<compile_context>
chip_gen: v5e
topology: v5e:2x2
jax: 0.10.0
libtpu: 0.0.40
codegen_flags: <defaults>
</compile_context>

<pallas_src>
from functools import partial

import numpy as np
import jax
import jax.numpy as jnp
from jax import lax
from jax.experimental import pallas as pl
from jax.experimental.pallas import tpu as pltpu

RS = 8  # conv output rows per strip (one f32 sublane tile)


# ---------------------------------------------------------------------------
# One-time weight layout prep (outside jit).
# ---------------------------------------------------------------------------
def _build_conv_matrices(w):
    """w: (Cout, Cin, 3, 3) -> A: (3, Cout*RS, (RS+2)*Cin) block-banded, with
    A[dx, co*RS + r, (r+dy)*Cin + ci] = w[co, ci, dy, dx] and zero elsewhere,
    so that for one 8-row strip of padded input flattened to ((RS+2)*Cin, W+2):
        conv_strip = sum_dx  A[dx] @ strip[:, dx:dx+W]        # (Cout*RS, W)
    """
    Cout, Cin, KH, KW = w.shape
    w = np.asarray(w, np.float32)
    Rin = RS + KH - 1
    A = np.zeros((KW, Cout * RS, Rin * Cin), np.float32)
    for dx in range(KW):
        for co in range(Cout):
            for r in range(RS):
                for dy in range(KH):
                    A[dx, co * RS + r,
                      (r + dy) * Cin:(r + dy) * Cin + Cin] = w[co, :, dy, dx]
    return A


def prepare_params(params, *, fc_tk=15872):
    conv1_A = _build_conv_matrices(np.asarray(params["conv1_w"]))
    conv2_A = _build_conv_matrices(np.asarray(params["conv2_w"]))
    conv1_bcol = np.repeat(np.asarray(params["conv1_b"], np.float32), RS)[:, None]
    conv2_bcol = np.repeat(np.asarray(params["conv2_b"], np.float32), RS)[:, None]

    # fc1 columns: torch flatten order is (c, h, w); the conv2 kernel output is
    # (h, c, w).  Permute once, transpose to (K, F1), zero-pad K to a multiple
    # of the FC K-tile, and cast to bf16 (weight-only quantization: the FC is
    # HBM-bound on this stream; accumulation stays f32 in-kernel).
    C2, H2, W2 = 32, 62, 62
    fc1_w = np.asarray(params["fc1_w"], np.float32)                  # (128, C2*H2*W2)
    F1 = fc1_w.shape[0]
    fc1_w = fc1_w.reshape(F1, C2, H2, W2).transpose(0, 2, 1, 3).reshape(F1, -1)
    K = fc1_w.shape[1]
    Kpad = ((K + fc_tk - 1) // fc_tk) * fc_tk
    fc1_wT = np.zeros((Kpad, F1), np.float32)
    fc1_wT[:K] = fc1_w.T
    return {
        "conv1_A": jnp.asarray(conv1_A),
        "conv1_bcol": jnp.asarray(conv1_bcol),
        "conv2_A": jnp.asarray(conv2_A),
        "conv2_bcol": jnp.asarray(conv2_bcol),
        "fc1_wT": jnp.asarray(fc1_wT, dtype=jnp.bfloat16),           # (Kpad, 128)
        "fc1_b": jnp.asarray(params["fc1_b"]),
        "fc2_wT": jnp.asarray(np.asarray(params["fc2_w"], np.float32).T),  # (128, 5)
        "fc2_b": jnp.asarray(params["fc2_b"]),
    }


# ---------------------------------------------------------------------------
# Fused Conv2d(3x3, stride=1, pad=1) -> ReLU -> MaxPool2d(2, 2).
# Layout: activations are (N, H, C, W); one grid step per sample.
# ---------------------------------------------------------------------------
def _conv_pool_kernel(x_ref, a_ref, b_ref, o_ref, *, Cin, Cout, W, n_strips):
    Wh = W // 2
    Kb = (RS + 2) * Cin

    # Width-pool 0/1 selection matrices (exact max), built once per sample and
    # hoisted out of the strip loop.
    src = lax.broadcasted_iota(jnp.int32, (W, Wh), 0)
    dst = lax.broadcasted_iota(jnp.int32, (W, Wh), 1)
    s0 = (src == 2 * dst).astype(jnp.float32)
    s1 = (src == 2 * dst + 1).astype(jnp.float32)

    @pl.loop(0, n_strips)
    def _strip(s):
        r0 = pl.multiple_of(s * RS * Cin, 8)
        blk = x_ref[0, pl.ds(r0, Kb), :]                       # ((RS+2)*Cin, W+2)

        # 3x3 conv as 3 MXU matmuls (one per horizontal tap dx); the
        # block-banded A matrices absorb the (Cin, dy) contraction and the
        # Cout fan-out.  Bias is a VPU broadcast-add.
        conv = (jnp.dot(a_ref[0], blk[:, 0:W], preferred_element_type=jnp.float32)
                + jnp.dot(a_ref[1], blk[:, 1:1 + W], preferred_element_type=jnp.float32)
                + jnp.dot(a_ref[2], blk[:, 2:2 + W], preferred_element_type=jnp.float32)
                + b_ref[...])                                  # (Cout*RS, W)
        act = jnp.maximum(conv, 0.0)                           # ReLU

        # 2x2 max pool: width via exact 0/1 selection matmuls (MXU), height via
        # pairwise max; one coalesced (RS//2, Cout, Wh) store per strip.
        cp = jnp.maximum(jnp.dot(act, s0, preferred_element_type=jnp.float32),
                         jnp.dot(act, s1, preferred_element_type=jnp.float32))
        cp = cp.reshape(Cout, RS, Wh)
        pooled = jnp.stack(
            [jnp.maximum(cp[:, 2 * p, :], cp[:, 2 * p + 1, :])
             for p in range(RS // 2)], axis=0)                 # (RS//2, Cout, Wh)
        o_ref[0, pl.ds(s * (RS // 2), RS // 2), :, :] = pooled


def conv3x3_relu_pool(x, a_mats, b_col):
    """x: (N, H, Cin, W) f32; a_mats: (3, Cout*RS, (RS+2)*Cin); b_col: (Cout*RS, 1).
    Returns (N, H//2, Cout, W//2) f32."""
    N, H, Cin, W = x.shape
    Cout = a_mats.shape[1] // RS
    assert H % 2 == 0 and W % 2 == 0
    Hc = pl.cdiv(H, RS) * RS                 # conv rows incl. bottom zero-padding
    n_strips = Hc // RS
    Wp, Wh, Hh, Hch = W + 2, W // 2, H // 2, Hc // 2

    # 1-pixel conv halo + extra zero rows at the bottom so Hc % 8 == 0, then
    # flatten (rows, channels) so each strip is one contiguous, 8-aligned slab.
    xp = jnp.pad(x, ((0, 0), (1, Hc - H + 1), (0, 0), (1, 1)))
    xp = xp.reshape(N, (Hc + 2) * Cin, Wp)

    out = pl.pallas_call(
        partial(_conv_pool_kernel, Cin=Cin, Cout=Cout, W=W, n_strips=n_strips),
        out_shape=jax.ShapeDtypeStruct((N, Hch, Cout, Wh), jnp.float32),
        grid=(N,),
        in_specs=[
            pl.BlockSpec((1, (Hc + 2) * Cin, Wp), lambda n: (n, 0, 0)),
            pl.BlockSpec((3, Cout * RS, (RS + 2) * Cin), lambda n: (0, 0, 0)),
            pl.BlockSpec((Cout * RS, 1), lambda n: (0, 0)),
        ],
        out_specs=pl.BlockSpec((1, Hch, Cout, Wh), lambda n: (n, 0, 0, 0)),
        compiler_params=pltpu.CompilerParams(dimension_semantics=("parallel",)),
    )(xp, a_mats, b_col)
    return out[:, :Hh, :, :]    # drop pooled rows from the bottom zero-padding


# ---------------------------------------------------------------------------
# FC head: relu(a @ w1t + b1) @ w2t + b2, huge K dim tiled on the grid.
# fc1 weights stream from HBM in bf16; accumulation is f32 in VMEM scratch.
# ---------------------------------------------------------------------------
def mlp_head(a, w1t, b1, w2t, b2, *, tk=15872):
    N, K = a.shape
    Kpad, F1 = w1t.shape
    F2 = w2t.shape[1]
    if Kpad != K:
        a = jnp.pad(a, ((0, 0), (0, Kpad - K)))     # padded rows of w1t are zero
    assert Kpad % tk == 0 and tk % 128 == 0
    nk = Kpad // tk

    def kernel(a_ref, w1_ref, b1_ref, w2_ref, b2_ref, o_ref, acc_ref):
        k = pl.program_id(0)

        @pl.when(k == 0)
        def _init():
            acc_ref[...] = jnp.zeros_like(acc_ref)

        # bf16 x bf16 MXU matmul with f32 accumulation; halves the dominant
        # HBM traffic (fc1 weight stream) relative to f32 weights.
        acc_ref[...] += jnp.dot(a_ref[...].astype(jnp.bfloat16), w1_ref[...],
                                preferred_element_type=jnp.float32)

        @pl.when(k == pl.num_programs(0) - 1)
        def _finish():
            h = jnp.maximum(acc_ref[...] + b1_ref[...], 0.0)            # fc1 + ReLU
            o_ref[...] = (jnp.dot(h, w2_ref[...],
                                  preferred_element_type=jnp.float32)
                          + b2_ref[...])                                # fc2

    return pl.pallas_call(
        kernel,
        out_shape=jax.ShapeDtypeStruct((N, F2), jnp.float32),
        grid=(nk,),
        in_specs=[
            pl.BlockSpec((N, tk), lambda k: (0, k)),
            pl.BlockSpec((tk, F1), lambda k: (k, 0)),   # pre-transposed bf16 fc1_w
            pl.BlockSpec((1, F1), lambda k: (0, 0)),
            pl.BlockSpec((F1, F2), lambda k: (0, 0)),
            pl.BlockSpec((1, F2), lambda k: (0, 0)),
        ],
        out_specs=pl.BlockSpec((N, F2), lambda k: (0, 0)),
        scratch_shapes=[pltpu.VMEM((N, F1), jnp.float32)],
        compiler_params=pltpu.CompilerParams(dimension_semantics=("arbitrary",)),
    )(a, w1t, b1.reshape(1, F1), w2t, b2.reshape(1, F2))


# ---------------------------------------------------------------------------
# Full forward.
# ---------------------------------------------------------------------------
@jax.jit
def emotion_cnn_forward(x, prep):
    # x: (N, 1, H, W) NCHW -> channels-middle (N, H, C, W) layout.
    xh = jnp.transpose(x, (0, 2, 1, 3))
    h = conv3x3_relu_pool(xh, prep["conv1_A"], prep["conv1_bcol"])   # (N, 124, 16, 124)
    h = conv3x3_relu_pool(h, prep["conv2_A"], prep["conv2_bcol"])    # (N,  62, 32,  62)
    flat = h.reshape(h.shape[0], -1)       # (h, c, w) order; fc1_wT permuted to match
    return mlp_head(flat, prep["fc1_wT"], prep["fc1_b"],
                    prep["fc2_wT"], prep["fc2_b"])


# ---------------------------------------------------------------------------
# Pure-JAX reference of PyTorch EmotionCNN.forward and parameter init.
# ---------------------------------------------------------------------------
@jax.jit
def reference_forward(x, params):
    hi = lax.Precision.HIGHEST

    def conv(x, w, b):
        y = lax.conv_general_dilated(
            x, w, window_strides=(1, 1), padding=((1, 1), (1, 1)),
            dimension_numbers=("NCHW", "OIHW", "NCHW"), precision=hi)
        return y + b[None, :, None, None]

    def pool(x):
        return lax.reduce_window(x, -jnp.inf, lax.max,
                                 (1, 1, 2, 2), (1, 1, 2, 2), "VALID")

    y = pool(jnp.maximum(conv(x, params["conv1_w"], params["conv1_b"]), 0.0))
    y = pool(jnp.maximum(conv(y, params["conv2_w"], params["conv2_b"]), 0.0))
    y = y.reshape(y.shape[0], -1)
    y = jnp.maximum(jnp.matmul(y, params["fc1_w"].T, precision=hi)
                    + params["fc1_b"], 0.0)
    return jnp.matmul(y, params["fc2_w"].T, precision=hi) + params["fc2_b"]


def init_params(key):
    ks = jax.random.split(key, 8)
    f32 = jnp.float32
    return {
        "conv1_w": 0.10 * jax.random.normal(ks[0], (16, 1, 3, 3), f32),
        "conv1_b": 0.10 * jax.random.normal(ks[1], (16,), f32),
        "conv2_w": 0.05 * jax.random.normal(ks[2], (32, 16, 3, 3), f32),
        "conv2_b": 0.10 * jax.random.normal(ks[3], (32,), f32),
        "fc1_w": 0.002 * jax.random.normal(ks[4], (128, 32 * 62 * 62), f32),
        "fc1_b": 0.10 * jax.random.normal(ks[5], (128,), f32),
        "fc2_w": 0.05 * jax.random.normal(ks[6], (5, 128), f32),
        "fc2_b": 0.10 * jax.random.normal(ks[7], (5,), f32),
    }


if __name__ == "__main__":
    key = jax.random.PRNGKey(0)
    pkey, xkey = jax.random.split(key)
    params = init_params(pkey)
    prep = prepare_params(params)     # one-time weight layout prep, outside jit
    # fc1 expects 32*62*62 features, which implies a 248x248 single-channel input.
    x = jax.random.normal(xkey, (2, 1, 248, 248), jnp.float32)

    out = jax.block_until_ready(emotion_cnn_forward(x, prep))
    assert out.shape == (2, 5)

    ref = jax.block_until_ready(reference_forward(x, params))
    np.testing.assert_allclose(np.asarray(out), np.asarray(ref), rtol=5e-3, atol=5e-3)

    print("KERNEL_OK")
</pallas_src>

<mosaic_0001>
module attributes {stable_mosaic.version = 11 : i64} {
  func.func @_conv_pool_kernel(%arg0: i32, %arg1: memref<1x250x250xf32, #tpu.memory_space<vmem>>, %arg2: memref<3x128x10xf32, #tpu.memory_space<vmem>>, %arg3: memref<128x1xf32, #tpu.memory_space<vmem>>, %arg4: memref<1x124x16x124xf32, #tpu.memory_space<vmem>>) attributes {dimension_semantics = [#tpu.dimension_semantics<parallel>], iteration_bounds = array<i64: 2>, scalar_prefetch = 0 : i64, scratch_operands = 0 : i64, tpu.core_type = #tpu.core_type<tc>, window_params = [{transform_indices = @transform_0, window_bounds = array<i64: 1, 250, 250>}, {pipeline_mode = #tpu.pipeline_mode<synchronous>, transform_indices = @transform_1, window_bounds = array<i64: 3, 128, 10>}, {pipeline_mode = #tpu.pipeline_mode<synchronous>, transform_indices = @transform_2, window_bounds = array<i64: 128, 1>}, {transform_indices = @transform_3, window_bounds = array<i64: 1, 124, 16, 124>}]} {
    %0 = tpu.iota {dimensions = array<i32: 0>} : vector<248x124xi32>
    %1 = tpu.iota {dimensions = array<i32: 1>} : vector<248x124xi32>
    %c2_i32 = arith.constant 2 : i32
    %2 = vector.broadcast %c2_i32 : i32 to vector<248x124xi32>
    %3 = arith.muli %2, %1 : vector<248x124xi32>
    %4 = arith.cmpi eq, %0, %3 : vector<248x124xi32>
    %5 = arith.extui %4 : vector<248x124xi1> to vector<248x124xi32>
    %6 = arith.sitofp %5 : vector<248x124xi32> to vector<248x124xf32>
    %c2_i32_0 = arith.constant 2 : i32
    %7 = vector.broadcast %c2_i32_0 : i32 to vector<248x124xi32>
    %8 = arith.muli %7, %1 : vector<248x124xi32>
    %c1_i32 = arith.constant 1 : i32
    %9 = vector.broadcast %c1_i32 : i32 to vector<248x124xi32>
    %10 = arith.addi %8, %9 : vector<248x124xi32>
    %11 = arith.cmpi eq, %0, %10 : vector<248x124xi32>
    %12 = arith.extui %11 : vector<248x124xi1> to vector<248x124xi32>
    %13 = arith.sitofp %12 : vector<248x124xi32> to vector<248x124xf32>
    %c0_i32 = arith.constant 0 : i32
    %c31_i32 = arith.constant 31 : i32
    %14 = arith.addi %c0_i32, %c31_i32 : i32
    %c1_i32_1 = arith.constant 1 : i32
    scf.for %arg5 = %c0_i32 to %14 step %c1_i32_1  : i32 {
      %c1_i32_3 = arith.constant 1 : i32
      %15 = arith.muli %arg5, %c1_i32_3 : i32
      %c0_i32_4 = arith.constant 0 : i32
      %16 = arith.addi %c0_i32_4, %15 : i32
      %c8_i32 = arith.constant 8 : i32
      %17 = arith.muli %16, %c8_i32 : i32
      %c1_i32_5 = arith.constant 1 : i32
      %18 = arith.muli %17, %c1_i32_5 : i32
      %19 = tpu.assume_multiple %18, 8 : i32
      %c0 = arith.constant 0 : index
      %20 = arith.index_cast %19 : i32 to index
      %c0_6 = arith.constant 0 : index
      %21 = vector.load %arg1[%c0, %20, %c0_6] : memref<1x250x250xf32, #tpu.memory_space<vmem>>, vector<1x10x250xf32>
      %22 = vector.shape_cast %21 : vector<1x10x250xf32> to vector<10x250xf32>
      %c0_7 = arith.constant 0 : index
      %c0_8 = arith.constant 0 : index
      %c0_9 = arith.constant 0 : index
      %23 = vector.load %arg2[%c0_7, %c0_8, %c0_9] : memref<3x128x10xf32, #tpu.memory_space<vmem>>, vector<1x128x10xf32>
      %24 = vector.shape_cast %23 : vector<1x128x10xf32> to vector<128x10xf32>
      %25 = vector.extract_strided_slice %22 {offsets = [0, 0], sizes = [10, 248], strides = [1, 1]} : vector<10x250xf32> to vector<10x248xf32>
      %cst = arith.constant dense<0.000000e+00> : vector<128x248xf32>
      %26 = tpu.matmul %24, %25, %cst {dimension_numbers = #tpu.dot_dimension_numbers<[1], [0], [0], [1], [0, 0, 1, 1], [], []>} : vector<128x10xf32>, vector<10x248xf32>, vector<128x248xf32> -> vector<128x248xf32>
      %c1 = arith.constant 1 : index
      %c0_10 = arith.constant 0 : index
      %c0_11 = arith.constant 0 : index
      %27 = vector.load %arg2[%c1, %c0_10, %c0_11] : memref<3x128x10xf32, #tpu.memory_space<vmem>>, vector<1x128x10xf32>
      %28 = vector.shape_cast %27 : vector<1x128x10xf32> to vector<128x10xf32>
      %29 = vector.extract_strided_slice %22 {offsets = [0, 1], sizes = [10, 248], strides = [1, 1]} : vector<10x250xf32> to vector<10x248xf32>
      %cst_12 = arith.constant dense<0.000000e+00> : vector<128x248xf32>
      %30 = tpu.matmul %28, %29, %cst_12 {dimension_numbers = #tpu.dot_dimension_numbers<[1], [0], [0], [1], [0, 0, 1, 1], [], []>} : vector<128x10xf32>, vector<10x248xf32>, vector<128x248xf32> -> vector<128x248xf32>
      %31 = arith.addf %26, %30 : vector<128x248xf32>
      %c2 = arith.constant 2 : index
      %c0_13 = arith.constant 0 : index
      %c0_14 = arith.constant 0 : index
      %32 = vector.load %arg2[%c2, %c0_13, %c0_14] : memref<3x128x10xf32, #tpu.memory_space<vmem>>, vector<1x128x10xf32>
      %33 = vector.shape_cast %32 : vector<1x128x10xf32> to vector<128x10xf32>
      %34 = vector.extract_strided_slice %22 {offsets = [0, 2], sizes = [10, 248], strides = [1, 1]} : vector<10x250xf32> to vector<10x248xf32>
      %cst_15 = arith.constant dense<0.000000e+00> : vector<128x248xf32>
      %35 = tpu.matmul %33, %34, %cst_15 {dimension_numbers = #tpu.dot_dimension_numbers<[1], [0], [0], [1], [0, 0, 1, 1], [], []>} : vector<128x10xf32>, vector<10x248xf32>, vector<128x248xf32> -> vector<128x248xf32>
      %36 = arith.addf %31, %35 : vector<128x248xf32>
      %c0_16 = arith.constant 0 : index
      %c0_17 = arith.constant 0 : index
      %37 = vector.load %arg3[%c0_16, %c0_17] : memref<128x1xf32, #tpu.memory_space<vmem>>, vector<128x1xf32>
      %38 = vector.broadcast %37 : vector<128x1xf32> to vector<128x248xf32>
      %39 = arith.addf %36, %38 : vector<128x248xf32>
      %cst_18 = arith.constant 0.000000e+00 : f32
      %40 = vector.broadcast %cst_18 : f32 to vector<128x248xf32>
      %41 = arith.maximumf %39, %40 : vector<128x248xf32>
      %cst_19 = arith.constant dense<0.000000e+00> : vector<128x124xf32>
      %42 = tpu.matmul %41, %6, %cst_19 {dimension_numbers = #tpu.dot_dimension_numbers<[1], [0], [0], [1], [0, 0, 1, 1], [], []>} : vector<128x248xf32>, vector<248x124xf32>, vector<128x124xf32> -> vector<128x124xf32>
      %cst_20 = arith.constant dense<0.000000e+00> : vector<128x124xf32>
      %43 = tpu.matmul %41, %13, %cst_20 {dimension_numbers = #tpu.dot_dimension_numbers<[1], [0], [0], [1], [0, 0, 1, 1], [], []>} : vector<128x248xf32>, vector<248x124xf32>, vector<128x124xf32> -> vector<128x124xf32>
      %44 = arith.maximumf %42, %43 : vector<128x124xf32>
      %45 = vector.shape_cast %44 : vector<128x124xf32> to vector<16x8x124xf32>
      %46 = vector.extract_strided_slice %45 {offsets = [0, 0, 0], sizes = [16, 1, 124], strides = [1, 1, 1]} : vector<16x8x124xf32> to vector<16x1x124xf32>
      %47 = vector.shape_cast %46 : vector<16x1x124xf32> to vector<16x124xf32>
      %48 = vector.extract_strided_slice %45 {offsets = [0, 1, 0], sizes = [16, 1, 124], strides = [1, 1, 1]} : vector<16x8x124xf32> to vector<16x1x124xf32>
      %49 = vector.shape_cast %48 : vector<16x1x124xf32> to vector<16x124xf32>
      %50 = arith.maximumf %47, %49 : vector<16x124xf32>
      %51 = vector.extract_strided_slice %45 {offsets = [0, 2, 0], sizes = [16, 1, 124], strides = [1, 1, 1]} : vector<16x8x124xf32> to vector<16x1x124xf32>
      %52 = vector.shape_cast %51 : vector<16x1x124xf32> to vector<16x124xf32>
      %53 = vector.extract_strided_slice %45 {offsets = [0, 3, 0], sizes = [16, 1, 124], strides = [1, 1, 1]} : vector<16x8x124xf32> to vector<16x1x124xf32>
      %54 = vector.shape_cast %53 : vector<16x1x124xf32> to vector<16x124xf32>
      %55 = arith.maximumf %52, %54 : vector<16x124xf32>
      %56 = vector.extract_strided_slice %45 {offsets = [0, 4, 0], sizes = [16, 1, 124], strides = [1, 1, 1]} : vector<16x8x124xf32> to vector<16x1x124xf32>
      %57 = vector.shape_cast %56 : vector<16x1x124xf32> to vector<16x124xf32>
      %58 = vector.extract_strided_slice %45 {offsets = [0, 5, 0], sizes = [16, 1, 124], strides = [1, 1, 1]} : vector<16x8x124xf32> to vector<16x1x124xf32>
      %59 = vector.shape_cast %58 : vector<16x1x124xf32> to vector<16x124xf32>
      %60 = arith.maximumf %57, %59 : vector<16x124xf32>
      %61 = vector.extract_strided_slice %45 {offsets = [0, 6, 0], sizes = [16, 1, 124], strides = [1, 1, 1]} : vector<16x8x124xf32> to vector<16x1x124xf32>
      %62 = vector.shape_cast %61 : vector<16x1x124xf32> to vector<16x124xf32>
      %63 = vector.extract_strided_slice %45 {offsets = [0, 7, 0], sizes = [16, 1, 124], strides = [1, 1, 1]} : vector<16x8x124xf32> to vector<16x1x124xf32>
      %64 = vector.shape_cast %63 : vector<16x1x124xf32> to vector<16x124xf32>
      %65 = arith.maximumf %62, %64 : vector<16x124xf32>
      %66 = vector.shape_cast %50 : vector<16x124xf32> to vector<1x16x124xf32>
      %67 = vector.shape_cast %55 : vector<16x124xf32> to vector<1x16x124xf32>
      %68 = vector.shape_cast %60 : vector<16x124xf32> to vector<1x16x124xf32>
      %69 = vector.shape_cast %65 : vector<16x124xf32> to vector<1x16x124xf32>
      %70 = tpu.concatenate %66, %67, %68, %69 in 0 : vector<1x16x124xf32>, vector<1x16x124xf32>, vector<1x16x124xf32>, vector<1x16x124xf32> -> vector<4x16x124xf32>
      %c4_i32 = arith.constant 4 : i32
      %71 = arith.muli %16, %c4_i32 : i32
      %c0_21 = arith.constant 0 : index
      %72 = arith.index_cast %71 : i32 to index
      %c0_22 = arith.constant 0 : index
      %c0_23 = arith.constant 0 : index
      %73 = vector.load %arg4[%c0_21, %72, %c0_22, %c0_23] : memref<1x124x16x124xf32, #tpu.memory_space<vmem>>, vector<1x4x16x124xf32>
      %74 = vector.shape_cast %73 : vector<1x4x16x124xf32> to vector<4x16x124xf32>
      %75 = vector.shape_cast %70 : vector<4x16x124xf32> to vector<1x4x16x124xf32>
      tpu.vector_store %arg4[%c0_21, %72, %c0_22, %c0_23], %75 {strides = array<i32>} : memref<1x124x16x124xf32, #tpu.memory_space<vmem>>, vector<1x4x16x124xf32>,
    }
    %c31_i32_2 = arith.constant 31 : i32
    return
  }
  func.func @transform_0(%arg0: i32) -> (i32, i32, i32) {
    %c0_i32 = arith.constant 0 : i32
    %c0_i32_0 = arith.constant 0 : i32
    %c0_i32_1 = arith.constant 0 : i32
    return %arg0, %c0_i32, %c0_i32_0 : i32, i32, i32
  }
  func.func @transform_1(%arg0: i32) -> (i32, i32, i32) {
    %c0_i32 = arith.constant 0 : i32
    %c0_i32_0 = arith.constant 0 : i32
    %c0_i32_1 = arith.constant 0 : i32
    %c0_i32_2 = arith.constant 0 : i32
    return %c0_i32, %c0_i32_0, %c0_i32_1 : i32, i32, i32
  }
  func.func @transform_2(%arg0: i32) -> (i32, i32) {
    %c0_i32 = arith.constant 0 : i32
    %c0_i32_0 = arith.constant 0 : i32
    %c0_i32_1 = arith.constant 0 : i32
    return %c0_i32, %c0_i32_0 : i32, i32
  }
  func.func @transform_3(%arg0: i32) -> (i32, i32, i32, i32) {
    %c0_i32 = arith.constant 0 : i32
    %c0_i32_0 = arith.constant 0 : i32
    %c0_i32_1 = arith.constant 0 : i32
    %c0_i32_2 = arith.constant 0 : i32
    return %arg0, %c0_i32, %c0_i32_0, %c0_i32_1 : i32, i32, i32, i32
  }
}

module attributes {stable_mosaic.version = 11 : i64} {
  func.func @_conv_pool_kernel(%arg0: i32, %arg1: memref<1x2080x126xf32, #tpu.memory_space<vmem>>, %arg2: memref<3x256x160xf32, #tpu.memory_space<vmem>>, %arg3: memref<256x1xf32, #tpu.memory_space<vmem>>, %arg4: memref<1x64x32x62xf32, #tpu.memory_space<vmem>>) attributes {dimension_semantics = [#tpu.dimension_semantics<parallel>], iteration_bounds = array<i64: 2>, scalar_prefetch = 0 : i64, scratch_operands = 0 : i64, tpu.core_type = #tpu.core_type<tc>, window_params = [{transform_indices = @transform_0, window_bounds = array<i64: 1, 2080, 126>}, {pipeline_mode = #tpu.pipeline_mode<synchronous>, transform_indices = @transform_1, window_bounds = array<i64: 3, 256, 160>}, {pipeline_mode = #tpu.pipeline_mode<synchronous>, transform_indices = @transform_2, window_bounds = array<i64: 256, 1>}, {transform_indices = @transform_3, window_bounds = array<i64: 1, 64, 32, 62>}]} {
    %0 = tpu.iota {dimensions = array<i32: 0>} : vector<124x62xi32>
    %1 = tpu.iota {dimensions = array<i32: 1>} : vector<124x62xi32>
    %c2_i32 = arith.constant 2 : i32
    %2 = vector.broadcast %c2_i32 : i32 to vector<124x62xi32>
    %3 = arith.muli %2, %1 : vector<124x62xi32>
    %4 = arith.cmpi eq, %0, %3 : vector<124x62xi32>
    %5 = arith.extui %4 : vector<124x62xi1> to vector<124x62xi32>
    %6 = arith.sitofp %5 : vector<124x62xi32> to vector<124x62xf32>
    %c2_i32_0 = arith.constant 2 : i32
    %7 = vector.broadcast %c2_i32_0 : i32 to vector<124x62xi32>
    %8 = arith.muli %7, %1 : vector<124x62xi32>
    %c1_i32 = arith.constant 1 : i32
    %9 = vector.broadcast %c1_i32 : i32 to vector<124x62xi32>
    %10 = arith.addi %8, %9 : vector<124x62xi32>
    %11 = arith.cmpi eq, %0, %10 : vector<124x62xi32>
    %12 = arith.extui %11 : vector<124x62xi1> to vector<124x62xi32>
    %13 = arith.sitofp %12 : vector<124x62xi32> to vector<124x62xf32>
    %c0_i32 = arith.constant 0 : i32
    %c16_i32 = arith.constant 16 : i32
    %14 = arith.addi %c0_i32, %c16_i32 : i32
    %c1_i32_1 = arith.constant 1 : i32
    scf.for %arg5 = %c0_i32 to %14 step %c1_i32_1  : i32 {
      %c1_i32_3 = arith.constant 1 : i32
      %15 = arith.muli %arg5, %c1_i32_3 : i32
      %c0_i32_4 = arith.constant 0 : i32
      %16 = arith.addi %c0_i32_4, %15 : i32
      %c8_i32 = arith.constant 8 : i32
      %17 = arith.muli %16, %c8_i32 : i32
      %c16_i32_5 = arith.constant 16 : i32
      %18 = arith.muli %17, %c16_i32_5 : i32
      %19 = tpu.assume_multiple %18, 8 : i32
      %c0 = arith.constant 0 : index
      %20 = arith.index_cast %19 : i32 to index
      %c0_6 = arith.constant 0 : index
      %21 = vector.load %arg1[%c0, %20, %c0_6] : memref<1x2080x126xf32, #tpu.memory_space<vmem>>, vector<1x160x126xf32>
      %22 = vector.shape_cast %21 : vector<1x160x126xf32> to vector<160x126xf32>
      %c0_7 = arith.constant 0 : index
      %c0_8 = arith.constant 0 : index
      %c0_9 = arith.constant 0 : index
      %23 = vector.load %arg2[%c0_7, %c0_8, %c0_9] : memref<3x256x160xf32, #tpu.memory_space<vmem>>, vector<1x256x160xf32>
      %24 = vector.shape_cast %23 : vector<1x256x160xf32> to vector<256x160xf32>
      %25 = vector.extract_strided_slice %22 {offsets = [0, 0], sizes = [160, 124], strides = [1, 1]} : vector<160x126xf32> to vector<160x124xf32>
      %cst = arith.constant dense<0.000000e+00> : vector<256x124xf32>
      %26 = tpu.matmul %24, %25, %cst {dimension_numbers = #tpu.dot_dimension_numbers<[1], [0], [0], [1], [0, 0, 1, 1], [], []>} : vector<256x160xf32>, vector<160x124xf32>, vector<256x124xf32> -> vector<256x124xf32>
      %c1 = arith.constant 1 : index
      %c0_10 = arith.constant 0 : index
      %c0_11 = arith.constant 0 : index
      %27 = vector.load %arg2[%c1, %c0_10, %c0_11] : memref<3x256x160xf32, #tpu.memory_space<vmem>>, vector<1x256x160xf32>
      %28 = vector.shape_cast %27 : vector<1x256x160xf32> to vector<256x160xf32>
      %29 = vector.extract_strided_slice %22 {offsets = [0, 1], sizes = [160, 124], strides = [1, 1]} : vector<160x126xf32> to vector<160x124xf32>
      %cst_12 = arith.constant dense<0.000000e+00> : vector<256x124xf32>
      %30 = tpu.matmul %28, %29, %cst_12 {dimension_numbers = #tpu.dot_dimension_numbers<[1], [0], [0], [1], [0, 0, 1, 1], [], []>} : vector<256x160xf32>, vector<160x124xf32>, vector<256x124xf32> -> vector<256x124xf32>
      %31 = arith.addf %26, %30 : vector<256x124xf32>
      %c2 = arith.constant 2 : index
      %c0_13 = arith.constant 0 : index
      %c0_14 = arith.constant 0 : index
      %32 = vector.load %arg2[%c2, %c0_13, %c0_14] : memref<3x256x160xf32, #tpu.memory_space<vmem>>, vector<1x256x160xf32>
      %33 = vector.shape_cast %32 : vector<1x256x160xf32> to vector<256x160xf32>
      %34 = vector.extract_strided_slice %22 {offsets = [0, 2], sizes = [160, 124], strides = [1, 1]} : vector<160x126xf32> to vector<160x124xf32>
      %cst_15 = arith.constant dense<0.000000e+00> : vector<256x124xf32>
      %35 = tpu.matmul %33, %34, %cst_15 {dimension_numbers = #tpu.dot_dimension_numbers<[1], [0], [0], [1], [0, 0, 1, 1], [], []>} : vector<256x160xf32>, vector<160x124xf32>, vector<256x124xf32> -> vector<256x124xf32>
      %36 = arith.addf %31, %35 : vector<256x124xf32>
      %c0_16 = arith.constant 0 : index
      %c0_17 = arith.constant 0 : index
      %37 = vector.load %arg3[%c0_16, %c0_17] : memref<256x1xf32, #tpu.memory_space<vmem>>, vector<256x1xf32>
      %38 = vector.broadcast %37 : vector<256x1xf32> to vector<256x124xf32>
      %39 = arith.addf %36, %38 : vector<256x124xf32>
      %cst_18 = arith.constant 0.000000e+00 : f32
      %40 = vector.broadcast %cst_18 : f32 to vector<256x124xf32>
      %41 = arith.maximumf %39, %40 : vector<256x124xf32>
      %cst_19 = arith.constant dense<0.000000e+00> : vector<256x62xf32>
      %42 = tpu.matmul %41, %6, %cst_19 {dimension_numbers = #tpu.dot_dimension_numbers<[1], [0], [0], [1], [0, 0, 1, 1], [], []>} : vector<256x124xf32>, vector<124x62xf32>, vector<256x62xf32> -> vector<256x62xf32>
      %cst_20 = arith.constant dense<0.000000e+00> : vector<256x62xf32>
      %43 = tpu.matmul %41, %13, %cst_20 {dimension_numbers = #tpu.dot_dimension_numbers<[1], [0], [0], [1], [0, 0, 1, 1], [], []>} : vector<256x124xf32>, vector<124x62xf32>, vector<256x62xf32> -> vector<256x62xf32>
      %44 = arith.maximumf %42, %43 : vector<256x62xf32>
      %45 = vector.shape_cast %44 : vector<256x62xf32> to vector<32x8x62xf32>
      %46 = vector.extract_strided_slice %45 {offsets = [0, 0, 0], sizes = [32, 1, 62], strides = [1, 1, 1]} : vector<32x8x62xf32> to vector<32x1x62xf32>
      %47 = vector.shape_cast %46 : vector<32x1x62xf32> to vector<32x62xf32>
      %48 = vector.extract_strided_slice %45 {offsets = [0, 1, 0], sizes = [32, 1, 62], strides = [1, 1, 1]} : vector<32x8x62xf32> to vector<32x1x62xf32>
      %49 = vector.shape_cast %48 : vector<32x1x62xf32> to vector<32x62xf32>
      %50 = arith.maximumf %47, %49 : vector<32x62xf32>
      %51 = vector.extract_strided_slice %45 {offsets = [0, 2, 0], sizes = [32, 1, 62], strides = [1, 1, 1]} : vector<32x8x62xf32> to vector<32x1x62xf32>
      %52 = vector.shape_cast %51 : vector<32x1x62xf32> to vector<32x62xf32>
      %53 = vector.extract_strided_slice %45 {offsets = [0, 3, 0], sizes = [32, 1, 62], strides = [1, 1, 1]} : vector<32x8x62xf32> to vector<32x1x62xf32>
      %54 = vector.shape_cast %53 : vector<32x1x62xf32> to vector<32x62xf32>
      %55 = arith.maximumf %52, %54 : vector<32x62xf32>
      %56 = vector.extract_strided_slice %45 {offsets = [0, 4, 0], sizes = [32, 1, 62], strides = [1, 1, 1]} : vector<32x8x62xf32> to vector<32x1x62xf32>
      %57 = vector.shape_cast %56 : vector<32x1x62xf32> to vector<32x62xf32>
      %58 = vector.extract_strided_slice %45 {offsets = [0, 5, 0], sizes = [32, 1, 62], strides = [1, 1, 1]} : vector<32x8x62xf32> to vector<32x1x62xf32>
      %59 = vector.shape_cast %58 : vector<32x1x62xf32> to vector<32x62xf32>
      %60 = arith.maximumf %57, %59 : vector<32x62xf32>
      %61 = vector.extract_strided_slice %45 {offsets = [0, 6, 0], sizes = [32, 1, 62], strides = [1, 1, 1]} : vector<32x8x62xf32> to vector<32x1x62xf32>
      %62 = vector.shape_cast %61 : vector<32x1x62xf32> to vector<32x62xf32>
      %63 = vector.extract_strided_slice %45 {offsets = [0, 7, 0], sizes = [32, 1, 62], strides = [1, 1, 1]} : vector<32x8x62xf32> to vector<32x1x62xf32>
      %64 = vector.shape_cast %63 : vector<32x1x62xf32> to vector<32x62xf32>
      %65 = arith.maximumf %62, %64 : vector<32x62xf32>
      %66 = vector.shape_cast %50 : vector<32x62xf32> to vector<1x32x62xf32>
      %67 = vector.shape_cast %55 : vector<32x62xf32> to vector<1x32x62xf32>
      %68 = vector.shape_cast %60 : vector<32x62xf32> to vector<1x32x62xf32>
      %69 = vector.shape_cast %65 : vector<32x62xf32> to vector<1x32x62xf32>
      %70 = tpu.concatenate %66, %67, %68, %69 in 0 : vector<1x32x62xf32>, vector<1x32x62xf32>, vector<1x32x62xf32>, vector<1x32x62xf32> -> vector<4x32x62xf32>
      %c4_i32 = arith.constant 4 : i32
      %71 = arith.muli %16, %c4_i32 : i32
      %c0_21 = arith.constant 0 : index
      %72 = arith.index_cast %71 : i32 to index
      %c0_22 = arith.constant 0 : index
      %c0_23 = arith.constant 0 : index
      %73 = vector.load %arg4[%c0_21, %72, %c0_22, %c0_23] : memref<1x64x32x62xf32, #tpu.memory_space<vmem>>, vector<1x4x32x62xf32>
      %74 = vector.shape_cast %73 : vector<1x4x32x62xf32> to vector<4x32x62xf32>
      %75 = vector.shape_cast %70 : vector<4x32x62xf32> to vector<1x4x32x62xf32>
      tpu.vector_store %arg4[%c0_21, %72, %c0_22, %c0_23], %75 {strides = array<i32>} : memref<1x64x32x62xf32, #tpu.memory_space<vmem>>, vector<1x4x32x62xf32>,
    }
    %c16_i32_2 = arith.constant 16 : i32
    return
  }
  func.func @transform_0(%arg0: i32) -> (i32, i32, i32) {
    %c0_i32 = arith.constant 0 : i32
    %c0_i32_0 = arith.constant 0 : i32
    %c0_i32_1 = arith.constant 0 : i32
    return %arg0, %c0_i32, %c0_i32_0 : i32, i32, i32
  }
  func.func @transform_1(%arg0: i32) -> (i32, i32, i32) {
    %c0_i32 = arith.constant 0 : i32
    %c0_i32_0 = arith.constant 0 : i32
    %c0_i32_1 = arith.constant 0 : i32
    %c0_i32_2 = arith.constant 0 : i32
    return %c0_i32, %c0_i32_0, %c0_i32_1 : i32, i32, i32
  }
  func.func @transform_2(%arg0: i32) -> (i32, i32) {
    %c0_i32 = arith.constant 0 : i32
    %c0_i32_0 = arith.constant 0 : i32
    %c0_i32_1 = arith.constant 0 : i32
    return %c0_i32, %c0_i32_0 : i32, i32
  }
  func.func @transform_3(%arg0: i32) -> (i32, i32, i32, i32) {
    %c0_i32 = arith.constant 0 : i32
    %c0_i32_0 = arith.constant 0 : i32
    %c0_i32_1 = arith.constant 0 : i32
    %c0_i32_2 = arith.constant 0 : i32
    return %arg0, %c0_i32, %c0_i32_0, %c0_i32_1 : i32, i32, i32, i32
  }
}

module attributes {stable_mosaic.version = 11 : i64} {
  func.func @kernel(%arg0: i32, %arg1: memref<2x15872xf32, #tpu.memory_space<vmem>>, %arg2: memref<15872x128xbf16, #tpu.memory_space<vmem>>, %arg3: memref<1x128xf32, #tpu.memory_space<vmem>>, %arg4: memref<128x5xf32, #tpu.memory_space<vmem>>, %arg5: memref<1x5xf32, #tpu.memory_space<vmem>>, %arg6: memref<2x5xf32, #tpu.memory_space<vmem>>, %arg7: memref<2x128xf32, #tpu.memory_space<vmem>>) attributes {dimension_semantics = [#tpu.dimension_semantics<arbitrary>], iteration_bounds = array<i64: 8>, scalar_prefetch = 0 : i64, scratch_operands = 1 : i64, tpu.core_type = #tpu.core_type<tc>, window_params = [{transform_indices = @transform_0, window_bounds = array<i64: 2, 15872>}, {transform_indices = @transform_1, window_bounds = array<i64: 15872, 128>}, {pipeline_mode = #tpu.pipeline_mode<synchronous>, transform_indices = @transform_2, window_bounds = array<i64: 1, 128>}, {pipeline_mode = #tpu.pipeline_mode<synchronous>, transform_indices = @transform_3, window_bounds = array<i64: 128, 5>}, {pipeline_mode = #tpu.pipeline_mode<synchronous>, transform_indices = @transform_4, window_bounds = array<i64: 1, 5>}, {pipeline_mode = #tpu.pipeline_mode<synchronous>, transform_indices = @transform_5, window_bounds = array<i64: 2, 5>}]} {
    %c0_i32 = arith.constant 0 : i32
    %0 = arith.cmpi eq, %arg0, %c0_i32 : i32
    %1 = arith.extui %0 : i1 to i32
    %c0_i32_0 = arith.constant 0 : i32
    %2 = arith.cmpi ne, %1, %c0_i32_0 : i32
    scf.if %2 {
      %cst_9 = arith.constant 0.000000e+00 : f32
      %13 = vector.broadcast %cst_9 : f32 to vector<2x128xf32>
      %c0_10 = arith.constant 0 : index
      %c0_11 = arith.constant 0 : index
      %14 = vector.load %arg7[%c0_10, %c0_11] : memref<2x128xf32, #tpu.memory_space<vmem>>, vector<2x128xf32>
      tpu.vector_store %arg7[%c0_10, %c0_11], %13 {strides = array<i32>} : memref<2x128xf32, #tpu.memory_space<vmem>>, vector<2x128xf32>,
    } else {
    }
    %c0 = arith.constant 0 : index
    %c0_1 = arith.constant 0 : index
    %3 = vector.load %arg7[%c0, %c0_1] : memref<2x128xf32, #tpu.memory_space<vmem>>, vector<2x128xf32>
    %c0_2 = arith.constant 0 : index
    %c0_3 = arith.constant 0 : index
    %4 = vector.load %arg1[%c0_2, %c0_3] : memref<2x15872xf32, #tpu.memory_space<vmem>>, vector<2x15872xf32>
    %5 = arith.truncf %4 : vector<2x15872xf32> to vector<2x15872xbf16>
    %c0_4 = arith.constant 0 : index
    %c0_5 = arith.constant 0 : index
    %6 = vector.load %arg2[%c0_4, %c0_5] : memref<15872x128xbf16, #tpu.memory_space<vmem>>, vector<15872x128xbf16>
    %cst = arith.constant dense<0.000000e+00> : vector<2x128xf32>
    %7 = tpu.matmul %5, %6, %cst {dimension_numbers = #tpu.dot_dimension_numbers<[1], [0], [0], [1], [0, 0, 1, 1], [], []>} : vector<2x15872xbf16>, vector<15872x128xbf16>, vector<2x128xf32> -> vector<2x128xf32>
    %8 = arith.addf %3, %7 : vector<2x128xf32>
    %c0_6 = arith.constant 0 : index
    %c0_7 = arith.constant 0 : index
    %9 = vector.load %arg7[%c0_6, %c0_7] : memref<2x128xf32, #tpu.memory_space<vmem>>, vector<2x128xf32>
    tpu.vector_store %arg7[%c0_6, %c0_7], %8 {strides = array<i32>} : memref<2x128xf32, #tpu.memory_space<vmem>>, vector<2x128xf32>,
    %c7_i32 = arith.constant 7 : i32
    %10 = arith.cmpi eq, %arg0, %c7_i32 : i32
    %11 = arith.extui %10 : i1 to i32
    %c0_i32_8 = arith.constant 0 : i32
    %12 = arith.cmpi ne, %11, %c0_i32_8 : i32
    scf.if %12 {
      %c0_9 = arith.constant 0 : index
      %c0_10 = arith.constant 0 : index
      %13 = vector.load %arg7[%c0_9, %c0_10] : memref<2x128xf32, #tpu.memory_space<vmem>>, vector<2x128xf32>
      %c0_11 = arith.constant 0 : index
      %c0_12 = arith.constant 0 : index
      %14 = vector.load %arg3[%c0_11, %c0_12] : memref<1x128xf32, #tpu.memory_space<vmem>>, vector<1x128xf32>
      %15 = vector.broadcast %14 : vector<1x128xf32> to vector<2x128xf32>
      %16 = arith.addf %13, %15 : vector<2x128xf32>
      %cst_13 = arith.constant 0.000000e+00 : f32
      %17 = vector.broadcast %cst_13 : f32 to vector<2x128xf32>
      %18 = arith.maximumf %16, %17 : vector<2x128xf32>
      %c0_14 = arith.constant 0 : index
      %c0_15 = arith.constant 0 : index
      %19 = vector.load %arg4[%c0_14, %c0_15] : memref<128x5xf32, #tpu.memory_space<vmem>>, vector<128x5xf32>
      %cst_16 = arith.constant dense<0.000000e+00> : vector<2x5xf32>
      %20 = tpu.matmul %18, %19, %cst_16 {dimension_numbers = #tpu.dot_dimension_numbers<[1], [0], [0], [1], [0, 0, 1, 1], [], []>} : vector<2x128xf32>, vector<128x5xf32>, vector<2x5xf32> -> vector<2x5xf32>
      %c0_17 = arith.constant 0 : index
      %c0_18 = arith.constant 0 : index
      %21 = vector.load %arg5[%c0_17, %c0_18] : memref<1x5xf32, #tpu.memory_space<vmem>>, vector<1x5xf32>
      %22 = vector.broadcast %21 : vector<1x5xf32> to vector<2x5xf32>
      %23 = arith.addf %20, %22 : vector<2x5xf32>
      %c0_19 = arith.constant 0 : index
      %c0_20 = arith.constant 0 : index
      %24 = vector.load %arg6[%c0_19, %c0_20] : memref<2x5xf32, #tpu.memory_space<vmem>>, vector<2x5xf32>
      tpu.vector_store %arg6[%c0_19, %c0_20], %23 {strides = array<i32>} : memref<2x5xf32, #tpu.memory_space<vmem>>, vector<2x5xf32>,
    } else {
    }
    return
  }
  func.func @transform_0(%arg0: i32) -> (i32, i32) {
    %c0_i32 = arith.constant 0 : i32
    %c0_i32_0 = arith.constant 0 : i32
    return %c0_i32, %arg0 : i32, i32
  }
  func.func @transform_1(%arg0: i32) -> (i32, i32) {
    %c0_i32 = arith.constant 0 : i32
    %c0_i32_0 = arith.constant 0 : i32
    return %arg0, %c0_i32 : i32, i32
  }
  func.func @transform_2(%arg0: i32) -> (i32, i32) {
    %c0_i32 = arith.constant 0 : i32
    %c0_i32_0 = arith.constant 0 : i32
    %c0_i32_1 = arith.constant 0 : i32
    return %c0_i32, %c0_i32_0 : i32, i32
  }
  func.func @transform_3(%arg0: i32) -> (i32, i32) {
    %c0_i32 = arith.constant 0 : i32
    %c0_i32_0 = arith.constant 0 : i32
    %c0_i32_1 = arith.constant 0 : i32
    return %c0_i32, %c0_i32_0 : i32, i32
  }
  func.func @transform_4(%arg0: i32) -> (i32, i32) {
    %c0_i32 = arith.constant 0 : i32
    %c0_i32_0 = arith.constant 0 : i32
    %c0_i32_1 = arith.constant 0 : i32
    return %c0_i32, %c0_i32_0 : i32, i32
  }
  func.func @transform_5(%arg0: i32) -> (i32, i32) {
    %c0_i32 = arith.constant 0 : i32
    %c0_i32_0 = arith.constant 0 : i32
    %c0_i32_1 = arith.constant 0 : i32
    return %c0_i32, %c0_i32_0 : i32, i32
  }
}

</mosaic_0001>

<bundles_post_ra>
// kernel: emotion_cnn_forward.3
= control target key start
LH: loop header
LB: loop body
LE: loop exit
PB: predicated region body
PF: predicated region fallthrough
CT: control target
= control target key end

     0   :  { %s2301_s12 = smov 0   ;;  %s3309_s0 = inlined_call_operand.vmem [shape: f32[2,250,250], index: 0, kind: input, shape index: {}]   ;;  %s3310_s1 = inlined_call_operand.vmem [shape: f32[3,128,10], index: 1, kind: input, shape index: {}]   ;;  %s3311_s2 = inlined_call_operand.vmem [shape: f32[128,1], index: 2, kind: input, shape index: {}]   ;;  %s3312_s3 = inlined_call_operand.vmem [shape: f32[2,124,16,124], index: 3, kind: output, shape index: {}]  }
   0x1 LB: > { %s1879_s13 = sadd.s32 4294967295, %s2271_s12   ;;  %p1883_p0 = scmp.ge.s32.totalorder %s2271_s12, 1  ;;  %s2271_s12 = sphi %s2301_s12, %s13_s12  }
   0x2   : > { %p137_p1 = scmp.lt.s32.totalorder %s2271_s12, 3 }
   0x4   : > { %p138_p2 = pnand %p1883_p0, %p137_p1 }
   0x5   : > { %p161_p3 = scmp.lt.s32.totalorder (!%p138_p2), %s1879_s13, 1  ;;  %s2540_s22 = smov (!%p138_p2), 0  }
   0x6   : > { %141 = sbr.rel (%p138_p2) target bundleno = 642 (0x282), region = 32 }
   0xb   : > { %v171_v0 = vlaneseq  ;;  %s3448_s13 = smov (!%p161_p3, %s1879_s13), 1 }
   0xc   : > { %s2220_s14 = sshll.u32 %s3448_s13, 9  ;;  %s2227_s15 = smul.u32 1984, %s3448_s13 }
   0xd   : > { %v2309_v1 = vshrl.u32 %v171_v0, 7  ;;  %s2314_s18 = scalar_lea.vmem %s3309_s0, %s2220_s14  ;;  %v204_v5 = vand.u32 127, %v171_v0 }
   0xe   : > { %s2328_s21 = scalar_lea.vmem %s3312_s3, %s2227_s15 }
   0xf   : > { %3353 = vst [vmem:[#allocation2_spill] sm:$0xff] %v2309_v1  ;;  %v2317_v2 = vadd.s32 8, %v2309_v1  ;;  %v2320_v3 = vadd.s32 16, %v2309_v1  ;;  %v2323_v4 = vadd.s32 24, %v2309_v1  ;;  %v2331_v6 = vadd.s32 32, %v2309_v1 }
  0x10   : > { %v2334_v7 = vadd.s32 40, %v2309_v1  ;;  %v2337_v8 = vadd.s32 48, %v2309_v1  ;;  %v2340_v9 = vadd.s32 56, %v2309_v1  ;;  %v2343_v10 = vadd.s32 64, %v2309_v1 }
  0x11   : > { %3354 = vst [vmem:[#allocation3_spill] sm:$0xff] %v2317_v2  ;;  %v2346_v11 = vadd.s32 72, %v2309_v1  ;;  %v2349_v12 = vadd.s32 80, %v2309_v1  ;;  %v2352_v13 = vadd.s32 88, %v2309_v1  ;;  %v2355_v14 = vadd.s32 96, %v2309_v1 }
  0x12   : > { %3355 = vst [vmem:[#allocation4_spill] sm:$0xff] %v2320_v3  ;;  %v2358_v15 = vadd.s32 104, %v2309_v1  ;;  %v2361_v16 = vadd.s32 112, %v2309_v1  ;;  %v2364_v17 = vadd.s32 120, %v2309_v1  ;;  %v2367_v18 = vadd.s32 128, %v2309_v1 }
  0x13   : > { %3356 = vst [vmem:[#allocation5_spill] sm:$0xff] %v2323_v4  ;;  %v2370_v19 = vadd.s32 136, %v2309_v1  ;;  %v2373_v20 = vadd.s32 144, %v2309_v1  ;;  %v2376_v21 = vadd.s32 152, %v2309_v1  ;;  %v2379_v22 = vadd.s32 160, %v2309_v1 }
  0x14   : > { %3357 = vst [vmem:[#allocation6_spill] sm:$0xff] %v2331_v6  ;;  %v2382_v23 = vadd.s32 168, %v2309_v1  ;;  %v2385_v24 = vadd.s32 176, %v2309_v1  ;;  %v2388_v25 = vadd.s32 184, %v2309_v1  ;;  %v2391_v26 = vadd.s32 192, %v2309_v1 }
  0x15   : > { %3358 = vst [vmem:[#allocation7_spill] sm:$0xff] %v2334_v7  ;;  %v2394_v27 = vadd.s32 200, %v2309_v1  ;;  %v2397_v28 = vadd.s32 208, %v2309_v1  ;;  %v2399_v29 = vmul.u32 2, %v204_v5  ;;  %v2402_v30 = vadd.s32 216, %v2309_v1 }
  0x16   : > { %3359 = vst [vmem:[#allocation8_spill] sm:$0xff] %v2337_v8  ;;  %v2405_v31 = vadd.s32 224, %v2309_v1  ;;  %v2408_v32 = vadd.s32 232, %v2309_v1  ;;  %v2411_v33 = vadd.s32 240, %v2309_v1 }
  0x17   : > { %3360 = vst [vmem:[#allocation9_spill] sm:$0xff] %v2340_v9  ;;  %vm219_vm13 = vcmp.eq.s32.totalorder %v2358_v15, %v2399_v29  ;;  %vm220_vm14 = vcmp.eq.s32.totalorder %v2361_v16, %v2399_v29  ;;  %vm221_vm15 = vcmp.eq.s32.totalorder %v2364_v17, %v2399_v29  ;;  %v2476_v34 = vadd.s32 1, %v2399_v29 }
  0x18   : > { %3361 = vst [vmem:[#allocation10_spill] sm:$0xff] %v2343_v10  ;;  %vm234_vm5 = vcmp.eq.s32.totalorder %v2405_v31, %v2399_v29  ;;  %vm235_vm6 = vcmp.eq.s32.totalorder %v2408_v32, %v2399_v29  ;;  %vm236_vm7 = vcmp.eq.s32.totalorder %v2411_v33, %v2399_v29 }
  0x19   : > { %3362 = vst [vmem:[#allocation11_spill] sm:$0xff] %v2346_v11  ;;  %vm315_vm8 = vcmp.eq.s32.totalorder %v2364_v17, %v2476_v34  ;;  %vm329_vm12 = vcmp.eq.s32.totalorder %v2408_v32, %v2476_v34 }
  0x1a   : > { %3363 = vst [vmem:[#allocation12_spill] sm:$0xff] %v2349_v12 }
  0x1b   : > { %3364 = vst [vmem:[#allocation13_spill] sm:$0xff] %v2352_v13 }
  0x1c   : > { %3365 = vst [vmem:[#allocation14_spill] sm:$0xff] %v2355_v14 }
  0x1d   : > { %3366 = vst [vmem:[#allocation15_spill] sm:$0xff] %v2358_v15 }
  0x1e   : > { %3367 = vst [vmem:[#allocation16_spill] sm:$0xff] %v2361_v16 }
  0x1f   : > { %3368 = vst [vmem:[#allocation17_spill] sm:$0xff] %v2364_v17 }
  0x20   : > { %3369 = vst [vmem:[#allocation18_spill] sm:$0xff] %v2367_v18 }
  0x21   : > { %3370 = vst [vmem:[#allocation19_spill] sm:$0xff] %v2370_v19 }
  0x22   : > { %3371 = vst [vmem:[#allocation20_spill] sm:$0xff] %v2373_v20 }
  0x23   : > { %3372 = vst [vmem:[#allocation21_spill] sm:$0xff] %v2376_v21 }
  0x24 LB: >> { %v3379_v15 = vld [vmem:[#allocation15_spill] sm:$0xff]  ;;  %v3380_v14 = vld [vmem:[#allocation14_spill] sm:$0xff]  ;;  %v3381_v13 = vld [vmem:[#allocation13_spill] sm:$0xff]  ;;  %s1949_s23 = sshll.u32 %s2275_s22, 3  ;;  %s2277_s27 = smov 127   ;;  %vm508_vm9 = vcmask 1041408   ;;  %vm3393_vm1 = vcmp.eq.s32.totalorder %v2411_v33, %v2476_v34  ;;  %vm3397_vm4 = vcmp.eq.s32.totalorder %v2405_v31, %v2476_v34  ;;  %s2275_s22 = sphi %s2540_s22, %s398_s22  }
  0x25   : >> { %v3378_v16 = vld [vmem:[#allocation16_spill] sm:$0xff]  ;;  %v3383_v11 = vld [vmem:[#allocation11_spill] sm:$0xff]  ;;  %v3384_v10 = vld [vmem:[#allocation10_spill] sm:$0xff]  ;;  %s400_s24 = sshra.s32 %s1949_s23, 3  ;;  %s2278_s28 = smov 126   ;;  %vm454_vm2 = vcmask 1039360   ;;  %vm3395_vm3 = vcmp.eq.s32.totalorder %v3379_v15, %v2476_v34 }
  0x26   : >> { %v3382_v12 = vld [vmem:[#allocation12_spill] sm:$0xff]  ;;  %v3385_v9 = vld [vmem:[#allocation9_spill] sm:$0xff]  ;;  %v3387_v7 = vld [vmem:[#allocation7_spill] sm:$0xff]  ;;  %s2221_s25 = sshll.u32 %s400_s24, 4  ;;  %vm459_vm11 = vcmask 80896   ;;  %vm850_vm10 = vcmask 1031168   ;;  %vm3394_vm0 = vcmp.eq.s32.totalorder %v3378_v16, %v2476_v34 }
  0x27   : >> { %v3376_v18 = vld [vmem:[#allocation18_spill] sm:$0xff]  ;;  %v3386_v8 = vld [vmem:[#allocation8_spill] sm:$0xff]  ;;  %v3389_v4 = vld [vmem:[#allocation5_spill] sm:$0xff]  ;;  %s404_s26 = scalar_lea.vmem %s2314_s18, %s2221_s25  ;;  %v2279_v62 = vmov 0   ;;  %s2222_s16 = sshll.u32 %s2275_s22, 6 }
  0x28   : >> { %v3375_v19 = vld [vmem:[#allocation19_spill] sm:$0xff]  ;;  %v3388_v6 = vld [vmem:[#allocation6_spill] sm:$0xff]  ;;  %v3390_v3 = vld [vmem:[#allocation4_spill] sm:$0xff]  ;;  %2259 = vset.pattern.permute.xlu1 %v2279_v62  ;;  %2258 = vset.pattern.permute.xlu0 %v2279_v62  ;;  %s3246_s17 = scalar_lea.vmem %s2328_s21, %s2222_s16  ;;  %s398_s22 = sadd.s32 1, %s2275_s22  }
  0x29   : >> { %v3374_v20 = vld [vmem:[#allocation20_spill] sm:$0xff]  ;;  %v3391_v2 = vld [vmem:[#allocation3_spill] sm:$0xff]  ;;  %v3392_v1 = vld [vmem:[#allocation2_spill] sm:$0xff]  ;;  %2260 = vset.pattern.permute.xlu2 %v2279_v62  ;;  %p395_p4 = scmp.ge.s32.totalorder %s398_s22, 31  }
  0x2a   : >> { %v3373_v21 = vld [vmem:[#allocation21_spill] sm:$0xff]  ;;  %v407_v35 = vld [vmem:[%s404_s26 + $0x10] sm:$0x3]  ;;  %v405_v37 = vld [vmem:[%s404_s26] sm:$0xff] }
  0x2b   : >> { %v408_v36 = vld [vmem:[%s404_s26 + $0x18] sm:$0x3]  ;;  %450 = vrot.lane.b32.xlu0 %v407_v35, %s2277_s27  ;;  %v406_v38 = vld [vmem:[%s404_s26 + $0x8] sm:$0xff]  ;;  %v1960_v48 = vld [vmem:[%s3310_s1 + $0xc0] sm:$0xff] }
  0x2c   : >> { %848 = vrot.lane.b32.xlu2 %v408_v36, %s2278_s28  ;;  %v2248_v39 = vpack.i.bf16 %v406_v38, %v405_v37  ;;  %v1952_v50 = vld [vmem:[%s3310_s1 + $0x80] sm:$0xff]  ;;  %v1961_v53 = vld [vmem:[%s3310_s1 + $0xc8] sm:$0xff]  ;;  %v1962_v58 = vld [vmem:[%s3310_s1 + $0xd0] sm:$0xff] }
  0x2d   : >> { %v1953_v55 = vld [vmem:[%s3310_s1 + $0x88] sm:$0xff]  ;;  %v1954_v59 = vld [vmem:[%s3310_s1 + $0x90] sm:$0xff]  ;;  %v1069_v60 = vld [vmem:[%s3311_s2] sm:$0xff] }
  0x2e   : >> { %2249 = vrot.lane.b32.xlu1 %v2248_v39, %s2277_s27  ;;  %v1070_v61 = vld [vmem:[%s3311_s2 + $0x8] sm:$0xff]  ;;  %v1963_v63 = vld [vmem:[%s3310_s1 + $0xd8] sm:$0xff] }
  0x2f   : >> { %v1955_v0 = vld [vmem:[%s3310_s1 + $0x98] sm:$0xff]  ;;  %v1074_v5 = vld [vmem:[%s3311_s2 + $0x28] sm:$0xff] }
  0x30   : >> { %v412_v62 = vld [vmem:[%s3310_s1 + $0x18] sm:$0xff] }
  0x33   : >> { %452 = vrot.lane.b32.xlu0 %v408_v36, %s2277_s27 }
  0x34   : >> { %2254 = vrot.lane.b32.xlu2 %v2248_v39, %s2278_s28  ;;  %v1075_v39 = vld [vmem:[%s3311_s2 + $0x30] sm:$0xff] }
  0x36   : >> { %846 = vrot.lane.b32.xlu1 %v407_v35, %s2278_s28 }
  0x3b   : >> { %1087 = vperm.xlu0 %2258, %v1069_v60   ;;  %v2038_v60 = vld [vmem:[%s3310_s1 + $0x110] sm:$0xff] }
  0x3e   : >> { %1092 = vperm.xlu1 %2259, %v1070_v61   ;;  %v1079_v61 = vld [vmem:[%s3311_s2 + $0x50] sm:$0xff] }
  0x43   : >> { %1112 = vperm.xlu0 %2258, %v1074_v5   ;;  %v413_v5 = vld [vmem:[%s3310_s1 + $0x20] sm:$0xff] }
  0x86   : >> { %v849_v44 = vpop.permute.xlu2 %848 }
  0x8e   : >> { %v2255_v52 = vpop.permute.xlu2 %2254 }
  0x8f   : >> { %v2256_v54 = vunpack.i.l.bf16 %v2255_v52  ;;  %v2257_v56 = vunpack.i.h.bf16 %v2255_v52  ;;  %v1084_v52 = vld [vmem:[%s3311_s2 + $0x78] sm:$0xff] }
  0x91   : >> { %v851_v57 = vsel %vm850_vm10, %v2256_v54, %v2257_v56  ;;  %v2036_v54 = vld [vmem:[%s3310_s1 + $0x100] sm:$0xff] }
  0x9d   : >> { %v451_v40 = vpop.permute.xlu0 %450 }
  0xa0   : >> { %v2250_v41 = vpop.permute.xlu1 %2249 }
  0xa1   : >> { %v2252_v42 = vunpack.i.h.bf16 %v2250_v41  ;;  %v2251_v43 = vunpack.i.l.bf16 %v2250_v41  ;;  %v1957_v41 = vld [vmem:[%s3310_s1 + $0xa8] sm:$0xff] }
  0xa3   : >> { %v455_v47 = vsel %vm454_vm2, %v2251_v43, %v2252_v42  ;;  %v1078_v43 = vld [vmem:[%s3311_s2 + $0x48] sm:$0xff] }
  0xa5   : >> { %v453_v45 = vpop.permute.xlu0 %452 }
  0xa6   : >> { %1985 = vmatpush.msk.msra.mxu1 %vm508_vm9, %v453_v45  ;;  %2225 = vmatpush.msk.msra.mxu3 %vm508_vm9, %v453_v45  ;;  %v456_v46 = vsel %vm454_vm2, %v451_v40, %v453_v45  ;;  %v1965_v40 = vld [vmem:[%s3310_s1 + $0xe8] sm:$0xff]  ;;  %v1966_v45 = vld [vmem:[%s3310_s1 + $0xf0] sm:$0xff]  ;;  %vm3396_vm2 = vcmp.eq.s32.totalorder %v3380_v14, %v2399_v29 }
  0xa7   : >> { %1968 = vmatpush.msk.msra.mxu0 %vm508_vm9, %v456_v46  ;;  %2223 = vmatpush.msk.msra.mxu2 %vm508_vm9, %v456_v46  ;;  %v1958_v46 = vld [vmem:[%s3310_s1 + $0xb0] sm:$0xff] }
  0xa8   : >> { %593 = vmatpush.msra.mxu1 %v2252_v42  ;;  %2226 = vmatpush.msra.mxu3 %v2252_v42  ;;  %v847_v49 = vpop.permute.xlu1 %846  ;;  %v1080_v42 = vld [vmem:[%s3311_s2 + $0x58] sm:$0xff] }
  0xa9   : >> { %528 = vmatpush.msra.mxu0 %v455_v47  ;;  %2224 = vmatpush.msra.mxu2 %v455_v47  ;;  %v852_v51 = vsel %vm850_vm10, %v847_v49, %v849_v44  ;;  %v1083_v47 = vld [vmem:[%s3311_s2 + $0x70] sm:$0xff]  ;;  %v1967_v49 = vld [vmem:[%s3310_s1 + $0xf8] sm:$0xff]  ;;  %vm3399_vm10 = vcmp.eq.s32.totalorder %v3380_v14, %v2476_v34 }
  0xaa   : >> { %1994 = vmatmul.msk.f32.vlgmr.msra.gmra.mxu3 %vm459_vm11, %v1960_v48  ;;  %1977 = vmatmul.msk.f32.vlgmr.msra.gmra.mxu2 %vm459_vm11, %v1960_v48  ;;  %v1081_v48 = vld [vmem:[%s3311_s2 + $0x60] sm:$0xff] }
  0xab   : >> { %2002 = vmatpush.msk.msrb.mxu2 %vm508_vm9, %v407_v35  ;;  %2019 = vmatpush.msk.msrb.mxu3 %vm508_vm9, %v408_v36  ;;  %v1072_v35 = vld [vmem:[%s3311_s2 + $0x18] sm:$0xff]  ;;  %v1964_v36 = vld [vmem:[%s3310_s1 + $0xe0] sm:$0xff] }
  0xac   : >> { %1986 = vmatmul.msk.f32.vlgmr.msra.gmra.mxu1 %vm459_vm11, %v1952_v50  ;;  %1969 = vmatmul.msk.f32.vlgmr.msra.gmra.mxu0 %vm459_vm11, %v1952_v50  ;;  %v1959_v50 = vld [vmem:[%s3310_s1 + $0xb8] sm:$0xff] }
  0xad   : >> { %2069 = vmatpush.msk.msrb.mxu1 %vm508_vm9, %v849_v44  ;;  %2052 = vmatpush.msk.msrb.mxu0 %vm508_vm9, %v852_v51  ;;  %v2280_v44 = vmov 1.0   ;;  %vm3398_vm9 = vcmp.eq.s32.totalorder %v2402_v30, %v2399_v29  ;;  %v1071_v51 = vld [vmem:[%s3311_s2 + $0x10] sm:$0xff] }
  0xae   : >> { %710 = vmatpush.msrb.mxu2 %v405_v37  ;;  %775 = vmatpush.msrb.mxu3 %v406_v38  ;;  %v1956_v37 = vld [vmem:[%s3310_s1 + $0xa0] sm:$0xff] }
  0xaf   : >> { %987 = vmatpush.msrb.mxu1 %v2257_v56  ;;  %922 = vmatpush.msrb.mxu0 %v851_v57  ;;  %v1077_v38 = vld [vmem:[%s3311_s2 + $0x40] sm:$0xff]  ;;  %v410_v56 = vld [vmem:[%s3310_s1 + $0x8] sm:$0xff] }
  0xb0   : >> { %1102 = vperm.xlu1 %2259, %v1072_v35   ;;  %1127 = vperm.xlu0 %2258, %v1077_v38   ;;  %v2037_v57 = vld [vmem:[%s3310_s1 + $0x108] sm:$0xff]  ;;  %v2040_v35 = vld [vmem:[%s3310_s1 + $0x120] sm:$0xff]  ;;  %v415_v38 = vld [vmem:[%s3310_s1 + $0x30] sm:$0xff] }
  0xb1   : >> { %2086 = vmatpush.msk.msra.mxu2 %vm221_vm15, %v2280_v44  ;;  %2102 = vmatpush.msk.msra.mxu3 %vm236_vm7, %v2280_v44 }
  0xb2   : >> { %1995 = vmatmul.msk.f32.gmra.mxu3 %vm459_vm11, %v1961_v53  ;;  %1978 = vmatmul.msk.f32.gmra.mxu2 %vm459_vm11, %v1961_v53  ;;  %v409_v53 = vld [vmem:[%s3310_s1] sm:$0xff] }
  0xb3   : >> { %2133 = vmatpush.msk.msra.mxu0 %vm315_vm8, %v2280_v44  ;;  %2149 = vmatpush.msk.msra.mxu1 %vm3393_vm1, %v2280_v44  ;;  %vm1696_vm1 = vcmask 1046534  }
  0xb4   : >> { %1987 = vmatmul.msk.f32.gmra.mxu1 %vm459_vm11, %v1953_v55  ;;  %1970 = vmatmul.msk.f32.gmra.mxu0 %vm459_vm11, %v1953_v55  ;;  %v1073_v55 = vld [vmem:[%s3311_s2 + $0x20] sm:$0xff] }
  0xb5   : >> { %2087 = vmatpush.msk.msra.mxu2 %vm220_vm14, %v2280_v44  ;;  %2103 = vmatpush.msk.msra.mxu3 %vm235_vm6, %v2280_v44 }
  0xb6   : >> { %2134 = vmatpush.msk.msra.mxu0 %vm3394_vm0, %v2280_v44  ;;  %2150 = vmatpush.msk.msra.mxu1 %vm329_vm12, %v2280_v44  ;;  %vm3401_vm0 = vcmp.eq.s32.totalorder %v2402_v30, %v2476_v34 }
  0xb7   : >> { %2088 = vmatpush.msk.msra.mxu2 %vm219_vm13, %v2280_v44  ;;  %2104 = vmatpush.msk.msra.mxu3 %vm234_vm5, %v2280_v44 }
  0xb8   : >> { %1117 = vperm.xlu1 %2259, %v1075_v39   ;;  %1142 = vperm.xlu0 %2258, %v1080_v42   ;;  %v2042_v39 = vld [vmem:[%s3310_s1 + $0x130] sm:$0xff]  ;;  %v417_v42 = vld [vmem:[%s3310_s1 + $0x40] sm:$0xff] }
  0xb9   : >> { %2135 = vmatpush.msk.msra.mxu0 %vm3395_vm3, %v2280_v44  ;;  %2089 = vmatpush.msk.msra.mxu2 %vm3396_vm2, %v2280_v44  ;;  %vm3400_vm2 = vcmp.eq.s32.totalorder %v3381_v13, %v2399_v29  ;;  %vm1699_vm3 = vcmask 1047559  }
  0xba   : >> { %1996 = vmatmul.msk.f32.gmra.mxu3 %vm459_vm11, %v1962_v58  ;;  %1979 = vmatmul.msk.f32.gmra.mxu2 %vm459_vm11, %v1962_v58  ;;  %v1076_v58 = vld [vmem:[%s3311_s2 + $0x38] sm:$0xff] }
  0xbb   : >> { %2151 = vmatpush.msk.msra.mxu1 %vm3397_vm4, %v2280_v44  ;;  %2105 = vmatpush.msk.msra.mxu3 %vm3398_vm9, %v2280_v44  ;;  %vm3402_vm9 = vcmp.eq.s32.totalorder %v2397_v28, %v2399_v29  ;;  %vm1806_vm4 = vcmask 1014784  }
  0xbc   : >> { %1988 = vmatmul.msk.f32.gmra.mxu1 %vm459_vm11, %v1954_v59  ;;  %1971 = vmatmul.msk.f32.gmra.mxu0 %vm459_vm11, %v1954_v59  ;;  %v411_v59 = vld [vmem:[%s3310_s1 + $0x10] sm:$0xff] }
  0xbd   : >> { %2136 = vmatpush.msk.msra.mxu0 %vm3399_vm10, %v2280_v44  ;;  %2090 = vmatpush.msk.msra.mxu2 %vm3400_vm2, %v2280_v44  ;;  %vm3403_vm10 = vcmp.eq.s32.totalorder %v3381_v13, %v2476_v34  ;;  %vm3404_vm2 = vcmp.eq.s32.totalorder %v3382_v12, %v2399_v29 }
  0xbe   : >> { %2152 = vmatpush.msk.msra.mxu1 %vm3401_vm0, %v2280_v44  ;;  %2106 = vmatpush.msk.msra.mxu3 %vm3402_vm9, %v2280_v44  ;;  %vm3405_vm0 = vcmp.eq.s32.totalorder %v2397_v28, %v2476_v34  ;;  %vm3406_vm9 = vcmp.eq.s32.totalorder %v2394_v27, %v2399_v29 }
  0xbf   : >> { %2137 = vmatpush.msk.msra.mxu0 %vm3403_vm10, %v2280_v44  ;;  %2091 = vmatpush.msk.msra.mxu2 %vm3404_vm2, %v2280_v44  ;;  %vm3407_vm10 = vcmp.eq.s32.totalorder %v3382_v12, %v2476_v34  ;;  %vm3408_vm2 = vcmp.eq.s32.totalorder %v3383_v11, %v2399_v29 }
  0xc0   : >> { %1132 = vperm.xlu1 %2259, %v1078_v43   ;;  %1157 = vperm.xlu0 %2258, %v1083_v47  }
  0xc1   : >> { %1097 = vperm.xlu2 %2260, %v1071_v51   ;;  %2153 = vmatpush.msk.msra.mxu1 %vm3405_vm0, %v2280_v44  ;;  %vm3409_vm0 = vcmp.eq.s32.totalorder %v2394_v27, %v2476_v34  ;;  %v2045_v51 = vld [vmem:[%s3310_s1 + $0x148] sm:$0xff] }
  0xc2   : >> { %1997 = vmatmul.msk.f32.gmra.mxu3 %vm459_vm11, %v1963_v63  ;;  %1980 = vmatmul.msk.f32.gmra.mxu2 %vm459_vm11, %v1963_v63  ;;  %v2039_v63 = vld [vmem:[%s3310_s1 + $0x118] sm:$0xff] }
  0xc3   : >> { %2107 = vmatpush.msk.msra.mxu3 %vm3406_vm9, %v2280_v44  ;;  %2138 = vmatpush.msk.msra.mxu0 %vm3407_vm10, %v2280_v44  ;;  %vm3410_vm9 = vcmp.eq.s32.totalorder %v2391_v26, %v2399_v29  ;;  %vm3411_vm10 = vcmp.eq.s32.totalorder %v3383_v11, %v2476_v34  ;;  %v1088_v11 = vpop.permute.xlu0 %1087 }
  0xc4   : >> { %1989 = vmatmul.msk.f32.gmra.mxu1 %vm459_vm11, %v1955_v0  ;;  %1972 = vmatmul.msk.f32.gmra.mxu0 %vm459_vm11, %v1955_v0  ;;  %v1082_v0 = vld [vmem:[%s3311_s2 + $0x68] sm:$0xff] }
  0xc5   : >> { %2092 = vmatpush.msk.msra.mxu2 %vm3408_vm2, %v2280_v44  ;;  %2154 = vmatpush.msk.msra.mxu1 %vm3409_vm0, %v2280_v44  ;;  %vm3412_vm2 = vcmp.eq.s32.totalorder %v3384_v10, %v2399_v29  ;;  %vm3413_vm0 = vcmp.eq.s32.totalorder %v2391_v26, %v2476_v34 }
  0xc6   : >> { %2108 = vmatpush.msk.msra.mxu3 %vm3410_vm9, %v2280_v44  ;;  %2139 = vmatpush.msk.msra.mxu0 %vm3411_vm10, %v2280_v44  ;;  %vm3414_vm9 = vcmp.eq.s32.totalorder %v2388_v25, %v2399_v29  ;;  %vm3415_vm10 = vcmp.eq.s32.totalorder %v3384_v10, %v2476_v34 }
  0xc7   : >> { %2093 = vmatpush.msk.msra.mxu2 %vm3412_vm2, %v2280_v44  ;;  %2155 = vmatpush.msk.msra.mxu1 %vm3413_vm0, %v2280_v44  ;;  %vm3416_vm2 = vcmp.eq.s32.totalorder %v3385_v9, %v2399_v29  ;;  %vm3417_vm0 = vcmp.eq.s32.totalorder %v2388_v25, %v2476_v34 }
  0xc8   : >> { %1147 = vperm.xlu1 %2259, %v1081_v48   ;;  %2109 = vmatpush.msk.msra.mxu3 %vm3414_vm9, %v2280_v44  ;;  %vm3418_vm9 = vcmp.eq.s32.totalorder %v2385_v24, %v2399_v29  ;;  %v418_v48 = vld [vmem:[%s3310_s1 + $0x48] sm:$0xff] }
  0xc9   : >> { %1107 = vperm.xlu2 %2260, %v1073_v55   ;;  %2140 = vmatpush.msk.msra.mxu0 %vm3415_vm10, %v2280_v44  ;;  %vm3419_vm10 = vcmp.eq.s32.totalorder %v3385_v9, %v2476_v34 }
  0xca   : >> { %1998 = vmatmul.msk.f32.gmra.mxu3 %vm459_vm11, %v1964_v36  ;;  %1981 = vmatmul.msk.f32.gmra.mxu2 %vm459_vm11, %v1964_v36  ;;  %v414_v36 = vld [vmem:[%s3310_s1 + $0x28] sm:$0xff] }
  0xcb   : >> { %2094 = vmatpush.msk.msra.mxu2 %vm3416_vm2, %v2280_v44  ;;  %2156 = vmatpush.msk.msra.mxu1 %vm3417_vm0, %v2280_v44  ;;  %vm3420_vm2 = vcmp.eq.s32.totalorder %v3386_v8, %v2399_v29  ;;  %vm3421_vm0 = vcmp.eq.s32.totalorder %v2385_v24, %v2476_v34 }
  0xcc   : >> { %1990 = vmatmul.msk.f32.gmra.mxu1 %vm459_vm11, %v1956_v37  ;;  %1973 = vmatmul.msk.f32.gmra.mxu0 %vm459_vm11, %v1956_v37  ;;  %v2041_v37 = vld [vmem:[%s3310_s1 + $0x128] sm:$0xff] }
  0xcd   : >> { %2110 = vmatpush.msk.msra.mxu3 %vm3418_vm9, %v2280_v44  ;;  %2141 = vmatpush.msk.msra.mxu0 %vm3419_vm10, %v2280_v44  ;;  %vm3422_vm9 = vcmp.eq.s32.totalorder %v2382_v23, %v2399_v29  ;;  %vm3423_vm10 = vcmp.eq.s32.totalorder %v3386_v8, %v2476_v34 }
  0xce   : >> { %2095 = vmatpush.msk.msra.mxu2 %vm3420_vm2, %v2280_v44  ;;  %2157 = vmatpush.msk.msra.mxu1 %vm3421_vm0, %v2280_v44  ;;  %vm3424_vm2 = vcmp.eq.s32.totalorder %v3387_v7, %v2399_v29  ;;  %vm3425_vm0 = vcmp.eq.s32.totalorder %v2382_v23, %v2476_v34 }
  0xcf   : >> { %2111 = vmatpush.msk.msra.mxu3 %vm3422_vm9, %v2280_v44  ;;  %2142 = vmatpush.msk.msra.mxu0 %vm3423_vm10, %v2280_v44  ;;  %vm3426_vm9 = vcmp.eq.s32.totalorder %v2379_v22, %v2399_v29  ;;  %vm3427_vm10 = vcmp.eq.s32.totalorder %v3387_v7, %v2476_v34 }
  0xd0   : >> { %1162 = vperm.xlu1 %2259, %v1084_v52   ;;  %2096 = vmatpush.msk.msra.mxu2 %vm3424_vm2, %v2280_v44  ;;  %vm3428_vm2 = vcmp.eq.s32.totalorder %v3388_v6, %v2399_v29 }
  0xd1   : >> { %2158 = vmatpush.msk.msra.mxu1 %vm3425_vm0, %v2280_v44  ;;  %1122 = vperm.xlu2 %2260, %v1076_v58   ;;  %vm3429_vm0 = vcmp.eq.s32.totalorder %v2379_v22, %v2476_v34 }
  0xd2   : >> { %1999 = vmatmul.msk.f32.gmra.mxu3 %vm459_vm11, %v1965_v40  ;;  %1982 = vmatmul.msk.f32.gmra.mxu2 %vm459_vm11, %v1965_v40  ;;  %v416_v40 = vld [vmem:[%s3310_s1 + $0x38] sm:$0xff] }
  0xd3   : >> { %2112 = vmatpush.msk.msra.mxu3 %vm3426_vm9, %v2280_v44  ;;  %2143 = vmatpush.msk.msra.mxu0 %vm3427_vm10, %v2280_v44  ;;  %vm3430_vm9 = vcmp.eq.s32.totalorder %v3373_v21, %v2399_v29  ;;  %vm3431_vm10 = vcmp.eq.s32.totalorder %v3388_v6, %v2476_v34 }
  0xd4   : >> { %1991 = vmatmul.msk.f32.gmra.mxu1 %vm459_vm11, %v1957_v41  ;;  %1974 = vmatmul.msk.f32.gmra.mxu0 %vm459_vm11, %v1957_v41  ;;  %v2043_v41 = vld [vmem:[%s3310_s1 + $0x138] sm:$0xff] }
  0xd5   : >> { %2097 = vmatpush.msk.msra.mxu2 %vm3428_vm2, %v2280_v44  ;;  %2159 = vmatpush.msk.msra.mxu1 %vm3429_vm0, %v2280_v44  ;;  %vm3432_vm2 = vcmp.eq.s32.totalorder %v3389_v4, %v2399_v29  ;;  %vm3433_vm0 = vcmp.eq.s32.totalorder %v3373_v21, %v2476_v34 }
  0xd6   : >> { %2113 = vmatpush.msk.msra.mxu3 %vm3430_vm9, %v2280_v44  ;;  %2144 = vmatpush.msk.msra.mxu0 %vm3431_vm10, %v2280_v44  ;;  %vm3434_vm9 = vcmp.eq.s32.totalorder %v3374_v20, %v2399_v29  ;;  %vm3435_vm10 = vcmp.eq.s32.totalorder %v3389_v4, %v2476_v34 }
  0xd7   : >> { %2098 = vmatpush.msk.msra.mxu2 %vm3432_vm2, %v2280_v44  ;;  %2160 = vmatpush.msk.msra.mxu1 %vm3433_vm0, %v2280_v44  ;;  %vm3436_vm2 = vcmp.eq.s32.totalorder %v3390_v3, %v2399_v29  ;;  %vm3437_vm0 = vcmp.eq.s32.totalorder %v3374_v20, %v2476_v34 }
  0xd8   : >> { %2114 = vmatpush.msk.msra.mxu3 %vm3434_vm9, %v2280_v44  ;;  %2145 = vmatpush.msk.msra.mxu0 %vm3435_vm10, %v2280_v44  ;;  %vm3438_vm9 = vcmp.eq.s32.totalorder %v3390_v3, %v2476_v34  ;;  %vm3439_vm10 = vcmp.eq.s32.totalorder %v3375_v19, %v2399_v29 }
  0xd9   : >> { %2099 = vmatpush.msk.msra.mxu2 %vm3436_vm2, %v2280_v44  ;;  %1137 = vperm.xlu2 %2260, %v1079_v61   ;;  %vm3440_vm2 = vcmp.eq.s32.totalorder %v3391_v2, %v2399_v29 }
  0xda   : >> { %2000 = vmatmul.msk.f32.gmra.mxu3 %vm459_vm11, %v1966_v45  ;;  %1983 = vmatmul.msk.f32.gmra.mxu2 %vm459_vm11, %v1966_v45  ;;  %v2044_v45 = vld [vmem:[%s3310_s1 + $0x140] sm:$0xff] }
  0xdb   : >> { %2161 = vmatpush.msk.msra.mxu1 %vm3437_vm0, %v2280_v44  ;;  %2146 = vmatpush.msk.msra.mxu0 %vm3438_vm9, %v2280_v44  ;;  %vm3441_vm0 = vcmp.eq.s32.totalorder %v3375_v19, %v2476_v34  ;;  %vm3442_vm9 = vcmp.eq.s32.totalorder %v3391_v2, %v2476_v34 }
  0xdc   : >> { %1992 = vmatmul.msk.f32.gmra.mxu1 %vm459_vm11, %v1958_v46  ;;  %1975 = vmatmul.msk.f32.gmra.mxu0 %vm459_vm11, %v1958_v46 }
  0xdd   : >> { %2115 = vmatpush.msk.msra.mxu3 %vm3439_vm10, %v2280_v44  ;;  %2100 = vmatpush.msk.msra.mxu2 %vm3440_vm2, %v2280_v44  ;;  %vm3443_vm10 = vcmp.eq.s32.totalorder %v3376_v18, %v2399_v29  ;;  %vm3444_vm2 = vcmp.eq.s32.totalorder %v3392_v1, %v2399_v29 }
  0xde   : >> { %2162 = vmatpush.msk.msra.mxu1 %vm3441_vm0, %v2280_v44  ;;  %2147 = vmatpush.msk.msra.mxu0 %vm3442_vm9, %v2280_v44  ;;  %vm3445_vm0 = vcmp.eq.s32.totalorder %v3376_v18, %v2476_v34  ;;  %vm3446_vm9 = vcmp.eq.s32.totalorder %v3392_v1, %v2476_v34 }
  0xdf   : >> { %2116 = vmatpush.msk.msra.mxu3 %vm3443_vm10, %v2280_v44  ;;  %2101 = vmatpush.msk.msra.mxu2 %vm3444_vm2, %v2280_v44  ;;  %vm1684_vm10 = vcmask 1041409   ;;  %vm1686_vm2 = vcmask 1042434  }
  0xe0   : >> { %2163 = vmatpush.msk.msra.mxu1 %vm3445_vm0, %v2280_v44  ;;  %2148 = vmatpush.msk.msra.mxu0 %vm3446_vm9, %v2280_v44  ;;  %vm1689_vm0 = vcmask 1043459   ;;  %vm1691_vm9 = vcmask 1044484  }
  0xe1   : >> { %1152 = vperm.xlu2 %2260, %v1082_v0  }
  0xe2   : >> { %2001 = vmatmul.msk.f32.gmra.mxu3 %vm459_vm11, %v1967_v49  ;;  %1984 = vmatmul.msk.f32.gmra.mxu2 %vm459_vm11, %v1967_v49 }
  0xe4   : >> { %1993 = vmatmul.msk.f32.gmra.mxu1 %vm459_vm11, %v1959_v50  ;;  %1976 = vmatmul.msk.f32.gmra.mxu0 %vm459_vm11, %v1959_v50 }
  0xea   : >> { %2020 = vmatmul.msk.f32.vlgmr.msrb.gmra.mxu3 %vm459_vm11, %v409_v53  ;;  %2003 = vmatmul.msk.f32.vlgmr.msrb.gmra.mxu2 %vm459_vm11, %v409_v53 }
  0xec   : >> { %2070 = vmatmul.msk.f32.vlgmr.msrb.gmra.mxu1 %vm459_vm11, %v2036_v54  ;;  %2053 = vmatmul.msk.f32.vlgmr.msrb.gmra.mxu0 %vm459_vm11, %v2036_v54  ;;  %v419_v54 = vld [vmem:[%s3310_s1 + $0x50] sm:$0xff] }
  0xf2   : >> { %2021 = vmatmul.msk.f32.gmra.mxu3 %vm459_vm11, %v410_v56  ;;  %2004 = vmatmul.msk.f32.gmra.mxu2 %vm459_vm11, %v410_v56 }
  0xf4   : >> { %2071 = vmatmul.msk.f32.gmra.mxu1 %vm459_vm11, %v2037_v57  ;;  %2054 = vmatmul.msk.f32.gmra.mxu0 %vm459_vm11, %v2037_v57  ;;  %v2046_v57 = vld [vmem:[%s3310_s1 + $0x150] sm:$0xff] }
  0xfa   : >> { %2022 = vmatmul.msk.f32.gmra.mxu3 %vm459_vm11, %v411_v59  ;;  %2005 = vmatmul.msk.f32.gmra.mxu2 %vm459_vm11, %v411_v59 }
  0xfc   : >> { %2072 = vmatmul.msk.f32.gmra.mxu1 %vm459_vm11, %v2038_v60  ;;  %2055 = vmatmul.msk.f32.gmra.mxu0 %vm459_vm11, %v2038_v60  ;;  %v420_v60 = vld [vmem:[%s3310_s1 + $0x58] sm:$0xff] }
 0x102   : >> { %2023 = vmatmul.msk.f32.gmra.mxu3 %vm459_vm11, %v412_v62  ;;  %2006 = vmatmul.msk.f32.gmra.mxu2 %vm459_vm11, %v412_v62 }
 0x104   : >> { %2073 = vmatmul.msk.f32.gmra.mxu1 %vm459_vm11, %v2039_v63  ;;  %2056 = vmatmul.msk.f32.gmra.mxu0 %vm459_vm11, %v2039_v63  ;;  %v2047_v63 = vld [vmem:[%s3310_s1 + $0x158] sm:$0xff] }
 0x10a   : >> { %2024 = vmatmul.msk.f32.gmra.mxu3 %vm459_vm11, %v413_v5  ;;  %2007 = vmatmul.msk.f32.gmra.mxu2 %vm459_vm11, %v413_v5 }
 0x10c   : >> { %2074 = vmatmul.msk.f32.gmra.mxu1 %vm459_vm11, %v2040_v35  ;;  %2057 = vmatmul.msk.f32.gmra.mxu0 %vm459_vm11, %v2040_v35  ;;  %v421_v35 = vld [vmem:[%s3310_s1 + $0x60] sm:$0xff] }
 0x112   : >> { %2025 = vmatmul.msk.f32.gmra.mxu3 %vm459_vm11, %v414_v36  ;;  %2008 = vmatmul.msk.f32.gmra.mxu2 %vm459_vm11, %v414_v36 }
 0x114   : >> { %2075 = vmatmul.msk.f32.gmra.mxu1 %vm459_vm11, %v2041_v37  ;;  %2058 = vmatmul.msk.f32.gmra.mxu0 %vm459_vm11, %v2041_v37 }
 0x11a   : >> { %2026 = vmatmul.msk.f32.gmra.mxu3 %vm459_vm11, %v415_v38  ;;  %2009 = vmatmul.msk.f32.gmra.mxu2 %vm459_vm11, %v415_v38  ;;  %v2048_v38 = vld [vmem:[%s3310_s1 + $0x160] sm:$0xff] }
 0x11c   : >> { %2076 = vmatmul.msk.f32.gmra.mxu1 %vm459_vm11, %v2042_v39  ;;  %2059 = vmatmul.msk.f32.gmra.mxu0 %vm459_vm11, %v2042_v39 }
 0x122   : >> { %2027 = vmatmul.msk.f32.gmra.mxu3 %vm459_vm11, %v416_v40  ;;  %2010 = vmatmul.msk.f32.gmra.mxu2 %vm459_vm11, %v416_v40 }
 0x124   : >> { %2077 = vmatmul.msk.f32.gmra.mxu1 %vm459_vm11, %v2043_v41  ;;  %2060 = vmatmul.msk.f32.gmra.mxu0 %vm459_vm11, %v2043_v41  ;;  %v422_v41 = vld [vmem:[%s3310_s1 + $0x68] sm:$0xff] }
 0x129   : >> { %v3016_v43 = vpop.f32.mrf.mxu1  ;;  %v3018_v44 = vpop.f32.mrf.mxu0 }
 0x12a   : >> { %2028 = vmatmul.msk.f32.gmra.mxu3 %vm459_vm11, %v417_v42  ;;  %2011 = vmatmul.msk.f32.gmra.mxu2 %vm459_vm11, %v417_v42 }
 0x12c   : >> { %2078 = vmatmul.msk.f32.gmra.mxu1 %vm459_vm11, %v2044_v45  ;;  %2061 = vmatmul.msk.f32.gmra.mxu0 %vm459_vm11, %v2044_v45 }
 0x12d   : >> { %v3027_v46 = vpop.f32.mrf.mxu3  ;;  %v3029_v47 = vpop.f32.mrf.mxu2 }
 0x131   : >> { %v3034_v49 = vpop.f32.mrf.mxu1  ;;  %v3036_v50 = vpop.f32.mrf.mxu0 }
 0x132   : >> { %2029 = vmatmul.msk.f32.gmra.mxu3 %vm459_vm11, %v418_v48  ;;  %2012 = vmatmul.msk.f32.gmra.mxu2 %vm459_vm11, %v418_v48  ;;  %v2049_v48 = vld [vmem:[%s3310_s1 + $0x168] sm:$0xff] }
 0x134   : >> { %2079 = vmatmul.msk.f32.gmra.mxu1 %vm459_vm11, %v2045_v51  ;;  %2062 = vmatmul.msk.f32.gmra.mxu0 %vm459_vm11, %v2045_v51 }
 0x135   : >> { %v3045_v52 = vpop.f32.mrf.mxu3  ;;  %v3047_v53 = vpop.f32.mrf.mxu2 }
 0x139   : >> { %v3052_v55 = vpop.f32.mrf.mxu1  ;;  %v3054_v56 = vpop.f32.mrf.mxu0 }
 0x13a   : >> { %2030 = vmatmul.msk.f32.gmra.mxu3 %vm459_vm11, %v419_v54  ;;  %2013 = vmatmul.msk.f32.gmra.mxu2 %vm459_vm11, %v419_v54 }
 0x13c   : >> { %2080 = vmatmul.msk.f32.gmra.mxu1 %vm459_vm11, %v2046_v57  ;;  %2063 = vmatmul.msk.f32.gmra.mxu0 %vm459_vm11, %v2046_v57  ;;  %v423_v57 = vld [vmem:[%s3310_s1 + $0x70] sm:$0xff] }
 0x13d   : >> { %v3063_v58 = vpop.f32.mrf.mxu3  ;;  %v3065_v59 = vpop.f32.mrf.mxu2 }
 0x141   : >> { %v3070_v61 = vpop.f32.mrf.mxu1  ;;  %v3072_v62 = vpop.f32.mrf.mxu0 }
 0x142   : >> { %2031 = vmatmul.msk.f32.gmra.mxu3 %vm459_vm11, %v420_v60  ;;  %2014 = vmatmul.msk.f32.gmra.mxu2 %vm459_vm11, %v420_v60 }
 0x144   : >> { %2081 = vmatmul.msk.f32.gmra.mxu1 %vm459_vm11, %v2047_v63  ;;  %2064 = vmatmul.msk.f32.gmra.mxu0 %vm459_vm11, %v2047_v63 }
 0x145   : >> { %v3081_v0 = vpop.f32.mrf.mxu3  ;;  %v3083_v5 = vpop.f32.mrf.mxu2 }
 0x149   : >> { %v3088_v36 = vpop.f32.mrf.mxu1  ;;  %v3090_v37 = vpop.f32.mrf.mxu0 }
 0x14a   : >> { %2032 = vmatmul.msk.f32.gmra.mxu3 %vm459_vm11, %v421_v35  ;;  %2015 = vmatmul.msk.f32.gmra.mxu2 %vm459_vm11, %v421_v35  ;;  %v2050_v35 = vld [vmem:[%s3310_s1 + $0x170] sm:$0xff] }
 0x14c   : >> { %2082 = vmatmul.msk.f32.gmra.mxu1 %vm459_vm11, %v2048_v38  ;;  %2065 = vmatmul.msk.f32.gmra.mxu0 %vm459_vm11, %v2048_v38 }
 0x14d   : >> { %v3099_v39 = vpop.f32.mrf.mxu3  ;;  %v3101_v40 = vpop.f32.mrf.mxu2 }
 0x151   : >> { %v3106_v42 = vpop.f32.mrf.mxu1  ;;  %v3108_v45 = vpop.f32.mrf.mxu0 }
 0x152   : >> { %2033 = vmatmul.msk.f32.gmra.mxu3 %vm459_vm11, %v422_v41  ;;  %2016 = vmatmul.msk.f32.gmra.mxu2 %vm459_vm11, %v422_v41 }
 0x154   : >> { %2083 = vmatmul.msk.f32.gmra.mxu1 %vm459_vm11, %v2049_v48  ;;  %2066 = vmatmul.msk.f32.gmra.mxu0 %vm459_vm11, %v2049_v48  ;;  %v424_v48 = vld [vmem:[%s3310_s1 + $0x78] sm:$0xff] }
 0x155   : >> { %v3117_v51 = vpop.f32.mrf.mxu3  ;;  %v3119_v54 = vpop.f32.mrf.mxu2 }
 0x159   : >> { %v3124_v60 = vpop.f32.mrf.mxu1  ;;  %v3126_v63 = vpop.f32.mrf.mxu0 }
 0x15a   : >> { %2034 = vmatmul.msk.f32.gmra.mxu3 %vm459_vm11, %v423_v57  ;;  %2017 = vmatmul.msk.f32.gmra.mxu2 %vm459_vm11, %v423_v57  ;;  %v2051_v57 = vld [vmem:[%s3310_s1 + $0x178] sm:$0xff] }
 0x15c   : >> { %2084 = vmatmul.msk.f32.gmra.mxu1 %vm459_vm11, %v2050_v35  ;;  %2067 = vmatmul.msk.f32.gmra.mxu0 %vm459_vm11, %v2050_v35 }
 0x15d   : >> { %v3135_v38 = vpop.f32.mrf.mxu3  ;;  %v3137_v41 = vpop.f32.mrf.mxu2 }
 0x161   : >> { %v3142_v1 = vpop.f32.mrf.mxu1  ;;  %v3144_v2 = vpop.f32.mrf.mxu0 }
 0x162   : >> { %2035 = vmatmul.msk.f32.gmra.mxu3 %vm459_vm11, %v424_v48  ;;  %2018 = vmatmul.msk.f32.gmra.mxu2 %vm459_vm11, %v424_v48 }
 0x164   : >> { %2085 = vmatmul.msk.f32.gmra.mxu1 %vm459_vm11, %v2051_v57  ;;  %2068 = vmatmul.msk.f32.gmra.mxu0 %vm459_vm11, %v2051_v57  ;;  %vm1229_vm11 = vcmask 982016  }
 0x165   : >> { %v3153_v35 = vpop.f32.mrf.mxu3  ;;  %v3155_v3 = vpop.f32.mrf.mxu2 }
 0x169   : >> { %v989_v4 = vpop.f32.mrf.mxu1  ;;  %v924_v6 = vpop.f32.mrf.mxu0 }
 0x16d   : >> { %v777_v7 = vpop.f32.mrf.mxu3  ;;  %v712_v8 = vpop.f32.mrf.mxu2 }
 0x16e   : >> { %v778_v9 = vadd.f32 %v777_v7, %v3016_v43  ;;  %v713_v10 = vadd.f32 %v712_v8, %v3018_v44 }
 0x170   : >> { %v1038_v12 = vadd.f32 %v989_v4, %v778_v9  ;;  %v1037_v13 = vadd.f32 %v924_v6, %v713_v10  ;;  %v1093_v4 = vpop.permute.xlu1 %1092 }
 0x171   : >> { %v992_v48 = vpop.f32.mrf.mxu1  ;;  %v927_v14 = vpop.f32.mrf.mxu0 }
 0x172   : >> { %v1166_v15 = vadd.f32 %v1088_v11, %v1038_v12  ;;  %v1165_v16 = vadd.f32 %v1088_v11, %v1037_v13 }
 0x174   : >> { %v1198_v57 = vmax.f32 %v1166_v15, 0.0  ;;  %v1197_v17 = vmax.f32 %v1165_v16, 0.0 }
 0x175   : >> { %v780_v18 = vpop.f32.mrf.mxu3  ;;  %v715_v19 = vpop.f32.mrf.mxu2 }
 0x176   : >> { %v781_v20 = vadd.f32 %v780_v18, %v3034_v49  ;;  %v716_v21 = vadd.f32 %v715_v19, %v3036_v50  ;;  %2117 = vmatmul.msk.f32.vlgmr.msra.gmra.mxu3 %vm1229_vm11, %v1198_v57  ;;  %2164 = vmatmul.msk.f32.vlgmr.msra.gmra.mxu1 %vm1229_vm11, %v1198_v57 }
 0x177   : >> { %1294 = vmatmul.f32.vlgmr.msra.gmra.mxu2 %v1197_v17  ;;  %1424 = vmatmul.f32.vlgmr.msra.gmra.mxu0 %v1197_v17  ;;  %v1098_v17 = vpop.permute.xlu2 %1097 }
 0x178   : >> { %v1040_v6 = vadd.f32 %v992_v48, %v781_v20  ;;  %v1039_v7 = vadd.f32 %v927_v14, %v716_v21 }
 0x179   : >> { %v995_v8 = vpop.f32.mrf.mxu1  ;;  %v930_v9 = vpop.f32.mrf.mxu0 }
 0x17a   : >> { %v1168_v10 = vadd.f32 %v1093_v4, %v1040_v6  ;;  %v1167_v11 = vadd.f32 %v1093_v4, %v1039_v7  ;;  %v1103_v6 = vpop.permute.xlu1 %1102 }
 0x17c   : >> { %v1200_v12 = vmax.f32 %v1168_v10, 0.0  ;;  %v1199_v13 = vmax.f32 %v1167_v11, 0.0 }
 0x17d   : >> { %v783_v15 = vpop.f32.mrf.mxu3  ;;  %v718_v16 = vpop.f32.mrf.mxu2 }
 0x17e   : >> { %v784_v18 = vadd.f32 %v783_v15, %v3052_v55  ;;  %v719_v19 = vadd.f32 %v718_v16, %v3054_v56  ;;  %2118 = vmatmul.msk.f32.gmra.mxu3 %vm1229_vm11, %v1200_v12  ;;  %2165 = vmatmul.msk.f32.gmra.mxu1 %vm1229_vm11, %v1200_v12 }
 0x17f   : >> { %1297 = vmatmul.f32.gmra.mxu2 %v1199_v13  ;;  %1427 = vmatmul.f32.gmra.mxu0 %v1199_v13 }
 0x180   : >> { %v1042_v14 = vadd.f32 %v995_v8, %v784_v18  ;;  %v1041_v20 = vadd.f32 %v930_v9, %v719_v19  ;;  %v1108_v19 = vpop.permute.xlu2 %1107 }
 0x181   : >> { %v998_v21 = vpop.f32.mrf.mxu1  ;;  %v933_v43 = vpop.f32.mrf.mxu0 }
 0x182   : >> { %v1170_v44 = vadd.f32 %v1098_v17, %v1042_v14  ;;  %v1169_v49 = vadd.f32 %v1098_v17, %v1041_v20 }
 0x184   : >> { %v1202_v50 = vmax.f32 %v1170_v44, 0.0  ;;  %v1201_v48 = vmax.f32 %v1169_v49, 0.0 }
 0x185   : >> { %v786_v57 = vpop.f32.mrf.mxu3  ;;  %v721_v4 = vpop.f32.mrf.mxu2 }
 0x186   : >> { %v787_v55 = vadd.f32 %v786_v57, %v3070_v61  ;;  %v722_v56 = vadd.f32 %v721_v4, %v3072_v62  ;;  %2119 = vmatmul.msk.f32.gmra.mxu3 %vm1229_vm11, %v1202_v50  ;;  %2166 = vmatmul.msk.f32.gmra.mxu1 %vm1229_vm11, %v1202_v50  ;;  %v1113_v4 = vpop.permute.xlu0 %1112 }
 0x187   : >> { %1300 = vmatmul.f32.gmra.mxu2 %v1201_v48  ;;  %1430 = vmatmul.f32.gmra.mxu0 %v1201_v48 }
 0x188   : >> { %v1044_v7 = vadd.f32 %v998_v21, %v787_v55  ;;  %v1043_v8 = vadd.f32 %v933_v43, %v722_v56 }
 0x189   : >> { %v1001_v9 = vpop.f32.mrf.mxu1  ;;  %v936_v10 = vpop.f32.mrf.mxu0 }
 0x18a   : >> { %v1172_v11 = vadd.f32 %v1103_v6, %v1044_v7  ;;  %v1171_v12 = vadd.f32 %v1103_v6, %v1043_v8 }
 0x18c   : >> { %v1204_v13 = vmax.f32 %v1172_v11, 0.0  ;;  %v1203_v15 = vmax.f32 %v1171_v12, 0.0 }
 0x18d   : >> { %v789_v16 = vpop.f32.mrf.mxu3  ;;  %v724_v18 = vpop.f32.mrf.mxu2 }
 0x18e   : >> { %v790_v61 = vadd.f32 %v789_v16, %v3088_v36  ;;  %v725_v62 = vadd.f32 %v724_v18, %v3090_v37  ;;  %2120 = vmatmul.msk.f32.gmra.mxu3 %vm1229_vm11, %v1204_v13  ;;  %2167 = vmatmul.msk.f32.gmra.mxu1 %vm1229_vm11, %v1204_v13 }
 0x18f   : >> { %1303 = vmatmul.f32.gmra.mxu2 %v1203_v15  ;;  %1433 = vmatmul.f32.gmra.mxu0 %v1203_v15  ;;  %v1118_v15 = vpop.permute.xlu1 %1117 }
 0x190   : >> { %v1046_v17 = vadd.f32 %v1001_v9, %v790_v61  ;;  %v1045_v14 = vadd.f32 %v936_v10, %v725_v62 }
 0x191   : >> { %v1004_v20 = vpop.f32.mrf.mxu1  ;;  %v939_v21 = vpop.f32.mrf.mxu0 }
 0x192   : >> { %v1174_v43 = vadd.f32 %v1108_v19, %v1046_v17  ;;  %v1173_v44 = vadd.f32 %v1108_v19, %v1045_v14 }
 0x194   : >> { %v1206_v49 = vmax.f32 %v1174_v43, 0.0  ;;  %v1205_v50 = vmax.f32 %v1173_v44, 0.0  ;;  %v1123_v44 = vpop.permute.xlu2 %1122 }
 0x195   : >> { %v792_v48 = vpop.f32.mrf.mxu3  ;;  %v727_v57 = vpop.f32.mrf.mxu2 }
 0x196   : >> { %v793_v36 = vadd.f32 %v792_v48, %v3106_v42  ;;  %v728_v37 = vadd.f32 %v727_v57, %v3108_v45  ;;  %2121 = vmatmul.msk.f32.gmra.mxu3 %vm1229_vm11, %v1206_v49  ;;  %2168 = vmatmul.msk.f32.gmra.mxu1 %vm1229_vm11, %v1206_v49 }
 0x197   : >> { %1306 = vmatmul.f32.gmra.mxu2 %v1205_v50  ;;  %1436 = vmatmul.f32.gmra.mxu0 %v1205_v50 }
 0x198   : >> { %v1048_v55 = vadd.f32 %v1004_v20, %v793_v36  ;;  %v1047_v56 = vadd.f32 %v939_v21, %v728_v37 }
 0x199   : >> { %v1007_v6 = vpop.f32.mrf.mxu1  ;;  %v942_v7 = vpop.f32.mrf.mxu0 }
 0x19a   : >> { %v1176_v8 = vadd.f32 %v1113_v4, %v1048_v55  ;;  %v1175_v9 = vadd.f32 %v1113_v4, %v1047_v56 }
 0x19c   : >> { %v1208_v10 = vmax.f32 %v1176_v8, 0.0  ;;  %v1207_v11 = vmax.f32 %v1175_v9, 0.0 }
 0x19d   : >> { %v795_v12 = vpop.f32.mrf.mxu3  ;;  %v730_v13 = vpop.f32.mrf.mxu2 }
 0x19e   : >> { %v796_v42 = vadd.f32 %v795_v12, %v3124_v60  ;;  %v731_v45 = vadd.f32 %v730_v13, %v3126_v63  ;;  %2122 = vmatmul.msk.f32.gmra.mxu3 %vm1229_vm11, %v1208_v10  ;;  %2169 = vmatmul.msk.f32.gmra.mxu1 %vm1229_vm11, %v1208_v10 }
 0x19f   : >> { %1309 = vmatmul.f32.gmra.mxu2 %v1207_v11  ;;  %1439 = vmatmul.f32.gmra.mxu0 %v1207_v11 }
 0x1a0   : >> { %v1050_v16 = vadd.f32 %v1007_v6, %v796_v42  ;;  %v1049_v18 = vadd.f32 %v942_v7, %v731_v45  ;;  %v1128_v7 = vpop.permute.xlu0 %1127 }
 0x1a1   : >> { %v1010_v61 = vpop.f32.mrf.mxu1  ;;  %v945_v62 = vpop.f32.mrf.mxu0 }
 0x1a2   : >> { %v1178_v19 = vadd.f32 %v1118_v15, %v1050_v16  ;;  %v1177_v17 = vadd.f32 %v1118_v15, %v1049_v18  ;;  %v1133_v18 = vpop.permute.xlu1 %1132 }
 0x1a4   : >> { %v1210_v14 = vmax.f32 %v1178_v19, 0.0  ;;  %v1209_v20 = vmax.f32 %v1177_v17, 0.0 }
 0x1a5   : >> { %v798_v21 = vpop.f32.mrf.mxu3  ;;  %v733_v43 = vpop.f32.mrf.mxu2 }
 0x1a6   : >> { %v799_v60 = vadd.f32 %v798_v21, %v3142_v1  ;;  %v734_v63 = vadd.f32 %v733_v43, %v3144_v2  ;;  %2123 = vmatmul.msk.f32.gmra.mxu3 %vm1229_vm11, %v1210_v14  ;;  %2170 = vmatmul.msk.f32.gmra.mxu1 %vm1229_vm11, %v1210_v14 }
 0x1a7   : >> { %1312 = vmatmul.f32.gmra.mxu2 %v1209_v20  ;;  %1442 = vmatmul.f32.gmra.mxu0 %v1209_v20 }
 0x1a8   : >> { %v1052_v49 = vadd.f32 %v1010_v61, %v799_v60  ;;  %v1051_v50 = vadd.f32 %v945_v62, %v734_v63 }
 0x1a9   : >> { %v1013_v48 = vpop.f32.mrf.mxu1  ;;  %v948_v57 = vpop.f32.mrf.mxu0 }
 0x1aa   : >> { %v1180_v36 = vadd.f32 %v1123_v44, %v1052_v49  ;;  %v1179_v37 = vadd.f32 %v1123_v44, %v1051_v50  ;;  %v1138_v44 = vpop.permute.xlu2 %1137 }
 0x1ac   : >> { %v1212_v4 = vmax.f32 %v1180_v36, 0.0  ;;  %v1211_v55 = vmax.f32 %v1179_v37, 0.0 }
 0x1ad   : >> { %v801_v56 = vpop.f32.mrf.mxu3  ;;  %v736_v6 = vpop.f32.mrf.mxu2 }
 0x1ae   : >> { %v802_v1 = vadd.f32 %v801_v56, %v3027_v46  ;;  %v737_v2 = vadd.f32 %v736_v6, %v3029_v47  ;;  %2124 = vmatmul.msk.f32.gmra.mxu3 %vm1229_vm11, %v1212_v4  ;;  %2171 = vmatmul.msk.f32.gmra.mxu1 %vm1229_vm11, %v1212_v4 }
 0x1af   : >> { %1315 = vmatmul.f32.gmra.mxu2 %v1211_v55  ;;  %1445 = vmatmul.f32.gmra.mxu0 %v1211_v55 }
 0x1b0   : >> { %v1054_v8 = vadd.f32 %v1013_v48, %v802_v1  ;;  %v1053_v9 = vadd.f32 %v948_v57, %v737_v2  ;;  %v1143_v1 = vpop.permute.xlu0 %1142 }
 0x1b1   : >> { %v1016_v10 = vpop.f32.mrf.mxu1  ;;  %v951_v11 = vpop.f32.mrf.mxu0 }
 0x1b2   : >> { %v1182_v12 = vadd.f32 %v1128_v7, %v1054_v8  ;;  %v1181_v13 = vadd.f32 %v1128_v7, %v1053_v9 }
 0x1b4   : >> { %v1214_v42 = vmax.f32 %v1182_v12, 0.0  ;;  %v1213_v45 = vmax.f32 %v1181_v13, 0.0 }
 0x1b5   : >> { %v804_v15 = vpop.f32.mrf.mxu3  ;;  %v739_v16 = vpop.f32.mrf.mxu2 }
 0x1b6   : >> { %v805_v46 = vadd.f32 %v804_v15, %v3045_v52  ;;  %v740_v47 = vadd.f32 %v739_v16, %v3047_v53  ;;  %2125 = vmatmul.msk.f32.gmra.mxu3 %vm1229_vm11, %v1214_v42  ;;  %2172 = vmatmul.msk.f32.gmra.mxu1 %vm1229_vm11, %v1214_v42  ;;  %v1148_v15 = vpop.permute.xlu1 %1147 }
 0x1b7   : >> { %1318 = vmatmul.f32.gmra.mxu2 %v1213_v45  ;;  %1448 = vmatmul.f32.gmra.mxu0 %v1213_v45 }
 0x1b8   : >> { %v1056_v61 = vadd.f32 %v1016_v10, %v805_v46  ;;  %v1055_v62 = vadd.f32 %v951_v11, %v740_v47 }
 0x1b9   : >> { %v1019_v19 = vpop.f32.mrf.mxu1  ;;  %v954_v17 = vpop.f32.mrf.mxu0 }
 0x1ba   : >> { %v1184_v14 = vadd.f32 %v1133_v18, %v1056_v61  ;;  %v1183_v20 = vadd.f32 %v1133_v18, %v1055_v62 }
 0x1bc   : >> { %v1216_v21 = vmax.f32 %v1184_v14, 0.0  ;;  %v1215_v43 = vmax.f32 %v1183_v20, 0.0 }
 0x1bd   : >> { %v807_v60 = vpop.f32.mrf.mxu3  ;;  %v742_v63 = vpop.f32.mrf.mxu2 }
 0x1be   : >> { %v808_v52 = vadd.f32 %v807_v60, %v3063_v58  ;;  %v743_v53 = vadd.f32 %v742_v63, %v3065_v59  ;;  %2126 = vmatmul.msk.f32.gmra.mxu3 %vm1229_vm11, %v1216_v21  ;;  %2173 = vmatmul.msk.f32.gmra.mxu1 %vm1229_vm11, %v1216_v21  ;;  %v1153_v60 = vpop.permute.xlu2 %1152 }
 0x1bf   : >> { %1321 = vmatmul.f32.gmra.mxu2 %v1215_v43  ;;  %1451 = vmatmul.f32.gmra.mxu0 %v1215_v43 }
 0x1c0   : >> { %v1058_v49 = vadd.f32 %v1019_v19, %v808_v52  ;;  %v1057_v50 = vadd.f32 %v954_v17, %v743_v53 }
 0x1c1   : >> { %v1022_v48 = vpop.f32.mrf.mxu1  ;;  %v957_v57 = vpop.f32.mrf.mxu0 }
 0x1c2   : >> { %v1186_v36 = vadd.f32 %v1138_v44, %v1058_v49  ;;  %v1185_v37 = vadd.f32 %v1138_v44, %v1057_v50 }
 0x1c4   : >> { %v1218_v4 = vmax.f32 %v1186_v36, 0.0  ;;  %v1217_v55 = vmax.f32 %v1185_v37, 0.0 }
 0x1c5   : >> { %v810_v56 = vpop.f32.mrf.mxu3  ;;  %v745_v6 = vpop.f32.mrf.mxu2 }
 0x1c6   : >> { %v811_v58 = vadd.f32 %v810_v56, %v3081_v0  ;;  %v746_v59 = vadd.f32 %v745_v6, %v3083_v5  ;;  %2127 = vmatmul.msk.f32.gmra.mxu3 %vm1229_vm11, %v1218_v4  ;;  %2174 = vmatmul.msk.f32.gmra.mxu1 %vm1229_vm11, %v1218_v4  ;;  %v1158_v4 = vpop.permute.xlu0 %1157 }
 0x1c7   : >> { %1324 = vmatmul.f32.gmra.mxu2 %v1217_v55  ;;  %1454 = vmatmul.f32.gmra.mxu0 %v1217_v55 }
 0x1c8   : >> { %v1060_v2 = vadd.f32 %v1022_v48, %v811_v58  ;;  %v1059_v7 = vadd.f32 %v957_v57, %v746_v59 }
 0x1c9   : >> { %v1025_v8 = vpop.f32.mrf.mxu1  ;;  %v960_v9 = vpop.f32.mrf.mxu0 }
 0x1ca   : >> { %v1188_v10 = vadd.f32 %v1143_v1, %v1060_v2  ;;  %v1187_v11 = vadd.f32 %v1143_v1, %v1059_v7 }
 0x1cc   : >> { %v1220_v12 = vmax.f32 %v1188_v10, 0.0  ;;  %v1219_v13 = vmax.f32 %v1187_v11, 0.0  ;;  %v1163_v10 = vpop.permute.xlu1 %1162 }
 0x1cd   : >> { %v813_v42 = vpop.f32.mrf.mxu3  ;;  %v748_v45 = vpop.f32.mrf.mxu2 }
 0x1ce   : >> { %v814_v0 = vadd.f32 %v813_v42, %v3099_v39  ;;  %v749_v5 = vadd.f32 %v748_v45, %v3101_v40  ;;  %2128 = vmatmul.msk.f32.gmra.mxu3 %vm1229_vm11, %v1220_v12  ;;  %2175 = vmatmul.msk.f32.gmra.mxu1 %vm1229_vm11, %v1220_v12 }
 0x1cf   : >> { %1327 = vmatmul.f32.gmra.mxu2 %v1219_v13  ;;  %1457 = vmatmul.f32.gmra.mxu0 %v1219_v13 }
 0x1d0   : >> { %v1062_v16 = vadd.f32 %v1025_v8, %v814_v0  ;;  %v1061_v46 = vadd.f32 %v960_v9, %v749_v5 }
 0x1d1   : >> { %v1028_v47 = vpop.f32.mrf.mxu1  ;;  %v963_v18 = vpop.f32.mrf.mxu0 }
 0x1d2   : >> { %v1190_v61 = vadd.f32 %v1148_v15, %v1062_v16  ;;  %v1189_v62 = vadd.f32 %v1148_v15, %v1061_v46 }
 0x1d4   : >> { %v1222_v19 = vmax.f32 %v1190_v61, 0.0  ;;  %v1221_v17 = vmax.f32 %v1189_v62, 0.0 }
 0x1d5   : >> { %v816_v14 = vpop.f32.mrf.mxu3  ;;  %v751_v20 = vpop.f32.mrf.mxu2 }
 0x1d6   : >> { %v817_v39 = vadd.f32 %v816_v14, %v3117_v51  ;;  %v752_v40 = vadd.f32 %v751_v20, %v3119_v54  ;;  %2129 = vmatmul.msk.f32.gmra.mxu3 %vm1229_vm11, %v1222_v19  ;;  %2176 = vmatmul.msk.f32.gmra.mxu1 %vm1229_vm11, %v1222_v19 }
 0x1d7   : >> { %1330 = vmatmul.f32.gmra.mxu2 %v1221_v17  ;;  %1460 = vmatmul.f32.gmra.mxu0 %v1221_v17 }
 0x1d8   : >> { %v1064_v21 = vadd.f32 %v1028_v47, %v817_v39  ;;  %v1063_v43 = vadd.f32 %v963_v18, %v752_v40 }
 0x1d9   : >> { %v1031_v53 = vpop.f32.mrf.mxu1  ;;  %v966_v44 = vpop.f32.mrf.mxu0 }
 0x1da   : >> { %v1192_v63 = vadd.f32 %v1153_v60, %v1064_v21  ;;  %v1191_v52 = vadd.f32 %v1153_v60, %v1063_v43 }
 0x1dc   : >> { %v1224_v49 = vmax.f32 %v1192_v63, 0.0  ;;  %v1223_v50 = vmax.f32 %v1191_v52, 0.0 }
 0x1dd   : >> { %v819_v48 = vpop.f32.mrf.mxu3  ;;  %v754_v57 = vpop.f32.mrf.mxu2 }
 0x1de   : >> { %v820_v51 = vadd.f32 %v819_v48, %v3135_v38  ;;  %v755_v54 = vadd.f32 %v754_v57, %v3137_v41  ;;  %2130 = vmatmul.msk.f32.gmra.mxu3 %vm1229_vm11, %v1224_v49  ;;  %2177 = vmatmul.msk.f32.gmra.mxu1 %vm1229_vm11, %v1224_v49 }
 0x1df   : >> { %1333 = vmatmul.f32.gmra.mxu2 %v1223_v50  ;;  %1463 = vmatmul.f32.gmra.mxu0 %v1223_v50 }
 0x1e0   : >> { %v1066_v36 = vadd.f32 %v1031_v53, %v820_v51  ;;  %v1065_v37 = vadd.f32 %v966_v44, %v755_v54 }
 0x1e1   : >> { %v1034_v59 = vpop.f32.mrf.mxu1  ;;  %v969_v1 = vpop.f32.mrf.mxu0 }
 0x1e2   : >> { %v1194_v55 = vadd.f32 %v1158_v4, %v1066_v36  ;;  %v1193_v56 = vadd.f32 %v1158_v4, %v1065_v37 }
 0x1e4   : >> { %v1226_v6 = vmax.f32 %v1194_v55, 0.0  ;;  %v1225_v58 = vmax.f32 %v1193_v56, 0.0 }
 0x1e5   : >> { %v822_v2 = vpop.f32.mrf.mxu3  ;;  %v757_v7 = vpop.f32.mrf.mxu2 }
 0x1e6   : >> { %v823_v38 = vadd.f32 %v822_v2, %v3153_v35  ;;  %v758_v41 = vadd.f32 %v757_v7, %v3155_v3  ;;  %2131 = vmatmul.msk.f32.gmra.mxu3 %vm1229_vm11, %v1226_v6  ;;  %2178 = vmatmul.msk.f32.gmra.mxu1 %vm1229_vm11, %v1226_v6 }
 0x1e7   : >> { %1336 = vmatmul.f32.gmra.mxu2 %v1225_v58  ;;  %1466 = vmatmul.f32.gmra.mxu0 %v1225_v58 }
 0x1e8   : >> { %v1068_v8 = vadd.f32 %v1034_v59, %v823_v38  ;;  %v1067_v9 = vadd.f32 %v969_v1, %v758_v41 }
 0x1ea   : >> { %v1196_v11 = vadd.f32 %v1163_v10, %v1068_v8  ;;  %v1195_v12 = vadd.f32 %v1163_v10, %v1067_v9 }
 0x1ec   : >> { %v1228_v13 = vmax.f32 %v1196_v11, 0.0  ;;  %v1227_v42 = vmax.f32 %v1195_v12, 0.0 }
 0x1ee   : >> { %2132 = vmatmul.msk.f32.gmra.mxu3 %vm1229_vm11, %v1228_v13  ;;  %2179 = vmatmul.msk.f32.gmra.mxu1 %vm1229_vm11, %v1228_v13  ;;  %vm1694_vm11 = vcmask 1045509  }
 0x1ef   : >> { %1339 = vmatmul.f32.gmra.mxu2 %v1227_v42  ;;  %1469 = vmatmul.f32.gmra.mxu0 %v1227_v42 }
 0x1f3   : >> { %v1490_v3 = vpop.f32.mrf.mxu1 }
 0x1f4   : >> { %v1425_v35 = vpop.f32.mrf.mxu0 }
 0x1f5   : >> { %v1491_v48 = vadd.f32 %v1490_v3, %v1425_v35 }
 0x1f9   : >> { %v1360_v45 = vpop.f32.mrf.mxu3 }
 0x1fa   : >> { %v1295_v0 = vpop.f32.mrf.mxu2 }
 0x1fb   : >> { %v1493_v5 = vpop.f32.mrf.mxu1  ;;  %v1361_v44 = vadd.f32 %v1360_v45, %v1295_v0 }
 0x1fc   : >> { %v1428_v15 = vpop.f32.mrf.mxu0 }
 0x1fd   : >> { %v1494_v49 = vadd.f32 %v1493_v5, %v1428_v15  ;;  %v1538_v54 = vmax.f32 %v1361_v44, %v1491_v48 }
 0x1ff   : >> { %v1570_v7 = vrot.slane %v1538_v54, 1 }
 0x201   : >> { %v1363_v16 = vpop.f32.mrf.mxu3  ;;  %v1602_v12 = vmax.f32 %v1538_v54, %v1570_v7 }
 0x202   : >> { %v1298_v46 = vpop.f32.mrf.mxu2 }
 0x203   : >> { %v1496_v47 = vpop.f32.mrf.mxu1  ;;  %v1364_v60 = vadd.f32 %v1363_v16, %v1298_v46 }
 0x204   : >> { %v1431_v18 = vpop.f32.mrf.mxu0 }
 0x205   : >> { %v1497_v50 = vadd.f32 %v1496_v47, %v1431_v18  ;;  %v1539_v57 = vmax.f32 %v1364_v60, %v1494_v49 }
 0x207   : >> { %v1571_v56 = vrot.slane %v1539_v57, 1 }
 0x209   : >> { %v1366_v61 = vpop.f32.mrf.mxu3  ;;  %v1603_v9 = vmax.f32 %v1539_v57, %v1571_v56 }
 0x20a   : >> { %v1301_v62 = vpop.f32.mrf.mxu2 }
 0x20b   : >> { %v1499_v19 = vpop.f32.mrf.mxu1  ;;  %v1367_v52 = vadd.f32 %v1366_v61, %v1301_v62  ;;  %v1683_v0 = vrot.slane %v1603_v9, 7  ;;  %v2205_v5 = vrot.slane %v1603_v9, 13  ;;  %v2181_v16 = vrot.slane %v1603_v9, 9 }
 0x20c   : >> { %v1434_v17 = vpop.f32.mrf.mxu0  ;;  %v1666_v62 = vrot.slane %v1602_v12, 6 }
 0x20d   : >> { %v1540_v51 = vmax.f32 %v1367_v52, %v1497_v50  ;;  %v1500_v6 = vadd.f32 %v1499_v19, %v1434_v17  ;;  %v2193_v19 = vrot.slane %v1603_v9, 11  ;;  %v1685_v60 = vsel %vm1684_vm10, %v1683_v0, %v1602_v12 }
 0x20f   : >> { %v1572_v1 = vrot.slane %v1540_v51, 1 }
 0x211   : >> { %v1369_v14 = vpop.f32.mrf.mxu3  ;;  %v1604_v10 = vmax.f32 %v1540_v51, %v1572_v1 }
 0x212   : >> { %v1304_v20 = vpop.f32.mrf.mxu2 }
 0x213   : >> { %v1502_v39 = vpop.f32.mrf.mxu1  ;;  %v1370_v36 = vadd.f32 %v1369_v14, %v1304_v20  ;;  %v1668_v46 = vrot.slane %v1604_v10, 6  ;;  %v1634_v20 = vrot.slane %v1602_v12, 2  ;;  %v2194_v52 = vrot.slane %v1604_v10, 10 }
 0x214   : >> { %v1437_v40 = vpop.f32.mrf.mxu0 }
 0x215   : >> { %v1503_v58 = vadd.f32 %v1502_v39, %v1437_v40  ;;  %v1541_v38 = vmax.f32 %v1370_v36, %v1500_v6  ;;  %v1650_v39 = vrot.slane %v1602_v12, 4  ;;  %v1687_v54 = vsel %vm1686_vm2, %v1668_v46, %v1685_v60 }
 0x217   : >> { %v1573_v13 = vrot.slane %v1541_v38, 1  ;;  %v1741_v50 = vsel %vm1684_vm10, %v2193_v19, %v1650_v39 }
 0x219   : >> { %v1372_v21 = vpop.f32.mrf.mxu3  ;;  %v1605_v17 = vmax.f32 %v1541_v38, %v1573_v13 }
 0x21a   : >> { %v1307_v43 = vpop.f32.mrf.mxu2 }
 0x21b   : >> { %v1505_v63 = vpop.f32.mrf.mxu1  ;;  %v1373_v37 = vadd.f32 %v1372_v21, %v1307_v43  ;;  %v1769_v43 = vsel %vm1684_vm10, %v2205_v5, %v1666_v62  ;;  %v2195_v48 = vrot.slane %v1605_v17, 9  ;;  %v1688_v36 = vrot.slane %v1605_v17, 5 }
 0x21c   : >> { %v1440_v53 = vpop.f32.mrf.mxu0  ;;  %v2183_v56 = vrot.slane %v1605_v17, 7  ;;  %v2206_v6 = vrot.slane %v1605_v17, 11 }
 0x21d   : >> { %v1542_v41 = vmax.f32 %v1373_v37, %v1503_v58  ;;  %v1506_v11 = vadd.f32 %v1505_v63, %v1440_v53  ;;  %v1713_v63 = vsel %vm1684_vm10, %v2181_v16, %v1634_v20  ;;  %v1770_v53 = vrot.slane %v1668_v46, 6 }
 0x21e   : >> { %v1715_v49 = vsel %vm1686_vm2, %v1604_v10, %v1713_v63 }
 0x21f   : >> { %v1574_v42 = vrot.slane %v1542_v41, 1  ;;  %v1771_v7 = vsel %vm1686_vm2, %v1770_v53, %v1769_v43 }
 0x220   : >> { %v1773_v0 = vsel %vm1689_vm0, %v2206_v6, %v1771_v7 }
 0x221   : >> { %v1375_v4 = vpop.f32.mrf.mxu3  ;;  %v1606_v14 = vmax.f32 %v1542_v41, %v1574_v42 }
 0x222   : >> { %v1310_v55 = vpop.f32.mrf.mxu2 }
 0x223   : >> { %v1508_v59 = vpop.f32.mrf.mxu1  ;;  %v1376_v8 = vadd.f32 %v1375_v4, %v1310_v55  ;;  %v1654_v57 = vrot.slane %v1606_v14, 4  ;;  %v2184_v9 = vrot.slane %v1606_v14, 6  ;;  %v2207_v12 = vrot.slane %v1606_v14, 10 }
 0x224   : >> { %v1443_v2 = vpop.f32.mrf.mxu0 }
 0x225   : >> { %v1543_v35 = vmax.f32 %v1376_v8, %v1506_v11  ;;  %v1509_v47 = vadd.f32 %v1508_v59, %v1443_v2  ;;  %v1743_v2 = vsel %vm1686_vm2, %v2194_v52, %v1741_v50  ;;  %v1746_v10 = vrot.slane %v1654_v57, 4 }
 0x226   : >> { %v1745_v8 = vsel %vm1689_vm0, %v2195_v48, %v1743_v2  ;;  %v1775_v39 = vsel %vm1691_vm9, %v2207_v12, %v1773_v0 }
 0x227   : >> { %v1575_v40 = vrot.slane %v1543_v35, 1 }
 0x229   : >> { %v1378_v3 = vpop.f32.mrf.mxu3  ;;  %v1607_v37 = vmax.f32 %v1543_v35, %v1575_v40  ;;  %v1690_v35 = vsel %vm1689_vm0, %v1688_v36, %v1687_v54 }
 0x22a   : >> { %v1313_v45 = vpop.f32.mrf.mxu2 }
 0x22b   : >> { %v1511_v15 = vpop.f32.mrf.mxu1  ;;  %v1379_v18 = vadd.f32 %v1378_v3, %v1313_v45  ;;  %v1693_v13 = vrot.slane %v1607_v37, 3  ;;  %v2185_v42 = vrot.slane %v1607_v37, 5  ;;  %v2196_v3 = vrot.slane %v1607_v37, 7 }
 0x22c   : >> { %v1446_v61 = vpop.f32.mrf.mxu0  ;;  %v1717_v45 = vsel %vm1689_vm0, %v2183_v56, %v1715_v49 }
 0x22d   : >> { %v1544_v21 = vmax.f32 %v1379_v18, %v1509_v47  ;;  %v1512_v58 = vadd.f32 %v1511_v15, %v1446_v61  ;;  %v2208_v15 = vrot.slane %v1607_v37, 9  ;;  %v1692_v47 = vsel %vm1691_vm9, %v1654_v57, %v1690_v35 }
 0x22e   : >> { %v1719_v18 = vsel %vm1691_vm9, %v2184_v9, %v1717_v45  ;;  %v1747_v61 = vsel %vm1691_vm9, %v1746_v10, %v1745_v8  ;;  %v1695_v14 = vsel %vm1694_vm11, %v1693_v13, %v1692_v47 }
 0x22f   : >> { %v1576_v44 = vrot.slane %v1544_v21, 1  ;;  %v1721_v17 = vsel %vm1694_vm11, %v2185_v42, %v1719_v18  ;;  %v1749_v20 = vsel %vm1694_vm11, %v2196_v3, %v1747_v61  ;;  %v1777_v50 = vsel %vm1694_vm11, %v2208_v15, %v1775_v39 }
 0x231   : >> { %v1381_v51 = vpop.f32.mrf.mxu3  ;;  %v1608_v4 = vmax.f32 %v1544_v21, %v1576_v44 }
 0x232   : >> { %v1316_v55 = vpop.f32.mrf.mxu2 }
 0x233   : >> { %v1382_v59 = vadd.f32 %v1381_v51, %v1316_v55  ;;  %v3227_v1 = vpop.f32.mrf.mxu1  ;;  %v1640_v38 = vrot.slane %v1608_v4, 2  ;;  %v2197_v46 = vrot.slane %v1608_v4, 6  ;;  %v1779_v57 = vsel %vm1696_vm1, %v1608_v4, %v1777_v50 }
 0x234   : >> { %v3231_v41 = vpop.f32.mrf.mxu0 }
 0x235   : >> { %v1545_v11 = vmax.f32 %v1382_v59, %v1512_v58  ;;  %v1722_v16 = vrot.slane %v1640_v38, 2  ;;  %v1697_v53 = vsel %vm1696_vm1, %v1640_v38, %v1695_v14  ;;  %v1751_v49 = vsel %vm1696_vm1, %v2197_v46, %v1749_v20 }
 0x236   : >> { %v1515_v3 = vadd.f32 %v3227_v1, %v3231_v41 }
 0x237   : >> { %v1577_v5 = vrot.slane %v1545_v11, 1  ;;  %v1723_v44 = vsel %vm1696_vm1, %v1722_v16, %v1721_v17 }
 0x239   : >> { %v1609_v62 = vmax.f32 %v1545_v11, %v1577_v5  ;;  %v1384_v19 = vpop.f32.mrf.mxu3 }
 0x23a   : >> { %v1319_v40 = vpop.f32.mrf.mxu2 }
 0x23b   : >> { %v1698_v21 = vrot.slane %v1609_v62, 1  ;;  %v2186_v43 = vrot.slane %v1609_v62, 3  ;;  %v2198_v60 = vrot.slane %v1609_v62, 5  ;;  %v2210_v63 = vrot.slane %v1609_v62, 7  ;;  %v1517_v52 = vpop.f32.mrf.mxu1 }
 0x23c   : >> { %v1452_v48 = vpop.f32.mrf.mxu0  ;;  %v1385_v10 = vadd.f32 %v1384_v19, %v1319_v40 }
 0x23d   : >> { %v1700_v51 = vsel %vm1699_vm3, %v1698_v21, %v1697_v53  ;;  %v1725_v54 = vsel %vm1699_vm3, %v2186_v43, %v1723_v44  ;;  %v1753_v36 = vsel %vm1699_vm3, %v2198_v60, %v1751_v49  ;;  %v1781_v37 = vsel %vm1699_vm3, %v2210_v63, %v1779_v57 }
 0x23e   : >> { %1807 = vst.msk [vmem:[%s3246_s17] sm:$0xff] %vm1806_vm4, %v1700_v51  ;;  %v1518_v11 = vadd.f32 %v1517_v52, %v1452_v48  ;;  %v1546_v15 = vmax.f32 %v1385_v10, %v1515_v3 }
 0x23f   : >> { %1809 = vst.msk [vmem:[%s3246_s17 + $0x10] sm:$0xff] %vm1806_vm4, %v1725_v54 }
 0x240   : >> { %1811 = vst.msk [vmem:[%s3246_s17 + $0x20] sm:$0xff] %vm1806_vm4, %v1753_v36  ;;  %v1578_v62 = vrot.slane %v1546_v15, 1 }
 0x241   : >> { %1813 = vst.msk [vmem:[%s3246_s17 + $0x30] sm:$0xff] %vm1806_vm4, %v1781_v37  ;;  %v1387_v55 = vpop.f32.mrf.mxu3 }
 0x242   : >> { %v1322_v56 = vpop.f32.mrf.mxu2  ;;  %v1610_v1 = vmax.f32 %v1546_v15, %v1578_v62 }
 0x243   : >> { %v1520_v6 = vpop.f32.mrf.mxu1  ;;  %v1388_v38 = vadd.f32 %v1387_v55, %v1322_v56 }
 0x244   : >> { %v1455_v4 = vpop.f32.mrf.mxu0  ;;  %v1674_v49 = vrot.slane %v1610_v1, 6  ;;  %v1642_v54 = vrot.slane %v1610_v1, 2  ;;  %v1658_v56 = vrot.slane %v1610_v1, 4 }
 0x245   : >> { %v1521_v13 = vadd.f32 %v1520_v6, %v1455_v4  ;;  %v1547_v35 = vmax.f32 %v1388_v38, %v1518_v11 }
 0x247   : >> { %v1579_v46 = vrot.slane %v1547_v35, 1 }
 0x249   : >> { %v1390_v58 = vpop.f32.mrf.mxu3  ;;  %v1611_v19 = vmax.f32 %v1547_v35, %v1579_v46 }
 0x24a   : >> { %v1325_v59 = vpop.f32.mrf.mxu2 }
 0x24b   : >> { %v1523_v2 = vpop.f32.mrf.mxu1  ;;  %v1391_v8 = vadd.f32 %v1390_v58, %v1325_v59  ;;  %v2211_v60 = vrot.slane %v1611_v19, 13  ;;  %v1701_v50 = vrot.slane %v1611_v19, 7  ;;  %v2187_v48 = vrot.slane %v1611_v19, 9 }
 0x24c   : >> { %v1458_v7 = vpop.f32.mrf.mxu0  ;;  %v2199_v36 = vrot.slane %v1611_v19, 11 }
 0x24d   : >> { %v1548_v0 = vmax.f32 %v1391_v8, %v1521_v13  ;;  %v1524_v16 = vadd.f32 %v1523_v2, %v1458_v7  ;;  %v1783_v6 = vsel %vm1684_vm10, %v2211_v60, %v1674_v49  ;;  %v1702_v8 = vsel %vm1684_vm10, %v1701_v50, %v1610_v1 }
 0x24e   : >> { %v1755_v35 = vsel %vm1684_vm10, %v2199_v36, %v1658_v56 }
 0x24f   : >> { %v1580_v47 = vrot.slane %v1548_v0, 1 }
 0x251   : >> { %v1393_v9 = vpop.f32.mrf.mxu3  ;;  %v1612_v21 = vmax.f32 %v1548_v0, %v1580_v47 }
 0x252   : >> { %v1328_v12 = vpop.f32.mrf.mxu2 }
 0x253   : >> { %v1526_v42 = vpop.f32.mrf.mxu1  ;;  %v1394_v5 = vadd.f32 %v1393_v9, %v1328_v12  ;;  %v1676_v52 = vrot.slane %v1612_v21, 6  ;;  %v2200_v4 = vrot.slane %v1612_v21, 10  ;;  %v1727_v9 = vsel %vm1684_vm10, %v2187_v48, %v1642_v54 }
 0x254   : >> { %v1461_v45 = vpop.f32.mrf.mxu0  ;;  %v1729_v3 = vsel %vm1686_vm2, %v1612_v21, %v1727_v9 }
 0x255   : >> { %v1549_v18 = vmax.f32 %v1394_v5, %v1524_v16  ;;  %v1527_v14 = vadd.f32 %v1526_v42, %v1461_v45  ;;  %v1784_v59 = vrot.slane %v1676_v52, 6  ;;  %v1703_v42 = vsel %vm1686_vm2, %v1676_v52, %v1702_v8 }
 0x256   : >> { %v1757_v0 = vsel %vm1686_vm2, %v2200_v4, %v1755_v35 }
 0x257   : >> { %v1581_v43 = vrot.slane %v1549_v18, 1  ;;  %v1785_v46 = vsel %vm1686_vm2, %v1784_v59, %v1783_v6 }
 0x259   : >> { %v1396_v61 = vpop.f32.mrf.mxu3  ;;  %v1613_v53 = vmax.f32 %v1549_v18, %v1581_v43 }
 0x25a   : >> { %v1331_v17 = vpop.f32.mrf.mxu2 }
 0x25b   : >> { %v1397_v20 = vadd.f32 %v1396_v61, %v1331_v17  ;;  %v1529_v39 = vpop.f32.mrf.mxu1  ;;  %v1704_v2 = vrot.slane %v1613_v53, 5  ;;  %v2201_v7 = vrot.slane %v1613_v53, 9  ;;  %v2189_v10 = vrot.slane %v1613_v53, 7 }
 0x25c   : >> { %v1464_v40 = vpop.f32.mrf.mxu0  ;;  %v2212_v11 = vrot.slane %v1613_v53, 11 }
 0x25d   : >> { %v1550_v41 = vmax.f32 %v1397_v20, %v1527_v14  ;;  %v1530_v37 = vadd.f32 %v1529_v39, %v1464_v40  ;;  %v1759_v47 = vsel %vm1689_vm0, %v2201_v7, %v1757_v0  ;;  %v1705_v18 = vsel %vm1689_vm0, %v1704_v2, %v1703_v42 }
 0x25e   : >> { %v1731_v19 = vsel %vm1689_vm0, %v2189_v10, %v1729_v3  ;;  %v1787_v39 = vsel %vm1689_vm0, %v2212_v11, %v1785_v46 }
 0x25f   : >> { %v1582_v63 = vrot.slane %v1550_v41, 1 }
 0x261   : >> { %v1399_v44 = vpop.f32.mrf.mxu3  ;;  %v1614_v57 = vmax.f32 %v1550_v41, %v1582_v63 }
 0x262   : >> { %v1334_v51 = vpop.f32.mrf.mxu2 }
 0x263   : >> { %v1400_v55 = vadd.f32 %v1399_v44, %v1334_v51  ;;  %v1662_v58 = vrot.slane %v1614_v57, 4  ;;  %v1532_v12 = vpop.f32.mrf.mxu1  ;;  %v2190_v5 = vrot.slane %v1614_v57, 6  ;;  %v2213_v16 = vrot.slane %v1614_v57, 10 }
 0x264   : >> { %v1467_v13 = vpop.f32.mrf.mxu0 }
 0x265   : >> { %v1551_v38 = vmax.f32 %v1400_v55, %v1530_v37  ;;  %v1760_v15 = vrot.slane %v1662_v58, 4  ;;  %v1706_v17 = vsel %vm1691_vm9, %v1662_v58, %v1705_v18  ;;  %v1533_v14 = vadd.f32 %v1532_v12, %v1467_v13 }
 0x266   : >> { %v1733_v41 = vsel %vm1691_vm9, %v2190_v5, %v1731_v19  ;;  %v1789_v52 = vsel %vm1691_vm9, %v2213_v16, %v1787_v39 }
 0x267   : >> { %v1583_v45 = vrot.slane %v1551_v38, 1  ;;  %v1761_v60 = vsel %vm1691_vm9, %v1760_v15, %v1759_v47 }
 0x269   : >> { %v1615_v61 = vmax.f32 %v1551_v38, %v1583_v45  ;;  %v1402_v62 = vpop.f32.mrf.mxu3 }
 0x26a   : >> { %v1337_v20 = vpop.f32.mrf.mxu2 }
 0x26b   : >> { %v1707_v40 = vrot.slane %v1615_v61, 3  ;;  %v2191_v21 = vrot.slane %v1615_v61, 5  ;;  %v2202_v43 = vrot.slane %v1615_v61, 7  ;;  %v2214_v1 = vrot.slane %v1615_v61, 9  ;;  %v1535_v51 = vpop.f32.mrf.mxu1 }
 0x26c   : >> { %v1403_v63 = vadd.f32 %v1402_v62, %v1337_v20  ;;  %v1470_v54 = vpop.f32.mrf.mxu0 }
 0x26d   : >> { %v1735_v53 = vsel %vm1694_vm11, %v2191_v21, %v1733_v41  ;;  %v1708_v44 = vsel %vm1694_vm11, %v1707_v40, %v1706_v17  ;;  %v1763_v49 = vsel %vm1694_vm11, %v2202_v43, %v1761_v60  ;;  %v1791_v50 = vsel %vm1694_vm11, %v2214_v1, %v1789_v52 }
 0x26e   : >> { %v1552_v48 = vmax.f32 %v1403_v63, %v1533_v14  ;;  %v1536_v56 = vadd.f32 %v1535_v51, %v1470_v54 }
 0x270   : >> { %v1584_v57 = vrot.slane %v1552_v48, 1 }
 0x271   : >> { %v1405_v36 = vpop.f32.mrf.mxu3 }
 0x272   : >> { %v1616_v37 = vmax.f32 %v1552_v48, %v1584_v57  ;;  %v1340_v55 = vpop.f32.mrf.mxu2 }
 0x273   : >> { %v1406_v6 = vadd.f32 %v1405_v36, %v1340_v55 }
 0x274   : >> { %v1648_v4 = vrot.slane %v1616_v37, 2  ;;  %v2203_v7 = vrot.slane %v1616_v37, 6  ;;  %v1793_v3 = vsel %vm1696_vm1, %v1616_v37, %v1791_v50 }
 0x275   : >> { %v1553_v58 = vmax.f32 %v1406_v6, %v1536_v56 }
 0x276   : >> { %v1736_v2 = vrot.slane %v1648_v4, 2  ;;  %v1709_v12 = vsel %vm1696_vm1, %v1648_v4, %v1708_v44  ;;  %v1765_v42 = vsel %vm1696_vm1, %v2203_v7, %v1763_v49 }
 0x277   : >> { %v1585_v59 = vrot.slane %v1553_v58, 1 }
 0x278   : >> { %v1737_v13 = vsel %vm1696_vm1, %v1736_v2, %v1735_v53 }
 0x279   : >> { %v1617_v38 = vmax.f32 %v1553_v58, %v1585_v59 }
 0x27b   : >> { %v1710_v8 = vrot.slane %v1617_v38, 1  ;;  %v2192_v9 = vrot.slane %v1617_v38, 3  ;;  %v2204_v10 = vrot.slane %v1617_v38, 5  ;;  %v2216_v11 = vrot.slane %v1617_v38, 7 }
 0x27d   : >> { %v1711_v35 = vsel %vm1699_vm3, %v1710_v8, %v1709_v12  ;;  %v1739_v45 = vsel %vm1699_vm3, %v2192_v9, %v1737_v13  ;;  %v1767_v0 = vsel %vm1699_vm3, %v2204_v10, %v1765_v42  ;;  %v1795_v5 = vsel %vm1699_vm3, %v2216_v11, %v1793_v3  ;;  %397 = sbr.rel (!%p395_p4) target bundleno = 36 (0x24), region = 73 }
 0x27e   : >> { %1808 = vst.msk [vmem:[%s3246_s17 + $0x8] sm:$0xff] %vm1806_vm4, %v1711_v35 }
 0x27f   : >> { %1810 = vst.msk [vmem:[%s3246_s17 + $0x18] sm:$0xff] %vm1806_vm4, %v1739_v45 }
 0x280   : >> { %1812 = vst.msk [vmem:[%s3246_s17 + $0x28] sm:$0xff] %vm1806_vm4, %v1767_v0 }
 0x281   : >> { %1814 = vst.msk [vmem:[%s3246_s17 + $0x38] sm:$0xff] %vm1806_vm4, %v1795_v5 }
 0x282 PF: > { %s13_s12 = sadd.s32 1, %s2271_s12  }
 0x283   : > { %p10_p5 = scmp.ge.s32.totalorder %s13_s12, 4  }
 0x285   :  { %12 = sbr.rel (!%p10_p5) target bundleno = 1 (0x1), region = 84 }

// kernel: emotion_cnn_forward.4
= control target key start
LH: loop header
LB: loop body
LE: loop exit
PB: predicated region body
PF: predicated region fallthrough
CT: control target
= control target key end

     0   :  { %s3479_s12 = smov 0   ;;  %s5220_s0 = inlined_call_operand.vmem [shape: f32[2,2080,126], index: 0, kind: input, shape index: {}]   ;;  %s5221_s1 = inlined_call_operand.vmem [shape: f32[3,256,160], index: 1, kind: input, shape index: {}]   ;;  %s5222_s2 = inlined_call_operand.vmem [shape: f32[256,1], index: 2, kind: input, shape index: {}]   ;;  %s5223_s3 = inlined_call_operand.vmem [shape: f32[2,64,32,62], index: 3, kind: output, shape index: {}]  }
   0x1 LB: > { %s2842_s13 = sadd.s32 4294967295, %s3448_s12   ;;  %p2846_p0 = scmp.ge.s32.totalorder %s3448_s12, 1  ;;  %s3448_s12 = sphi %s3479_s12, %s13_s12  }
   0x2   : > { %p137_p1 = scmp.lt.s32.totalorder %s3448_s12, 3 }
   0x4   : > { %p138_p2 = pnand %p2846_p0, %p137_p1 }
   0x5   : > { %p161_p3 = scmp.lt.s32.totalorder (!%p138_p2), %s2842_s13, 1  ;;  %s3613_s22 = smov (!%p138_p2), 0  }
   0x6   : > { %141 = sbr.rel (%p138_p2) target bundleno = 942 (0x3ae), region = 32 }
   0xb   : > { %v171_v0 = vlaneseq  ;;  %s5299_s13 = smov (!%p161_p3, %s2842_s13), 1  ;;  %v3454_v19 = vmov 0.0  }
   0xc   : > { %s3313_s14 = smul.u32 2080, %s5299_s13  ;;  %s3279_s15 = sshll.u32 %s5299_s13, 11 }
   0xd   : > { %v3487_v1 = vshrl.u32 %v171_v0, 7  ;;  %v189_v2 = vand.u32 127, %v171_v0  ;;  %s3492_s18 = scalar_lea.vmem %s5223_s3, %s3279_s15 }
   0xe   : > { %s3509_s21 = scalar_lea.vmem %s5220_s0, %s3313_s14 }
   0xf   : > { %5240 = vst [vmem:[#allocation2_spill] sm:$0xff] %v3487_v1  ;;  %v3495_v3 = vadd.s32 8, %v3487_v1  ;;  %v3498_v4 = vadd.s32 16, %v3487_v1  ;;  %v3501_v5 = vadd.s32 24, %v3487_v1  ;;  %v3504_v6 = vadd.s32 32, %v3487_v1 }
  0x10   : > { %v3512_v7 = vadd.s32 40, %v3487_v1  ;;  %v3515_v8 = vadd.s32 48, %v3487_v1  ;;  %v3518_v9 = vadd.s32 56, %v3487_v1  ;;  %v3521_v10 = vadd.s32 64, %v3487_v1 }
  0x11   : > { %5241 = vst [vmem:[#allocation3_spill] sm:$0xff] %v3495_v3  ;;  %v3524_v11 = vadd.s32 72, %v3487_v1  ;;  %v3527_v12 = vadd.s32 80, %v3487_v1  ;;  %v3530_v13 = vadd.s32 88, %v3487_v1  ;;  %v3532_v14 = vmul.u32 2, %v189_v2 }
  0x12   : > { %5242 = vst [vmem:[#allocation4_spill] sm:$0xff] %v3498_v4  ;;  %v3535_v15 = vadd.s32 96, %v3487_v1  ;;  %v3538_v16 = vadd.s32 104, %v3487_v1  ;;  %v3541_v17 = vadd.s32 112, %v3487_v1  ;;  %v187_v18 = vadd.s32 120, %v3487_v1 }
  0x13   : > { %5243 = vst [vmem:[#allocation5_spill] sm:$0xff] %v3501_v5  ;;  %vm202_vm11 = vcmp.eq.s32.totalorder %v3530_v13, %v3532_v14  ;;  %v3578_v21 = vadd.s32 1, %v3532_v14 }
  0x14   : > { %5244 = vst [vmem:[#allocation6_spill] sm:$0xff] %v3504_v6  ;;  %vm203_vm12 = vcmp.eq.s32.totalorder %v3535_v15, %v3532_v14  ;;  %vm204_vm13 = vcmp.eq.s32.totalorder %v3538_v16, %v3532_v14  ;;  %vm205_vm14 = vcmp.eq.s32.totalorder %v3541_v17, %v3532_v14  ;;  %vm206_vm15 = vcmp.eq.s32.totalorder %v187_v18, %v3532_v14 }
  0x15   : > { %5245 = vst [vmem:[#allocation7_spill] sm:$0xff] %v3512_v7  ;;  %v3575_v20 = vsel %vm206_vm15, 1.0, %v3454_v19  ;;  %vm252_vm15 = vcmp.eq.s32.totalorder %v3535_v15, %v3578_v21  ;;  %vm253_vm6 = vcmp.eq.s32.totalorder %v3538_v16, %v3578_v21  ;;  %vm254_vm5 = vcmp.eq.s32.totalorder %v3541_v17, %v3578_v21 }
  0x16   : > { %5246 = vst [vmem:[#allocation8_spill] sm:$0xff] %v3515_v8  ;;  %vm255_vm7 = vcmp.eq.s32.totalorder %v187_v18, %v3578_v21 }
  0x17   : > { %5247 = vst [vmem:[#allocation9_spill] sm:$0xff] %v3518_v9  ;;  %v3611_v22 = vsel %vm255_vm7, 1.0, %v3454_v19 }
  0x18 LB: >> { %v5254_v3 = vld [vmem:[#allocation3_spill] sm:$0xff]  ;;  %v5255_v1 = vld [vmem:[#allocation2_spill] sm:$0xff]  ;;  %s2882_s23 = sshll.u32 %s3452_s22, 7  ;;  %s3455_s25 = smov 127   ;;  %vm525_vm7 = vcmask 261120   ;;  %v319_v56 = vld [vmem:[%s5221_s1 + $0x18] sm:$0xff]  ;;  %vm5256_vm4 = vcmp.eq.s32.totalorder %v3530_v13, %v3578_v21  ;;  %vm5257_vm3 = vcmp.eq.s32.totalorder %v3527_v12, %v3578_v21  ;;  %vm5258_vm10 = vcmp.eq.s32.totalorder %v3527_v12, %v3532_v14  ;;  %s3452_s22 = sphi %s3613_s22, %s293_s22  }
  0x19   : >> { %v5253_v4 = vld [vmem:[#allocation4_spill] sm:$0xff]  ;;  %s3622_s24 = scalar_lea.vmem %s3509_s21, %s2882_s23  ;;  %s3456_s26 = smov 126   ;;  %v317_v55 = vld [vmem:[%s5221_s1 + $0x8] sm:$0xff]  ;;  %v323_v60 = vld [vmem:[%s5221_s1 + $0x38] sm:$0xff]  ;;  %vm2002_vm0 = vcmask 1043456   ;;  %vm5259_vm2 = vcmp.eq.s32.totalorder %v3524_v11, %v3578_v21  ;;  %vm5260_vm9 = vcmp.eq.s32.totalorder %v3524_v11, %v3532_v14  ;;  %vm5261_vm1 = vcmp.eq.s32.totalorder %v3521_v10, %v3578_v21 }
  0x1a   : >> { %v5252_v5 = vld [vmem:[#allocation5_spill] sm:$0xff]  ;;  %v3625_v23 = vld [vmem:[%s3622_s24 + $0x90] sm:$0xff]  ;;  %v3639_v29 = vld [vmem:[%s3622_s24 + $0x80] sm:$0xff]  ;;  %vm5262_vm8 = vcmp.eq.s32.totalorder %v3521_v10, %v3532_v14  ;;  %s5063_s14 = scalar_lea.vmem %s3492_s18, %s2882_s23  ;;  %s293_s22 = sadd.s32 1, %s3452_s22  }
  0x1b   : >> { %v5251_v6 = vld [vmem:[#allocation6_spill] sm:$0xff]  ;;  %v3628_v24 = vld [vmem:[%s3622_s24 + $0x98] sm:$0xff]  ;;  %v310_v25 = vld [vmem:[%s3622_s24 + $0x70] sm:$0xff]  ;;  %p290_p4 = scmp.ge.s32.totalorder %s293_s22, 16  }
  0x1c   : >> { %v5250_v7 = vld [vmem:[#allocation7_spill] sm:$0xff]  ;;  %v3335_v26 = vpack.i.bf16 %v3625_v23, %v3628_v24  ;;  %v311_v27 = vld [vmem:[%s3622_s24 + $0x78] sm:$0xff]  ;;  %1069 = vmatpush.msra.mxu3 %v3628_v24  ;;  %v306_v31 = vld [vmem:[%s3622_s24 + $0x50] sm:$0xff] }
  0x1d   : >> { %v5249_v8 = vld [vmem:[#allocation8_spill] sm:$0xff]  ;;  %v3345_v28 = vpack.i.bf16 %v310_v25, %v311_v27  ;;  %944 = vmatpush.msra.mxu2 %v311_v27  ;;  %v3642_v30 = vld [vmem:[%s3622_s24 + $0x88] sm:$0xff]  ;;  %v308_v32 = vld [vmem:[%s3622_s24 + $0x60] sm:$0xff] }
  0x1e   : >> { %v5248_v9 = vld [vmem:[#allocation9_spill] sm:$0xff]  ;;  %3336 = vrot.lane.b32.xlu0 %v3335_v26, %s3455_s25  ;;  %1070 = vmatpush.msra.mxu3 %v3625_v23  ;;  %v309_v33 = vld [vmem:[%s3622_s24 + $0x68] sm:$0xff]  ;;  %v3340_v36 = vpack.i.bf16 %v3639_v29, %v3642_v30  ;;  %v304_v38 = vld [vmem:[%s3622_s24 + $0x40] sm:$0xff] }
  0x1f   : >> { %3346 = vrot.lane.b32.xlu1 %v3345_v28, %s3455_s25  ;;  %945 = vmatpush.msra.mxu2 %v310_v25  ;;  %v307_v34 = vld [vmem:[%s3622_s24 + $0x58] sm:$0xff]  ;;  %v3350_v37 = vpack.i.bf16 %v308_v32, %v309_v33  ;;  %v305_v39 = vld [vmem:[%s3622_s24 + $0x48] sm:$0xff]  ;;  %v302_v40 = vld [vmem:[%s3622_s24 + $0x30] sm:$0xff] }
  0x20   : >> { %1071 = vmatpush.msra.mxu3 %v3642_v30  ;;  %v3355_v35 = vpack.i.bf16 %v306_v31, %v307_v34  ;;  %v303_v41 = vld [vmem:[%s3622_s24 + $0x38] sm:$0xff]  ;;  %v3360_v42 = vpack.i.bf16 %v304_v38, %v305_v39  ;;  %v300_v43 = vld [vmem:[%s3622_s24 + $0x20] sm:$0xff]  ;;  %v301_v44 = vld [vmem:[%s3622_s24 + $0x28] sm:$0xff] }
  0x21   : >> { %946 = vmatpush.msra.mxu2 %v309_v33  ;;  %v3365_v45 = vpack.i.bf16 %v302_v40, %v303_v41  ;;  %v3370_v46 = vpack.i.bf16 %v300_v43, %v301_v44  ;;  %v3663_v47 = vld [vmem:[%s3622_s24 + $0x10] sm:$0xff]  ;;  %v3666_v48 = vld [vmem:[%s3622_s24 + $0x18] sm:$0xff]  ;;  %v296_v49 = vld [vmem:[%s3622_s24] sm:$0xff]  ;;  %v3410_v53 = vpack.i.bf16 %v301_v44, %v3628_v24  ;;  %v3415_v54 = vpack.i.bf16 %v300_v43, %v3625_v23 }
  0x22   : >> { %1072 = vmatpush.msra.mxu3 %v3639_v29  ;;  %3356 = vrot.lane.b32.xlu2 %v3355_v35, %s3455_s25  ;;  %v297_v50 = vld [vmem:[%s3622_s24 + $0x8] sm:$0xff]  ;;  %v3375_v51 = vpack.i.bf16 %v3663_v47, %v3666_v48  ;;  %v316_v2 = vld [vmem:[%s5221_s1] sm:$0xff] }
  0x23   : >> { %947 = vmatpush.msra.mxu2 %v308_v32  ;;  %v3674_v52 = vpack.i.bf16 %v296_v49, %v297_v50  ;;  %2979 = vmatmul.msk.f32.vlgmr.msra.gmra.mxu3 %vm525_vm7, %v317_v55  ;;  %v321_v57 = vld [vmem:[%s5221_s1 + $0x28] sm:$0xff] }
  0x24   : >> { %v325_v23 = vld [vmem:[%s5221_s1 + $0x48] sm:$0xff] }
  0x25   : >> { %948 = vmatpush.msra.mxu2 %v307_v34  ;;  %v2884_v33 = vld [vmem:[%s5221_s1 + $0x208] sm:$0xff] }
  0x26   : >> { %3341 = vrot.lane.b32.xlu0 %v3340_v36, %s3455_s25 }
  0x27   : >> { %3351 = vrot.lane.b32.xlu1 %v3350_v37, %s3455_s25  ;;  %949 = vmatpush.msra.mxu2 %v306_v31  ;;  %v318_v31 = vld [vmem:[%s5221_s1 + $0x10] sm:$0xff] }
  0x29   : >> { %950 = vmatpush.msra.mxu2 %v305_v39 }
  0x2a   : >> { %3361 = vrot.lane.b32.xlu2 %v3360_v42, %s3455_s25 }
  0x2b   : >> { %951 = vmatpush.msra.mxu2 %v304_v38  ;;  %2980 = vmatmul.msk.f32.gmra.mxu3 %vm525_vm7, %v319_v56  ;;  %v327_v38 = vld [vmem:[%s5221_s1 + $0x58] sm:$0xff] }
  0x2d   : >> { %952 = vmatpush.msra.mxu2 %v303_v41 }
  0x2e   : >> { %3366 = vrot.lane.b32.xlu0 %v3365_v45, %s3455_s25 }
  0x2f   : >> { %3371 = vrot.lane.b32.xlu1 %v3370_v46, %s3455_s25  ;;  %953 = vmatpush.msra.mxu2 %v302_v40  ;;  %v329_v46 = vld [vmem:[%s5221_s1 + $0x68] sm:$0xff] }
  0x31   : >> { %954 = vmatpush.msra.mxu2 %v301_v44 }
  0x32   : >> { %3376 = vrot.lane.b32.xlu2 %v3375_v51, %s3455_s25 }
  0x33   : >> { %955 = vmatpush.msra.mxu2 %v300_v43  ;;  %2981 = vmatmul.msk.f32.gmra.mxu3 %vm525_vm7, %v321_v57  ;;  %v2886_v43 = vld [vmem:[%s5221_s1 + $0x218] sm:$0xff]  ;;  %v322_v57 = vld [vmem:[%s5221_s1 + $0x30] sm:$0xff] }
  0x35   : >> { %956 = vmatpush.msra.mxu2 %v3666_v48 }
  0x36   : >> { %3381 = vrot.lane.b32.xlu0 %v3674_v52, %s3455_s25 }
  0x37   : >> { %3386 = vrot.lane.b32.xlu1 %v3345_v28, %s3456_s26  ;;  %957 = vmatpush.msra.mxu2 %v3663_v47 }
  0x39   : >> { %958 = vmatpush.msra.mxu2 %v297_v50 }
  0x3a   : >> { %3391 = vrot.lane.b32.xlu2 %v3350_v37, %s3456_s26 }
  0x3b   : >> { %959 = vmatpush.msra.mxu2 %v296_v49  ;;  %2982 = vmatmul.msk.f32.gmra.mxu3 %vm525_vm7, %v323_v60 }
  0x3c   : >> { %960 = vmatmul.f32.vlgmr.msra.gmra.mxu2 %v316_v2 }
  0x3d   : >> { %3155 = vmatpush.msk.msrb.mxu2 %vm2002_vm0, %v3611_v22 }
  0x3e   : >> { %3396 = vrot.lane.b32.xlu0 %v3355_v35, %s3456_s26 }
  0x3f   : >> { %3401 = vrot.lane.b32.xlu1 %v3360_v42, %s3456_s26  ;;  %v320_v42 = vld [vmem:[%s5221_s1 + $0x20] sm:$0xff] }
  0x42   : >> { %3406 = vrot.lane.b32.xlu2 %v3365_v45, %s3456_s26 }
  0x43   : >> { %2983 = vmatmul.msk.f32.gmra.mxu3 %vm525_vm7, %v325_v23 }
  0x44   : >> { %963 = vmatmul.f32.gmra.mxu2 %v318_v31 }
  0x46   : >> { %3411 = vrot.lane.b32.xlu0 %v3410_v53, %s3456_s26 }
  0x47   : >> { %3416 = vrot.lane.b32.xlu1 %v3415_v54, %s3456_s26 }
  0x4b   : >> { %2984 = vmatmul.msk.f32.gmra.mxu3 %vm525_vm7, %v327_v38  ;;  %v326_v38 = vld [vmem:[%s5221_s1 + $0x50] sm:$0xff] }
  0x4c   : >> { %966 = vmatmul.f32.gmra.mxu2 %v320_v42  ;;  %v3420_v42 = vpack.i.bf16 %v3666_v48, %v3642_v30  ;;  %v2887_v30 = vld [vmem:[%s5221_s1 + $0x220] sm:$0xff]  ;;  %v337_v48 = vld [vmem:[%s5221_s1 + $0xa8] sm:$0xff] }
  0x4e   : >> { %3421 = vrot.lane.b32.xlu2 %v3420_v42, %s3456_s26  ;;  %v346_v42 = vld [vmem:[%s5221_s1 + $0xf0] sm:$0xff] }
  0x4f   : >> { %3431 = vrot.lane.b32.xlu1 %v3674_v52, %s3456_s26  ;;  %v2905_v52 = vld [vmem:[%s5221_s1 + $0x2b0] sm:$0xff] }
  0x53   : >> { %2985 = vmatmul.msk.f32.gmra.mxu3 %vm525_vm7, %v329_v46  ;;  %v330_v46 = vld [vmem:[%s5221_s1 + $0x70] sm:$0xff] }
  0x54   : >> { %969 = vmatmul.f32.gmra.mxu2 %v322_v57 }
  0x7c   : >> { %v3357_v58 = vpop.permute.xlu2 %3356 }
  0x7d   : >> { %v3358_v34 = vunpack.i.l.bf16 %v3357_v58  ;;  %v3359_v35 = vunpack.i.h.bf16 %v3357_v58  ;;  %v2888_v58 = vld [vmem:[%s5221_s1 + $0x228] sm:$0xff] }
  0x84   : >> { %v3362_v26 = vpop.permute.xlu2 %3361 }
  0x85   : >> { %v3363_v37 = vunpack.i.l.bf16 %v3362_v26  ;;  %v3364_v41 = vunpack.i.h.bf16 %v3362_v26  ;;  %v2890_v26 = vld [vmem:[%s5221_s1 + $0x238] sm:$0xff] }
  0x8c   : >> { %v3377_v40 = vpop.permute.xlu2 %3376 }
  0x90   : >> { %v3337_v59 = vpop.permute.xlu0 %3336 }
  0x91   : >> { %v3347_v61 = vpop.permute.xlu1 %3346  ;;  %v3338_v62 = vunpack.i.l.bf16 %v3337_v59  ;;  %v3339_v18 = vunpack.i.h.bf16 %v3337_v59  ;;  %v3378_v59 = vunpack.i.l.bf16 %v3377_v40 }
  0x92   : >> { %v3348_v63 = vunpack.i.l.bf16 %v3347_v61  ;;  %v3349_v0 = vunpack.i.h.bf16 %v3347_v61  ;;  %v3379_v61 = vunpack.i.h.bf16 %v3377_v40 }
  0x93   : >> { %747 = vmatpush.msra.mxu1 %v3338_v62 }
  0x94   : >> { %622 = vmatpush.msra.mxu0 %v3348_v63  ;;  %v3392_v53 = vpop.permute.xlu2 %3391  ;;  %v331_v63 = vld [vmem:[%s5221_s1 + $0x78] sm:$0xff] }
  0x95   : >> { %748 = vmatpush.msra.mxu1 %v3339_v18  ;;  %v3393_v60 = vunpack.i.l.bf16 %v3392_v53  ;;  %v3394_v62 = vunpack.i.h.bf16 %v3392_v53  ;;  %2986 = vmatmul.msk.f32.gmra.mxu3 %vm525_vm7, %v331_v63  ;;  %v332_v53 = vld [vmem:[%s5221_s1 + $0x80] sm:$0xff]  ;;  %v343_v63 = vld [vmem:[%s5221_s1 + $0xd8] sm:$0xff] }
  0x96   : >> { %623 = vmatpush.msra.mxu0 %v3349_v0 }
  0x98   : >> { %v3342_v19 = vpop.permute.xlu0 %3341 }
  0x99   : >> { %v3352_v24 = vpop.permute.xlu1 %3351  ;;  %v3343_v25 = vunpack.i.l.bf16 %v3342_v19  ;;  %v3344_v32 = vunpack.i.h.bf16 %v3342_v19 }
  0x9a   : >> { %v3353_v27 = vunpack.i.l.bf16 %v3352_v24  ;;  %v3354_v28 = vunpack.i.h.bf16 %v3352_v24 }
  0x9b   : >> { %749 = vmatpush.msra.mxu1 %v3343_v25  ;;  %v324_v25 = vld [vmem:[%s5221_s1 + $0x40] sm:$0xff] }
  0x9c   : >> { %624 = vmatpush.msra.mxu0 %v3353_v27  ;;  %972 = vmatmul.f32.gmra.mxu2 %v324_v25  ;;  %v3407_v31 = vpop.permute.xlu2 %3406  ;;  %v2904_v25 = vld [vmem:[%s5221_s1 + $0x2a8] sm:$0xff] }
  0x9d   : >> { %750 = vmatpush.msra.mxu1 %v3344_v32 }
  0x9e   : >> { %625 = vmatpush.msra.mxu0 %v3354_v28  ;;  %2947 = vmatmul.msk.f32.vlgmr.msra.gmra.mxu1 %vm525_vm7, %v2884_v33  ;;  %v2883_v28 = vld [vmem:[%s5221_s1 + $0x200] sm:$0xff]  ;;  %v333_v33 = vld [vmem:[%s5221_s1 + $0x88] sm:$0xff] }
  0x9f   : >> { %2987 = vmatmul.msk.f32.gmra.mxu3 %vm525_vm7, %v333_v33  ;;  %v2908_v33 = vld [vmem:[%s5221_s1 + $0x2c8] sm:$0xff] }
  0xa0   : >> { %626 = vmatpush.msra.mxu0 %v3358_v34  ;;  %v3367_v36 = vpop.permute.xlu0 %3366 }
  0xa1   : >> { %v3372_v39 = vpop.permute.xlu1 %3371  ;;  %v3368_v44 = vunpack.i.l.bf16 %v3367_v36  ;;  %v3369_v45 = vunpack.i.h.bf16 %v3367_v36 }
  0xa2   : >> { %627 = vmatpush.msra.mxu0 %v3359_v35  ;;  %v3373_v50 = vunpack.i.l.bf16 %v3372_v39  ;;  %v3374_v55 = vunpack.i.h.bf16 %v3372_v39  ;;  %v3408_v35 = vunpack.i.l.bf16 %v3407_v31  ;;  %v2892_v39 = vld [vmem:[%s5221_s1 + $0x248] sm:$0xff] }
  0xa4   : >> { %628 = vmatpush.msra.mxu0 %v3363_v37  ;;  %v3409_v37 = vunpack.i.h.bf16 %v3407_v31  ;;  %975 = vmatmul.f32.gmra.mxu2 %v326_v38  ;;  %v349_v31 = vld [vmem:[%s5221_s1 + $0x108] sm:$0xff]  ;;  %v2910_v38 = vld [vmem:[%s5221_s1 + $0x2d8] sm:$0xff] }
  0xa6   : >> { %629 = vmatpush.msra.mxu0 %v3364_v41  ;;  %2948 = vmatmul.msk.f32.gmra.mxu1 %vm525_vm7, %v2886_v43  ;;  %v2885_v41 = vld [vmem:[%s5221_s1 + $0x210] sm:$0xff]  ;;  %v335_v43 = vld [vmem:[%s5221_s1 + $0x98] sm:$0xff] }
  0xa7   : >> { %2988 = vmatmul.msk.f32.gmra.mxu3 %vm525_vm7, %v335_v43  ;;  %v2912_v43 = vld [vmem:[%s5221_s1 + $0x2e8] sm:$0xff] }
  0xa8   : >> { %630 = vmatpush.msra.mxu0 %v3368_v44  ;;  %v3382_v49 = vpop.permute.xlu0 %3381  ;;  %v328_v44 = vld [vmem:[%s5221_s1 + $0x60] sm:$0xff] }
  0xa9   : >> { %v3387_v51 = vpop.permute.xlu1 %3386  ;;  %v3383_v2 = vunpack.i.l.bf16 %v3382_v49  ;;  %v3384_v23 = vunpack.i.h.bf16 %v3382_v49  ;;  %v2896_v49 = vld [vmem:[%s5221_s1 + $0x268] sm:$0xff] }
  0xaa   : >> { %631 = vmatpush.msra.mxu0 %v3369_v45  ;;  %v3388_v54 = vunpack.i.l.bf16 %v3387_v51  ;;  %v3389_v56 = vunpack.i.h.bf16 %v3387_v51  ;;  %v2894_v45 = vld [vmem:[%s5221_s1 + $0x258] sm:$0xff] }
  0xab   : >> { %v339_v51 = vld [vmem:[%s5221_s1 + $0xb8] sm:$0xff] }
  0xac   : >> { %632 = vmatpush.msra.mxu0 %v3373_v50  ;;  %1391 = vmatpush.msrb.mxu1 %v3388_v54  ;;  %v2889_v50 = vld [vmem:[%s5221_s1 + $0x230] sm:$0xff]  ;;  %v2898_v54 = vld [vmem:[%s5221_s1 + $0x278] sm:$0xff] }
  0xad   : >> { %978 = vmatmul.f32.gmra.mxu2 %v328_v44 }
  0xae   : >> { %633 = vmatpush.msra.mxu0 %v3374_v55  ;;  %1392 = vmatpush.msrb.mxu1 %v3389_v56  ;;  %v2891_v55 = vld [vmem:[%s5221_s1 + $0x240] sm:$0xff]  ;;  %v341_v56 = vld [vmem:[%s5221_s1 + $0xc8] sm:$0xff] }
  0xaf   : >> { %2949 = vmatmul.msk.f32.gmra.mxu1 %vm525_vm7, %v2888_v58  ;;  %2989 = vmatmul.msk.f32.gmra.mxu3 %vm525_vm7, %v337_v48  ;;  %v2914_v48 = vld [vmem:[%s5221_s1 + $0x2f8] sm:$0xff] }
  0xb0   : >> { %634 = vmatpush.msra.mxu0 %v3378_v59  ;;  %1393 = vmatpush.msrb.mxu1 %v3393_v60  ;;  %v3397_v0 = vpop.permute.xlu0 %3396  ;;  %v334_v60 = vld [vmem:[%s5221_s1 + $0x90] sm:$0xff] }
  0xb1   : >> { %v3398_v18 = vunpack.i.l.bf16 %v3397_v0  ;;  %v3402_v19 = vpop.permute.xlu1 %3401  ;;  %v3399_v24 = vunpack.i.h.bf16 %v3397_v0  ;;  %v336_v0 = vld [vmem:[%s5221_s1 + $0xa0] sm:$0xff] }
  0xb2   : >> { %635 = vmatpush.msra.mxu0 %v3379_v61  ;;  %1394 = vmatpush.msrb.mxu1 %v3394_v62  ;;  %v3403_v27 = vunpack.i.l.bf16 %v3402_v19  ;;  %v3404_v32 = vunpack.i.h.bf16 %v3402_v19  ;;  %v2900_v61 = vld [vmem:[%s5221_s1 + $0x288] sm:$0xff]  ;;  %v2893_v62 = vld [vmem:[%s5221_s1 + $0x250] sm:$0xff]  ;;  %v3425_v19 = vpack.i.bf16 %v3663_v47, %v3639_v29  ;;  %v347_v47 = vld [vmem:[%s5221_s1 + $0xf8] sm:$0xff] }
  0xb3   : >> { %v2897_v29 = vld [vmem:[%s5221_s1 + $0x270] sm:$0xff] }
  0xb4   : >> { %636 = vmatpush.msra.mxu0 %v3383_v2  ;;  %1395 = vmatpush.msrb.mxu1 %v3398_v18  ;;  %v2902_v2 = vld [vmem:[%s5221_s1 + $0x298] sm:$0xff]  ;;  %v2895_v18 = vld [vmem:[%s5221_s1 + $0x260] sm:$0xff] }
  0xb5   : >> { %981 = vmatmul.f32.gmra.mxu2 %v330_v46  ;;  %3426 = vrot.lane.b32.xlu0 %v3425_v19, %s3456_s26  ;;  %v2907_v46 = vld [vmem:[%s5221_s1 + $0x2c0] sm:$0xff] }
  0xb6   : >> { %637 = vmatpush.msra.mxu0 %v3384_v23  ;;  %1396 = vmatpush.msrb.mxu1 %v3399_v24  ;;  %v345_v23 = vld [vmem:[%s5221_s1 + $0xe8] sm:$0xff]  ;;  %v338_v24 = vld [vmem:[%s5221_s1 + $0xb0] sm:$0xff] }
  0xb7   : >> { %2950 = vmatmul.msk.f32.gmra.mxu1 %vm525_vm7, %v2890_v26  ;;  %638 = vmatmul.f32.vlgmr.msra.gmra.mxu0 %v2883_v28  ;;  %v340_v26 = vld [vmem:[%s5221_s1 + $0xc0] sm:$0xff] }
  0xb8   : >> { %1397 = vmatpush.msrb.mxu1 %v3403_v27  ;;  %v3412_v34 = vpop.permute.xlu0 %3411  ;;  %2990 = vmatmul.msk.f32.gmra.mxu3 %vm525_vm7, %v339_v51  ;;  %v2906_v27 = vld [vmem:[%s5221_s1 + $0x2b8] sm:$0xff]  ;;  %v2899_v28 = vld [vmem:[%s5221_s1 + $0x280] sm:$0xff]  ;;  %v357_v51 = vld [vmem:[%s5221_s1 + $0x148] sm:$0xff] }
  0xb9   : >> { %v3413_v36 = vunpack.i.l.bf16 %v3412_v34  ;;  %v3414_v40 = vunpack.i.h.bf16 %v3412_v34  ;;  %v3417_v57 = vpop.permute.xlu1 %3416  ;;  %v2901_v34 = vld [vmem:[%s5221_s1 + $0x290] sm:$0xff]  ;;  %3107 = vmatpush.msk.msrb.mxu0 %vm2002_vm0, %v3575_v20 }
  0xba   : >> { %1398 = vmatpush.msrb.mxu1 %v3404_v32  ;;  %v3419_v58 = vunpack.i.h.bf16 %v3417_v57  ;;  %v3418_v59 = vunpack.i.l.bf16 %v3417_v57  ;;  %v342_v32 = vld [vmem:[%s5221_s1 + $0xd0] sm:$0xff] }
  0xbb   : >> { %1516 = vmatpush.msrb.mxu3 %v3413_v36  ;;  %v351_v36 = vld [vmem:[%s5221_s1 + $0x118] sm:$0xff]  ;;  %v2909_v57 = vld [vmem:[%s5221_s1 + $0x2d0] sm:$0xff] }
  0xbc   : >> { %1399 = vmatpush.msrb.mxu1 %v3408_v35  ;;  %v3887_v35 = vpop.f32.mrf.mxu3 }
  0xbd   : >> { %984 = vmatmul.f32.gmra.mxu2 %v332_v53  ;;  %1517 = vmatpush.msrb.mxu3 %v3418_v59  ;;  %v350_v53 = vld [vmem:[%s5221_s1 + $0x110] sm:$0xff] }
  0xbe   : >> { %1400 = vmatpush.msrb.mxu1 %v3409_v37  ;;  %v344_v37 = vld [vmem:[%s5221_s1 + $0xe0] sm:$0xff] }
  0xbf   : >> { %2951 = vmatmul.msk.f32.gmra.mxu1 %vm525_vm7, %v2892_v39  ;;  %641 = vmatmul.f32.gmra.mxu0 %v2885_v41  ;;  %v2903_v39 = vld [vmem:[%s5221_s1 + $0x2a0] sm:$0xff]  ;;  %v353_v41 = vld [vmem:[%s5221_s1 + $0x128] sm:$0xff] }
  0xc0   : >> { %1401 = vmatpush.msrb.mxu1 %v3414_v40  ;;  %2991 = vmatmul.msk.f32.gmra.mxu3 %vm525_vm7, %v341_v56  ;;  %v2916_v56 = vld [vmem:[%s5221_s1 + $0x308] sm:$0xff] }
  0xc2   : >> { %1402 = vmatpush.msrb.mxu1 %v3419_v58 }
  0xc4   : >> { %v3903_v40 = vpop.f32.mrf.mxu3 }
  0xc5   : >> { %987 = vmatmul.f32.gmra.mxu2 %v334_v60 }
  0xc7   : >> { %2952 = vmatmul.msk.f32.gmra.mxu1 %vm525_vm7, %v2894_v45  ;;  %644 = vmatmul.f32.gmra.mxu0 %v2887_v30  ;;  %v355_v45 = vld [vmem:[%s5221_s1 + $0x138] sm:$0xff]  ;;  %v348_v30 = vld [vmem:[%s5221_s1 + $0x100] sm:$0xff] }
  0xc8   : >> { %2992 = vmatmul.msk.f32.gmra.mxu3 %vm525_vm7, %v343_v63  ;;  %v352_v63 = vld [vmem:[%s5221_s1 + $0x120] sm:$0xff] }
  0xcc   : >> { %v3921_v44 = vpop.f32.mrf.mxu3 }
  0xcd   : >> { %990 = vmatmul.f32.gmra.mxu2 %v336_v0 }
  0xcf   : >> { %2953 = vmatmul.msk.f32.gmra.mxu1 %vm525_vm7, %v2896_v49  ;;  %647 = vmatmul.f32.gmra.mxu0 %v2889_v50  ;;  %v961_v50 = vpop.f32.mrf.mxu2 }
  0xd0   : >> { %2993 = vmatmul.msk.f32.gmra.mxu3 %vm525_vm7, %v345_v23 }
  0xd4   : >> { %v3937_v49 = vpop.f32.mrf.mxu3 }
  0xd5   : >> { %993 = vmatmul.f32.gmra.mxu2 %v338_v24  ;;  %v361_v24 = vld [vmem:[%s5221_s1 + $0x168] sm:$0xff] }
  0xd7   : >> { %2954 = vmatmul.msk.f32.gmra.mxu1 %vm525_vm7, %v2898_v54  ;;  %650 = vmatmul.f32.gmra.mxu0 %v2891_v55  ;;  %v3422_v55 = vpop.permute.xlu2 %3421 }
  0xd8   : >> { %2994 = vmatmul.msk.f32.gmra.mxu3 %vm525_vm7, %v347_v47  ;;  %v3424_v59 = vunpack.i.h.bf16 %v3422_v55  ;;  %v3423_v60 = vunpack.i.l.bf16 %v3422_v55  ;;  %v2920_v47 = vld [vmem:[%s5221_s1 + $0x328] sm:$0xff] }
  0xda   : >> { %1403 = vmatpush.msrb.mxu1 %v3424_v59  ;;  %1518 = vmatpush.msrb.mxu3 %v3423_v60  ;;  %v360_v59 = vld [vmem:[%s5221_s1 + $0x160] sm:$0xff] }
  0xdc   : >> { %v3953_v58 = vpop.f32.mrf.mxu3 }
  0xdd   : >> { %996 = vmatmul.f32.gmra.mxu2 %v340_v26  ;;  %v2913_v26 = vld [vmem:[%s5221_s1 + $0x2f0] sm:$0xff] }
  0xdf   : >> { %2955 = vmatmul.msk.f32.gmra.mxu1 %vm525_vm7, %v2900_v61  ;;  %653 = vmatmul.f32.gmra.mxu0 %v2893_v62  ;;  %v964_v61 = vpop.f32.mrf.mxu2  ;;  %v359_v62 = vld [vmem:[%s5221_s1 + $0x158] sm:$0xff] }
  0xe0   : >> { %2995 = vmatmul.msk.f32.gmra.mxu3 %vm525_vm7, %v349_v31  ;;  %v363_v31 = vld [vmem:[%s5221_s1 + $0x178] sm:$0xff] }
  0xe4   : >> { %v3969_v19 = vpop.f32.mrf.mxu3 }
  0xe5   : >> { %999 = vmatmul.f32.gmra.mxu2 %v342_v32  ;;  %v356_v32 = vld [vmem:[%s5221_s1 + $0x140] sm:$0xff] }
  0xe7   : >> { %2956 = vmatmul.msk.f32.gmra.mxu1 %vm525_vm7, %v2902_v2  ;;  %656 = vmatmul.f32.gmra.mxu0 %v2895_v18  ;;  %v2918_v2 = vld [vmem:[%s5221_s1 + $0x318] sm:$0xff]  ;;  %v2911_v18 = vld [vmem:[%s5221_s1 + $0x2e0] sm:$0xff]  ;;  %v3971_v23 = vpop.f32.mrf.mxu2 }
  0xe8   : >> { %2996 = vmatmul.msk.f32.gmra.mxu3 %vm525_vm7, %v351_v36 }
  0xed   : >> { %1002 = vmatmul.f32.gmra.mxu2 %v344_v37  ;;  %v2915_v37 = vld [vmem:[%s5221_s1 + $0x300] sm:$0xff] }
  0xef   : >> { %2957 = vmatmul.msk.f32.gmra.mxu1 %vm525_vm7, %v2904_v25  ;;  %659 = vmatmul.f32.gmra.mxu0 %v2897_v29  ;;  %v354_v25 = vld [vmem:[%s5221_s1 + $0x130] sm:$0xff] }
  0xf0   : >> { %2997 = vmatmul.msk.f32.gmra.mxu3 %vm525_vm7, %v353_v41 }
  0xf5   : >> { %1005 = vmatmul.f32.gmra.mxu2 %v346_v42 }
  0xf7   : >> { %2958 = vmatmul.msk.f32.gmra.mxu1 %vm525_vm7, %v2906_v27  ;;  %662 = vmatmul.f32.gmra.mxu0 %v2899_v28  ;;  %v3987_v27 = vpop.f32.mrf.mxu3  ;;  %v3993_v28 = vpop.f32.mrf.mxu2 }
  0xf8   : >> { %2998 = vmatmul.msk.f32.gmra.mxu3 %vm525_vm7, %v355_v45  ;;  %v358_v45 = vld [vmem:[%s5221_s1 + $0x150] sm:$0xff] }
  0xfd   : >> { %1008 = vmatmul.f32.gmra.mxu2 %v348_v30 }
  0xff   : >> { %2959 = vmatmul.msk.f32.gmra.mxu1 %vm525_vm7, %v2908_v33  ;;  %665 = vmatmul.f32.gmra.mxu0 %v2901_v34  ;;  %v2922_v34 = vld [vmem:[%s5221_s1 + $0x338] sm:$0xff] }
 0x100   : >> { %2999 = vmatmul.msk.f32.gmra.mxu3 %vm525_vm7, %v357_v51 }
 0x105   : >> { %1011 = vmatmul.f32.gmra.mxu2 %v350_v53  ;;  %v3457_v53 = vmov 1.0  }
 0x106   : >> { %3156 = vmatpush.msk.msrb.mxu2 %vm254_vm5, %v3457_v53  ;;  %3108 = vmatpush.msk.msrb.mxu0 %vm205_vm14, %v3457_v53 }
 0x107   : >> { %2960 = vmatmul.msk.f32.gmra.mxu1 %vm525_vm7, %v2910_v38  ;;  %668 = vmatmul.f32.gmra.mxu0 %v2903_v39 }
 0x108   : >> { %3000 = vmatmul.msk.f32.gmra.mxu3 %vm525_vm7, %v359_v62  ;;  %3157 = vmatpush.msk.msrb.mxu2 %vm253_vm6, %v3457_v53  ;;  %v2919_v62 = vld [vmem:[%s5221_s1 + $0x320] sm:$0xff] }
 0x109   : >> { %3109 = vmatpush.msk.msrb.mxu0 %vm204_vm13, %v3457_v53 }
 0x10a   : >> { %3158 = vmatpush.msk.msrb.mxu2 %vm252_vm15, %v3457_v53 }
 0x10b   : >> { %3110 = vmatpush.msk.msrb.mxu0 %vm203_vm12, %v3457_v53 }
 0x10c   : >> { %3159 = vmatpush.msk.msrb.mxu2 %vm5256_vm4, %v3457_v53 }
 0x10d   : >> { %1014 = vmatmul.f32.gmra.mxu2 %v352_v63  ;;  %3111 = vmatpush.msk.msrb.mxu0 %vm202_vm11, %v3457_v53 }
 0x10e   : >> { %3160 = vmatpush.msk.msrb.mxu2 %vm5257_vm3, %v3457_v53 }
 0x10f   : >> { %2961 = vmatmul.msk.f32.gmra.mxu1 %vm525_vm7, %v2912_v43  ;;  %671 = vmatmul.f32.gmra.mxu0 %v2905_v52  ;;  %v365_v43 = vld [vmem:[%s5221_s1 + $0x188] sm:$0xff] }
 0x110   : >> { %3001 = vmatmul.msk.f32.gmra.mxu3 %vm525_vm7, %v361_v24  ;;  %3112 = vmatpush.msk.msrb.mxu0 %vm5258_vm10, %v3457_v53  ;;  %v369_v24 = vld [vmem:[%s5221_s1 + $0x1a8] sm:$0xff]  ;;  %vm5265_vm10 = vcmp.eq.s32.totalorder %v5249_v8, %v3578_v21 }
 0x111   : >> { %3161 = vmatpush.msk.msrb.mxu2 %vm5259_vm2, %v3457_v53 }
 0x112   : >> { %3113 = vmatpush.msk.msrb.mxu0 %vm5260_vm9, %v3457_v53  ;;  %vm5263_vm9 = vcmp.eq.s32.totalorder %v5248_v9, %v3578_v21 }
 0x113   : >> { %3162 = vmatpush.msk.msrb.mxu2 %vm5261_vm1, %v3457_v53 }
 0x114   : >> { %3114 = vmatpush.msk.msrb.mxu0 %vm5262_vm8, %v3457_v53  ;;  %vm5264_vm8 = vcmp.eq.s32.totalorder %v5248_v9, %v3532_v14 }
 0x115   : >> { %1017 = vmatmul.f32.gmra.mxu2 %v354_v25 }
 0x116   : >> { %3163 = vmatpush.msk.msrb.mxu2 %vm5263_vm9, %v3457_v53  ;;  %3115 = vmatpush.msk.msrb.mxu0 %vm5264_vm8, %v3457_v53  ;;  %vm5266_vm9 = vcmp.eq.s32.totalorder %v5249_v8, %v3532_v14  ;;  %vm5267_vm8 = vcmp.eq.s32.totalorder %v5250_v7, %v3578_v21 }
 0x117   : >> { %2962 = vmatmul.msk.f32.gmra.mxu1 %vm525_vm7, %v2914_v48  ;;  %674 = vmatmul.f32.gmra.mxu0 %v2907_v46  ;;  %v2924_v48 = vld [vmem:[%s5221_s1 + $0x348] sm:$0xff] }
 0x118   : >> { %3002 = vmatmul.msk.f32.gmra.mxu3 %vm525_vm7, %v363_v31  ;;  %v4011_v39 = vpop.f32.mrf.mxu3  ;;  %3164 = vmatpush.msk.msrb.mxu2 %vm5265_vm10, %v3457_v53  ;;  %vm5268_vm10 = vcmp.eq.s32.totalorder %v5250_v7, %v3532_v14 }
 0x119   : >> { %3116 = vmatpush.msk.msrb.mxu0 %vm5266_vm9, %v3457_v53  ;;  %vm5269_vm9 = vcmp.eq.s32.totalorder %v5251_v6, %v3578_v21 }
 0x11a   : >> { %3165 = vmatpush.msk.msrb.mxu2 %vm5267_vm8, %v3457_v53  ;;  %vm5270_vm8 = vcmp.eq.s32.totalorder %v5251_v6, %v3532_v14 }
 0x11b   : >> { %v752_v54 = vpop.f32.mrf.mxu1  ;;  %3117 = vmatpush.msk.msrb.mxu0 %vm5268_vm10, %v3457_v53  ;;  %vm5271_vm10 = vcmp.eq.s32.totalorder %v5252_v5, %v3578_v21 }
 0x11c   : >> { %3166 = vmatpush.msk.msrb.mxu2 %vm5269_vm9, %v3457_v53  ;;  %vm5272_vm9 = vcmp.eq.s32.totalorder %v5252_v5, %v3532_v14 }
 0x11d   : >> { %1020 = vmatmul.f32.gmra.mxu2 %v356_v32  ;;  %3118 = vmatpush.msk.msrb.mxu0 %vm5270_vm8, %v3457_v53  ;;  %vm5273_vm8 = vcmp.eq.s32.totalorder %v5253_v4, %v3578_v21 }
 0x11e   : >> { %3167 = vmatpush.msk.msrb.mxu2 %vm5271_vm10, %v3457_v53  ;;  %vm5274_vm10 = vcmp.eq.s32.totalorder %v5253_v4, %v3532_v14 }
 0x11f   : >> { %2963 = vmatmul.msk.f32.gmra.mxu1 %vm525_vm7, %v2916_v56  ;;  %677 = vmatmul.f32.gmra.mxu0 %v2909_v57  ;;  %v4013_v41 = vpop.f32.mrf.mxu2  ;;  %v367_v56 = vld [vmem:[%s5221_s1 + $0x198] sm:$0xff] }
 0x120   : >> { %3003 = vmatmul.msk.f32.gmra.mxu3 %vm525_vm7, %v365_v43  ;;  %v1650_v43 = vld [vmem:[%s5222_s2 + $0x8] sm:$0xff]  ;;  %3119 = vmatpush.msk.msrb.mxu0 %vm5272_vm9, %v3457_v53  ;;  %vm5275_vm9 = vcmp.eq.s32.totalorder %v5254_v3, %v3532_v14 }
 0x121   : >> { %3168 = vmatpush.msk.msrb.mxu2 %vm5273_vm8, %v3457_v53  ;;  %vm5276_vm8 = vcmp.eq.s32.totalorder %v5254_v3, %v3578_v21 }
 0x122   : >> { %v4034_v51 = vpop.f32.mrf.mxu3  ;;  %3120 = vmatpush.msk.msrb.mxu0 %vm5274_vm10, %v3457_v53  ;;  %vm5277_vm10 = vcmp.eq.s32.totalorder %v5255_v1, %v3532_v14 }
 0x123   : >> { %v755_v0 = vpop.f32.mrf.mxu1  ;;  %3169 = vmatpush.msk.msrb.mxu2 %vm5276_vm8, %v3457_v53  ;;  %vm5279_vm8 = vcmp.eq.s32.totalorder %v5248_v9, %v3578_v21 }
 0x124   : >> { %3121 = vmatpush.msk.msrb.mxu0 %vm5275_vm9, %v3457_v53  ;;  %vm5278_vm9 = vcmp.eq.s32.totalorder %v5255_v1, %v3578_v21 }
 0x125   : >> { %1023 = vmatmul.f32.gmra.mxu2 %v358_v45  ;;  %v2930_v45 = vld [vmem:[%s5221_s1 + $0x378] sm:$0xff] }
 0x126   : >> { %3122 = vmatpush.msk.msrb.mxu0 %vm5277_vm10, %v3457_v53  ;;  %3170 = vmatpush.msk.msrb.mxu2 %vm5278_vm9, %v3457_v53  ;;  %vm5280_vm10 = vcmp.eq.s32.totalorder %v5249_v8, %v3578_v21  ;;  %vm5281_vm9 = vcmp.eq.s32.totalorder %v5250_v7, %v3578_v21 }
 0x127   : >> { %2964 = vmatmul.msk.f32.gmra.mxu1 %vm525_vm7, %v2918_v2  ;;  %680 = vmatmul.f32.gmra.mxu0 %v2911_v18 }
 0x128   : >> { %3004 = vmatmul.msk.f32.gmra.mxu3 %vm525_vm7, %v367_v56 }
 0x12c   : >> { %v758_v29 = vpop.f32.mrf.mxu1 }
 0x12d   : >> { %1026 = vmatmul.f32.gmra.mxu2 %v360_v59 }
 0x12f   : >> { %2965 = vmatmul.msk.f32.gmra.mxu1 %vm525_vm7, %v2920_v47  ;;  %683 = vmatmul.f32.gmra.mxu0 %v2913_v26  ;;  %v2921_v26 = vld [vmem:[%s5221_s1 + $0x330] sm:$0xff] }
 0x130   : >> { %3005 = vmatmul.msk.f32.gmra.mxu3 %vm525_vm7, %v369_v24 }
 0x134   : >> { %v4003_v33 = vpop.f32.mrf.mxu1  ;;  %v639_v36 = vpop.f32.mrf.mxu0 }
 0x135   : >> { %v753_v38 = vadd.f32 %v752_v54, %v639_v36  ;;  %v4044_v54 = vpop.f32.mrf.mxu2 }
 0x137   : >> { %2966 = vmatmul.msk.f32.gmra.mxu1 %vm525_vm7, %v2922_v34  ;;  %v962_v42 = vadd.f32 %v961_v50, %v753_v38  ;;  %686 = vmatmul.f32.gmra.mxu0 %v2915_v37  ;;  %v2917_v50 = vld [vmem:[%s5221_s1 + $0x310] sm:$0xff]  ;;  %v3458_v38 = vmov 0  }
 0x138   : >> { %3437 = vset.pattern.permute.xlu1 %v3458_v38  ;;  %3436 = vset.pattern.permute.xlu0 %v3458_v38 }
 0x139   : >> { %v4020_v52 = vadd.f32 %v3887_v35, %v962_v42  ;;  %v1651_v42 = vld [vmem:[%s5222_s2 + $0x10] sm:$0xff]  ;;  %1688 = vperm.xlu0 %3436, %v1650_v43   ;;  %3435 = vset.pattern.permute.xlu2 %v3458_v38  ;;  %v1652_v38 = vld [vmem:[%s5222_s2 + $0x18] sm:$0xff] }
 0x13a   : >> { %1693 = vperm.xlu1 %3437, %v1651_v42   ;;  %v1656_v42 = vld [vmem:[%s5222_s2 + $0x38] sm:$0xff] }
 0x13c   : >> { %v4026_v30 = vpop.f32.mrf.mxu1  ;;  %v642_v46 = vpop.f32.mrf.mxu0 }
 0x13d   : >> { %v756_v35 = vadd.f32 %v755_v0, %v642_v46  ;;  %v4089_v0 = vpop.f32.mrf.mxu3  ;;  %v4091_v2 = vpop.f32.mrf.mxu2  ;;  %v2923_v46 = vld [vmem:[%s5221_s1 + $0x340] sm:$0xff] }
 0x13f   : >> { %2967 = vmatmul.msk.f32.gmra.mxu1 %vm525_vm7, %v2924_v48  ;;  %v965_v55 = vadd.f32 %v964_v61, %v756_v35  ;;  %689 = vmatmul.f32.gmra.mxu0 %v2917_v50 }
 0x141   : >> { %v4059_v57 = vadd.f32 %v3903_v40, %v965_v55  ;;  %v2926_v40 = vld [vmem:[%s5221_s1 + $0x358] sm:$0xff] }
 0x144   : >> { %v4073_v60 = vpop.f32.mrf.mxu1  ;;  %v645_v61 = vpop.f32.mrf.mxu0 }
 0x145   : >> { %v759_v63 = vadd.f32 %v758_v29, %v645_v61  ;;  %v4146_v32 = vpop.f32.mrf.mxu3  ;;  %v4148_v34 = vpop.f32.mrf.mxu2  ;;  %v1653_v61 = vld [vmem:[%s5222_s2 + $0x20] sm:$0xff] }
 0x146   : >> { %1703 = vperm.xlu1 %3437, %v1653_v61   ;;  %v370_v61 = vld [vmem:[%s5221_s1 + $0x1b0] sm:$0xff] }
 0x147   : >> { %2968 = vmatmul.msk.f32.gmra.mxu1 %vm525_vm7, %v2926_v40  ;;  %v968_v18 = vadd.f32 %v3971_v23, %v759_v63  ;;  %692 = vmatmul.f32.gmra.mxu0 %v2919_v62  ;;  %v362_v23 = vld [vmem:[%s5221_s1 + $0x170] sm:$0xff]  ;;  %v1649_v40 = vld [vmem:[%s5222_s2] sm:$0xff] }
 0x148   : >> { %1029 = vmatmul.f32.gmra.mxu2 %v362_v23  ;;  %1683 = vperm.xlu2 %3435, %v1649_v40   ;;  %v1655_v62 = vld [vmem:[%s5222_s2 + $0x30] sm:$0xff]  ;;  %v377_v40 = vld [vmem:[%s5221_s1 + $0x1e8] sm:$0xff] }
 0x149   : >> { %v4115_v25 = vadd.f32 %v3921_v44, %v968_v18  ;;  %v2928_v44 = vld [vmem:[%s5221_s1 + $0x368] sm:$0xff]  ;;  %v2925_v23 = vld [vmem:[%s5221_s1 + $0x350] sm:$0xff]  ;;  %1713 = vperm.xlu0 %3436, %v1655_v62  }
 0x14a   : >> { %v2932_v18 = vld [vmem:[%s5221_s1 + $0x388] sm:$0xff] }
 0x14c   : >> { %v4129_v29 = vpop.f32.mrf.mxu1  ;;  %v648_v47 = vpop.f32.mrf.mxu0 }
 0x14d   : >> { %v762_v31 = vadd.f32 %v4003_v33, %v648_v47  ;;  %v371_v33 = vld [vmem:[%s5221_s1 + $0x1b8] sm:$0xff]  ;;  %v4193_v35 = vpop.f32.mrf.mxu3  ;;  %v4203_v55 = vpop.f32.mrf.mxu2 }
 0x14e   : >> { %3006 = vmatmul.msk.f32.gmra.mxu3 %vm525_vm7, %v371_v33  ;;  %v375_v33 = vld [vmem:[%s5221_s1 + $0x1d8] sm:$0xff]  ;;  %1718 = vperm.xlu1 %3437, %v1656_v42  }
 0x14f   : >> { %2969 = vmatmul.msk.f32.gmra.mxu1 %vm525_vm7, %v2928_v44  ;;  %v971_v36 = vadd.f32 %v3993_v28, %v762_v31  ;;  %695 = vmatmul.f32.gmra.mxu0 %v2921_v26  ;;  %v364_v28 = vld [vmem:[%s5221_s1 + $0x180] sm:$0xff] }
 0x150   : >> { %1032 = vmatmul.f32.gmra.mxu2 %v364_v28  ;;  %1698 = vperm.xlu2 %3435, %v1652_v38   ;;  %v1662_v38 = vld [vmem:[%s5222_s2 + $0x68] sm:$0xff] }
 0x151   : >> { %v4172_v37 = vadd.f32 %v3937_v49, %v971_v36 }
 0x154   : >> { %v4184_v49 = vpop.f32.mrf.mxu1  ;;  %v651_v48 = vpop.f32.mrf.mxu0 }
 0x155   : >> { %v765_v50 = vadd.f32 %v4026_v30, %v651_v48  ;;  %v373_v30 = vld [vmem:[%s5221_s1 + $0x1c8] sm:$0xff]  ;;  %v4251_v31 = vpop.f32.mrf.mxu3  ;;  %v4261_v36 = vpop.f32.mrf.mxu2 }
 0x156   : >> { %3007 = vmatmul.msk.f32.gmra.mxu3 %vm525_vm7, %v373_v30 }
 0x157   : >> { %2970 = vmatmul.msk.f32.gmra.mxu1 %vm525_vm7, %v2930_v45  ;;  %v974_v56 = vadd.f32 %v4013_v41, %v765_v50  ;;  %698 = vmatmul.f32.gmra.mxu0 %v2923_v46  ;;  %v366_v41 = vld [vmem:[%s5221_s1 + $0x190] sm:$0xff]  ;;  %v2934_v45 = vld [vmem:[%s5221_s1 + $0x398] sm:$0xff]  ;;  %v2927_v46 = vld [vmem:[%s5221_s1 + $0x360] sm:$0xff] }
 0x158   : >> { %1035 = vmatmul.f32.gmra.mxu2 %v366_v41 }
 0x159   : >> { %v4219_v59 = vadd.f32 %v3953_v58, %v974_v56  ;;  %v3427_v58 = vpop.permute.xlu0 %3426 }
 0x15a   : >> { %v3429_v44 = vunpack.i.h.bf16 %v3427_v58  ;;  %v3428_v47 = vunpack.i.l.bf16 %v3427_v58  ;;  %v1659_v58 = vld [vmem:[%s5222_s2 + $0x50] sm:$0xff] }
 0x15b   : >> { %1733 = vperm.xlu1 %3437, %v1659_v58  }
 0x15c   : >> { %v4242_v63 = vpop.f32.mrf.mxu1  ;;  %v654_v24 = vpop.f32.mrf.mxu0  ;;  %1404 = vmatpush.msrb.mxu1 %v3429_v44  ;;  %1519 = vmatpush.msrb.mxu3 %v3428_v47 }
 0x15d   : >> { %v768_v26 = vadd.f32 %v4073_v60, %v654_v24  ;;  %v4303_v56 = vpop.f32.mrf.mxu3  ;;  %v4309_v30 = vpop.f32.mrf.mxu2 }
 0x15e   : >> { %3008 = vmatmul.msk.f32.gmra.mxu3 %vm525_vm7, %v375_v33  ;;  %v379_v33 = vld [vmem:[%s5221_s1 + $0x1f8] sm:$0xff] }
 0x15f   : >> { %2971 = vmatmul.msk.f32.gmra.mxu1 %vm525_vm7, %v2932_v18  ;;  %v977_v60 = vadd.f32 %v4044_v54, %v768_v26  ;;  %701 = vmatmul.f32.gmra.mxu0 %v2925_v23  ;;  %v368_v54 = vld [vmem:[%s5221_s1 + $0x1a0] sm:$0xff]  ;;  %v2936_v18 = vld [vmem:[%s5221_s1 + $0x3a8] sm:$0xff]  ;;  %v2929_v23 = vld [vmem:[%s5221_s1 + $0x370] sm:$0xff] }
 0x160   : >> { %3297 = vmatpush.msk.msra.mxu3 %vm2002_vm0, %v3611_v22  ;;  %1038 = vmatmul.f32.gmra.mxu2 %v368_v54  ;;  %v372_v54 = vld [vmem:[%s5221_s1 + $0x1c0] sm:$0xff] }
 0x161   : >> { %v4277_v28 = vadd.f32 %v3969_v19, %v977_v60  ;;  %v1658_v19 = vld [vmem:[%s5222_s2 + $0x48] sm:$0xff] }
 0x162   : >> { %1728 = vperm.xlu0 %3436, %v1658_v19   ;;  %3298 = vmatpush.msk.msra.mxu3 %vm254_vm5, %v3457_v53  ;;  %v2938_v19 = vld [vmem:[%s5221_s1 + $0x3b8] sm:$0xff] }
 0x163   : >> { %1748 = vperm.xlu1 %3437, %v1662_v38  }
 0x164   : >> { %v4294_v43 = vpop.f32.mrf.mxu1  ;;  %v657_v48 = vpop.f32.mrf.mxu0  ;;  %3299 = vmatpush.msk.msra.mxu3 %vm253_vm6, %v3457_v53 }
 0x165   : >> { %v771_v50 = vadd.f32 %v4129_v29, %v657_v48  ;;  %v4349_v47 = vpop.f32.mrf.mxu3  ;;  %v4355_v26 = vpop.f32.mrf.mxu2  ;;  %v2931_v48 = vld [vmem:[%s5221_s1 + $0x380] sm:$0xff] }
 0x166   : >> { %3009 = vmatmul.msk.f32.gmra.mxu3 %vm525_vm7, %v377_v40 }
 0x167   : >> { %2972 = vmatmul.msk.f32.gmra.mxu1 %vm525_vm7, %v2934_v45  ;;  %v980_v41 = vadd.f32 %v4091_v2, %v771_v50  ;;  %704 = vmatmul.f32.gmra.mxu0 %v2927_v46  ;;  %v1654_v2 = vld [vmem:[%s5222_s2 + $0x28] sm:$0xff] }
 0x168   : >> { %3300 = vmatpush.msk.msra.mxu3 %vm252_vm15, %v3457_v53  ;;  %1041 = vmatmul.f32.gmra.mxu2 %v370_v61  ;;  %v3432_v61 = vpop.permute.xlu1 %3431 }
 0x169   : >> { %v4321_v29 = vadd.f32 %v3987_v27, %v980_v41  ;;  %1708 = vperm.xlu2 %3435, %v1654_v2   ;;  %v1661_v27 = vld [vmem:[%s5222_s2 + $0x60] sm:$0xff]  ;;  %v3012_v2 = vld [vmem:[%s5221_s1 + $0x408] sm:$0xff] }
 0x16a   : >> { %1743 = vperm.xlu0 %3436, %v1661_v27   ;;  %3301 = vmatpush.msk.msra.mxu3 %vm5256_vm4, %v3457_v53  ;;  %v3434_v27 = vunpack.i.h.bf16 %v3432_v61  ;;  %vm2761_vm4 = vcmask 506880  }
 0x16c   : >> { %v4340_v62 = vpop.f32.mrf.mxu1  ;;  %v660_v24 = vpop.f32.mrf.mxu0  ;;  %3302 = vmatpush.msk.msra.mxu3 %vm5257_vm3, %v3457_v53  ;;  %vm2540_vm3 = vcmask 1047559  }
 0x16d   : >> { %v774_v44 = vadd.f32 %v4184_v49, %v660_v24  ;;  %v4395_v50 = vpop.f32.mrf.mxu3  ;;  %v4401_v41 = vpop.f32.mrf.mxu2  ;;  %v1665_v24 = vld [vmem:[%s5222_s2 + $0x80] sm:$0xff] }
 0x16e   : >> { %3010 = vmatmul.msk.f32.gmra.mxu3 %vm525_vm7, %v379_v33  ;;  %v2933_v33 = vld [vmem:[%s5221_s1 + $0x390] sm:$0xff]  ;;  %1763 = vperm.xlu1 %3437, %v1665_v24  }
 0x16f   : >> { %2973 = vmatmul.msk.f32.gmra.mxu1 %vm525_vm7, %v2936_v18  ;;  %v983_v60 = vadd.f32 %v4148_v34, %v774_v44  ;;  %707 = vmatmul.f32.gmra.mxu0 %v2929_v23  ;;  %v1657_v34 = vld [vmem:[%s5222_s2 + $0x40] sm:$0xff]  ;;  %v1660_v18 = vld [vmem:[%s5222_s2 + $0x58] sm:$0xff]  ;;  %v2940_v44 = vld [vmem:[%s5221_s1 + $0x3c8] sm:$0xff] }
 0x170   : >> { %3303 = vmatpush.msk.msra.mxu3 %vm5259_vm2, %v3457_v53  ;;  %1044 = vmatmul.f32.gmra.mxu2 %v372_v54  ;;  %vm2537_vm2 = vcmask 1046534  }
 0x171   : >> { %v4367_v49 = vadd.f32 %v4011_v39, %v983_v60  ;;  %1723 = vperm.xlu2 %3435, %v1657_v34   ;;  %v1664_v39 = vld [vmem:[%s5222_s2 + $0x78] sm:$0xff] }
 0x172   : >> { %1758 = vperm.xlu0 %3436, %v1664_v39   ;;  %3304 = vmatpush.msk.msra.mxu3 %vm5261_vm1, %v3457_v53  ;;  %vm2535_vm1 = vcmask 1045509  }
 0x174   : >> { %v4386_v42 = vpop.f32.mrf.mxu1  ;;  %v663_v45 = vpop.f32.mrf.mxu0  ;;  %3305 = vmatpush.msk.msra.mxu3 %vm5279_vm8, %v3457_v53  ;;  %vm5283_vm8 = vcmp.eq.s32.totalorder %v5252_v5, %v3578_v21 }
 0x175   : >> { %v777_v46 = vadd.f32 %v4242_v63, %v663_v45  ;;  %v3433_v63 = vunpack.i.l.bf16 %v3432_v61  ;;  %v4441_v34 = vpop.f32.mrf.mxu3  ;;  %v4445_v38 = vpop.f32.mrf.mxu2  ;;  %v1663_v45 = vld [vmem:[%s5222_s2 + $0x70] sm:$0xff] }
 0x176   : >> { %3075 = vmatmul.msk.f32.vlgmr.msrb.gmra.mxu3 %vm525_vm7, %v3012_v2  ;;  %v2935_v2 = vld [vmem:[%s5221_s1 + $0x3a0] sm:$0xff] }
 0x177   : >> { %2974 = vmatmul.msk.f32.gmra.mxu1 %vm525_vm7, %v2938_v19  ;;  %v986_v40 = vadd.f32 %v4203_v55, %v777_v46  ;;  %710 = vmatmul.f32.gmra.mxu0 %v2931_v48  ;;  %v374_v55 = vld [vmem:[%s5221_s1 + $0x1d0] sm:$0xff]  ;;  %v1668_v48 = vld [vmem:[%s5222_s2 + $0x98] sm:$0xff] }
 0x178   : >> { %1405 = vmatpush.msrb.mxu1 %v3433_v63  ;;  %3306 = vmatpush.msk.msra.mxu3 %vm5280_vm10, %v3457_v53  ;;  %vm5284_vm10 = vcmp.eq.s32.totalorder %v5253_v4, %v3578_v21 }
 0x179   : >> { %v4413_v58 = vadd.f32 %v4034_v51, %v986_v40  ;;  %1047 = vmatmul.f32.gmra.mxu2 %v374_v55  ;;  %1738 = vperm.xlu2 %3435, %v1660_v18   ;;  %v1667_v51 = vld [vmem:[%s5222_s2 + $0x90] sm:$0xff]  ;;  %v2942_v40 = vld [vmem:[%s5221_s1 + $0x3d8] sm:$0xff] }
 0x17a   : >> { %1406 = vmatpush.msrb.mxu1 %v3434_v27  ;;  %1773 = vperm.xlu0 %3436, %v1667_v51   ;;  %v1666_v51 = vld [vmem:[%s5222_s2 + $0x88] sm:$0xff] }
 0x17b   : >> { %3307 = vmatpush.msk.msra.mxu3 %vm5281_vm9, %v3457_v53  ;;  %1778 = vperm.xlu1 %3437, %v1668_v48   ;;  %vm5285_vm9 = vcmp.eq.s32.totalorder %v3527_v12, %v3532_v14 }
 0x17c   : >> { %v4432_v23 = vpop.f32.mrf.mxu1  ;;  %v666_v60 = vpop.f32.mrf.mxu0  ;;  %3281 = vmatpush.msk.msra.mxu1 %vm2002_vm0, %v3575_v20  ;;  %vm5282_vm0 = vcmp.eq.s32.totalorder %v5251_v6, %v3578_v21 }
 0x17d   : >> { %v780_v54 = vadd.f32 %v4294_v43, %v666_v60  ;;  %v3014_v43 = vld [vmem:[%s5221_s1 + $0x418] sm:$0xff]  ;;  %3308 = vmatpush.msk.msra.mxu3 %vm5282_vm0, %v3457_v53  ;;  %v4501_v27 = vpop.f32.mrf.mxu3  ;;  %v4507_v55 = vpop.f32.mrf.mxu2  ;;  %vm5286_vm0 = vcmp.eq.s32.totalorder %v5254_v3, %v3578_v21 }
 0x17e   : >> { %3282 = vmatpush.msk.msra.mxu1 %vm205_vm14, %v3457_v53  ;;  %3076 = vmatmul.msk.f32.gmra.mxu3 %vm525_vm7, %v3014_v43 }
 0x17f   : >> { %2975 = vmatmul.msk.f32.gmra.mxu1 %vm525_vm7, %v2940_v44  ;;  %v989_v39 = vadd.f32 %v4261_v36, %v780_v54  ;;  %713 = vmatmul.f32.gmra.mxu0 %v2933_v33  ;;  %v376_v36 = vld [vmem:[%s5221_s1 + $0x1e0] sm:$0xff]  ;;  %v1671_v44 = vld [vmem:[%s5222_s2 + $0xb0] sm:$0xff]  ;;  %v2944_v33 = vld [vmem:[%s5221_s1 + $0x3e8] sm:$0xff] }
 0x180   : >> { %3283 = vmatpush.msk.msra.mxu1 %vm204_vm13, %v3457_v53  ;;  %3309 = vmatpush.msk.msra.mxu3 %vm5283_vm8, %v3457_v53  ;;  %vm5287_vm8 = vcmp.eq.s32.totalorder %v3524_v11, %v3532_v14 }
 0x181   : >> { %v4465_v19 = vadd.f32 %v4089_v0, %v989_v39  ;;  %1050 = vmatmul.f32.gmra.mxu2 %v376_v36  ;;  %1753 = vperm.xlu2 %3435, %v1663_v45   ;;  %v1670_v0 = vld [vmem:[%s5222_s2 + $0xa8] sm:$0xff]  ;;  %v2937_v39 = vld [vmem:[%s5221_s1 + $0x3b0] sm:$0xff] }
 0x182   : >> { %3284 = vmatpush.msk.msra.mxu1 %vm203_vm12, %v3457_v53  ;;  %1788 = vperm.xlu0 %3436, %v1670_v0   ;;  %v3018_v0 = vld [vmem:[%s5221_s1 + $0x438] sm:$0xff] }
 0x183   : >> { %3310 = vmatpush.msk.msra.mxu3 %vm5284_vm10, %v3457_v53  ;;  %vm5288_vm10 = vcmp.eq.s32.totalorder %v5255_v1, %v3578_v21  ;;  %1793 = vperm.xlu1 %3437, %v1671_v44  }
 0x184   : >> { %v4488_v46 = vpop.f32.mrf.mxu1  ;;  %v669_v61 = vpop.f32.mrf.mxu0  ;;  %3285 = vmatpush.msk.msra.mxu1 %vm202_vm11, %v3457_v53 }
 0x185   : >> { %v783_v63 = vadd.f32 %v4340_v62, %v669_v61  ;;  %v3016_v62 = vld [vmem:[%s5221_s1 + $0x428] sm:$0xff]  ;;  %3311 = vmatpush.msk.msra.mxu3 %vm5286_vm0, %v3457_v53  ;;  %v4563_v36 = vpop.f32.mrf.mxu3  ;;  %v4565_v45 = vpop.f32.mrf.mxu2  ;;  %vm5290_vm0 = vcmp.eq.s32.totalorder %v5248_v9, %v3532_v14  ;;  %v1676_v61 = vld [vmem:[%s5222_s2 + $0xd8] sm:$0xff] }
 0x186   : >> { %3286 = vmatpush.msk.msra.mxu1 %vm5285_vm9, %v3457_v53  ;;  %3077 = vmatmul.msk.f32.gmra.mxu3 %vm525_vm7, %v3016_v62  ;;  %vm5289_vm9 = vcmp.eq.s32.totalorder %v3521_v10, %v3532_v14 }
 0x187   : >> { %2976 = vmatmul.msk.f32.gmra.mxu1 %vm525_vm7, %v2942_v40  ;;  %v992_v18 = vadd.f32 %v4309_v30, %v783_v63  ;;  %716 = vmatmul.f32.gmra.mxu0 %v2935_v2  ;;  %v378_v30 = vld [vmem:[%s5221_s1 + $0x1f0] sm:$0xff]  ;;  %v1669_v40 = vld [vmem:[%s5222_s2 + $0xa0] sm:$0xff]  ;;  %v2946_v2 = vld [vmem:[%s5221_s1 + $0x3f8] sm:$0xff] }
 0x188   : >> { %3287 = vmatpush.msk.msra.mxu1 %vm5287_vm8, %v3457_v53  ;;  %3312 = vmatpush.msk.msra.mxu3 %vm5288_vm10, %v3457_v53  ;;  %vm5291_vm8 = vcmp.eq.s32.totalorder %v5249_v8, %v3532_v14  ;;  %vm5292_vm10 = vcmp.eq.s32.totalorder %v5250_v7, %v3532_v14 }
 0x189   : >> { %v4527_v24 = vadd.f32 %v4146_v32, %v992_v18  ;;  %1053 = vmatmul.f32.gmra.mxu2 %v378_v30  ;;  %1768 = vperm.xlu2 %3435, %v1666_v51   ;;  %v1673_v32 = vld [vmem:[%s5222_s2 + $0xc0] sm:$0xff] }
 0x18a   : >> { %3288 = vmatpush.msk.msra.mxu1 %vm5289_vm9, %v3457_v53  ;;  %1803 = vperm.xlu0 %3436, %v1673_v32   ;;  %v2939_v18 = vld [vmem:[%s5221_s1 + $0x3c0] sm:$0xff]  ;;  %vm5293_vm9 = vcmp.eq.s32.totalorder %v5251_v6, %v3532_v14  ;;  %v3020_v32 = vld [vmem:[%s5221_s1 + $0x448] sm:$0xff] }
 0x18c   : >> { %v4550_v60 = vpop.f32.mrf.mxu1  ;;  %v672_v54 = vpop.f32.mrf.mxu0  ;;  %3289 = vmatpush.msk.msra.mxu1 %vm5290_vm0, %v3457_v53  ;;  %vm5294_vm0 = vcmp.eq.s32.totalorder %v5252_v5, %v3532_v14 }
 0x18d   : >> { %v786_v43 = vadd.f32 %v4386_v42, %v672_v54  ;;  %v4608_v30 = vpop.f32.mrf.mxu3  ;;  %v4610_v51 = vpop.f32.mrf.mxu2  ;;  %v1679_v54 = vld [vmem:[%s5222_s2 + $0xf0] sm:$0xff] }
 0x18e   : >> { %3290 = vmatpush.msk.msra.mxu1 %vm5291_vm8, %v3457_v53  ;;  %3078 = vmatmul.msk.f32.gmra.mxu3 %vm525_vm7, %v3018_v0  ;;  %vm5295_vm8 = vcmp.eq.s32.totalorder %v5253_v4, %v3532_v14 }
 0x18f   : >> { %2977 = vmatmul.msk.f32.gmra.mxu1 %vm525_vm7, %v2944_v33  ;;  %v995_v48 = vadd.f32 %v4355_v26, %v786_v43  ;;  %719 = vmatmul.f32.gmra.mxu0 %v2937_v39  ;;  %v1674_v26 = vld [vmem:[%s5222_s2 + $0xc8] sm:$0xff]  ;;  %v1672_v33 = vld [vmem:[%s5222_s2 + $0xb8] sm:$0xff]  ;;  %v3011_v39 = vld [vmem:[%s5221_s1 + $0x400] sm:$0xff] }
 0x190   : >> { %3291 = vmatpush.msk.msra.mxu1 %vm5292_vm10, %v3457_v53  ;;  %1808 = vperm.xlu1 %3437, %v1674_v26   ;;  %vm5296_vm10 = vcmp.eq.s32.totalorder %v5254_v3, %v3532_v14 }
 0x191   : >> { %v4581_v42 = vadd.f32 %v4193_v35, %v995_v48  ;;  %1783 = vperm.xlu2 %3435, %v1669_v40   ;;  %v2941_v48 = vld [vmem:[%s5221_s1 + $0x3d0] sm:$0xff] }
 0x192   : >> { %3292 = vmatpush.msk.msra.mxu1 %vm5293_vm9, %v3457_v53  ;;  %1818 = vperm.xlu0 %3436, %v1676_v61   ;;  %vm5297_vm9 = vcmp.eq.s32.totalorder %v5255_v1, %v3532_v14  ;;  %v3022_v61 = vld [vmem:[%s5221_s1 + $0x458] sm:$0xff] }
 0x194   : >> { %v797_v35 = vpop.f32.mrf.mxu1  ;;  %v675_v63 = vpop.f32.mrf.mxu0  ;;  %3293 = vmatpush.msk.msra.mxu1 %vm5294_vm0, %v3457_v53  ;;  %vm1905_vm0 = vcmask 1014784  }
 0x195   : >> { %v789_v62 = vadd.f32 %v4432_v23, %v675_v63  ;;  %v4653_v40 = vpop.f32.mrf.mxu3 }
 0x196   : >> { %3294 = vmatpush.msk.msra.mxu1 %vm5295_vm8, %v3457_v53  ;;  %3079 = vmatmul.msk.f32.gmra.mxu3 %vm525_vm7, %v3020_v32  ;;  %vm2527_vm8 = vcmask 1042434  }
 0x197   : >> { %2978 = vmatmul.msk.f32.gmra.mxu1 %vm525_vm7, %v2946_v2  ;;  %v998_v44 = vadd.f32 %v4401_v41, %v789_v62  ;;  %722 = vmatmul.f32.gmra.mxu0 %v2939_v18  ;;  %v1677_v41 = vld [vmem:[%s5222_s2 + $0xe0] sm:$0xff]  ;;  %v1012_v2 = vpop.f32.mrf.mxu2  ;;  %v3013_v18 = vld [vmem:[%s5221_s1 + $0x410] sm:$0xff] }
 0x198   : >> { %3295 = vmatpush.msk.msra.mxu1 %vm5296_vm10, %v3457_v53  ;;  %1823 = vperm.xlu1 %3437, %v1677_v41   ;;  %v3024_v41 = vld [vmem:[%s5221_s1 + $0x468] sm:$0xff]  ;;  %vm2530_vm10 = vcmask 1043459  }
 0x199   : >> { %v4626_v23 = vadd.f32 %v4251_v31, %v998_v44  ;;  %1798 = vperm.xlu2 %3435, %v1672_v33  }
 0x19a   : >> { %3296 = vmatpush.msk.msra.mxu1 %vm5297_vm9, %v3457_v53  ;;  %1833 = vperm.xlu0 %3436, %v1679_v54   ;;  %v1675_v53 = vld [vmem:[%s5222_s2 + $0xd0] sm:$0xff]  ;;  %vm2532_vm9 = vcmask 1044484  }
 0x19c   : >> { %v800_v31 = vpop.f32.mrf.mxu1  ;;  %v678_v43 = vpop.f32.mrf.mxu0 }
 0x19d   : >> { %v792_v0 = vadd.f32 %v4488_v46, %v678_v43  ;;  %v1680_v46 = vld [vmem:[%s5222_s2 + $0xf8] sm:$0xff]  ;;  %v4676_v32 = vpop.f32.mrf.mxu3 }
 0x19e   : >> { %3080 = vmatmul.msk.f32.gmra.mxu3 %vm525_vm7, %v3022_v61 }
 0x19f   : >> { %1407 = vmatmul.f32.vlgmr.msrb.gmra.mxu1 %v3011_v39  ;;  %v1001_v26 = vadd.f32 %v4445_v38, %v792_v0  ;;  %725 = vmatmul.f32.gmra.mxu0 %v2941_v48  ;;  %v1015_v39 = vpop.f32.mrf.mxu2  ;;  %v2945_v0 = vld [vmem:[%s5221_s1 + $0x3f0] sm:$0xff] }
 0x1a0   : >> { %1838 = vperm.xlu1 %3437, %v1680_v46  }
 0x1a1   : >> { %v4660_v63 = vadd.f32 %v4303_v56, %v1001_v26  ;;  %1813 = vperm.xlu2 %3435, %v1675_v53   ;;  %v2943_v56 = vld [vmem:[%s5221_s1 + $0x3e0] sm:$0xff]  ;;  %v3026_v53 = vld [vmem:[%s5221_s1 + $0x478] sm:$0xff] }
 0x1a2   : >> { %v1684_v8 = vpop.permute.xlu2 %1683 }
 0x1a4   : >> { %v803_v38 = vpop.f32.mrf.mxu1  ;;  %v681_v62 = vpop.f32.mrf.mxu0 }
 0x1a5   : >> { %v795_v44 = vadd.f32 %v4550_v60, %v681_v62  ;;  %v1678_v60 = vld [vmem:[%s5222_s2 + $0xe8] sm:$0xff]  ;;  %v4695_v26 = vpop.f32.mrf.mxu3 }
 0x1a6   : >> { %3081 = vmatmul.msk.f32.gmra.mxu3 %vm525_vm7, %v3024_v41 }
 0x1a7   : >> { %1410 = vmatmul.f32.gmra.mxu1 %v3013_v18  ;;  %v1004_v33 = vadd.f32 %v4507_v55, %v795_v44  ;;  %728 = vmatmul.f32.gmra.mxu0 %v2943_v56  ;;  %v3015_v55 = vld [vmem:[%s5221_s1 + $0x420] sm:$0xff]  ;;  %v1018_v18 = vpop.f32.mrf.mxu2 }
 0x1a9   : >> { %v4683_v54 = vadd.f32 %v4349_v47, %v1004_v33  ;;  %1828 = vperm.xlu2 %3435, %v1678_v60  }
 0x1ac   : >> { %v806_v43 = vpop.f32.mrf.mxu1  ;;  %v684_v48 = vpop.f32.mrf.mxu0 }
 0x1ad   : >> { %v798_v47 = vadd.f32 %v797_v35, %v684_v48  ;;  %v3017_v35 = vld [vmem:[%s5221_s1 + $0x430] sm:$0xff]  ;;  %v4708_v33 = vpop.f32.mrf.mxu3 }
 0x1ae   : >> { %3082 = vmatmul.msk.f32.gmra.mxu3 %vm525_vm7, %v3026_v53 }
 0x1af   : >> { %1413 = vmatmul.f32.gmra.mxu1 %v3015_v55  ;;  %v1007_v61 = vadd.f32 %v4565_v45, %v798_v47  ;;  %731 = vmatmul.f32.gmra.mxu0 %v2945_v0  ;;  %v3019_v55 = vld [vmem:[%s5221_s1 + $0x440] sm:$0xff]  ;;  %v1021_v47 = vpop.f32.mrf.mxu2 }
 0x1b1   : >> { %v4702_v46 = vadd.f32 %v4395_v50, %v1007_v61  ;;  %v3028_v50 = vld [vmem:[%s5221_s1 + $0x488] sm:$0xff]  ;;  %v3030_v61 = vld [vmem:[%s5221_s1 + $0x498] sm:$0xff] }
 0x1b4   : >> { %v809_v62 = vpop.f32.mrf.mxu1  ;;  %v687_v56 = vpop.f32.mrf.mxu0 }
 0x1b5   : >> { %v801_v44 = vadd.f32 %v800_v31, %v687_v56  ;;  %v4721_v0 = vpop.f32.mrf.mxu3 }
 0x1b6   : >> { %3083 = vmatmul.msk.f32.gmra.mxu3 %vm525_vm7, %v3028_v50  ;;  %v3032_v50 = vld [vmem:[%s5221_s1 + $0x4a8] sm:$0xff] }
 0x1b7   : >> { %1416 = vmatmul.f32.gmra.mxu1 %v3017_v35  ;;  %v1010_v45 = vadd.f32 %v4610_v51, %v801_v44  ;;  %v3021_v35 = vld [vmem:[%s5221_s1 + $0x450] sm:$0xff] }
 0x1b9   : >> { %v4715_v41 = vadd.f32 %v4441_v34, %v1010_v45  ;;  %v1024_v45 = vpop.f32.mrf.mxu2 }
 0x1bc   : >> { %v812_v60 = vpop.f32.mrf.mxu1  ;;  %v690_v31 = vpop.f32.mrf.mxu0 }
 0x1bd   : >> { %v804_v48 = vadd.f32 %v803_v38, %v690_v31  ;;  %v4733_v44 = vpop.f32.mrf.mxu3  ;;  %v3023_v31 = vld [vmem:[%s5221_s1 + $0x460] sm:$0xff] }
 0x1be   : >> { %3084 = vmatmul.msk.f32.gmra.mxu3 %vm525_vm7, %v3030_v61  ;;  %v3034_v61 = vld [vmem:[%s5221_s1 + $0x4b8] sm:$0xff] }
 0x1bf   : >> { %1419 = vmatmul.f32.gmra.mxu1 %v3019_v55  ;;  %v1013_v51 = vadd.f32 %v1012_v2, %v804_v48 }
 0x1c1   : >> { %v4727_v34 = vadd.f32 %v4501_v27, %v1013_v51 }
 0x1c4   : >> { %v815_v53 = vpop.f32.mrf.mxu1  ;;  %v693_v38 = vpop.f32.mrf.mxu0 }
 0x1c5   : >> { %v807_v56 = vadd.f32 %v806_v43, %v693_v38  ;;  %v4745_v51 = vpop.f32.mrf.mxu3 }
 0x1c6   : >> { %3085 = vmatmul.msk.f32.gmra.mxu3 %vm525_vm7, %v3032_v50 }
 0x1c7   : >> { %1422 = vmatmul.f32.gmra.mxu1 %v3021_v35  ;;  %v1016_v2 = vadd.f32 %v1015_v39, %v807_v56  ;;  %v1027_v35 = vpop.f32.mrf.mxu2  ;;  %v3025_v56 = vld [vmem:[%s5221_s1 + $0x470] sm:$0xff] }
 0x1c9   : >> { %v4739_v27 = vadd.f32 %v4563_v36, %v1016_v2 }
 0x1cc   : >> { %v818_v55 = vpop.f32.mrf.mxu1  ;;  %v696_v43 = vpop.f32.mrf.mxu0 }
 0x1cd   : >> { %v810_v48 = vadd.f32 %v809_v62, %v696_v43 }
 0x1ce   : >> { %3086 = vmatmul.msk.f32.gmra.mxu3 %vm525_vm7, %v3034_v61 }
 0x1cf   : >> { %1425 = vmatmul.f32.gmra.mxu1 %v3023_v31  ;;  %v1019_v39 = vadd.f32 %v1018_v18, %v810_v48  ;;  %v3036_v31 = vld [vmem:[%s5221_s1 + $0x4c8] sm:$0xff]  ;;  %v1030_v43 = vpop.f32.mrf.mxu2 }
 0x1d1   : >> { %v4751_v36 = vadd.f32 %v4608_v30, %v1019_v39  ;;  %v4757_v50 = vpop.f32.mrf.mxu3  ;;  %v3027_v39 = vld [vmem:[%s5221_s1 + $0x480] sm:$0xff] }
 0x1d4   : >> { %v821_v38 = vpop.f32.mrf.mxu1  ;;  %v699_v62 = vpop.f32.mrf.mxu0 }
 0x1d5   : >> { %v813_v2 = vadd.f32 %v812_v60, %v699_v62 }
 0x1d6   : >> { %3087 = vmatmul.msk.f32.gmra.mxu3 %vm525_vm7, %v3036_v31 }
 0x1d7   : >> { %1428 = vmatmul.f32.gmra.mxu1 %v3025_v56  ;;  %v1022_v18 = vadd.f32 %v1021_v47, %v813_v2  ;;  %v3038_v56 = vld [vmem:[%s5221_s1 + $0x4d8] sm:$0xff] }
 0x1d9   : >> { %v4763_v30 = vadd.f32 %v4653_v40, %v1022_v18  ;;  %v4769_v62 = vpop.f32.mrf.mxu3  ;;  %v3029_v18 = vld [vmem:[%s5221_s1 + $0x490] sm:$0xff] }
 0x1dc   : >> { %v824_v48 = vpop.f32.mrf.mxu1  ;;  %v702_v60 = vpop.f32.mrf.mxu0 }
 0x1dd   : >> { %v816_v61 = vadd.f32 %v815_v53, %v702_v60  ;;  %v1033_v60 = vpop.f32.mrf.mxu2 }
 0x1de   : >> { %3088 = vmatmul.msk.f32.gmra.mxu3 %vm525_vm7, %v3038_v56 }
 0x1df   : >> { %1431 = vmatmul.f32.gmra.mxu1 %v3027_v39  ;;  %v1025_v47 = vadd.f32 %v1024_v45, %v816_v61  ;;  %v3040_v39 = vld [vmem:[%s5221_s1 + $0x4e8] sm:$0xff] }
 0x1e1   : >> { %v4775_v40 = vadd.f32 %v4676_v32, %v1025_v47  ;;  %v4781_v1 = vpop.f32.mrf.mxu3  ;;  %v3031_v47 = vld [vmem:[%s5221_s1 + $0x4a0] sm:$0xff] }
 0x1e4   : >> { %v827_v2 = vpop.f32.mrf.mxu1  ;;  %v705_v31 = vpop.f32.mrf.mxu0 }
 0x1e5   : >> { %v819_v53 = vadd.f32 %v818_v55, %v705_v31 }
 0x1e6   : >> { %3089 = vmatmul.msk.f32.gmra.mxu3 %vm525_vm7, %v3040_v39  ;;  %v3033_v39 = vld [vmem:[%s5221_s1 + $0x4b0] sm:$0xff] }
 0x1e7   : >> { %1434 = vmatmul.f32.gmra.mxu1 %v3029_v18  ;;  %v1028_v45 = vadd.f32 %v1027_v35, %v819_v53  ;;  %v1036_v18 = vpop.f32.mrf.mxu2  ;;  %v3042_v53 = vld [vmem:[%s5221_s1 + $0x4f8] sm:$0xff] }
 0x1e9   : >> { %v4787_v32 = vadd.f32 %v4695_v26, %v1028_v45  ;;  %v4793_v31 = vpop.f32.mrf.mxu3 }
 0x1ec   : >> { %v830_v61 = vpop.f32.mrf.mxu1  ;;  %v708_v55 = vpop.f32.mrf.mxu0 }
 0x1ed   : >> { %v822_v56 = vadd.f32 %v821_v38, %v708_v55 }
 0x1ee   : >> { %3090 = vmatmul.msk.f32.gmra.mxu3 %vm525_vm7, %v3042_v53  ;;  %v3035_v53 = vld [vmem:[%s5221_s1 + $0x4c0] sm:$0xff] }
 0x1ef   : >> { %1437 = vmatmul.f32.gmra.mxu1 %v3031_v47  ;;  %v1031_v35 = vadd.f32 %v1030_v43, %v822_v56  ;;  %v3044_v47 = vld [vmem:[%s5221_s1 + $0x508] sm:$0xff]  ;;  %v1039_v56 = vpop.f32.mrf.mxu2 }
 0x1f1   : >> { %v4799_v26 = vadd.f32 %v4708_v33, %v1031_v35  ;;  %v4805_v3 = vpop.f32.mrf.mxu3 }
 0x1f4   : >> { %v833_v45 = vpop.f32.mrf.mxu1  ;;  %v711_v38 = vpop.f32.mrf.mxu0 }
 0x1f5   : >> { %v825_v55 = vadd.f32 %v824_v48, %v711_v38 }
 0x1f6   : >> { %3091 = vmatmul.msk.f32.gmra.mxu3 %vm525_vm7, %v3044_v47  ;;  %v3037_v47 = vld [vmem:[%s5221_s1 + $0x4d0] sm:$0xff] }
 0x1f7   : >> { %1440 = vmatmul.f32.gmra.mxu1 %v3033_v39  ;;  %v1034_v43 = vadd.f32 %v1033_v60, %v825_v55  ;;  %v3046_v39 = vld [vmem:[%s5221_s1 + $0x518] sm:$0xff]  ;;  %v1042_v55 = vpop.f32.mrf.mxu2 }
 0x1f9   : >> { %v4811_v33 = vadd.f32 %v4721_v0, %v1034_v43  ;;  %v1521_v4 = vpop.f32.mrf.mxu3 }
 0x1fc   : >> { %v836_v35 = vpop.f32.mrf.mxu1  ;;  %v714_v48 = vpop.f32.mrf.mxu0 }
 0x1fd   : >> { %v828_v38 = vadd.f32 %v827_v2, %v714_v48 }
 0x1fe   : >> { %3092 = vmatmul.msk.f32.gmra.mxu3 %vm525_vm7, %v3046_v39 }
 0x1ff   : >> { %1443 = vmatmul.f32.gmra.mxu1 %v3035_v53  ;;  %v1037_v60 = vadd.f32 %v1036_v18, %v828_v38  ;;  %v3048_v53 = vld [vmem:[%s5221_s1 + $0x528] sm:$0xff] }
 0x201   : >> { %v4821_v0 = vadd.f32 %v4733_v44, %v1037_v60  ;;  %v1524_v48 = vpop.f32.mrf.mxu3  ;;  %v3039_v60 = vld [vmem:[%s5221_s1 + $0x4e0] sm:$0xff] }
 0x204   : >> { %v839_v43 = vpop.f32.mrf.mxu1  ;;  %v717_v5 = vpop.f32.mrf.mxu0 }
 0x205   : >> { %v831_v2 = vadd.f32 %v830_v61, %v717_v5  ;;  %v1045_v5 = vpop.f32.mrf.mxu2 }
 0x206   : >> { %3093 = vmatmul.msk.f32.gmra.mxu3 %vm525_vm7, %v3048_v53 }
 0x207   : >> { %1446 = vmatmul.f32.gmra.mxu1 %v3037_v47  ;;  %v1040_v18 = vadd.f32 %v1039_v56, %v831_v2  ;;  %v3050_v47 = vld [vmem:[%s5221_s1 + $0x538] sm:$0xff] }
 0x209   : >> { %v4831_v44 = vadd.f32 %v4745_v51, %v1040_v18  ;;  %v1527_v61 = vpop.f32.mrf.mxu3  ;;  %v3041_v18 = vld [vmem:[%s5221_s1 + $0x4f0] sm:$0xff] }
 0x20c   : >> { %v842_v38 = vpop.f32.mrf.mxu1  ;;  %v720_v39 = vpop.f32.mrf.mxu0 }
 0x20d   : >> { %v834_v6 = vadd.f32 %v833_v45, %v720_v39 }
 0x20e   : >> { %3094 = vmatmul.msk.f32.gmra.mxu3 %vm525_vm7, %v3050_v47  ;;  %v3043_v47 = vld [vmem:[%s5221_s1 + $0x500] sm:$0xff] }
 0x20f   : >> { %1449 = vmatmul.f32.gmra.mxu1 %v3039_v60  ;;  %v1043_v56 = vadd.f32 %v1042_v55, %v834_v6  ;;  %v1048_v6 = vpop.f32.mrf.mxu2  ;;  %v3052_v55 = vld [vmem:[%s5221_s1 + $0x548] sm:$0xff] }
 0x211   : >> { %v4841_v51 = vadd.f32 %v4757_v50, %v1043_v56  ;;  %v1530_v39 = vpop.f32.mrf.mxu3 }
 0x214   : >> { %v845_v2 = vpop.f32.mrf.mxu1  ;;  %v723_v53 = vpop.f32.mrf.mxu0 }
 0x215   : >> { %v837_v45 = vadd.f32 %v836_v35, %v723_v53 }
 0x216   : >> { %3095 = vmatmul.msk.f32.gmra.mxu3 %vm525_vm7, %v3052_v55 }
 0x217   : >> { %1452 = vmatmul.f32.gmra.mxu1 %v3041_v18  ;;  %v1046_v60 = vadd.f32 %v1045_v5, %v837_v45  ;;  %v1051_v9 = vpop.f32.mrf.mxu2 }
 0x219   : >> { %v4851_v50 = vadd.f32 %v4769_v62, %v1046_v60  ;;  %v1533_v18 = vpop.f32.mrf.mxu3  ;;  %v3054_v62 = vld [vmem:[%s5221_s1 + $0x558] sm:$0xff] }
 0x21c   : >> { %v1408_v56 = vpop.f32.mrf.mxu1  ;;  %v726_v7 = vpop.f32.mrf.mxu0 }
 0x21d   : >> { %v1522_v35 = vadd.f32 %v1521_v4, %v1408_v56  ;;  %v840_v53 = vadd.f32 %v839_v43, %v726_v7 }
 0x21e   : >> { %3096 = vmatmul.msk.f32.gmra.mxu3 %vm525_vm7, %v3054_v62 }
 0x21f   : >> { %v1617_v5 = vadd.f32 %v1522_v35, %v4020_v52  ;;  %1455 = vmatmul.f32.gmra.mxu1 %v3043_v47  ;;  %v1049_v45 = vadd.f32 %v1048_v6, %v840_v53  ;;  %v3045_v52 = vld [vmem:[%s5221_s1 + $0x510] sm:$0xff]  ;;  %v1689_v35 = vpop.permute.xlu0 %1688  ;;  %v3056_v53 = vld [vmem:[%s5221_s1 + $0x568] sm:$0xff]  ;;  %v1054_v62 = vpop.f32.mrf.mxu2 }
 0x221   : >> { %v1841_v60 = vadd.f32 %v1684_v8, %v1617_v5  ;;  %v4862_v55 = vadd.f32 %v4781_v1, %v1049_v45  ;;  %v1536_v56 = vpop.f32.mrf.mxu3 }
 0x223   : >> { %v1873_v4 = vmax.f32 %v1841_v60, 0.0 }
 0x224   : >> { %v1411_v7 = vpop.f32.mrf.mxu1  ;;  %v729_v43 = vpop.f32.mrf.mxu0 }
 0x225   : >> { %v1525_v6 = vadd.f32 %v1524_v48, %v1411_v7  ;;  %3123 = vmatmul.msk.f32.vlgmr.msrb.gmra.mxu0 %vm1905_vm0, %v1873_v4  ;;  %3171 = vmatmul.msk.f32.vlgmr.msrb.gmra.mxu2 %vm1905_vm0, %v1873_v4  ;;  %v843_v8 = vadd.f32 %v842_v38, %v729_v43  ;;  %v1694_v43 = vpop.permute.xlu1 %1693 }
 0x226   : >> { %3097 = vmatmul.msk.f32.gmra.mxu3 %vm525_vm7, %v3056_v53 }
 0x227   : >> { %v1618_v1 = vadd.f32 %v1525_v6, %v4059_v57  ;;  %1458 = vmatmul.f32.gmra.mxu1 %v3045_v52  ;;  %v1052_v47 = vadd.f32 %v1051_v9, %v843_v8  ;;  %v3047_v57 = vld [vmem:[%s5221_s1 + $0x520] sm:$0xff]  ;;  %v3058_v6 = vld [vmem:[%s5221_s1 + $0x578] sm:$0xff] }
 0x229   : >> { %v1842_v5 = vadd.f32 %v1689_v35, %v1618_v1  ;;  %v4875_v45 = vadd.f32 %v4793_v31, %v1052_v47  ;;  %v1539_v7 = vpop.f32.mrf.mxu3 }
 0x22b   : >> { %v1874_v48 = vmax.f32 %v1842_v5, 0.0  ;;  %v1699_v5 = vpop.permute.xlu2 %1698 }
 0x22c   : >> { %v1414_v60 = vpop.f32.mrf.mxu1  ;;  %v732_v38 = vpop.f32.mrf.mxu0 }
 0x22d   : >> { %v1528_v9 = vadd.f32 %v1527_v61, %v1414_v60  ;;  %3124 = vmatmul.msk.f32.gmra.mxu0 %vm1905_vm0, %v1874_v48  ;;  %3172 = vmatmul.msk.f32.gmra.mxu2 %vm1905_vm0, %v1874_v48  ;;  %v846_v4 = vadd.f32 %v845_v2, %v732_v38  ;;  %v3049_v2 = vld [vmem:[%s5221_s1 + $0x530] sm:$0xff] }
 0x22e   : >> { %3098 = vmatmul.msk.f32.gmra.mxu3 %vm525_vm7, %v3058_v6 }
 0x22f   : >> { %v1619_v31 = vadd.f32 %v1528_v9, %v4115_v25  ;;  %1461 = vmatmul.f32.gmra.mxu1 %v3047_v57  ;;  %v1055_v52 = vadd.f32 %v1054_v62, %v846_v4  ;;  %v1704_v9 = vpop.permute.xlu1 %1703  ;;  %v3062_v4 = vld [vmem:[%s5221_s1 + $0x598] sm:$0xff] }
 0x231   : >> { %v1843_v8 = vadd.f32 %v1694_v43, %v1619_v31  ;;  %v4888_v1 = vadd.f32 %v4805_v3, %v1055_v52  ;;  %v1542_v35 = vpop.f32.mrf.mxu3  ;;  %v3060_v3 = vld [vmem:[%s5221_s1 + $0x588] sm:$0xff] }
 0x233   : >> { %v1875_v61 = vmax.f32 %v1843_v8, 0.0 }
 0x234   : >> { %v1417_v47 = vpop.f32.mrf.mxu1 }
 0x235   : >> { %v1531_v25 = vadd.f32 %v1530_v39, %v1417_v47  ;;  %3125 = vmatmul.msk.f32.gmra.mxu0 %vm1905_vm0, %v1875_v61  ;;  %3173 = vmatmul.msk.f32.gmra.mxu2 %vm1905_vm0, %v1875_v61  ;;  %v3051_v39 = vld [vmem:[%s5221_s1 + $0x540] sm:$0xff]  ;;  %v1709_v61 = vpop.permute.xlu2 %1708  ;;  %v3064_v47 = vld [vmem:[%s5221_s1 + $0x5a8] sm:$0xff] }
 0x236   : >> { %3099 = vmatmul.msk.f32.gmra.mxu3 %vm525_vm7, %v3060_v3 }
 0x237   : >> { %v1620_v53 = vadd.f32 %v1531_v25, %v4172_v37  ;;  %1464 = vmatmul.f32.gmra.mxu1 %v3049_v2 }
 0x239   : >> { %v1844_v48 = vadd.f32 %v1699_v5, %v1620_v53  ;;  %v1545_v37 = vpop.f32.mrf.mxu3 }
 0x23b   : >> { %v1876_v62 = vmax.f32 %v1844_v48, 0.0  ;;  %v1714_v48 = vpop.permute.xlu0 %1713 }
 0x23c   : >> { %v1420_v60 = vpop.f32.mrf.mxu1 }
 0x23d   : >> { %v1534_v57 = vadd.f32 %v1533_v18, %v1420_v60  ;;  %3126 = vmatmul.msk.f32.gmra.mxu0 %vm1905_vm0, %v1876_v62  ;;  %3174 = vmatmul.msk.f32.gmra.mxu2 %vm1905_vm0, %v1876_v62  ;;  %v3053_v18 = vld [vmem:[%s5221_s1 + $0x550] sm:$0xff]  ;;  %v3066_v62 = vld [vmem:[%s5221_s1 + $0x5b8] sm:$0xff] }
 0x23e   : >> { %3100 = vmatmul.msk.f32.gmra.mxu3 %vm525_vm7, %v3062_v4  ;;  %v1719_v4 = vpop.permute.xlu1 %1718 }
 0x23f   : >> { %v1621_v38 = vadd.f32 %v1534_v57, %v4219_v59  ;;  %1467 = vmatmul.f32.gmra.mxu1 %v3051_v39 }
 0x241   : >> { %v1845_v31 = vadd.f32 %v1704_v9, %v1621_v38  ;;  %v1548_v59 = vpop.f32.mrf.mxu3 }
 0x243   : >> { %v1877_v52 = vmax.f32 %v1845_v31, 0.0  ;;  %v3068_v31 = vld [vmem:[%s5221_s1 + $0x5c8] sm:$0xff] }
 0x244   : >> { %v1423_v43 = vpop.f32.mrf.mxu1 }
 0x245   : >> { %v1537_v6 = vadd.f32 %v1536_v56, %v1423_v43  ;;  %3127 = vmatmul.msk.f32.gmra.mxu0 %vm1905_vm0, %v1877_v52  ;;  %3175 = vmatmul.msk.f32.gmra.mxu2 %vm1905_vm0, %v1877_v52  ;;  %v3055_v56 = vld [vmem:[%s5221_s1 + $0x560] sm:$0xff] }
 0x246   : >> { %3101 = vmatmul.msk.f32.gmra.mxu3 %vm525_vm7, %v3064_v47  ;;  %v3070_v47 = vld [vmem:[%s5221_s1 + $0x5d8] sm:$0xff] }
 0x247   : >> { %v1622_v8 = vadd.f32 %v1537_v6, %v4277_v28  ;;  %1470 = vmatmul.f32.gmra.mxu1 %v3053_v18 }
 0x249   : >> { %v1846_v2 = vadd.f32 %v1709_v61, %v1622_v8  ;;  %v1551_v28 = vpop.f32.mrf.mxu3  ;;  %v1724_v61 = vpop.permute.xlu2 %1723 }
 0x24b   : >> { %v1878_v25 = vmax.f32 %v1846_v2, 0.0 }
 0x24c   : >> { %v1426_v53 = vpop.f32.mrf.mxu1 }
 0x24d   : >> { %v1540_v5 = vadd.f32 %v1539_v7, %v1426_v53  ;;  %3128 = vmatmul.msk.f32.gmra.mxu0 %vm1905_vm0, %v1878_v25  ;;  %3176 = vmatmul.msk.f32.gmra.mxu2 %vm1905_vm0, %v1878_v25  ;;  %v3057_v7 = vld [vmem:[%s5221_s1 + $0x570] sm:$0xff] }
 0x24e   : >> { %3102 = vmatmul.msk.f32.gmra.mxu3 %vm525_vm7, %v3066_v62 }
 0x24f   : >> { %v1623_v3 = vadd.f32 %v1540_v5, %v4321_v29  ;;  %1473 = vmatmul.f32.gmra.mxu1 %v3055_v56 }
 0x251   : >> { %v1847_v60 = vadd.f32 %v1714_v48, %v1623_v3  ;;  %v1554_v29 = vpop.f32.mrf.mxu3  ;;  %v1729_v3 = vpop.permute.xlu0 %1728  ;;  %v3072_v48 = vld [vmem:[%s5221_s1 + $0x5e8] sm:$0xff] }
 0x253   : >> { %v1879_v39 = vmax.f32 %v1847_v60, 0.0 }
 0x254   : >> { %v1429_v57 = vpop.f32.mrf.mxu1 }
 0x255   : >> { %v1543_v38 = vadd.f32 %v1542_v35, %v1429_v57  ;;  %3129 = vmatmul.msk.f32.gmra.mxu0 %vm1905_vm0, %v1879_v39  ;;  %3177 = vmatmul.msk.f32.gmra.mxu2 %vm1905_vm0, %v1879_v39  ;;  %v3059_v35 = vld [vmem:[%s5221_s1 + $0x580] sm:$0xff] }
 0x256   : >> { %3103 = vmatmul.msk.f32.gmra.mxu3 %vm525_vm7, %v3068_v31 }
 0x257   : >> { %v1624_v9 = vadd.f32 %v1543_v38, %v4367_v49  ;;  %1476 = vmatmul.f32.gmra.mxu1 %v3057_v7  ;;  %v1734_v38 = vpop.permute.xlu1 %1733 }
 0x259   : >> { %v1848_v52 = vadd.f32 %v1719_v4, %v1624_v9  ;;  %v1557_v49 = vpop.f32.mrf.mxu3  ;;  %v3074_v9 = vld [vmem:[%s5221_s1 + $0x5f8] sm:$0xff] }
 0x25b   : >> { %v1880_v43 = vmax.f32 %v1848_v52, 0.0 }
 0x25c   : >> { %v1432_v18 = vpop.f32.mrf.mxu1 }
 0x25d   : >> { %v1546_v6 = vadd.f32 %v1545_v37, %v1432_v18  ;;  %3130 = vmatmul.msk.f32.gmra.mxu0 %vm1905_vm0, %v1880_v43  ;;  %3178 = vmatmul.msk.f32.gmra.mxu2 %vm1905_vm0, %v1880_v43  ;;  %v3061_v37 = vld [vmem:[%s5221_s1 + $0x590] sm:$0xff] }
 0x25e   : >> { %3104 = vmatmul.msk.f32.gmra.mxu3 %vm525_vm7, %v3070_v47  ;;  %v3067_v47 = vld [vmem:[%s5221_s1 + $0x5c0] sm:$0xff] }
 0x25f   : >> { %v1625_v8 = vadd.f32 %v1546_v6, %v4413_v58  ;;  %1479 = vmatmul.f32.gmra.mxu1 %v3059_v35  ;;  %v1739_v35 = vpop.permute.xlu2 %1738 }
 0x261   : >> { %v1849_v2 = vadd.f32 %v1724_v61, %v1625_v8  ;;  %v1560_v58 = vpop.f32.mrf.mxu3 }
 0x263   : >> { %v1881_v25 = vmax.f32 %v1849_v2, 0.0 }
 0x264   : >> { %v1435_v53 = vpop.f32.mrf.mxu1 }
 0x265   : >> { %v1549_v56 = vadd.f32 %v1548_v59, %v1435_v53  ;;  %3131 = vmatmul.msk.f32.gmra.mxu0 %vm1905_vm0, %v1881_v25  ;;  %3179 = vmatmul.msk.f32.gmra.mxu2 %vm1905_vm0, %v1881_v25  ;;  %v3063_v59 = vld [vmem:[%s5221_s1 + $0x5a0] sm:$0xff]  ;;  %v1744_v53 = vpop.permute.xlu0 %1743 }
 0x266   : >> { %3105 = vmatmul.msk.f32.gmra.mxu3 %vm525_vm7, %v3072_v48 }
 0x267   : >> { %v1626_v5 = vadd.f32 %v1549_v56, %v4465_v19  ;;  %1482 = vmatmul.f32.gmra.mxu1 %v3061_v37 }
 0x269   : >> { %v1850_v62 = vadd.f32 %v1729_v3, %v1626_v5  ;;  %v1563_v19 = vpop.f32.mrf.mxu3  ;;  %v3069_v5 = vld [vmem:[%s5221_s1 + $0x5d0] sm:$0xff] }
 0x26b   : >> { %v1882_v60 = vmax.f32 %v1850_v62, 0.0  ;;  %v1749_v62 = vpop.permute.xlu1 %1748 }
 0x26c   : >> { %v1438_v39 = vpop.f32.mrf.mxu1 }
 0x26d   : >> { %v1552_v57 = vadd.f32 %v1551_v28, %v1438_v39  ;;  %3132 = vmatmul.msk.f32.gmra.mxu0 %vm1905_vm0, %v1882_v60  ;;  %3180 = vmatmul.msk.f32.gmra.mxu2 %vm1905_vm0, %v1882_v60  ;;  %v3065_v28 = vld [vmem:[%s5221_s1 + $0x5b0] sm:$0xff] }
 0x26e   : >> { %3106 = vmatmul.msk.f32.gmra.mxu3 %vm525_vm7, %v3074_v9  ;;  %vm2525_vm7 = vcmask 1041409  }
 0x26f   : >> { %v1627_v7 = vadd.f32 %v1552_v57, %v4527_v24  ;;  %1485 = vmatmul.f32.gmra.mxu1 %v3063_v59  ;;  %v3071_v59 = vld [vmem:[%s5221_s1 + $0x5e0] sm:$0xff] }
 0x271   : >> { %v1851_v4 = vadd.f32 %v1734_v38, %v1627_v7  ;;  %v1566_v24 = vpop.f32.mrf.mxu3  ;;  %v1754_v7 = vpop.permute.xlu2 %1753 }
 0x273   : >> { %v1883_v31 = vmax.f32 %v1851_v4, 0.0 }
 0x274   : >> { %v1441_v52 = vpop.f32.mrf.mxu1 }
 0x275   : >> { %v1555_v43 = vadd.f32 %v1554_v29, %v1441_v52  ;;  %3133 = vmatmul.msk.f32.gmra.mxu0 %vm1905_vm0, %v1883_v31  ;;  %3181 = vmatmul.msk.f32.gmra.mxu2 %vm1905_vm0, %v1883_v31  ;;  %v3073_v31 = vld [vmem:[%s5221_s1 + $0x5f0] sm:$0xff] }
 0x277   : >> { %v1628_v18 = vadd.f32 %v1555_v43, %v4581_v42  ;;  %1488 = vmatmul.f32.gmra.mxu1 %v3065_v28  ;;  %v1759_v28 = vpop.permute.xlu0 %1758 }
 0x279   : >> { %v1852_v6 = vadd.f32 %v1739_v35, %v1628_v18  ;;  %v1569_v29 = vpop.f32.mrf.mxu3 }
 0x27b   : >> { %v1884_v8 = vmax.f32 %v1852_v6, 0.0 }
 0x27c   : >> { %v1444_v61 = vpop.f32.mrf.mxu1 }
 0x27d   : >> { %v1558_v2 = vadd.f32 %v1557_v49, %v1444_v61  ;;  %3134 = vmatmul.msk.f32.gmra.mxu0 %vm1905_vm0, %v1884_v8  ;;  %3182 = vmatmul.msk.f32.gmra.mxu2 %vm1905_vm0, %v1884_v8 }
 0x27f   : >> { %v1629_v25 = vadd.f32 %v1558_v2, %v4626_v23  ;;  %1491 = vmatmul.f32.gmra.mxu1 %v3067_v47 }
 0x281   : >> { %v1853_v42 = vadd.f32 %v1744_v53, %v1629_v25  ;;  %v1572_v49 = vpop.f32.mrf.mxu3 }
 0x283   : >> { %v1885_v37 = vmax.f32 %v1853_v42, 0.0 }
 0x284   : >> { %v1447_v56 = vpop.f32.mrf.mxu1 }
 0x285   : >> { %v1561_v3 = vadd.f32 %v1560_v58, %v1447_v56  ;;  %3135 = vmatmul.msk.f32.gmra.mxu0 %vm1905_vm0, %v1885_v37  ;;  %3183 = vmatmul.msk.f32.gmra.mxu2 %vm1905_vm0, %v1885_v37 }
 0x287   : >> { %v1630_v48 = vadd.f32 %v1561_v3, %v4660_v63  ;;  %1494 = vmatmul.f32.gmra.mxu1 %v3069_v5 }
 0x289   : >> { %v1854_v23 = vadd.f32 %v1749_v62, %v1630_v48  ;;  %v1575_v38 = vpop.f32.mrf.mxu3 }
 0x28b   : >> { %v1886_v60 = vmax.f32 %v1854_v23, 0.0  ;;  %v1774_v23 = vpop.permute.xlu0 %1773 }
 0x28c   : >> { %v1450_v39 = vpop.f32.mrf.mxu1 }
 0x28d   : >> { %v1564_v57 = vadd.f32 %v1563_v19, %v1450_v39  ;;  %3136 = vmatmul.msk.f32.gmra.mxu0 %vm1905_vm0, %v1886_v60  ;;  %3184 = vmatmul.msk.f32.gmra.mxu2 %vm1905_vm0, %v1886_v60 }
 0x28f   : >> { %v1631_v58 = vadd.f32 %v1564_v57, %v4683_v54  ;;  %1497 = vmatmul.f32.gmra.mxu1 %v3071_v59 }
 0x291   : >> { %v1855_v63 = vadd.f32 %v1754_v7, %v1631_v58  ;;  %v1578_v43 = vpop.f32.mrf.mxu3 }
 0x293   : >> { %v1887_v9 = vmax.f32 %v1855_v63, 0.0 }
 0x294   : >> { %v1453_v4 = vpop.f32.mrf.mxu1 }
 0x295   : >> { %v1567_v52 = vadd.f32 %v1566_v24, %v1453_v4  ;;  %3137 = vmatmul.msk.f32.gmra.mxu0 %vm1905_vm0, %v1887_v9  ;;  %3185 = vmatmul.msk.f32.gmra.mxu2 %vm1905_vm0, %v1887_v9  ;;  %v1764_v24 = vpop.permute.xlu1 %1763 }
 0x297   : >> { %v1632_v19 = vadd.f32 %v1567_v52, %v4702_v46  ;;  %1500 = vmatmul.f32.gmra.mxu1 %v3073_v31 }
 0x299   : >> { %v1856_v54 = vadd.f32 %v1759_v28, %v1632_v19  ;;  %v1581_v53 = vpop.f32.mrf.mxu3 }
 0x29b   : >> { %v1888_v18 = vmax.f32 %v1856_v54, 0.0 }
 0x29c   : >> { %v1456_v35 = vpop.f32.mrf.mxu1 }
 0x29d   : >> { %v1570_v6 = vadd.f32 %v1569_v29, %v1456_v35  ;;  %3138 = vmatmul.msk.f32.gmra.mxu0 %vm1905_vm0, %v1888_v18  ;;  %3186 = vmatmul.msk.f32.gmra.mxu2 %vm1905_vm0, %v1888_v18  ;;  %v1769_v29 = vpop.permute.xlu2 %1768  ;;  %v1779_v9 = vpop.permute.xlu1 %1778 }
 0x29f   : >> { %v1633_v8 = vadd.f32 %v1570_v6, %v4715_v41 }
 0x2a1   : >> { %v1857_v61 = vadd.f32 %v1764_v24, %v1633_v8  ;;  %v1584_v62 = vpop.f32.mrf.mxu3 }
 0x2a2   : >> { %v2023_v47 = vpop.f32.mrf.mxu0 }
 0x2a3   : >> { %v1889_v2 = vmax.f32 %v1857_v61, 0.0 }
 0x2a4   : >> { %v1459_v25 = vpop.f32.mrf.mxu1 }
 0x2a5   : >> { %v1573_v46 = vadd.f32 %v1572_v49, %v1459_v25  ;;  %3139 = vmatmul.msk.f32.gmra.mxu0 %vm1905_vm0, %v1889_v2  ;;  %3187 = vmatmul.msk.f32.gmra.mxu2 %vm1905_vm0, %v1889_v2  ;;  %v1784_v54 = vpop.permute.xlu2 %1783  ;;  %v1789_v2 = vpop.permute.xlu0 %1788 }
 0x2a7   : >> { %v1634_v42 = vadd.f32 %v1573_v46, %v4727_v34 }
 0x2a8   : >> { %v2139_v37 = vpop.f32.mrf.mxu2 }
 0x2a9   : >> { %v1858_v56 = vadd.f32 %v1769_v29, %v1634_v42  ;;  %v1587_v63 = vpop.f32.mrf.mxu3  ;;  %v2235_v42 = vmax.f32 %v2023_v47, %v2139_v37 }
 0x2aa   : >> { %v2026_v5 = vpop.f32.mrf.mxu0 }
 0x2ab   : >> { %v1890_v3 = vmax.f32 %v1858_v56, 0.0 }
 0x2ac   : >> { %v1462_v48 = vpop.f32.mrf.mxu1 }
 0x2ad   : >> { %v1576_v41 = vadd.f32 %v1575_v38, %v1462_v48  ;;  %3140 = vmatmul.msk.f32.gmra.mxu0 %vm1905_vm0, %v1890_v3  ;;  %3188 = vmatmul.msk.f32.gmra.mxu2 %vm1905_vm0, %v1890_v3 }
 0x2af   : >> { %v1635_v49 = vadd.f32 %v1576_v41, %v4739_v27 }
 0x2b0   : >> { %v2142_v60 = vpop.f32.mrf.mxu2 }
 0x2b1   : >> { %v1859_v39 = vadd.f32 %v1774_v23, %v1635_v49  ;;  %v1590_v6 = vpop.f32.mrf.mxu3  ;;  %v2236_v56 = vmax.f32 %v2026_v5, %v2142_v60 }
 0x2b2   : >> { %v2029_v59 = vpop.f32.mrf.mxu0 }
 0x2b3   : >> { %v1891_v57 = vmax.f32 %v1859_v39, 0.0  ;;  %v2300_v39 = vrot.slane %v2236_v56, 1 }
 0x2b4   : >> { %v1465_v34 = vpop.f32.mrf.mxu1 }
 0x2b5   : >> { %v1579_v58 = vadd.f32 %v1578_v43, %v1465_v34  ;;  %3141 = vmatmul.msk.f32.gmra.mxu0 %vm1905_vm0, %v1891_v57  ;;  %3189 = vmatmul.msk.f32.gmra.mxu2 %vm1905_vm0, %v1891_v57 }
 0x2b7   : >> { %v1636_v7 = vadd.f32 %v1579_v58, %v4751_v36 }
 0x2b8   : >> { %v2145_v38 = vpop.f32.mrf.mxu2 }
 0x2b9   : >> { %v1860_v4 = vadd.f32 %v1779_v9, %v1636_v7  ;;  %v1593_v48 = vpop.f32.mrf.mxu3  ;;  %v2364_v7 = vmax.f32 %v2236_v56, %v2300_v39 }
 0x2ba   : >> { %v2032_v31 = vpop.f32.mrf.mxu0 }
 0x2bb   : >> { %v1892_v52 = vmax.f32 %v1860_v4, 0.0 }
 0x2bc   : >> { %v1468_v27 = vpop.f32.mrf.mxu1 }
 0x2bd   : >> { %v1582_v19 = vadd.f32 %v1581_v53, %v1468_v27  ;;  %3142 = vmatmul.msk.f32.gmra.mxu0 %vm1905_vm0, %v1892_v52  ;;  %3190 = vmatmul.msk.f32.gmra.mxu2 %vm1905_vm0, %v1892_v52 }
 0x2bf   : >> { %v1637_v28 = vadd.f32 %v1582_v19, %v4763_v30  ;;  %v2237_v30 = vmax.f32 %v2029_v59, %v2145_v38 }
 0x2c0   : >> { %v2148_v43 = vpop.f32.mrf.mxu2 }
 0x2c1   : >> { %v1861_v18 = vadd.f32 %v1784_v54, %v1637_v28  ;;  %v2301_v49 = vrot.slane %v2237_v30, 1  ;;  %v2238_v57 = vmax.f32 %v2032_v31, %v2148_v43  ;;  %v1799_v28 = vpop.permute.xlu2 %1798  ;;  %v2524_v54 = vrot.slane %v2364_v7, 7 }
 0x2c2   : >> { %v2035_v35 = vpop.f32.mrf.mxu0  ;;  %v3204_v43 = vrot.slane %v2364_v7, 9 }
 0x2c3   : >> { %v1893_v36 = vmax.f32 %v1861_v18, 0.0  ;;  %v2365_v5 = vmax.f32 %v2237_v30, %v2301_v49  ;;  %v2302_v38 = vrot.slane %v2238_v57, 1  ;;  %v3252_v18 = vrot.slane %v2364_v7, 13 }
 0x2c4   : >> { %v1471_v8 = vpop.f32.mrf.mxu1 }
 0x2c5   : >> { %v1585_v24 = vadd.f32 %v1584_v62, %v1471_v8  ;;  %3143 = vmatmul.msk.f32.gmra.mxu0 %vm1905_vm0, %v1893_v36  ;;  %3191 = vmatmul.msk.f32.gmra.mxu2 %vm1905_vm0, %v1893_v36  ;;  %v2299_v62 = vrot.slane %v2235_v42, 1  ;;  %v2493_v27 = vrot.slane %v2365_v5, 6  ;;  %v3228_v8 = vrot.slane %v2364_v7, 11 }
 0x2c7   : >> { %v1638_v61 = vadd.f32 %v1585_v24, %v4775_v40  ;;  %v1794_v40 = vpop.permute.xlu1 %1793  ;;  %v2363_v59 = vmax.f32 %v2235_v42, %v2299_v62  ;;  %v3229_v42 = vrot.slane %v2365_v5, 10  ;;  %v2689_v30 = vrot.slane %v2493_v27, 6 }
 0x2c8   : >> { %v2151_v25 = vpop.f32.mrf.mxu2 }
 0x2c9   : >> { %v1862_v53 = vadd.f32 %v1789_v2, %v1638_v61  ;;  %v2239_v47 = vmax.f32 %v2035_v35, %v2151_v25  ;;  %v2427_v31 = vrot.slane %v2363_v59, 2  ;;  %v2366_v35 = vmax.f32 %v2238_v57, %v2302_v38 }
 0x2ca   : >> { %v2038_v46 = vpop.f32.mrf.mxu0  ;;  %v2459_v36 = vrot.slane %v2363_v59, 4  ;;  %v2491_v2 = vrot.slane %v2363_v59, 6 }
 0x2cb   : >> { %v1894_v29 = vmax.f32 %v1862_v53, 0.0  ;;  %v2303_v4 = vrot.slane %v2239_v47, 1  ;;  %v3230_v62 = vrot.slane %v2366_v35, 9 }
 0x2cc   : >> { %v1474_v3 = vpop.f32.mrf.mxu1  ;;  %v2688_v56 = vsel %vm2525_vm7, %v3252_v18, %v2491_v2 }
 0x2cd   : >> { %v1588_v41 = vadd.f32 %v1587_v63, %v1474_v3  ;;  %3144 = vmatmul.msk.f32.gmra.mxu0 %vm1905_vm0, %v1894_v29  ;;  %3192 = vmatmul.msk.f32.gmra.mxu2 %vm1905_vm0, %v1894_v29  ;;  %v2367_v25 = vmax.f32 %v2239_v47, %v2303_v4  ;;  %v2526_v3 = vsel %vm2525_vm7, %v2524_v54, %v2363_v59  ;;  %v1804_v59 = vpop.permute.xlu0 %1803 }
 0x2ce   : >> { %v2690_v38 = vsel %vm2527_vm8, %v2689_v30, %v2688_v56 }
 0x2cf   : >> { %v1639_v23 = vadd.f32 %v1588_v41, %v4787_v32  ;;  %v5024_v32 = vpop.f32.mrf.mxu3  ;;  %v2576_v41 = vsel %vm2525_vm7, %v3204_v43, %v2427_v31  ;;  %v2463_v47 = vrot.slane %v2367_v25, 4 }
 0x2d0   : >> { %v2154_v34 = vpop.f32.mrf.mxu2 }
 0x2d1   : >> { %v1863_v58 = vadd.f32 %v1794_v40, %v1639_v23  ;;  %v2240_v52 = vmax.f32 %v2038_v46, %v2154_v34  ;;  %v2632_v23 = vsel %vm2525_vm7, %v3228_v8, %v2459_v36  ;;  %v2529_v40 = vrot.slane %v2366_v35, 5 }
 0x2d2   : >> { %v2041_v37 = vpop.f32.mrf.mxu0  ;;  %v2578_v34 = vsel %vm2527_vm8, %v2365_v5, %v2576_v41  ;;  %v2634_v7 = vsel %vm2527_vm8, %v3229_v42, %v2632_v23  ;;  %v3253_v5 = vrot.slane %v2366_v35, 11  ;;  %v2637_v43 = vrot.slane %v2463_v47, 4 }
 0x2d3   : >> { %v1895_v60 = vmax.f32 %v1863_v58, 0.0  ;;  %v2304_v53 = vrot.slane %v2240_v52, 1  ;;  %v3206_v58 = vrot.slane %v2366_v35, 7 }
 0x2d4   : >> { %v1477_v63 = vpop.f32.mrf.mxu1 }
 0x2d5   : >> { %v1591_v9 = vadd.f32 %v1590_v6, %v1477_v63  ;;  %3145 = vmatmul.msk.f32.gmra.mxu0 %vm1905_vm0, %v1895_v60  ;;  %3193 = vmatmul.msk.f32.gmra.mxu2 %vm1905_vm0, %v1895_v60  ;;  %v2528_v60 = vsel %vm2527_vm8, %v2493_v27, %v2526_v3  ;;  %v2580_v54 = vsel %vm2530_vm10, %v3206_v58, %v2578_v34 }
 0x2d6   : >> { %v2531_v31 = vsel %vm2530_vm10, %v2529_v40, %v2528_v60  ;;  %v1809_v40 = vpop.permute.xlu1 %1808 }
 0x2d7   : >> { %v1640_v19 = vadd.f32 %v1591_v9, %v4799_v26  ;;  %v3207_v9 = vrot.slane %v2367_v25, 6 }
 0x2d8   : >> { %v2157_v6 = vpop.f32.mrf.mxu2 }
 0x2d9   : >> { %v1864_v24 = vadd.f32 %v1799_v28, %v1640_v19  ;;  %v2241_v61 = vmax.f32 %v2041_v37, %v2157_v6  ;;  %v2368_v37 = vmax.f32 %v2240_v52, %v2304_v53  ;;  %v1599_v52 = vpop.f32.mrf.mxu3  ;;  %v3254_v19 = vrot.slane %v2367_v25, 10 }
 0x2da   : >> { %v2044_v46 = vpop.f32.mrf.mxu0  ;;  %v2582_v2 = vsel %vm2532_vm9, %v3207_v9, %v2580_v54  ;;  %v2692_v25 = vsel %vm2530_vm10, %v3253_v5, %v2690_v38  ;;  %v1814_v54 = vpop.permute.xlu2 %1813 }
 0x2db   : >> { %v1896_v29 = vmax.f32 %v1864_v24, 0.0  ;;  %v2305_v26 = vrot.slane %v2241_v61, 1  ;;  %v3208_v18 = vrot.slane %v2368_v37, 5  ;;  %v3231_v8 = vrot.slane %v2368_v37, 7 }
 0x2dc   : >> { %v1480_v49 = vpop.f32.mrf.mxu1  ;;  %v3255_v35 = vrot.slane %v2368_v37, 9 }
 0x2dd   : >> { %v5031_v39 = vmax.f32 %v2241_v61, %v2305_v26  ;;  %v1594_v57 = vadd.f32 %v1593_v48, %v1480_v49  ;;  %3146 = vmatmul.msk.f32.gmra.mxu0 %vm1905_vm0, %v1896_v29  ;;  %3194 = vmatmul.msk.f32.gmra.mxu2 %vm1905_vm0, %v1896_v29  ;;  %v2636_v48 = vsel %vm2530_vm10, %v3230_v62, %v2634_v7 }
 0x2de   : >> { %v2533_v61 = vsel %vm2532_vm9, %v2463_v47, %v2531_v31  ;;  %v2694_v26 = vsel %vm2532_vm9, %v3254_v19, %v2692_v25  ;;  %v2638_v56 = vsel %vm2532_vm9, %v2637_v43, %v2636_v48  ;;  %v2584_v3 = vsel %vm2535_vm1, %v3208_v18, %v2582_v2  ;;  %v1819_v2 = vpop.permute.xlu0 %1818 }
 0x2df   : >> { %v1641_v63 = vadd.f32 %v1594_v57, %v4811_v33  ;;  %v2433_v28 = vrot.slane %v5031_v39, 2  ;;  %v2534_v33 = vrot.slane %v2368_v37, 3  ;;  %v3232_v29 = vrot.slane %v5031_v39, 6 }
 0x2e0   : >> { %v2160_v4 = vpop.f32.mrf.mxu2  ;;  %v2640_v49 = vsel %vm2535_vm1, %v3231_v8, %v2638_v56  ;;  %v2696_v23 = vsel %vm2535_vm1, %v3255_v35, %v2694_v26 }
 0x2e1   : >> { %v1865_v27 = vadd.f32 %v1804_v59, %v1641_v63  ;;  %v2242_v6 = vmax.f32 %v2044_v46, %v2160_v4  ;;  %v2585_v30 = vrot.slane %v2433_v28, 2  ;;  %v2536_v62 = vsel %vm2535_vm1, %v2534_v33, %v2533_v61  ;;  %v1602_v4 = vpop.f32.mrf.mxu3 }
 0x2e2   : >> { %v5044_v36 = vpop.f32.mrf.mxu0  ;;  %v2538_v59 = vsel %vm2537_vm2, %v2433_v28, %v2536_v62  ;;  %v2698_v38 = vsel %vm2537_vm2, %v5031_v39, %v2696_v23  ;;  %v1829_v23 = vpop.permute.xlu2 %1828 }
 0x2e3   : >> { %v1897_v24 = vmax.f32 %v1865_v27, 0.0  ;;  %v2306_v53 = vrot.slane %v2242_v6, 1  ;;  %v2586_v60 = vsel %vm2537_vm2, %v2585_v30, %v2584_v3 }
 0x2e4   : >> { %v1483_v42 = vpop.f32.mrf.mxu1 }
 0x2e5   : >> { %v1597_v46 = vadd.f32 %v5024_v32, %v1483_v42  ;;  %v2370_v41 = vmax.f32 %v2242_v6, %v2306_v53  ;;  %3147 = vmatmul.msk.f32.gmra.mxu0 %vm1905_vm0, %v1897_v24  ;;  %3195 = vmatmul.msk.f32.gmra.mxu2 %vm1905_vm0, %v1897_v24 }
 0x2e7   : >> { %v1642_v32 = vadd.f32 %v1597_v46, %v4821_v0  ;;  %v2539_v57 = vrot.slane %v2370_v41, 1  ;;  %v3209_v34 = vrot.slane %v2370_v41, 3  ;;  %v3233_v58 = vrot.slane %v2370_v41, 5  ;;  %v1824_v46 = vpop.permute.xlu1 %1823 }
 0x2e8   : >> { %v3257_v47 = vrot.slane %v2370_v41, 7  ;;  %v5065_v37 = vpop.f32.mrf.mxu2  ;;  %v2642_v0 = vsel %vm2537_vm2, %v3232_v29, %v2640_v49 }
 0x2e9   : >> { %v1866_v7 = vadd.f32 %v1809_v40, %v1642_v32  ;;  %v2541_v63 = vsel %vm2540_vm3, %v2539_v57, %v2538_v59  ;;  %v2588_v48 = vsel %vm2540_vm3, %v3209_v34, %v2586_v60  ;;  %v2644_v5 = vsel %vm2540_vm3, %v3233_v58, %v2642_v0  ;;  %v1605_v35 = vpop.f32.mrf.mxu3 }
 0x2ea   : >> { %v2050_v9 = vpop.f32.mrf.mxu0  ;;  %v2700_v31 = vsel %vm2540_vm3, %v3257_v47, %v2698_v38  ;;  %2762 = vst.msk [vmem:[%s5063_s14] sm:$0xff] %vm2761_vm4, %v2541_v63  ;;  %v1834_v63 = vpop.permute.xlu0 %1833 }
 0x2eb   : >> { %v1898_v19 = vmax.f32 %v1866_v7, 0.0  ;;  %2766 = vst.msk [vmem:[%s5063_s14 + $0x20] sm:$0xff] %vm2761_vm4, %v2588_v48  ;;  %v2243_v7 = vmax.f32 %v5044_v36, %v5065_v37 }
 0x2ec   : >> { %v1486_v28 = vpop.f32.mrf.mxu1  ;;  %2770 = vst.msk [vmem:[%s5063_s14 + $0x40] sm:$0xff] %vm2761_vm4, %v2644_v5 }
 0x2ed   : >> { %v1600_v27 = vadd.f32 %v1599_v52, %v1486_v28  ;;  %2774 = vst.msk [vmem:[%s5063_s14 + $0x60] sm:$0xff] %vm2761_vm4, %v2700_v31  ;;  %3148 = vmatmul.msk.f32.gmra.mxu0 %vm1905_vm0, %v1898_v19  ;;  %3196 = vmatmul.msk.f32.gmra.mxu2 %vm1905_vm0, %v1898_v19  ;;  %v2307_v28 = vrot.slane %v2243_v7, 1 }
 0x2ef   : >> { %v1643_v39 = vadd.f32 %v1600_v27, %v4831_v44 }
 0x2f0   : >> { %v2166_v43 = vpop.f32.mrf.mxu2 }
 0x2f1   : >> { %v1867_v18 = vadd.f32 %v1814_v54, %v1643_v39  ;;  %v1608_v29 = vpop.f32.mrf.mxu3 }
 0x2f2   : >> { %v2053_v6 = vpop.f32.mrf.mxu0 }
 0x2f3   : >> { %v1899_v33 = vmax.f32 %v1867_v18, 0.0 }
 0x2f4   : >> { %v1489_v8 = vpop.f32.mrf.mxu1 }
 0x2f5   : >> { %v1603_v24 = vadd.f32 %v1602_v4, %v1489_v8  ;;  %3149 = vmatmul.msk.f32.gmra.mxu0 %vm1905_vm0, %v1899_v33  ;;  %3197 = vmatmul.msk.f32.gmra.mxu2 %vm1905_vm0, %v1899_v33 }
 0x2f7   : >> { %v1644_v52 = vadd.f32 %v1603_v24, %v4841_v51 }
 0x2f8   : >> { %v2169_v61 = vpop.f32.mrf.mxu2 }
 0x2f9   : >> { %v1868_v25 = vadd.f32 %v1819_v2, %v1644_v52  ;;  %v1611_v57 = vpop.f32.mrf.mxu3  ;;  %v2245_v60 = vmax.f32 %v2053_v6, %v2169_v61 }
 0x2fa   : >> { %v2056_v53 = vpop.f32.mrf.mxu0 }
 0x2fb   : >> { %v1900_v42 = vmax.f32 %v1868_v25, 0.0  ;;  %v2309_v5 = vrot.slane %v2245_v60, 1 }
 0x2fc   : >> { %v1492_v44 = vpop.f32.mrf.mxu1 }
 0x2fd   : >> { %v1606_v30 = vadd.f32 %v1605_v35, %v1492_v44  ;;  %3150 = vmatmul.msk.f32.gmra.mxu0 %vm1905_vm0, %v1900_v42  ;;  %3198 = vmatmul.msk.f32.gmra.mxu2 %vm1905_vm0, %v1900_v42  ;;  %v2373_v18 = vmax.f32 %v2245_v60, %v2309_v5  ;;  %v1839_v35 = vpop.permute.xlu1 %1838 }
 0x2ff   : >> { %v1645_v26 = vadd.f32 %v1606_v30, %v4851_v50  ;;  %v2244_v50 = vmax.f32 %v2050_v9, %v2166_v43  ;;  %v2501_v61 = vrot.slane %v2373_v18, 6 }
 0x300   : >> { %v2172_v56 = vpop.f32.mrf.mxu2 }
 0x301   : >> { %v1869_v3 = vadd.f32 %v1824_v46, %v1645_v26  ;;  %v1614_v9 = vpop.f32.mrf.mxu3  ;;  %v2246_v27 = vmax.f32 %v2056_v53, %v2172_v56 }
 0x302   : >> { %v2059_v41 = vpop.f32.mrf.mxu0 }
 0x303   : >> { %v1901_v62 = vmax.f32 %v1869_v3, 0.0  ;;  %v2310_v36 = vrot.slane %v2246_v27, 1 }
 0x304   : >> { %v1495_v51 = vpop.f32.mrf.mxu1 }
 0x305   : >> { %v1609_v49 = vadd.f32 %v1608_v29, %v1495_v51  ;;  %3151 = vmatmul.msk.f32.gmra.mxu0 %vm1905_vm0, %v1901_v62  ;;  %3199 = vmatmul.msk.f32.gmra.mxu2 %vm1905_vm0, %v1901_v62  ;;  %v2374_v56 = vmax.f32 %v2246_v27, %v2310_v36 }
 0x307   : >> { %v1646_v32 = vadd.f32 %v1609_v49, %v4862_v55  ;;  %v2308_v55 = vrot.slane %v2244_v50, 1  ;;  %v3235_v49 = vrot.slane %v2373_v18, 10  ;;  %v3212_v60 = vrot.slane %v2374_v56, 7 }
 0x308   : >> { %v2175_v40 = vpop.f32.mrf.mxu2 }
 0x309   : >> { %v1870_v34 = vadd.f32 %v1829_v23, %v1646_v32  ;;  %v2247_v4 = vmax.f32 %v2059_v41, %v2175_v40  ;;  %v2372_v54 = vmax.f32 %v2244_v50, %v2308_v55  ;;  %v2703_v23 = vrot.slane %v2501_v61, 6 }
 0x30a   : >> { %v2062_v58 = vpop.f32.mrf.mxu0 }
 0x30b   : >> { %v1902_v47 = vmax.f32 %v1870_v34, 0.0  ;;  %v2311_v6 = vrot.slane %v2247_v4, 1  ;;  %v3258_v24 = vrot.slane %v2372_v54, 13  ;;  %v2542_v42 = vrot.slane %v2372_v54, 7 }
 0x30c   : >> { %v1498_v59 = vpop.f32.mrf.mxu1  ;;  %v3210_v44 = vrot.slane %v2372_v54, 9  ;;  %v3234_v30 = vrot.slane %v2372_v54, 11 }
 0x30d   : >> { %v1612_v0 = vadd.f32 %v1611_v57, %v1498_v59  ;;  %3152 = vmatmul.msk.f32.gmra.mxu0 %vm1905_vm0, %v1902_v47  ;;  %3200 = vmatmul.msk.f32.gmra.mxu2 %vm1905_vm0, %v1902_v47  ;;  %v2375_v2 = vmax.f32 %v2247_v4, %v2311_v6  ;;  %v2545_v59 = vrot.slane %v2374_v56, 5 }
 0x30f   : >> { %v1647_v38 = vadd.f32 %v1612_v0, %v4875_v45  ;;  %v2371_v45 = vmax.f32 %v2243_v7, %v2307_v28  ;;  %v2471_v32 = vrot.slane %v2375_v2, 4  ;;  %v3236_v0 = vrot.slane %v2374_v56, 9 }
 0x310   : >> { %v2178_v48 = vpop.f32.mrf.mxu2  ;;  %v3213_v4 = vrot.slane %v2375_v2, 6 }
 0x311   : >> { %v1871_v31 = vadd.f32 %v1834_v63, %v1647_v38  ;;  %v2248_v8 = vmax.f32 %v2062_v58, %v2178_v48  ;;  %v2499_v46 = vrot.slane %v2371_v45, 6  ;;  %v2435_v62 = vrot.slane %v2371_v45, 2 }
 0x312   : >> { %v2065_v19 = vpop.f32.mrf.mxu0  ;;  %v2467_v51 = vrot.slane %v2371_v45, 4  ;;  %v2543_v57 = vsel %vm2525_vm7, %v2542_v42, %v2371_v45  ;;  %v3259_v63 = vrot.slane %v2374_v56, 11 }
 0x313   : >> { %v1903_v39 = vmax.f32 %v1871_v31, 0.0  ;;  %v2312_v29 = vrot.slane %v2248_v8, 1  ;;  %v2590_v34 = vsel %vm2525_vm7, %v3210_v44, %v2435_v62  ;;  %v2544_v7 = vsel %vm2527_vm8, %v2501_v61, %v2543_v57 }
 0x314   : >> { %v1501_v43 = vpop.f32.mrf.mxu1  ;;  %v2646_v58 = vsel %vm2525_vm7, %v3234_v30, %v2467_v51  ;;  %v2592_v50 = vsel %vm2527_vm8, %v2373_v18, %v2590_v34  ;;  %v2651_v31 = vrot.slane %v2471_v32, 4  ;;  %v2546_v18 = vsel %vm2530_vm10, %v2545_v59, %v2544_v7 }
 0x315   : >> { %v1615_v33 = vadd.f32 %v1614_v9, %v1501_v43  ;;  %3153 = vmatmul.msk.f32.gmra.mxu0 %vm1905_vm0, %v1903_v39  ;;  %3201 = vmatmul.msk.f32.gmra.mxu2 %vm1905_vm0, %v1903_v39  ;;  %v2376_v47 = vmax.f32 %v2248_v8, %v2312_v29  ;;  %v2648_v38 = vsel %vm2527_vm8, %v3235_v49, %v2646_v58  ;;  %v3260_v9 = vrot.slane %v2375_v2, 10 }
 0x316   : >> { %v2650_v43 = vsel %vm2530_vm10, %v3236_v0, %v2648_v38  ;;  %v2594_v6 = vsel %vm2530_vm10, %v3212_v60, %v2592_v50 }
 0x317   : >> { %v1648_v37 = vadd.f32 %v1615_v33, %v4888_v1  ;;  %v2702_v1 = vsel %vm2525_vm7, %v3258_v24, %v2499_v46  ;;  %v2548_v28 = vrot.slane %v2376_v47, 3  ;;  %v3214_v27 = vrot.slane %v2376_v47, 5 }
 0x318   : >> { %v2181_v52 = vpop.f32.mrf.mxu2  ;;  %v2704_v5 = vsel %vm2527_vm8, %v2703_v23, %v2702_v1  ;;  %v3237_v39 = vrot.slane %v2376_v47, 7  ;;  %v3261_v8 = vrot.slane %v2376_v47, 9  ;;  %v2596_v24 = vsel %vm2532_vm9, %v3213_v4, %v2594_v6 }
 0x319   : >> { %v1872_v25 = vadd.f32 %v1839_v35, %v1648_v37  ;;  %v2249_v53 = vmax.f32 %v2065_v19, %v2181_v52  ;;  %v2706_v37 = vsel %vm2530_vm10, %v3259_v63, %v2704_v5  ;;  %v2547_v35 = vsel %vm2532_vm9, %v2471_v32, %v2546_v18 }
 0x31a   : >> { %v2068_v26 = vpop.f32.mrf.mxu0  ;;  %v2652_v52 = vsel %vm2532_vm9, %v2651_v31, %v2650_v43  ;;  %v2598_v2 = vsel %vm2535_vm1, %v3214_v27, %v2596_v24  ;;  %v2708_v42 = vsel %vm2532_vm9, %v3260_v9, %v2706_v37 }
 0x31b   : >> { %v1904_v3 = vmax.f32 %v1872_v25, 0.0  ;;  %v2313_v41 = vrot.slane %v2249_v53, 1  ;;  %v2549_v25 = vsel %vm2535_vm1, %v2548_v28, %v2547_v35 }
 0x31d   : >> { %v2377_v40 = vmax.f32 %v2249_v53, %v2313_v41  ;;  %3154 = vmatmul.msk.f32.vlgmr.msra.gmra.mxu1 %vm1905_vm0, %v1904_v3  ;;  %3202 = vmatmul.msk.f32.vlgmr.msra.gmra.mxu3 %vm1905_vm0, %v1904_v3  ;;  %v2654_v53 = vsel %vm2535_vm1, %v3237_v39, %v2652_v52  ;;  %v2710_v41 = vsel %vm2535_vm1, %v3261_v8, %v2708_v42 }
 0x31f   : >> { %v2441_v55 = vrot.slane %v2377_v40, 2  ;;  %v3238_v36 = vrot.slane %v2377_v40, 6  ;;  %v2712_v51 = vsel %vm2537_vm2, %v2377_v40, %v2710_v41 }
 0x320   : >> { %v2184_v48 = vpop.f32.mrf.mxu2 }
 0x321   : >> { %v2250_v19 = vmax.f32 %v2068_v26, %v2184_v48  ;;  %v2599_v45 = vrot.slane %v2441_v55, 2  ;;  %v2550_v46 = vsel %vm2537_vm2, %v2441_v55, %v2549_v25  ;;  %v2656_v3 = vsel %vm2537_vm2, %v3238_v36, %v2654_v53 }
 0x322   : >> { %v2071_v54 = vpop.f32.mrf.mxu0 }
 0x323   : >> { %v2314_v33 = vrot.slane %v2250_v19, 1  ;;  %v2600_v56 = vsel %vm2537_vm2, %v2599_v45, %v2598_v2 }
 0x325   : >> { %v2378_v61 = vmax.f32 %v2250_v19, %v2314_v33 }
 0x327   : >> { %v2551_v44 = vrot.slane %v2378_v61, 1  ;;  %v3215_v30 = vrot.slane %v2378_v61, 3  ;;  %v3239_v29 = vrot.slane %v2378_v61, 5  ;;  %v3263_v26 = vrot.slane %v2378_v61, 7 }
 0x328   : >> { %v2187_v62 = vpop.f32.mrf.mxu2 }
 0x329   : >> { %v2552_v49 = vsel %vm2540_vm3, %v2551_v44, %v2550_v46  ;;  %v2602_v1 = vsel %vm2540_vm3, %v3215_v30, %v2600_v56  ;;  %v2658_v23 = vsel %vm2540_vm3, %v3239_v29, %v2656_v3  ;;  %v2714_v32 = vsel %vm2540_vm3, %v3263_v26, %v2712_v51 }
 0x32a   : >> { %2763 = vst.msk [vmem:[%s5063_s14 + $0x8] sm:$0xff] %vm2761_vm4, %v2552_v49  ;;  %v2074_v57 = vpop.f32.mrf.mxu0  ;;  %v2251_v63 = vmax.f32 %v2071_v54, %v2187_v62 }
 0x32b   : >> { %2767 = vst.msk [vmem:[%s5063_s14 + $0x28] sm:$0xff] %vm2761_vm4, %v2602_v1 }
 0x32c   : >> { %2771 = vst.msk [vmem:[%s5063_s14 + $0x48] sm:$0xff] %vm2761_vm4, %v2658_v23  ;;  %v2315_v19 = vrot.slane %v2251_v63, 1 }
 0x32d   : >> { %2775 = vst.msk [vmem:[%s5063_s14 + $0x68] sm:$0xff] %vm2761_vm4, %v2714_v32 }
 0x32e   : >> { %v2379_v18 = vmax.f32 %v2251_v63, %v2315_v19 }
 0x330   : >> { %v2190_v34 = vpop.f32.mrf.mxu2  ;;  %v2507_v2 = vrot.slane %v2379_v18, 6  ;;  %v2443_v42 = vrot.slane %v2379_v18, 2  ;;  %v2475_v44 = vrot.slane %v2379_v18, 4 }
 0x331   : >> { %v2252_v7 = vmax.f32 %v2074_v57, %v2190_v34 }
 0x332   : >> { %v2077_v58 = vpop.f32.mrf.mxu0 }
 0x333   : >> { %v2316_v48 = vrot.slane %v2252_v7, 1 }
 0x335   : >> { %v2380_v28 = vmax.f32 %v2252_v7, %v2316_v48 }
 0x337   : >> { %v3264_v8 = vrot.slane %v2380_v28, 13  ;;  %v2553_v35 = vrot.slane %v2380_v28, 7  ;;  %v3216_v54 = vrot.slane %v2380_v28, 9  ;;  %v3240_v24 = vrot.slane %v2380_v28, 11 }
 0x338   : >> { %v2193_v40 = vpop.f32.mrf.mxu2 }
 0x339   : >> { %v2253_v38 = vmax.f32 %v2077_v58, %v2193_v40  ;;  %v2716_v29 = vsel %vm2525_vm7, %v3264_v8, %v2507_v2  ;;  %v2554_v3 = vsel %vm2525_vm7, %v2553_v35, %v2379_v18  ;;  %v2604_v41 = vsel %vm2525_vm7, %v3216_v54, %v2443_v42 }
 0x33a   : >> { %v2080_v47 = vpop.f32.mrf.mxu0  ;;  %v2660_v62 = vsel %vm2525_vm7, %v3240_v24, %v2475_v44 }
 0x33b   : >> { %v2317_v5 = vrot.slane %v2253_v38, 1 }
 0x33d   : >> { %v2381_v27 = vmax.f32 %v2253_v38, %v2317_v5 }
 0x33f   : >> { %v2509_v45 = vrot.slane %v2381_v27, 6  ;;  %v3241_v30 = vrot.slane %v2381_v27, 10  ;;  %v2606_v49 = vsel %vm2527_vm8, %v2381_v27, %v2604_v41 }
 0x340   : >> { %v2196_v50 = vpop.f32.mrf.mxu2 }
 0x341   : >> { %v2254_v9 = vmax.f32 %v2080_v47, %v2196_v50  ;;  %v2717_v26 = vrot.slane %v2509_v45, 6  ;;  %v2555_v57 = vsel %vm2527_vm8, %v2509_v45, %v2554_v3  ;;  %v2662_v34 = vsel %vm2527_vm8, %v3241_v30, %v2660_v62 }
 0x342   : >> { %v2083_v59 = vpop.f32.mrf.mxu0 }
 0x343   : >> { %v2318_v6 = vrot.slane %v2254_v9, 1  ;;  %v2718_v50 = vsel %vm2527_vm8, %v2717_v26, %v2716_v29 }
 0x345   : >> { %v2382_v25 = vmax.f32 %v2254_v9, %v2318_v6 }
 0x347   : >> { %v2556_v1 = vrot.slane %v2382_v25, 5  ;;  %v3218_v23 = vrot.slane %v2382_v25, 7  ;;  %v3242_v32 = vrot.slane %v2382_v25, 9  ;;  %v3265_v58 = vrot.slane %v2382_v25, 11 }
 0x348   : >> { %v2199_v60 = vpop.f32.mrf.mxu2 }
 0x349   : >> { %v2255_v4 = vmax.f32 %v2083_v59, %v2199_v60  ;;  %v2664_v5 = vsel %vm2530_vm10, %v3242_v32, %v2662_v34 }
 0x34a   : >> { %v2086_v0 = vpop.f32.mrf.mxu0 }
 0x34b   : >> { %v2319_v39 = vrot.slane %v2255_v4, 1 }
 0x34d   : >> { %v2383_v36 = vmax.f32 %v2255_v4, %v2319_v39  ;;  %v2557_v4 = vsel %vm2530_vm10, %v2556_v1, %v2555_v57  ;;  %v2720_v39 = vsel %vm2530_vm10, %v3265_v58, %v2718_v50 }
 0x34f   : >> { %v2479_v46 = vrot.slane %v2383_v36, 4  ;;  %v3219_v59 = vrot.slane %v2383_v36, 6  ;;  %v3266_v7 = vrot.slane %v2383_v36, 10 }
 0x350   : >> { %v2202_v55 = vpop.f32.mrf.mxu2 }
 0x351   : >> { %v2256_v43 = vmax.f32 %v2086_v0, %v2202_v55  ;;  %v2665_v60 = vrot.slane %v2479_v46, 4 }
 0x352   : >> { %v2089_v31 = vpop.f32.mrf.mxu0 }
 0x353   : >> { %v2320_v52 = vrot.slane %v2256_v43, 1  ;;  %v2666_v6 = vsel %vm2532_vm9, %v2665_v60, %v2664_v5 }
 0x355   : >> { %v2384_v51 = vmax.f32 %v2256_v43, %v2320_v52  ;;  %v2558_v43 = vsel %vm2532_vm9, %v2479_v46, %v2557_v4 }
 0x357   : >> { %v2559_v38 = vrot.slane %v2384_v51, 3  ;;  %v3220_v63 = vrot.slane %v2384_v51, 5  ;;  %v3243_v55 = vrot.slane %v2384_v51, 7  ;;  %v3267_v9 = vrot.slane %v2384_v51, 9 }
 0x358   : >> { %v2205_v33 = vpop.f32.mrf.mxu2 }
 0x359   : >> { %v2257_v37 = vmax.f32 %v2089_v31, %v2205_v33  ;;  %v2608_v31 = vsel %vm2530_vm10, %v3218_v23, %v2606_v49  ;;  %v2560_v45 = vsel %vm2535_vm1, %v2559_v38, %v2558_v43  ;;  %v2668_v36 = vsel %vm2535_vm1, %v3243_v55, %v2666_v6 }
 0x35a   : >> { %v2092_v61 = vpop.f32.mrf.mxu0  ;;  %v2610_v18 = vsel %vm2532_vm9, %v3219_v59, %v2608_v31 }
 0x35b   : >> { %v2321_v53 = vrot.slane %v2257_v37, 1  ;;  %v2612_v8 = vsel %vm2535_vm1, %v3220_v63, %v2610_v18 }
 0x35d   : >> { %v2385_v56 = vmax.f32 %v2257_v37, %v2321_v53  ;;  %v2722_v37 = vsel %vm2532_vm9, %v3266_v7, %v2720_v39 }
 0x35e   : >> { %v2724_v53 = vsel %vm2535_vm1, %v3267_v9, %v2722_v37 }
 0x35f   : >> { %v2449_v40 = vrot.slane %v2385_v56, 2  ;;  %v3244_v27 = vrot.slane %v2385_v56, 6  ;;  %v2726_v44 = vsel %vm2537_vm2, %v2385_v56, %v2724_v53 }
 0x360   : >> { %v2208_v47 = vpop.f32.mrf.mxu2 }
 0x361   : >> { %v2258_v0 = vmax.f32 %v2092_v61, %v2208_v47  ;;  %v2613_v28 = vrot.slane %v2449_v40, 2  ;;  %v2561_v61 = vsel %vm2537_vm2, %v2449_v40, %v2560_v45  ;;  %v2670_v25 = vsel %vm2537_vm2, %v3244_v27, %v2668_v36 }
 0x362   : >> { %v2095_v48 = vpop.f32.mrf.mxu0 }
 0x363   : >> { %v2322_v19 = vrot.slane %v2258_v0, 1  ;;  %v2614_v2 = vsel %vm2537_vm2, %v2613_v28, %v2612_v8 }
 0x365   : >> { %v2386_v33 = vmax.f32 %v2258_v0, %v2322_v19 }
 0x367   : >> { %v2562_v35 = vrot.slane %v2386_v33, 1  ;;  %v3221_v54 = vrot.slane %v2386_v33, 3  ;;  %v3245_v24 = vrot.slane %v2386_v33, 5  ;;  %v3269_v52 = vrot.slane %v2386_v33, 7 }
 0x368   : >> { %v2211_v42 = vpop.f32.mrf.mxu2 }
 0x369   : >> { %v2563_v30 = vsel %vm2540_vm3, %v2562_v35, %v2561_v61  ;;  %v2616_v29 = vsel %vm2540_vm3, %v3221_v54, %v2614_v2  ;;  %v2672_v26 = vsel %vm2540_vm3, %v3245_v24, %v2670_v25  ;;  %v2728_v46 = vsel %vm2540_vm3, %v3269_v52, %v2726_v44 }
 0x36a   : >> { %2764 = vst.msk [vmem:[%s5063_s14 + $0x10] sm:$0xff] %vm2761_vm4, %v2563_v30  ;;  %v2098_v3 = vpop.f32.mrf.mxu0  ;;  %v2259_v34 = vmax.f32 %v2095_v48, %v2211_v42 }
 0x36b   : >> { %2768 = vst.msk [vmem:[%s5063_s14 + $0x30] sm:$0xff] %vm2761_vm4, %v2616_v29 }
 0x36c   : >> { %2772 = vst.msk [vmem:[%s5063_s14 + $0x50] sm:$0xff] %vm2761_vm4, %v2672_v26  ;;  %v2323_v60 = vrot.slane %v2259_v34, 1 }
 0x36d   : >> { %2776 = vst.msk [vmem:[%s5063_s14 + $0x70] sm:$0xff] %vm2761_vm4, %v2728_v46 }
 0x36e   : >> { %v2387_v5 = vmax.f32 %v2259_v34, %v2323_v60 }
 0x370   : >> { %v2214_v41 = vpop.f32.mrf.mxu2  ;;  %v2515_v33 = vrot.slane %v2387_v5, 6  ;;  %v2451_v45 = vrot.slane %v2387_v5, 2  ;;  %v2483_v36 = vrot.slane %v2387_v5, 4 }
 0x371   : >> { %v2260_v32 = vmax.f32 %v2098_v3, %v2214_v41 }
 0x372   : >> { %v2101_v62 = vpop.f32.mrf.mxu0 }
 0x373   : >> { %v2324_v40 = vrot.slane %v2260_v32, 1 }
 0x375   : >> { %v2388_v7 = vmax.f32 %v2260_v32, %v2324_v40 }
 0x377   : >> { %v2564_v31 = vrot.slane %v2388_v7, 7  ;;  %v3270_v19 = vrot.slane %v2388_v7, 13  ;;  %v3222_v48 = vrot.slane %v2388_v7, 9  ;;  %v3246_v43 = vrot.slane %v2388_v7, 11 }
 0x378   : >> { %v2217_v56 = vpop.f32.mrf.mxu2 }
 0x379   : >> { %v2261_v57 = vmax.f32 %v2101_v62, %v2217_v56  ;;  %v2730_v54 = vsel %vm2525_vm7, %v3270_v19, %v2515_v33  ;;  %v2565_v24 = vsel %vm2525_vm7, %v2564_v31, %v2387_v5  ;;  %v2618_v2 = vsel %vm2525_vm7, %v3222_v48, %v2451_v45 }
 0x37a   : >> { %v2104_v51 = vpop.f32.mrf.mxu0  ;;  %v2674_v25 = vsel %vm2525_vm7, %v3246_v43, %v2483_v36 }
 0x37b   : >> { %v2325_v47 = vrot.slane %v2261_v57, 1 }
 0x37d   : >> { %v2389_v38 = vmax.f32 %v2261_v57, %v2325_v47 }
 0x37f   : >> { %v2517_v9 = vrot.slane %v2389_v38, 6  ;;  %v3247_v37 = vrot.slane %v2389_v38, 10  ;;  %v2620_v44 = vsel %vm2527_vm8, %v2389_v38, %v2618_v2 }
 0x380   : >> { %v2220_v49 = vpop.f32.mrf.mxu2 }
 0x381   : >> { %v2262_v0 = vmax.f32 %v2104_v51, %v2220_v49  ;;  %v2731_v52 = vrot.slane %v2517_v9, 6  ;;  %v2566_v46 = vsel %vm2527_vm8, %v2517_v9, %v2565_v24  ;;  %v2676_v3 = vsel %vm2527_vm8, %v3247_v37, %v2674_v25 }
 0x382   : >> { %v2107_v1 = vpop.f32.mrf.mxu0 }
 0x383   : >> { %v2326_v4 = vrot.slane %v2262_v0, 1  ;;  %v2732_v49 = vsel %vm2527_vm8, %v2731_v52, %v2730_v54 }
 0x385   : >> { %v2390_v8 = vmax.f32 %v2262_v0, %v2326_v4 }
 0x387   : >> { %v2567_v30 = vrot.slane %v2390_v8, 5  ;;  %v3224_v29 = vrot.slane %v2390_v8, 7  ;;  %v3248_v26 = vrot.slane %v2390_v8, 9  ;;  %v3271_v41 = vrot.slane %v2390_v8, 11 }
 0x388   : >> { %v2223_v23 = vpop.f32.mrf.mxu2 }
 0x389   : >> { %v2263_v50 = vmax.f32 %v2107_v1, %v2223_v23  ;;  %v2678_v47 = vsel %vm2530_vm10, %v3248_v26, %v2676_v3 }
 0x38a   : >> { %v2110_v58 = vpop.f32.mrf.mxu0 }
 0x38b   : >> { %v2327_v63 = vrot.slane %v2263_v50, 1 }
 0x38d   : >> { %v2391_v28 = vmax.f32 %v2263_v50, %v2327_v63  ;;  %v2568_v50 = vsel %vm2530_vm10, %v2567_v30, %v2566_v46  ;;  %v2734_v63 = vsel %vm2530_vm10, %v3271_v41, %v2732_v49 }
 0x38f   : >> { %v2487_v61 = vrot.slane %v2391_v28, 4  ;;  %v3225_v1 = vrot.slane %v2391_v28, 6  ;;  %v3272_v57 = vrot.slane %v2391_v28, 10 }
 0x390   : >> { %v2226_v59 = vpop.f32.mrf.mxu2 }
 0x391   : >> { %v2264_v55 = vmax.f32 %v2110_v58, %v2226_v59  ;;  %v2679_v23 = vrot.slane %v2487_v61, 4  ;;  %v2622_v59 = vsel %vm2530_vm10, %v3224_v29, %v2620_v44 }
 0x392   : >> { %v2113_v27 = vpop.f32.mrf.mxu0  ;;  %v2624_v5 = vsel %vm2532_vm9, %v3225_v1, %v2622_v59 }
 0x393   : >> { %v2328_v18 = vrot.slane %v2264_v55, 1  ;;  %v2680_v4 = vsel %vm2532_vm9, %v2679_v23, %v2678_v47 }
 0x395   : >> { %v2392_v53 = vmax.f32 %v2264_v55, %v2328_v18  ;;  %v2569_v55 = vsel %vm2532_vm9, %v2487_v61, %v2568_v50 }
 0x397   : >> { %v2570_v34 = vrot.slane %v2392_v53, 3  ;;  %v3226_v58 = vrot.slane %v2392_v53, 5  ;;  %v3249_v40 = vrot.slane %v2392_v53, 7  ;;  %v3273_v0 = vrot.slane %v2392_v53, 9 }
 0x398   : >> { %v2229_v39 = vpop.f32.mrf.mxu2 }
 0x399   : >> { %v2265_v6 = vmax.f32 %v2113_v27, %v2229_v39  ;;  %v2626_v19 = vsel %vm2535_vm1, %v3226_v58, %v2624_v5  ;;  %v2571_v9 = vsel %vm2535_vm1, %v2570_v34, %v2569_v55  ;;  %v2682_v28 = vsel %vm2535_vm1, %v3249_v40, %v2680_v4 }
 0x39a   : >> { %v2116_v56 = vpop.f32.mrf.mxu1  ;;  %v2736_v27 = vsel %vm2532_vm9, %v3272_v57, %v2734_v63 }
 0x39b   : >> { %v2329_v35 = vrot.slane %v2265_v6, 1  ;;  %v2738_v45 = vsel %vm2535_vm1, %v3273_v0, %v2736_v27 }
 0x39d   : >> { %v2393_v42 = vmax.f32 %v2265_v6, %v2329_v35 }
 0x39f   : >> { %v2457_v62 = vrot.slane %v2393_v42, 2  ;;  %v3250_v38 = vrot.slane %v2393_v42, 6  ;;  %v2740_v36 = vsel %vm2537_vm2, %v2393_v42, %v2738_v45 }
 0x3a0   : >> { %v2232_v51 = vpop.f32.mrf.mxu3 }
 0x3a1   : >> { %v2266_v32 = vmax.f32 %v2116_v56, %v2232_v51  ;;  %v2627_v7 = vrot.slane %v2457_v62, 2  ;;  %v2572_v6 = vsel %vm2537_vm2, %v2457_v62, %v2571_v9  ;;  %v2684_v8 = vsel %vm2537_vm2, %v3250_v38, %v2682_v28 }
 0x3a3   : >> { %v2330_v60 = vrot.slane %v2266_v32, 1  ;;  %v2628_v33 = vsel %vm2537_vm2, %v2627_v7, %v2626_v19 }
 0x3a5   : >> { %v2394_v31 = vmax.f32 %v2266_v32, %v2330_v60 }
 0x3a7   : >> { %v2573_v39 = vrot.slane %v2394_v31, 1  ;;  %v3227_v48 = vrot.slane %v2394_v31, 3  ;;  %v3251_v43 = vrot.slane %v2394_v31, 5  ;;  %v3275_v18 = vrot.slane %v2394_v31, 7 }
 0x3a9   : >> { %v2574_v37 = vsel %vm2540_vm3, %v2573_v39, %v2572_v6  ;;  %v2630_v35 = vsel %vm2540_vm3, %v3227_v48, %v2628_v33  ;;  %v2686_v54 = vsel %vm2540_vm3, %v3251_v43, %v2684_v8  ;;  %v2742_v24 = vsel %vm2540_vm3, %v3275_v18, %v2740_v36  ;;  %292 = sbr.rel (!%p290_p4) target bundleno = 24 (0x18), region = 73 }
 0x3aa   : >> { %2765 = vst.msk [vmem:[%s5063_s14 + $0x18] sm:$0xff] %vm2761_vm4, %v2574_v37 }
 0x3ab   : >> { %2769 = vst.msk [vmem:[%s5063_s14 + $0x38] sm:$0xff] %vm2761_vm4, %v2630_v35 }
 0x3ac   : >> { %2773 = vst.msk [vmem:[%s5063_s14 + $0x58] sm:$0xff] %vm2761_vm4, %v2686_v54 }
 0x3ad   : >> { %2777 = vst.msk [vmem:[%s5063_s14 + $0x78] sm:$0xff] %vm2761_vm4, %v2742_v24 }
 0x3ae PF: > { %s13_s12 = sadd.s32 1, %s3448_s12  }
 0x3af   : > { %p10_p5 = scmp.ge.s32.totalorder %s13_s12, 4  }
 0x3b1   :  { %12 = sbr.rel (!%p10_p5) target bundleno = 1 (0x1), region = 84 }

// kernel: emotion_cnn_forward.5
= control target key start
LH: loop header
LB: loop body
LE: loop exit
PB: predicated region body
PF: predicated region fallthrough
CT: control target
= control target key end

     0   :  { %10 = vsyncpa [#allocation4], 0  ;;  %s16807_s0 = inlined_call_operand.vmem [shape: f32[2,126976], index: 0, kind: input, shape index: {}]   ;;  %s16808_s1 = inlined_call_operand.hbm [shape: bf16[126976,128], index: 1, kind: input, shape index: {}]   ;;  %s16809_s2 = inlined_call_operand.vmem [shape: f32[1,128], index: 2, kind: input, shape index: {}]   ;;  %s16810_s3 = inlined_call_operand.vmem [shape: f32[128,5], index: 3, kind: input, shape index: {}]   ;;  %s16811_s4 = inlined_call_operand.vmem [shape: f32[1,5], index: 4, kind: input, shape index: {}]   ;;  %s16812_s5 = inlined_call_operand.hbm [shape: f32[2,5], index: 5, kind: output, shape index: {}]  }
   0x1   :  { %12 = vsyncpa [#allocation4 + $0x1], 0 }
   0x2   :  { %13 = vsyncpa [#allocation5], 0  ;;  %s15560_s18 = smov 0   ;;  %s15562_s19 = smov 0  }
   0x3   :  { %s15564_s20 = smov 0   ;;  %s15566_s21 = smov 0  }
   0x4 LB: > { %s15579_s22 = sadd.s32 4294967295, %s15524_s21   ;;  %s15582_s23 = sadd.s32 1, %s15524_s21   ;;  %s15524_s21 = sphi %s15566_s21, %s16818_s21   ;;  %s15520_s20 = sphi %s15564_s20, %s16817_s20   ;;  %s15516_s19 = sphi %s15562_s19, %s16816_s19   ;;  %s15512_s18 = sphi %s15560_s18, %s16815_s18  }
   0x5   : > { %s49_s24 = ssub.s32 %s15524_s21, %s15582_s23  ;;  %s52_s25 = sadd.s32 1, %s15520_s20 }
   0x6   : > { %p50_p0 = scmp.eq.s32.totalorder %s49_s24, 0  ;;  %p59_p1 = scmp.ne.s32.totalorder %s15520_s20, %s15516_s19 }
   0x7   : > { %p60_p2 = scmp.eq.s32.totalorder %s15524_s21, 0  ;;  %p65_p3 = scmp.ne.s32.totalorder %s15516_s19, %s15512_s18 }
   0x8   : > { %s15592_s26 = scalar_select %p50_p0, %s15520_s20, %s52_s25  }
   0x9   : > { %p61_p4 = por %p60_p2, %p59_p1  ;;  %p66_p5 = scmp.eq.s32.totalorder %s15579_s22, 0 }
   0xa   : > { %p15387_p6 = scmp.lt.s32.totalorder %s15524_s21, 8  ;;  %s191_s28 = sand.u32 1, %s15520_s20  }
   0xb   : > { %p15596_p7 = por %p66_p5, %p65_p3  ;;  %s15375_s29 = smul.u32 7936, %s191_s28 }
   0xc   : > { %s14382_s30 = smul.u32 7936, %s15524_s21  ;;  %p15602_p8 = pnand %p15387_p6, %p61_p4 }
   0xd   : > { %s195_s10 = scalar_lea.vmem [#allocation3], %s15375_s29  ;;  %p10406_p9 = scmp.ge.s32.totalorder %s15524_s21, 1 }
   0xe   : > { %s200_s9 = scalar_lea.hbm %s16808_s1, %s14382_s30  ;;  %s203_s11 = sshll.u32 %s195_s10, 4  ;;  %s204_s11 = int_to_ptr.vmem [resolvable:$true] %s203_s11 }
   0xf   : > { %s201_s12 = sshll.u32 %s200_s9, 4  ;;  %s192_s13 = scalar_lea.sflag [#allocation4], %s191_s28  ;;  %s202_s12 = int_to_ptr.hbm [resolvable:$true] %s201_s12 }
  0x10   : > { %s15428_s14 = sshra.s32 %s202_s12, 4  ;;  %p15432_p11 = pneg %p15602_p8  ;;  %s15429_s14 = int_to_ptr.hbm [resolvable:$true] %s15428_s14 }
  0x11   : > { %s15430_s15 = scalar_lea.hbm %s15429_s14, 7936  ;;  %s15435_s18 = scalar_lea.hbm %s16808_s1, 63488 }
  0x12   : > { %p15431_p10 = scmp.ne.s32.totalorder %s15429_s14, %s15430_s15  ;;  %p15436_p0 = scmp.lt.s32.totalorder %s15429_s14, %s16808_s1 }
  0x13   : > { %p15437_p1 = scmp.lt.s32.totalorder %s15435_s18, %s15430_s15 }
  0x14   : > { %p15433_p12 = pnand %p15432_p11, %p15431_p10 }
  0x15   : > { %p15438_p2 = por %p15437_p1, %p15436_p0 }
  0x16   : > { %p15434_p13 = pneg %p15433_p12 }
  0x18   : > { %p15439_p3 = pnand %p15438_p2, %p15434_p13 }
  0x1a   : > { %15442 = shalt.err (!%p15439_p3)
}
  0x1b   : > { %s15526_s28 = smov 64   ;;  %s15527_s29 = smov 4  }
  0x1c   : > { %15386 = dma.hbm_to_vmem [thread:$0]  (!%p15602_p8), %s202_s12, 126976, %s204_s11, %s192_s13, %s15526_s28, %s15526_s28, %s15527_s29  }
  0x1d   : > { %p211_p4 = scmp.lt.s32.totalorder %s15524_s21, 9 }
  0x1f   : > { %p212_p5 = pnand %p10406_p9, %p211_p4 }
  0x20   : > { %s217_s30 = sand.u32 (!%p212_p5), 1, %s15516_s19  }
  0x21   : > { %215 = sbr.rel (%p212_p5) target bundleno = 1349 (0x545), region = 40  ;;  %s218_s8 = scalar_lea.sflag (!%p212_p5), [#allocation4], %s217_s30 }
  0x22   : > { %s15376_s7 = smul.u32 (!%p212_p5), 7936, %s217_s30 }
  0x24   : > { %s15624_s9 = scalar_lea.vmem (!%p212_p5), [#allocation3], %s15376_s7 }
  0x26   : > { %15503 = dma.done.wait (%p15596_p7), %s218_s8, 126976  }
  0x27   : > { %15505 = vsyncadd (%p15596_p7), %s218_s8, 4294840320  ;;  %s249_s10 = smul.u32 124, %s15579_s22  ;;  %p10408_p8 = scmp.ne.s32.totalorder %s15579_s22, 0 }
  0x29   : > { %p250_p6 = scmp.lt.s32.totalorder %s249_s10, 991  ;;  %259 = sbr.rel (%p10408_p8) target bundleno = 48 (0x30), region = 48 }
  0x2b   : > { %s16820_s10 = smov (!%p250_p6, %s249_s10), 991 }
  0x2c   : > { %s10407_s6 = sshll.u32 %s16820_s10, 1 }
  0x2d   : > { %s15634_s12 = scalar_lea.vmem %s16807_s0, %s10407_s6 }
  0x2e   : > { %v15528_v0 = vmov 0.0  }
  0x2f   : > { %260 = vst [vmem:[#allocation2] sm:$0x3] %v15528_v0 }
  0x30 PF: > { %v14390_v1 = vld [vmem:[%s15624_s9 + $0x38] sm:$0xff]  ;;  %v14389_v5 = vld [vmem:[%s15624_s9 + $0x30] sm:$0xff]  ;;  %v14388_v9 = vld [vmem:[%s15624_s9 + $0x28] sm:$0xff]  ;;  %p14377_p7 = scmp.ne.s32.totalorder %s15579_s22, 7 }
  0x31   : > { %v14398_v2 = vld [vmem:[%s15624_s9 + $0x78] sm:$0xff]  ;;  %8664 = vmatpush.bf16.msra.mxu0 %v14390_v1  ;;  %v14397_v6 = vld [vmem:[%s15624_s9 + $0x70] sm:$0xff]  ;;  %v14396_v10 = vld [vmem:[%s15624_s9 + $0x68] sm:$0xff] }
  0x32   : > { %v14406_v3 = vld [vmem:[%s15624_s9 + $0xb8] sm:$0xff]  ;;  %8677 = vmatpush.bf16.msra.mxu1 %v14398_v2  ;;  %v14405_v7 = vld [vmem:[%s15624_s9 + $0xb0] sm:$0xff]  ;;  %v14404_v11 = vld [vmem:[%s15624_s9 + $0xa8] sm:$0xff] }
  0x33   : > { %v14414_v4 = vld [vmem:[%s15624_s9 + $0xf8] sm:$0xff]  ;;  %8690 = vmatpush.bf16.msra.mxu2 %v14406_v3  ;;  %v14413_v8 = vld [vmem:[%s15624_s9 + $0xf0] sm:$0xff]  ;;  %v14412_v12 = vld [vmem:[%s15624_s9 + $0xe8] sm:$0xff] }
  0x34   : > { %8703 = vmatpush.bf16.msra.mxu3 %v14414_v4  ;;  %v14387_v13 = vld [vmem:[%s15624_s9 + $0x20] sm:$0xff]  ;;  %v14386_v17 = vld [vmem:[%s15624_s9 + $0x18] sm:$0xff]  ;;  %v14385_v22 = vld [vmem:[%s15624_s9 + $0x10] sm:$0xff] }
  0x35   : > { %8665 = vmatpush.bf16.msra.mxu0 %v14389_v5  ;;  %v14395_v14 = vld [vmem:[%s15624_s9 + $0x60] sm:$0xff]  ;;  %v14394_v18 = vld [vmem:[%s15624_s9 + $0x58] sm:$0xff]  ;;  %v14393_v23 = vld [vmem:[%s15624_s9 + $0x50] sm:$0xff] }
  0x36   : > { %8678 = vmatpush.bf16.msra.mxu1 %v14397_v6  ;;  %v14403_v15 = vld [vmem:[%s15624_s9 + $0xa0] sm:$0xff]  ;;  %v14402_v19 = vld [vmem:[%s15624_s9 + $0x98] sm:$0xff]  ;;  %v14401_v24 = vld [vmem:[%s15624_s9 + $0x90] sm:$0xff] }
  0x37   : > { %8691 = vmatpush.bf16.msra.mxu2 %v14405_v7  ;;  %v14411_v16 = vld [vmem:[%s15624_s9 + $0xe0] sm:$0xff]  ;;  %v14410_v20 = vld [vmem:[%s15624_s9 + $0xd8] sm:$0xff]  ;;  %v14409_v25 = vld [vmem:[%s15624_s9 + $0xd0] sm:$0xff] }
  0x38   : > { %8704 = vmatpush.bf16.msra.mxu3 %v14413_v8  ;;  %v262_v21 = vld [vmem:[%s15634_s12] sm:$0xff]  ;;  %v14384_v26 = vld [vmem:[%s15624_s9 + $0x8] sm:$0xff]  ;;  %v14383_v30 = vld [vmem:[%s15624_s9] sm:$0xff] }
  0x39   : > { %8666 = vmatpush.bf16.msra.mxu0 %v14388_v9  ;;  %324 = vst [vmem:[#allocation1] ss:$4 sm:$0xff] %v262_v21  ;;  %v14392_v27 = vld [vmem:[%s15624_s9 + $0x48] sm:$0xff]  ;;  %v14391_v31 = vld [vmem:[%s15624_s9 + $0x40] sm:$0xff]  ;;  %v14422_v34 = vld [vmem:[%s15624_s9 + $0x138] sm:$0xff] }
  0x3a   : > { %8679 = vmatpush.bf16.msra.mxu1 %v14396_v10  ;;  %v14400_v28 = vld [vmem:[%s15624_s9 + $0x88] sm:$0xff]  ;;  %v14399_v32 = vld [vmem:[%s15624_s9 + $0x80] sm:$0xff]  ;;  %v14430_v35 = vld [vmem:[%s15624_s9 + $0x178] sm:$0xff] }
  0x3b   : > { %8692 = vmatpush.bf16.msra.mxu2 %v14404_v11  ;;  %v14408_v29 = vld [vmem:[%s15624_s9 + $0xc8] sm:$0xff]  ;;  %v14407_v33 = vld [vmem:[%s15624_s9 + $0xc0] sm:$0xff]  ;;  %v14438_v40 = vld [vmem:[%s15624_s9 + $0x1b8] sm:$0xff] }
  0x3c   : > { %8705 = vmatpush.bf16.msra.mxu3 %v14412_v12  ;;  %v14446_v41 = vld [vmem:[%s15624_s9 + $0x1f8] sm:$0xff]  ;;  %v14421_v47 = vld [vmem:[%s15624_s9 + $0x130] sm:$0xff]  ;;  %v14420_v51 = vld [vmem:[%s15624_s9 + $0x128] sm:$0xff] }
  0x3d   : > { %8667 = vmatpush.bf16.msra.mxu0 %v14387_v13  ;;  %v263_v42 = vld [vmem:[%s15634_s12 + $0x8] sm:$0xff]  ;;  %v14429_v48 = vld [vmem:[%s15624_s9 + $0x170] sm:$0xff]  ;;  %v14428_v52 = vld [vmem:[%s15624_s9 + $0x168] sm:$0xff] }
  0x3e   : > { %8680 = vmatpush.bf16.msra.mxu1 %v14395_v14  ;;  %326 = vst [vmem:[#allocation1 + $0x20] ss:$4 sm:$0xff] %v263_v42  ;;  %v14437_v49 = vld [vmem:[%s15624_s9 + $0x1b0] sm:$0xff]  ;;  %v14436_v53 = vld [vmem:[%s15624_s9 + $0x1a8] sm:$0xff]  ;;  %v14419_v55 = vld [vmem:[%s15624_s9 + $0x120] sm:$0xff] }
  0x3f   : > { %8693 = vmatpush.bf16.msra.mxu2 %v14403_v15  ;;  %v14445_v50 = vld [vmem:[%s15624_s9 + $0x1f0] sm:$0xff]  ;;  %v14444_v54 = vld [vmem:[%s15624_s9 + $0x1e8] sm:$0xff]  ;;  %v14427_v56 = vld [vmem:[%s15624_s9 + $0x160] sm:$0xff] }
  0x40   : > { %8706 = vmatpush.bf16.msra.mxu3 %v14411_v16  ;;  %v329_v36 = vld.sshfl [vmem:[#allocation1 + $0x10] sm:$0xff pattern:$0x73625140]  ;;  %v327_v37 = vld.sshfl [vmem:[#allocation1] sm:$0xff pattern:$0x73625140] }
  0x41   : > { %8668 = vmatpush.bf16.msra.mxu0 %v14386_v17  ;;  %v330_v38 = vld.sshfl [vmem:[#allocation1 + $0x18] sm:$0xff pattern:$0x73625140]  ;;  %v328_v39 = vld.sshfl [vmem:[#allocation1 + $0x8] sm:$0xff pattern:$0x73625140]  ;;  %v606_v43 = vpack.c.bf16 %v329_v36, %v329_v36  ;;  %v604_v44 = vpack.c.bf16 %v327_v37, %v327_v37 }
  0x42   : > { %8681 = vmatpush.bf16.msra.mxu1 %v14394_v18  ;;  %v607_v45 = vpack.c.bf16 %v330_v38, %v330_v38  ;;  %v605_v46 = vpack.c.bf16 %v328_v39, %v328_v39  ;;  %v14435_v57 = vld [vmem:[%s15624_s9 + $0x1a0] sm:$0xff]  ;;  %v14418_v59 = vld [vmem:[%s15624_s9 + $0x118] sm:$0xff]  ;;  %v14417_v63 = vld [vmem:[%s15624_s9 + $0x110] sm:$0xff] }
  0x43   : > { %8694 = vmatpush.bf16.msra.mxu2 %v14402_v19  ;;  %v14443_v58 = vld [vmem:[%s15624_s9 + $0x1e0] sm:$0xff]  ;;  %v14426_v60 = vld [vmem:[%s15624_s9 + $0x158] sm:$0xff]  ;;  %v14425_v0 = vld [vmem:[%s15624_s9 + $0x150] sm:$0xff] }
  0x44   : > { %8707 = vmatpush.bf16.msra.mxu3 %v14410_v20  ;;  %v14434_v61 = vld [vmem:[%s15624_s9 + $0x198] sm:$0xff]  ;;  %v14433_v1 = vld [vmem:[%s15624_s9 + $0x190] sm:$0xff]  ;;  %v14416_v3 = vld [vmem:[%s15624_s9 + $0x108] sm:$0xff] }
  0x45   : > { %8669 = vmatpush.bf16.msra.mxu0 %v14385_v22  ;;  %v14442_v62 = vld [vmem:[%s15624_s9 + $0x1d8] sm:$0xff]  ;;  %v14441_v2 = vld [vmem:[%s15624_s9 + $0x1d0] sm:$0xff]  ;;  %v14424_v4 = vld [vmem:[%s15624_s9 + $0x148] sm:$0xff] }
  0x46   : > { %8682 = vmatpush.bf16.msra.mxu1 %v14393_v23  ;;  %v264_v5 = vld [vmem:[%s15634_s12 + $0x10] sm:$0xff]  ;;  %v14454_v12 = vld [vmem:[%s15624_s9 + $0x238] sm:$0xff]  ;;  %v334_v16 = vld.sshfl [vmem:[#allocation1 + $0x38] sm:$0xff pattern:$0x73625140] }
  0x47   : > { %8695 = vmatpush.bf16.msra.mxu2 %v14401_v24  ;;  %v14432_v6 = vld [vmem:[%s15624_s9 + $0x188] sm:$0xff]  ;;  %335 = vst [vmem:[#allocation1] ss:$4 sm:$0xff] %v264_v5  ;;  %v14415_v8 = vld [vmem:[%s15624_s9 + $0x100] sm:$0xff]  ;;  %v14462_v13 = vld [vmem:[%s15624_s9 + $0x278] sm:$0xff]  ;;  %v611_v22 = vpack.c.bf16 %v334_v16, %v334_v16 }
  0x48   : > { %8708 = vmatpush.bf16.msra.mxu3 %v14409_v25  ;;  %v14440_v7 = vld [vmem:[%s15624_s9 + $0x1c8] sm:$0xff]  ;;  %v14423_v9 = vld [vmem:[%s15624_s9 + $0x140] sm:$0xff]  ;;  %v331_v15 = vld.sshfl [vmem:[#allocation1 + $0x20] sm:$0xff pattern:$0x73625140] }
  0x49   : > { %8670 = vmatpush.bf16.msra.mxu0 %v14384_v26  ;;  %v14431_v10 = vld [vmem:[%s15624_s9 + $0x180] sm:$0xff]  ;;  %v14470_v18 = vld [vmem:[%s15624_s9 + $0x2b8] sm:$0xff]  ;;  %v608_v21 = vpack.c.bf16 %v331_v15, %v331_v15  ;;  %v14453_v24 = vld [vmem:[%s15624_s9 + $0x230] sm:$0xff] }
  0x4a   : > { %8683 = vmatpush.bf16.msra.mxu1 %v14392_v27  ;;  %v14439_v11 = vld [vmem:[%s15624_s9 + $0x1c0] sm:$0xff]  ;;  %v14478_v19 = vld [vmem:[%s15624_s9 + $0x2f8] sm:$0xff]  ;;  %v14461_v25 = vld [vmem:[%s15624_s9 + $0x270] sm:$0xff] }
  0x4b   : > { %8696 = vmatpush.bf16.msra.mxu2 %v14400_v28  ;;  %v333_v14 = vld.sshfl [vmem:[#allocation1 + $0x30] sm:$0xff pattern:$0x73625140]  ;;  %v332_v17 = vld.sshfl [vmem:[#allocation1 + $0x28] sm:$0xff pattern:$0x73625140] }
  0x4c   : > { %8709 = vmatpush.bf16.msra.mxu3 %v14408_v29  ;;  %v610_v20 = vpack.c.bf16 %v333_v14, %v333_v14  ;;  %v609_v23 = vpack.c.bf16 %v332_v17, %v332_v17  ;;  %v14469_v26 = vld [vmem:[%s15624_s9 + $0x2b0] sm:$0xff]  ;;  %v14452_v28 = vld [vmem:[%s15624_s9 + $0x228] sm:$0xff]  ;;  %v14450_v36 = vld [vmem:[%s15624_s9 + $0x218] sm:$0xff] }
  0x4d   : > { %8671 = vmatpush.bf16.msra.mxu0 %v14383_v30  ;;  %v14477_v27 = vld [vmem:[%s15624_s9 + $0x2f0] sm:$0xff]  ;;  %v14460_v29 = vld [vmem:[%s15624_s9 + $0x268] sm:$0xff]  ;;  %v14458_v37 = vld [vmem:[%s15624_s9 + $0x258] sm:$0xff] }
  0x4e   : > { %8684 = vmatpush.bf16.msra.mxu1 %v14391_v31  ;;  %v14468_v30 = vld [vmem:[%s15624_s9 + $0x2a8] sm:$0xff]  ;;  %v14466_v38 = vld [vmem:[%s15624_s9 + $0x298] sm:$0xff]  ;;  %v14465_v42 = vld [vmem:[%s15624_s9 + $0x290] sm:$0xff] }
  0x4f   : > { %8697 = vmatpush.bf16.msra.mxu2 %v14399_v32  ;;  %v14476_v31 = vld [vmem:[%s15624_s9 + $0x2e8] sm:$0xff]  ;;  %v14451_v32 = vld [vmem:[%s15624_s9 + $0x220] sm:$0xff]  ;;  %v14474_v39 = vld [vmem:[%s15624_s9 + $0x2d8] sm:$0xff] }
  0x50   : > { %8710 = vmatpush.bf16.msra.mxu3 %v14407_v33  ;;  %8672 = vmatmul.bf16.vlgmr.msra.gmra.mxu0 %v604_v44  ;;  %v14459_v33 = vld [vmem:[%s15624_s9 + $0x260] sm:$0xff]  ;;  %v14448_v44 = vld [vmem:[%s15624_s9 + $0x208] sm:$0xff]  ;;  %v14490_v14 = vld [vmem:[%s15624_s9 + $0x358] sm:$0xff] }
  0x51   : > { %8716 = vmatpush.bf16.msrb.mxu0 %v14422_v34  ;;  %8685 = vmatmul.bf16.vlgmr.msra.gmra.mxu1 %v605_v46  ;;  %v14467_v34 = vld [vmem:[%s15624_s9 + $0x2a0] sm:$0xff]  ;;  %v265_v46 = vld [vmem:[%s15634_s12 + $0x18] sm:$0xff]  ;;  %v14498_v15 = vld [vmem:[%s15624_s9 + $0x398] sm:$0xff] }
  0x52   : > { %8729 = vmatpush.bf16.msrb.mxu1 %v14430_v35  ;;  %8698 = vmatmul.bf16.vlgmr.msra.gmra.mxu2 %v606_v43  ;;  %v14475_v35 = vld [vmem:[%s15624_s9 + $0x2e0] sm:$0xff]  ;;  %v14473_v43 = vld [vmem:[%s15624_s9 + $0x2d0] sm:$0xff]  ;;  %336 = vst [vmem:[#allocation1 + $0x20] ss:$4 sm:$0xff] %v265_v46  ;;  %v14484_v5 = vld [vmem:[%s15624_s9 + $0x328] sm:$0xff] }
  0x53   : > { %8742 = vmatpush.bf16.msrb.mxu2 %v14438_v40  ;;  %8711 = vmatmul.bf16.vlgmr.msra.gmra.mxu3 %v607_v45  ;;  %v14449_v40 = vld [vmem:[%s15624_s9 + $0x210] sm:$0xff]  ;;  %v14456_v45 = vld [vmem:[%s15624_s9 + $0x248] sm:$0xff]  ;;  %v14506_v16 = vld [vmem:[%s15624_s9 + $0x3d8] sm:$0xff] }
  0x54   : > { %8755 = vmatpush.bf16.msrb.mxu3 %v14446_v41  ;;  %v14457_v41 = vld [vmem:[%s15624_s9 + $0x250] sm:$0xff]  ;;  %v14516_v46 = vld [vmem:[%s15624_s9 + $0x428] sm:$0xff] }
  0x55   : > { %8717 = vmatpush.bf16.msrb.mxu0 %v14421_v47  ;;  %v14464_v47 = vld [vmem:[%s15624_s9 + $0x288] sm:$0xff]  ;;  %v14481_v17 = vld [vmem:[%s15624_s9 + $0x310] sm:$0xff] }
  0x56   : > { %8730 = vmatpush.bf16.msrb.mxu1 %v14429_v48  ;;  %v14472_v48 = vld [vmem:[%s15624_s9 + $0x2c8] sm:$0xff] }
  0x57   : > { %8743 = vmatpush.bf16.msrb.mxu2 %v14437_v49  ;;  %v14447_v49 = vld [vmem:[%s15624_s9 + $0x200] sm:$0xff] }
  0x58   : > { %8756 = vmatpush.bf16.msrb.mxu3 %v14445_v50  ;;  %v14455_v50 = vld [vmem:[%s15624_s9 + $0x240] sm:$0xff] }
  0x59   : > { %8718 = vmatpush.bf16.msrb.mxu0 %v14420_v51  ;;  %v14463_v51 = vld [vmem:[%s15624_s9 + $0x280] sm:$0xff] }
  0x5a   : > { %8731 = vmatpush.bf16.msrb.mxu1 %v14428_v52  ;;  %v14471_v52 = vld [vmem:[%s15624_s9 + $0x2c0] sm:$0xff] }
  0x5b   : > { %8744 = vmatpush.bf16.msrb.mxu2 %v14436_v53  ;;  %v14486_v53 = vld [vmem:[%s15624_s9 + $0x338] sm:$0xff] }
  0x5c   : > { %8757 = vmatpush.bf16.msrb.mxu3 %v14444_v54  ;;  %v14494_v54 = vld [vmem:[%s15624_s9 + $0x378] sm:$0xff] }
  0x5d   : > { %8719 = vmatpush.bf16.msrb.mxu0 %v14419_v55  ;;  %v337_v55 = vld.sshfl [vmem:[#allocation1] sm:$0xff pattern:$0x73625140] }
  0x5e   : > { %8732 = vmatpush.bf16.msrb.mxu1 %v14427_v56  ;;  %v339_v56 = vld.sshfl [vmem:[#allocation1 + $0x10] sm:$0xff pattern:$0x73625140] }
  0x5f   : > { %8745 = vmatpush.bf16.msrb.mxu2 %v14435_v57  ;;  %v338_v57 = vld.sshfl [vmem:[#allocation1 + $0x8] sm:$0xff pattern:$0x73625140] }
  0x60   : > { %8758 = vmatpush.bf16.msrb.mxu3 %v14443_v58  ;;  %v340_v58 = vld.sshfl [vmem:[#allocation1 + $0x18] sm:$0xff pattern:$0x73625140] }
  0x61   : > { %8720 = vmatpush.bf16.msrb.mxu0 %v14418_v59  ;;  %v14502_v59 = vld [vmem:[%s15624_s9 + $0x3b8] sm:$0xff] }
  0x62   : > { %8733 = vmatpush.bf16.msrb.mxu1 %v14426_v60  ;;  %v14510_v60 = vld [vmem:[%s15624_s9 + $0x3f8] sm:$0xff] }
  0x63   : > { %8746 = vmatpush.bf16.msrb.mxu2 %v14434_v61  ;;  %v612_v61 = vpack.c.bf16 %v337_v55, %v337_v55  ;;  %v14522_v55 = vld [vmem:[%s15624_s9 + $0x458] sm:$0xff] }
  0x64   : > { %8759 = vmatpush.bf16.msrb.mxu3 %v14442_v62  ;;  %v614_v62 = vpack.c.bf16 %v339_v56, %v339_v56  ;;  %v14530_v56 = vld [vmem:[%s15624_s9 + $0x498] sm:$0xff] }
  0x65   : > { %8721 = vmatpush.bf16.msrb.mxu0 %v14417_v63  ;;  %v613_v63 = vpack.c.bf16 %v338_v57, %v338_v57  ;;  %v14538_v57 = vld [vmem:[%s15624_s9 + $0x4d8] sm:$0xff] }
  0x66   : > { %8734 = vmatpush.bf16.msrb.mxu1 %v14425_v0  ;;  %v615_v0 = vpack.c.bf16 %v340_v58, %v340_v58  ;;  %v14513_v58 = vld [vmem:[%s15624_s9 + $0x410] sm:$0xff] }
  0x67   : > { %8747 = vmatpush.bf16.msrb.mxu2 %v14433_v1  ;;  %v14485_v1 = vld [vmem:[%s15624_s9 + $0x330] sm:$0xff] }
  0x68   : > { %8760 = vmatpush.bf16.msrb.mxu3 %v14441_v2  ;;  %v14493_v2 = vld [vmem:[%s15624_s9 + $0x370] sm:$0xff] }
  0x69   : > { %8722 = vmatpush.bf16.msrb.mxu0 %v14416_v3  ;;  %v14501_v3 = vld [vmem:[%s15624_s9 + $0x3b0] sm:$0xff] }
  0x6a   : > { %8735 = vmatpush.bf16.msrb.mxu1 %v14424_v4  ;;  %v14509_v4 = vld [vmem:[%s15624_s9 + $0x3f0] sm:$0xff] }
  0x6b   : > { %8748 = vmatpush.bf16.msrb.mxu2 %v14432_v6  ;;  %v14492_v6 = vld [vmem:[%s15624_s9 + $0x368] sm:$0xff] }
  0x6c   : > { %8761 = vmatpush.bf16.msrb.mxu3 %v14440_v7  ;;  %v14500_v7 = vld [vmem:[%s15624_s9 + $0x3a8] sm:$0xff] }
  0x6d   : > { %8723 = vmatpush.bf16.msrb.mxu0 %v14415_v8  ;;  %v14508_v8 = vld [vmem:[%s15624_s9 + $0x3e8] sm:$0xff] }
  0x6e   : > { %8736 = vmatpush.bf16.msrb.mxu1 %v14423_v9  ;;  %v14483_v9 = vld [vmem:[%s15624_s9 + $0x320] sm:$0xff] }
  0x6f   : > { %8749 = vmatpush.bf16.msrb.mxu2 %v14431_v10  ;;  %v14491_v10 = vld [vmem:[%s15624_s9 + $0x360] sm:$0xff] }
  0x70   : > { %8762 = vmatpush.bf16.msrb.mxu3 %v14439_v11  ;;  %8724 = vmatmul.bf16.vlgmr.msrb.gmra.mxu0 %v608_v21  ;;  %v14499_v11 = vld [vmem:[%s15624_s9 + $0x3a0] sm:$0xff]  ;;  %v14480_v21 = vld [vmem:[%s15624_s9 + $0x308] sm:$0xff] }
  0x71   : > { %8768 = vmatpush.bf16.msra.mxu0 %v14454_v12  ;;  %8737 = vmatmul.bf16.vlgmr.msrb.gmra.mxu1 %v609_v23  ;;  %v14507_v12 = vld [vmem:[%s15624_s9 + $0x3e0] sm:$0xff]  ;;  %v266_v23 = vld [vmem:[%s15634_s12 + $0x20] sm:$0xff] }
  0x72   : > { %8781 = vmatpush.bf16.msra.mxu1 %v14462_v13  ;;  %8750 = vmatmul.bf16.vlgmr.msrb.gmra.mxu2 %v610_v20  ;;  %v14482_v13 = vld [vmem:[%s15624_s9 + $0x318] sm:$0xff]  ;;  %v14505_v20 = vld [vmem:[%s15624_s9 + $0x3d0] sm:$0xff]  ;;  %345 = vst [vmem:[#allocation1] ss:$4 sm:$0xff] %v266_v23  ;;  %v14548_v23 = vld [vmem:[%s15624_s9 + $0x528] sm:$0xff] }
  0x73   : > { %8794 = vmatpush.bf16.msra.mxu2 %v14470_v18  ;;  %8763 = vmatmul.bf16.vlgmr.msrb.gmra.mxu3 %v611_v22  ;;  %v14489_v18 = vld [vmem:[%s15624_s9 + $0x350] sm:$0xff]  ;;  %v14488_v22 = vld [vmem:[%s15624_s9 + $0x348] sm:$0xff] }
  0x74   : > { %8807 = vmatpush.bf16.msra.mxu3 %v14478_v19  ;;  %v14497_v19 = vld [vmem:[%s15624_s9 + $0x390] sm:$0xff] }
  0x75   : > { %8769 = vmatpush.bf16.msra.mxu0 %v14453_v24  ;;  %v14496_v24 = vld [vmem:[%s15624_s9 + $0x388] sm:$0xff] }
  0x76   : > { %8782 = vmatpush.bf16.msra.mxu1 %v14461_v25  ;;  %v14504_v25 = vld [vmem:[%s15624_s9 + $0x3c8] sm:$0xff] }
  0x77   : > { %8795 = vmatpush.bf16.msra.mxu2 %v14469_v26  ;;  %v14479_v26 = vld [vmem:[%s15624_s9 + $0x300] sm:$0xff] }
  0x78   : > { %8808 = vmatpush.bf16.msra.mxu3 %v14477_v27  ;;  %v14487_v27 = vld [vmem:[%s15624_s9 + $0x340] sm:$0xff] }
  0x79   : > { %8770 = vmatpush.bf16.msra.mxu0 %v14452_v28  ;;  %v14495_v28 = vld [vmem:[%s15624_s9 + $0x380] sm:$0xff] }
  0x7a   : > { %8783 = vmatpush.bf16.msra.mxu1 %v14460_v29  ;;  %v14503_v29 = vld [vmem:[%s15624_s9 + $0x3c0] sm:$0xff] }
  0x7b   : > { %8796 = vmatpush.bf16.msra.mxu2 %v14468_v30  ;;  %v14518_v30 = vld [vmem:[%s15624_s9 + $0x438] sm:$0xff] }
  0x7c   : > { %8809 = vmatpush.bf16.msra.mxu3 %v14476_v31  ;;  %v14526_v31 = vld [vmem:[%s15624_s9 + $0x478] sm:$0xff] }
  0x7d   : > { %8771 = vmatpush.bf16.msra.mxu0 %v14451_v32  ;;  %v341_v32 = vld.sshfl [vmem:[#allocation1 + $0x20] sm:$0xff pattern:$0x73625140] }
  0x7e   : > { %8784 = vmatpush.bf16.msra.mxu1 %v14459_v33  ;;  %v343_v33 = vld.sshfl [vmem:[#allocation1 + $0x30] sm:$0xff pattern:$0x73625140] }
  0x7f   : > { %8797 = vmatpush.bf16.msra.mxu2 %v14467_v34  ;;  %v342_v34 = vld.sshfl [vmem:[#allocation1 + $0x28] sm:$0xff pattern:$0x73625140] }
  0x80   : > { %8810 = vmatpush.bf16.msra.mxu3 %v14475_v35  ;;  %v344_v35 = vld.sshfl [vmem:[#allocation1 + $0x38] sm:$0xff pattern:$0x73625140] }
  0x81   : > { %8772 = vmatpush.bf16.msra.mxu0 %v14450_v36  ;;  %v14534_v36 = vld [vmem:[%s15624_s9 + $0x4b8] sm:$0xff] }
  0x82   : > { %8785 = vmatpush.bf16.msra.mxu1 %v14458_v37  ;;  %v14542_v37 = vld [vmem:[%s15624_s9 + $0x4f8] sm:$0xff] }
  0x83   : > { %8798 = vmatpush.bf16.msra.mxu2 %v14466_v38  ;;  %v616_v38 = vpack.c.bf16 %v341_v32, %v341_v32  ;;  %v14571_v32 = vld [vmem:[%s15624_s9 + $0x5e0] sm:$0xff] }
  0x84   : > { %8811 = vmatpush.bf16.msra.mxu3 %v14474_v39  ;;  %v618_v39 = vpack.c.bf16 %v343_v33, %v343_v33 }
  0x85   : > { %8773 = vmatpush.bf16.msra.mxu0 %v14449_v40  ;;  %v617_v40 = vpack.c.bf16 %v342_v34, %v342_v34  ;;  %v14546_v34 = vld [vmem:[%s15624_s9 + $0x518] sm:$0xff] }
  0x86   : > { %8786 = vmatpush.bf16.msra.mxu1 %v14457_v41  ;;  %v619_v41 = vpack.c.bf16 %v344_v35, %v344_v35  ;;  %v14554_v35 = vld [vmem:[%s15624_s9 + $0x558] sm:$0xff] }
  0x87   : > { %8799 = vmatpush.bf16.msra.mxu2 %v14465_v42  ;;  %v14517_v42 = vld [vmem:[%s15624_s9 + $0x430] sm:$0xff] }
  0x88   : > { %8812 = vmatpush.bf16.msra.mxu3 %v14473_v43  ;;  %v14525_v43 = vld [vmem:[%s15624_s9 + $0x470] sm:$0xff] }
  0x89   : > { %8774 = vmatpush.bf16.msra.mxu0 %v14448_v44  ;;  %v14533_v44 = vld [vmem:[%s15624_s9 + $0x4b0] sm:$0xff] }
  0x8a   : > { %8787 = vmatpush.bf16.msra.mxu1 %v14456_v45  ;;  %v14541_v45 = vld [vmem:[%s15624_s9 + $0x4f0] sm:$0xff] }
  0x8b   : > { %8800 = vmatpush.bf16.msra.mxu2 %v14464_v47  ;;  %v14524_v47 = vld [vmem:[%s15624_s9 + $0x468] sm:$0xff] }
  0x8c   : > { %8813 = vmatpush.bf16.msra.mxu3 %v14472_v48  ;;  %v14532_v48 = vld [vmem:[%s15624_s9 + $0x4a8] sm:$0xff] }
  0x8d   : > { %8775 = vmatpush.bf16.msra.mxu0 %v14447_v49  ;;  %v14540_v49 = vld [vmem:[%s15624_s9 + $0x4e8] sm:$0xff] }
  0x8e   : > { %8788 = vmatpush.bf16.msra.mxu1 %v14455_v50  ;;  %v14515_v50 = vld [vmem:[%s15624_s9 + $0x420] sm:$0xff] }
  0x8f   : > { %8801 = vmatpush.bf16.msra.mxu2 %v14463_v51  ;;  %v14523_v51 = vld [vmem:[%s15624_s9 + $0x460] sm:$0xff] }
  0x90   : > { %8814 = vmatpush.bf16.msra.mxu3 %v14471_v52  ;;  %8776 = vmatmul.bf16.vlgmr.msra.gmra.mxu0 %v612_v61  ;;  %v14531_v52 = vld [vmem:[%s15624_s9 + $0x4a0] sm:$0xff]  ;;  %v14537_v61 = vld [vmem:[%s15624_s9 + $0x4d0] sm:$0xff] }
  0x91   : > { %8820 = vmatpush.bf16.msrb.mxu0 %v14486_v53  ;;  %8789 = vmatmul.bf16.vlgmr.msra.gmra.mxu1 %v613_v63  ;;  %v14539_v53 = vld [vmem:[%s15624_s9 + $0x4e0] sm:$0xff]  ;;  %v14520_v63 = vld [vmem:[%s15624_s9 + $0x448] sm:$0xff] }
  0x92   : > { %8833 = vmatpush.bf16.msrb.mxu1 %v14494_v54  ;;  %8802 = vmatmul.bf16.vlgmr.msra.gmra.mxu2 %v614_v62  ;;  %v14514_v54 = vld [vmem:[%s15624_s9 + $0x418] sm:$0xff]  ;;  %v14512_v62 = vld [vmem:[%s15624_s9 + $0x408] sm:$0xff] }
  0x93   : > { %8846 = vmatpush.bf16.msrb.mxu2 %v14502_v59  ;;  %8815 = vmatmul.bf16.vlgmr.msra.gmra.mxu3 %v615_v0  ;;  %v14521_v59 = vld [vmem:[%s15624_s9 + $0x450] sm:$0xff]  ;;  %v267_v0 = vld [vmem:[%s15634_s12 + $0x28] sm:$0xff] }
  0x94   : > { %8859 = vmatpush.bf16.msrb.mxu3 %v14510_v60  ;;  %v14529_v60 = vld [vmem:[%s15624_s9 + $0x490] sm:$0xff]  ;;  %346 = vst [vmem:[#allocation1 + $0x20] ss:$4 sm:$0xff] %v267_v0 }
  0x95   : > { %8821 = vmatpush.bf16.msrb.mxu0 %v14485_v1  ;;  %v14528_v1 = vld [vmem:[%s15624_s9 + $0x488] sm:$0xff] }
  0x96   : > { %8834 = vmatpush.bf16.msrb.mxu1 %v14493_v2  ;;  %v14536_v2 = vld [vmem:[%s15624_s9 + $0x4c8] sm:$0xff] }
  0x97   : > { %8847 = vmatpush.bf16.msrb.mxu2 %v14501_v3  ;;  %v14511_v3 = vld [vmem:[%s15624_s9 + $0x400] sm:$0xff] }
  0x98   : > { %8860 = vmatpush.bf16.msrb.mxu3 %v14509_v4  ;;  %v14519_v4 = vld [vmem:[%s15624_s9 + $0x440] sm:$0xff] }
  0x99   : > { %8822 = vmatpush.bf16.msrb.mxu0 %v14484_v5  ;;  %v14527_v5 = vld [vmem:[%s15624_s9 + $0x480] sm:$0xff] }
  0x9a   : > { %8835 = vmatpush.bf16.msrb.mxu1 %v14492_v6  ;;  %v14535_v6 = vld [vmem:[%s15624_s9 + $0x4c0] sm:$0xff] }
  0x9b   : > { %8848 = vmatpush.bf16.msrb.mxu2 %v14500_v7  ;;  %v14550_v7 = vld [vmem:[%s15624_s9 + $0x538] sm:$0xff]  ;;  %v354_v0 = vld.sshfl [vmem:[#allocation1 + $0x38] sm:$0xff pattern:$0x73625140] }
  0x9c   : > { %8861 = vmatpush.bf16.msrb.mxu3 %v14508_v8  ;;  %v14558_v8 = vld [vmem:[%s15624_s9 + $0x578] sm:$0xff] }
  0x9d   : > { %8823 = vmatpush.bf16.msrb.mxu0 %v14483_v9  ;;  %v347_v9 = vld.sshfl [vmem:[#allocation1] sm:$0xff pattern:$0x73625140] }
  0x9e   : > { %8836 = vmatpush.bf16.msrb.mxu1 %v14491_v10  ;;  %v349_v10 = vld.sshfl [vmem:[#allocation1 + $0x10] sm:$0xff pattern:$0x73625140] }
  0x9f   : > { %8849 = vmatpush.bf16.msrb.mxu2 %v14499_v11  ;;  %v348_v11 = vld.sshfl [vmem:[#allocation1 + $0x8] sm:$0xff pattern:$0x73625140] }
  0xa0   : > { %8862 = vmatpush.bf16.msrb.mxu3 %v14507_v12  ;;  %v350_v12 = vld.sshfl [vmem:[#allocation1 + $0x18] sm:$0xff pattern:$0x73625140] }
  0xa1   : > { %8824 = vmatpush.bf16.msrb.mxu0 %v14482_v13  ;;  %v14566_v13 = vld [vmem:[%s15624_s9 + $0x5b8] sm:$0xff] }
  0xa2   : > { %8837 = vmatpush.bf16.msrb.mxu1 %v14490_v14  ;;  %v14574_v14 = vld [vmem:[%s15624_s9 + $0x5f8] sm:$0xff] }
  0xa3   : > { %8850 = vmatpush.bf16.msrb.mxu2 %v14498_v15  ;;  %v620_v15 = vpack.c.bf16 %v347_v9, %v347_v9  ;;  %v14597_v9 = vld [vmem:[%s15624_s9 + $0x6b0] sm:$0xff] }
  0xa4   : > { %8863 = vmatpush.bf16.msrb.mxu3 %v14506_v16  ;;  %v622_v16 = vpack.c.bf16 %v349_v10, %v349_v10  ;;  %v14605_v10 = vld [vmem:[%s15624_s9 + $0x6f0] sm:$0xff] }
  0xa5   : > { %8825 = vmatpush.bf16.msrb.mxu0 %v14481_v17  ;;  %v621_v17 = vpack.c.bf16 %v348_v11, %v348_v11  ;;  %v14580_v11 = vld [vmem:[%s15624_s9 + $0x628] sm:$0xff] }
  0xa6   : > { %8838 = vmatpush.bf16.msrb.mxu1 %v14489_v18  ;;  %v623_v18 = vpack.c.bf16 %v350_v12, %v350_v12  ;;  %v14588_v12 = vld [vmem:[%s15624_s9 + $0x668] sm:$0xff] }
  0xa7   : > { %8851 = vmatpush.bf16.msrb.mxu2 %v14497_v19  ;;  %v14549_v19 = vld [vmem:[%s15624_s9 + $0x530] sm:$0xff] }
  0xa8   : > { %8864 = vmatpush.bf16.msrb.mxu3 %v14505_v20  ;;  %v14557_v20 = vld [vmem:[%s15624_s9 + $0x570] sm:$0xff] }
  0xa9   : > { %8826 = vmatpush.bf16.msrb.mxu0 %v14480_v21  ;;  %v14565_v21 = vld [vmem:[%s15624_s9 + $0x5b0] sm:$0xff] }
  0xaa   : > { %8839 = vmatpush.bf16.msrb.mxu1 %v14488_v22  ;;  %v14573_v22 = vld [vmem:[%s15624_s9 + $0x5f0] sm:$0xff] }
  0xab   : > { %8852 = vmatpush.bf16.msrb.mxu2 %v14496_v24  ;;  %v14556_v24 = vld [vmem:[%s15624_s9 + $0x568] sm:$0xff] }
  0xac   : > { %8865 = vmatpush.bf16.msrb.mxu3 %v14504_v25  ;;  %v14564_v25 = vld [vmem:[%s15624_s9 + $0x5a8] sm:$0xff] }
  0xad   : > { %8827 = vmatpush.bf16.msrb.mxu0 %v14479_v26  ;;  %v14572_v26 = vld [vmem:[%s15624_s9 + $0x5e8] sm:$0xff] }
  0xae   : > { %8840 = vmatpush.bf16.msrb.mxu1 %v14487_v27 }
  0xaf   : > { %8853 = vmatpush.bf16.msrb.mxu2 %v14495_v28  ;;  %v14547_v28 = vld [vmem:[%s15624_s9 + $0x520] sm:$0xff] }
  0xb0   : > { %8866 = vmatpush.bf16.msrb.mxu3 %v14503_v29  ;;  %8828 = vmatmul.bf16.vlgmr.msrb.gmra.mxu0 %v616_v38  ;;  %v14555_v29 = vld [vmem:[%s15624_s9 + $0x560] sm:$0xff] }
  0xb1   : > { %8872 = vmatpush.bf16.msra.mxu0 %v14518_v30  ;;  %8841 = vmatmul.bf16.vlgmr.msrb.gmra.mxu1 %v617_v40 }
  0xb2   : > { %8885 = vmatpush.bf16.msra.mxu1 %v14526_v31  ;;  %8854 = vmatmul.bf16.vlgmr.msrb.gmra.mxu2 %v618_v39  ;;  %v14563_v31 = vld [vmem:[%s15624_s9 + $0x5a0] sm:$0xff] }
  0xb3   : > { %8898 = vmatpush.bf16.msra.mxu2 %v14534_v36  ;;  %8867 = vmatmul.bf16.vlgmr.msrb.gmra.mxu3 %v619_v41  ;;  %v14562_v36 = vld [vmem:[%s15624_s9 + $0x598] sm:$0xff] }
  0xb4   : > { %8911 = vmatpush.bf16.msra.mxu3 %v14542_v37  ;;  %v14570_v37 = vld [vmem:[%s15624_s9 + $0x5d8] sm:$0xff] }
  0xb5   : > { %8873 = vmatpush.bf16.msra.mxu0 %v14517_v42  ;;  %v14545_v42 = vld [vmem:[%s15624_s9 + $0x510] sm:$0xff] }
  0xb6   : > { %8886 = vmatpush.bf16.msra.mxu1 %v14525_v43  ;;  %v14553_v43 = vld [vmem:[%s15624_s9 + $0x550] sm:$0xff] }
  0xb7   : > { %8899 = vmatpush.bf16.msra.mxu2 %v14533_v44 }
  0xb8   : > { %8912 = vmatpush.bf16.msra.mxu3 %v14541_v45 }
  0xb9   : > { %8874 = vmatpush.bf16.msra.mxu0 %v14516_v46  ;;  %v14561_v46 = vld [vmem:[%s15624_s9 + $0x590] sm:$0xff] }
  0xba   : > { %8887 = vmatpush.bf16.msra.mxu1 %v14524_v47  ;;  %v14569_v47 = vld [vmem:[%s15624_s9 + $0x5d0] sm:$0xff] }
  0xbb   : > { %8900 = vmatpush.bf16.msra.mxu2 %v14532_v48  ;;  %v14544_v48 = vld [vmem:[%s15624_s9 + $0x508] sm:$0xff] }
  0xbc   : > { %8913 = vmatpush.bf16.msra.mxu3 %v14540_v49  ;;  %v14552_v49 = vld [vmem:[%s15624_s9 + $0x548] sm:$0xff] }
  0xbd   : > { %8875 = vmatpush.bf16.msra.mxu0 %v14515_v50  ;;  %v268_v50 = vld [vmem:[%s15634_s12 + $0x30] sm:$0xff] }
  0xbe   : > { %8888 = vmatpush.bf16.msra.mxu1 %v14523_v51  ;;  %v14560_v51 = vld [vmem:[%s15624_s9 + $0x588] sm:$0xff]  ;;  %355 = vst [vmem:[#allocation1] ss:$4 sm:$0xff] %v268_v50 }
  0xbf   : > { %8901 = vmatpush.bf16.msra.mxu2 %v14531_v52  ;;  %v14568_v52 = vld [vmem:[%s15624_s9 + $0x5c8] sm:$0xff] }
  0xc0   : > { %8914 = vmatpush.bf16.msra.mxu3 %v14539_v53 }
  0xc1   : > { %8876 = vmatpush.bf16.msra.mxu0 %v14514_v54 }
  0xc2   : > { %8889 = vmatpush.bf16.msra.mxu1 %v14522_v55  ;;  %v14543_v55 = vld [vmem:[%s15624_s9 + $0x500] sm:$0xff] }
  0xc3   : > { %8902 = vmatpush.bf16.msra.mxu2 %v14530_v56  ;;  %v14551_v56 = vld [vmem:[%s15624_s9 + $0x540] sm:$0xff] }
  0xc4   : > { %8915 = vmatpush.bf16.msra.mxu3 %v14538_v57  ;;  %v14559_v57 = vld [vmem:[%s15624_s9 + $0x580] sm:$0xff] }
  0xc5   : > { %8877 = vmatpush.bf16.msra.mxu0 %v14513_v58  ;;  %v14567_v58 = vld [vmem:[%s15624_s9 + $0x5c0] sm:$0xff]  ;;  %v357_v50 = vld.sshfl [vmem:[#allocation1] sm:$0xff pattern:$0x73625140] }
  0xc6   : > { %8890 = vmatpush.bf16.msra.mxu1 %v14521_v59  ;;  %v14582_v59 = vld [vmem:[%s15624_s9 + $0x638] sm:$0xff] }
  0xc7   : > { %8903 = vmatpush.bf16.msra.mxu2 %v14529_v60  ;;  %v14590_v60 = vld [vmem:[%s15624_s9 + $0x678] sm:$0xff] }
  0xc8   : > { %8916 = vmatpush.bf16.msra.mxu3 %v14537_v61  ;;  %v351_v61 = vld.sshfl [vmem:[#allocation1 + $0x20] sm:$0xff pattern:$0x73625140] }
  0xc9   : > { %8878 = vmatpush.bf16.msra.mxu0 %v14512_v62  ;;  %v353_v62 = vld.sshfl [vmem:[#allocation1 + $0x30] sm:$0xff pattern:$0x73625140] }
  0xca   : > { %8891 = vmatpush.bf16.msra.mxu1 %v14520_v63  ;;  %v352_v63 = vld.sshfl [vmem:[#allocation1 + $0x28] sm:$0xff pattern:$0x73625140] }
  0xcb   : > { %8904 = vmatpush.bf16.msra.mxu2 %v14528_v1  ;;  %v14598_v1 = vld [vmem:[%s15624_s9 + $0x6b8] sm:$0xff] }
  0xcc   : > { %8917 = vmatpush.bf16.msra.mxu3 %v14536_v2  ;;  %v14606_v2 = vld [vmem:[%s15624_s9 + $0x6f8] sm:$0xff] }
  0xcd   : > { %8879 = vmatpush.bf16.msra.mxu0 %v14511_v3  ;;  %v8673_v27 = vpop.f32.mrf.mxu0  ;;  %v624_v3 = vpack.c.bf16 %v351_v61, %v351_v61  ;;  %v14621_v61 = vld [vmem:[%s15624_s9 + $0x770] sm:$0xff] }
  0xce   : > { %8892 = vmatpush.bf16.msra.mxu1 %v14519_v4  ;;  %v8686_v30 = vpop.f32.mrf.mxu1  ;;  %v626_v4 = vpack.c.bf16 %v353_v62, %v353_v62  ;;  %v14629_v62 = vld [vmem:[%s15624_s9 + $0x7b0] sm:$0xff] }
  0xcf   : > { %8905 = vmatpush.bf16.msra.mxu2 %v14527_v5  ;;  %v8687_v33 = vadd.f32 %v8686_v30, %v8673_v27  ;;  %v625_v5 = vpack.c.bf16 %v352_v63, %v352_v63  ;;  %v14637_v63 = vld [vmem:[%s15624_s9 + $0x7f0] sm:$0xff] }
  0xd0   : > { %8918 = vmatpush.bf16.msra.mxu3 %v14535_v6  ;;  %8880 = vmatmul.bf16.vlgmr.msra.gmra.mxu0 %v620_v15  ;;  %v627_v6 = vpack.c.bf16 %v354_v0, %v354_v0  ;;  %v14612_v0 = vld [vmem:[%s15624_s9 + $0x728] sm:$0xff] }
  0xd1   : > { %8924 = vmatpush.bf16.msrb.mxu0 %v14550_v7  ;;  %8893 = vmatmul.bf16.vlgmr.msra.gmra.mxu1 %v621_v17  ;;  %v14581_v7 = vld [vmem:[%s15624_s9 + $0x630] sm:$0xff]  ;;  %v14587_v17 = vld [vmem:[%s15624_s9 + $0x660] sm:$0xff] }
  0xd2   : > { %8937 = vmatpush.bf16.msrb.mxu1 %v14558_v8  ;;  %8906 = vmatmul.bf16.vlgmr.msra.gmra.mxu2 %v622_v16  ;;  %v14589_v8 = vld [vmem:[%s15624_s9 + $0x670] sm:$0xff]  ;;  %v14579_v16 = vld [vmem:[%s15624_s9 + $0x620] sm:$0xff] }
  0xd3   : > { %8950 = vmatpush.bf16.msrb.mxu2 %v14566_v13  ;;  %8919 = vmatmul.bf16.vlgmr.msra.gmra.mxu3 %v623_v18  ;;  %v14596_v13 = vld [vmem:[%s15624_s9 + $0x6a8] sm:$0xff] }
  0xd4   : > { %8963 = vmatpush.bf16.msrb.mxu3 %v14574_v14  ;;  %v14604_v14 = vld [vmem:[%s15624_s9 + $0x6e8] sm:$0xff] }
  0xd5   : > { %8925 = vmatpush.bf16.msrb.mxu0 %v14549_v19  ;;  %v8699_v38 = vpop.f32.mrf.mxu2  ;;  %v8675_v41 = vpop.f32.mrf.mxu0 }
  0xd6   : > { %8938 = vmatpush.bf16.msrb.mxu1 %v14557_v20  ;;  %v8700_v39 = vadd.f32 %v8699_v38, %v8687_v33  ;;  %v8712_v40 = vpop.f32.mrf.mxu3  ;;  %v8688_v45 = vpop.f32.mrf.mxu1  ;;  %v14595_v20 = vld [vmem:[%s15624_s9 + $0x6a0] sm:$0xff]  ;;  %v14584_v38 = vld [vmem:[%s15624_s9 + $0x648] sm:$0xff] }
  0xd7   : > { %8951 = vmatpush.bf16.msrb.mxu2 %v14565_v21  ;;  %v14603_v21 = vld [vmem:[%s15624_s9 + $0x6e0] sm:$0xff]  ;;  %v14600_v41 = vld [vmem:[%s15624_s9 + $0x6c8] sm:$0xff] }
  0xd8   : > { %8964 = vmatpush.bf16.msrb.mxu3 %v14573_v22  ;;  %v15825_v44 = vadd.f32 %v8712_v40, %v8700_v39  ;;  %v269_v39 = vld [vmem:[%s15634_s12 + $0x38] sm:$0xff]  ;;  %v14583_v45 = vld [vmem:[%s15624_s9 + $0x640] sm:$0xff] }
  0xd9   : > { %8926 = vmatpush.bf16.msrb.mxu0 %v14548_v23  ;;  %v14578_v23 = vld [vmem:[%s15624_s9 + $0x618] sm:$0xff]  ;;  %v14592_v40 = vld [vmem:[%s15624_s9 + $0x688] sm:$0xff]  ;;  %356 = vst [vmem:[#allocation1 + $0x20] ss:$4 sm:$0xff] %v269_v39 }
  0xda   : > { %8939 = vmatpush.bf16.msrb.mxu1 %v14556_v24  ;;  %v14586_v24 = vld [vmem:[%s15624_s9 + $0x658] sm:$0xff] }
  0xdb   : > { %8952 = vmatpush.bf16.msrb.mxu2 %v14564_v25  ;;  %v14594_v25 = vld [vmem:[%s15624_s9 + $0x698] sm:$0xff] }
  0xdc   : > { %8965 = vmatpush.bf16.msrb.mxu3 %v14572_v26  ;;  %v14602_v26 = vld [vmem:[%s15624_s9 + $0x6d8] sm:$0xff] }
  0xdd   : > { %8927 = vmatpush.bf16.msrb.mxu0 %v14547_v28  ;;  %v8701_v53 = vpop.f32.mrf.mxu2 }
  0xde   : > { %8940 = vmatpush.bf16.msrb.mxu1 %v14555_v29  ;;  %v8714_v54 = vpop.f32.mrf.mxu3  ;;  %v360_v53 = vld.sshfl [vmem:[#allocation1 + $0x18] sm:$0xff pattern:$0x73625140] }
  0xdf   : > { %8953 = vmatpush.bf16.msrb.mxu2 %v14563_v31  ;;  %v14577_v31 = vld [vmem:[%s15624_s9 + $0x610] sm:$0xff]  ;;  %v14630_v54 = vld [vmem:[%s15624_s9 + $0x7b8] sm:$0xff] }
  0xe0   : > { %8966 = vmatpush.bf16.msrb.mxu3 %v14571_v32  ;;  %v14585_v32 = vld [vmem:[%s15624_s9 + $0x650] sm:$0xff] }
  0xe1   : > { %8928 = vmatpush.bf16.msrb.mxu0 %v14546_v34  ;;  %v361_v39 = vld.sshfl [vmem:[#allocation1 + $0x20] sm:$0xff pattern:$0x73625140] }
  0xe2   : > { %8941 = vmatpush.bf16.msrb.mxu1 %v14554_v35  ;;  %v14593_v35 = vld [vmem:[%s15624_s9 + $0x690] sm:$0xff] }
  0xe3   : > { %8954 = vmatpush.bf16.msrb.mxu2 %v14562_v36  ;;  %v14601_v36 = vld [vmem:[%s15624_s9 + $0x6d0] sm:$0xff] }
  0xe4   : > { %8967 = vmatpush.bf16.msrb.mxu3 %v14570_v37  ;;  %v14576_v37 = vld [vmem:[%s15624_s9 + $0x608] sm:$0xff] }
  0xe5   : > { %8929 = vmatpush.bf16.msrb.mxu0 %v14545_v42 }
  0xe6   : > { %8942 = vmatpush.bf16.msrb.mxu1 %v14553_v43 }
  0xe7   : > { %8955 = vmatpush.bf16.msrb.mxu2 %v14561_v46  ;;  %v14591_v46 = vld [vmem:[%s15624_s9 + $0x680] sm:$0xff] }
  0xe8   : > { %8968 = vmatpush.bf16.msrb.mxu3 %v14569_v47  ;;  %v14599_v47 = vld [vmem:[%s15624_s9 + $0x6c0] sm:$0xff] }
  0xe9   : > { %8930 = vmatpush.bf16.msrb.mxu0 %v14544_v48  ;;  %v14614_v48 = vld [vmem:[%s15624_s9 + $0x738] sm:$0xff] }
  0xea   : > { %8943 = vmatpush.bf16.msrb.mxu1 %v14552_v49  ;;  %v14622_v49 = vld [vmem:[%s15624_s9 + $0x778] sm:$0xff] }
  0xeb   : > { %8956 = vmatpush.bf16.msrb.mxu2 %v14560_v51  ;;  %v359_v51 = vld.sshfl [vmem:[#allocation1 + $0x10] sm:$0xff pattern:$0x73625140] }
  0xec   : > { %8969 = vmatpush.bf16.msrb.mxu3 %v14568_v52  ;;  %v358_v52 = vld.sshfl [vmem:[#allocation1 + $0x8] sm:$0xff pattern:$0x73625140] }
  0xed   : > { %8931 = vmatpush.bf16.msrb.mxu0 %v14543_v55  ;;  %v8725_v15 = vpop.f32.mrf.mxu0  ;;  %v14638_v55 = vld [vmem:[%s15624_s9 + $0x7f8] sm:$0xff] }
  0xee   : > { %8944 = vmatpush.bf16.msrb.mxu1 %v14551_v56  ;;  %v8726_v18 = vadd.f32 %v8725_v15, %v15825_v44  ;;  %v8738_v19 = vpop.f32.mrf.mxu1  ;;  %v14575_v44 = vld [vmem:[%s15624_s9 + $0x600] sm:$0xff]  ;;  %v628_v56 = vpack.c.bf16 %v357_v50, %v357_v50  ;;  %v14634_v15 = vld [vmem:[%s15624_s9 + $0x7d8] sm:$0xff]  ;;  %v14653_v50 = vld [vmem:[%s15624_s9 + $0x870] sm:$0xff] }
  0xef   : > { %8957 = vmatpush.bf16.msrb.mxu2 %v14559_v57  ;;  %v630_v57 = vpack.c.bf16 %v359_v51, %v359_v51  ;;  %v14661_v51 = vld [vmem:[%s15624_s9 + $0x8b0] sm:$0xff] }
  0xf0   : > { %8970 = vmatpush.bf16.msrb.mxu3 %v14567_v58  ;;  %8932 = vmatmul.bf16.vlgmr.msrb.gmra.mxu0 %v624_v3  ;;  %v8739_v22 = vadd.f32 %v8738_v19, %v8726_v18  ;;  %v629_v58 = vpack.c.bf16 %v358_v52, %v358_v52  ;;  %v14636_v3 = vld [vmem:[%s15624_s9 + $0x7e8] sm:$0xff]  ;;  %v14669_v52 = vld [vmem:[%s15624_s9 + $0x8f0] sm:$0xff] }
  0xf1   : > { %8976 = vmatpush.bf16.msra.mxu0 %v14582_v59  ;;  %8945 = vmatmul.bf16.vlgmr.msrb.gmra.mxu1 %v625_v5  ;;  %v631_v59 = vpack.c.bf16 %v360_v53, %v360_v53  ;;  %v14644_v53 = vld [vmem:[%s15624_s9 + $0x828] sm:$0xff] }
  0xf2   : > { %8989 = vmatpush.bf16.msra.mxu1 %v14590_v60  ;;  %8958 = vmatmul.bf16.vlgmr.msrb.gmra.mxu2 %v626_v4  ;;  %v14613_v60 = vld [vmem:[%s15624_s9 + $0x730] sm:$0xff] }
  0xf3   : > { %9002 = vmatpush.bf16.msra.mxu2 %v14598_v1  ;;  %8971 = vmatmul.bf16.vlgmr.msrb.gmra.mxu3 %v627_v6  ;;  %v14620_v1 = vld [vmem:[%s15624_s9 + $0x768] sm:$0xff]  ;;  %v14611_v6 = vld [vmem:[%s15624_s9 + $0x720] sm:$0xff] }
  0xf4   : > { %9015 = vmatpush.bf16.msra.mxu3 %v14606_v2  ;;  %v14628_v2 = vld [vmem:[%s15624_s9 + $0x7a8] sm:$0xff] }
  0xf5   : > { %8977 = vmatpush.bf16.msra.mxu0 %v14581_v7  ;;  %v8751_v27 = vpop.f32.mrf.mxu2  ;;  %v8727_v30 = vpop.f32.mrf.mxu0  ;;  %v14619_v7 = vld [vmem:[%s15624_s9 + $0x760] sm:$0xff] }
  0xf6   : > { %8990 = vmatpush.bf16.msra.mxu1 %v14589_v8  ;;  %v8752_v28 = vadd.f32 %v8751_v27, %v8739_v22  ;;  %v8764_v29 = vpop.f32.mrf.mxu3  ;;  %v8740_v34 = vpop.f32.mrf.mxu1  ;;  %v14617_v22 = vld [vmem:[%s15624_s9 + $0x750] sm:$0xff]  ;;  %v14616_v27 = vld [vmem:[%s15624_s9 + $0x748] sm:$0xff] }
  0xf7   : > { %9003 = vmatpush.bf16.msra.mxu2 %v14597_v9  ;;  %v14627_v9 = vld [vmem:[%s15624_s9 + $0x7a0] sm:$0xff]  ;;  %v14632_v30 = vld [vmem:[%s15624_s9 + $0x7c8] sm:$0xff] }
  0xf8   : > { %9016 = vmatpush.bf16.msra.mxu3 %v14605_v10  ;;  %v15861_v33 = vadd.f32 %v8764_v29, %v8752_v28  ;;  %v14635_v10 = vld [vmem:[%s15624_s9 + $0x7e0] sm:$0xff]  ;;  %v270_v28 = vld [vmem:[%s15634_s12 + $0x40] sm:$0xff]  ;;  %v14624_v29 = vld [vmem:[%s15624_s9 + $0x788] sm:$0xff] }
  0xf9   : > { %8978 = vmatpush.bf16.msra.mxu0 %v14580_v11  ;;  %365 = vst [vmem:[#allocation1] ss:$4 sm:$0xff] %v270_v28  ;;  %v14615_v34 = vld [vmem:[%s15624_s9 + $0x740] sm:$0xff] }
  0xfa   : > { %8991 = vmatpush.bf16.msra.mxu1 %v14588_v12  ;;  %v14610_v12 = vld [vmem:[%s15624_s9 + $0x718] sm:$0xff] }
  0xfb   : > { %9004 = vmatpush.bf16.msra.mxu2 %v14596_v13  ;;  %v14618_v13 = vld [vmem:[%s15624_s9 + $0x758] sm:$0xff] }
  0xfc   : > { %9017 = vmatpush.bf16.msra.mxu3 %v14604_v14  ;;  %v14626_v14 = vld [vmem:[%s15624_s9 + $0x798] sm:$0xff] }
  0xfd   : > { %8979 = vmatpush.bf16.msra.mxu0 %v14579_v16  ;;  %v8753_v42 = vpop.f32.mrf.mxu2 }
  0xfe   : > { %8992 = vmatpush.bf16.msra.mxu1 %v14587_v17  ;;  %v8766_v43 = vpop.f32.mrf.mxu3  ;;  %v364_v42 = vld.sshfl [vmem:[#allocation1 + $0x38] sm:$0xff pattern:$0x73625140] }
  0xff   : > { %9005 = vmatpush.bf16.msra.mxu2 %v14595_v20  ;;  %v14662_v43 = vld [vmem:[%s15624_s9 + $0x8b8] sm:$0xff] }
 0x100   : > { %9018 = vmatpush.bf16.msra.mxu3 %v14603_v21  ;;  %v14609_v21 = vld [vmem:[%s15624_s9 + $0x710] sm:$0xff] }
 0x101   : > { %8980 = vmatpush.bf16.msra.mxu0 %v14578_v23  ;;  %v367_v28 = vld.sshfl [vmem:[#allocation1] sm:$0xff pattern:$0x73625140] }
 0x102   : > { %8993 = vmatpush.bf16.msra.mxu1 %v14586_v24  ;;  %v14625_v24 = vld [vmem:[%s15624_s9 + $0x790] sm:$0xff] }
 0x103   : > { %9006 = vmatpush.bf16.msra.mxu2 %v14594_v25  ;;  %v14633_v25 = vld [vmem:[%s15624_s9 + $0x7d0] sm:$0xff] }
 0x104   : > { %9019 = vmatpush.bf16.msra.mxu3 %v14602_v26  ;;  %v14608_v26 = vld [vmem:[%s15624_s9 + $0x708] sm:$0xff] }
 0x105   : > { %8981 = vmatpush.bf16.msra.mxu0 %v14577_v31 }
 0x106   : > { %8994 = vmatpush.bf16.msra.mxu1 %v14585_v32 }
 0x107   : > { %9007 = vmatpush.bf16.msra.mxu2 %v14593_v35  ;;  %v14623_v35 = vld [vmem:[%s15624_s9 + $0x780] sm:$0xff] }
 0x108   : > { %9020 = vmatpush.bf16.msra.mxu3 %v14601_v36  ;;  %v14631_v36 = vld [vmem:[%s15624_s9 + $0x7c0] sm:$0xff] }
 0x109   : > { %8982 = vmatpush.bf16.msra.mxu0 %v14576_v37  ;;  %v14646_v37 = vld [vmem:[%s15624_s9 + $0x838] sm:$0xff] }
 0x10a   : > { %8995 = vmatpush.bf16.msra.mxu1 %v14584_v38  ;;  %v14654_v38 = vld [vmem:[%s15624_s9 + $0x878] sm:$0xff] }
 0x10b   : > { %9008 = vmatpush.bf16.msra.mxu2 %v14592_v40  ;;  %v363_v40 = vld.sshfl [vmem:[#allocation1 + $0x30] sm:$0xff pattern:$0x73625140] }
 0x10c   : > { %9021 = vmatpush.bf16.msra.mxu3 %v14600_v41  ;;  %v362_v41 = vld.sshfl [vmem:[#allocation1 + $0x28] sm:$0xff pattern:$0x73625140] }
 0x10d   : > { %8983 = vmatpush.bf16.msra.mxu0 %v14575_v44  ;;  %v8777_v4 = vpop.f32.mrf.mxu0  ;;  %v14670_v44 = vld [vmem:[%s15624_s9 + $0x8f8] sm:$0xff] }
 0x10e   : > { %8996 = vmatpush.bf16.msra.mxu1 %v14583_v45  ;;  %v8778_v5 = vadd.f32 %v8777_v4, %v15861_v33  ;;  %v8790_v8 = vpop.f32.mrf.mxu1  ;;  %v14607_v33 = vld [vmem:[%s15624_s9 + $0x700] sm:$0xff]  ;;  %v632_v45 = vpack.c.bf16 %v361_v39, %v361_v39  ;;  %v14666_v4 = vld [vmem:[%s15624_s9 + $0x8d8] sm:$0xff]  ;;  %v14685_v39 = vld [vmem:[%s15624_s9 + $0x970] sm:$0xff] }
 0x10f   : > { %9009 = vmatpush.bf16.msra.mxu2 %v14591_v46  ;;  %v634_v46 = vpack.c.bf16 %v363_v40, %v363_v40  ;;  %v14693_v40 = vld [vmem:[%s15624_s9 + $0x9b0] sm:$0xff] }
 0x110   : > { %9022 = vmatpush.bf16.msra.mxu3 %v14599_v47  ;;  %8984 = vmatmul.bf16.vlgmr.msra.gmra.mxu0 %v628_v56  ;;  %v8791_v11 = vadd.f32 %v8790_v8, %v8778_v5  ;;  %v633_v47 = vpack.c.bf16 %v362_v41, %v362_v41  ;;  %v14668_v56 = vld [vmem:[%s15624_s9 + $0x8e8] sm:$0xff]  ;;  %v14701_v41 = vld [vmem:[%s15624_s9 + $0x9f0] sm:$0xff] }
 0x111   : > { %9028 = vmatpush.bf16.msrb.mxu0 %v14614_v48  ;;  %8997 = vmatmul.bf16.vlgmr.msra.gmra.mxu1 %v629_v58  ;;  %v635_v48 = vpack.c.bf16 %v364_v42, %v364_v42  ;;  %v14676_v42 = vld [vmem:[%s15624_s9 + $0x928] sm:$0xff] }
 0x112   : > { %9041 = vmatpush.bf16.msrb.mxu1 %v14622_v49  ;;  %9010 = vmatmul.bf16.vlgmr.msra.gmra.mxu2 %v630_v57  ;;  %v14645_v49 = vld [vmem:[%s15624_s9 + $0x830] sm:$0xff] }
 0x113   : > { %9054 = vmatpush.bf16.msrb.mxu2 %v14630_v54  ;;  %9023 = vmatmul.bf16.vlgmr.msra.gmra.mxu3 %v631_v59  ;;  %v14652_v54 = vld [vmem:[%s15624_s9 + $0x868] sm:$0xff]  ;;  %v14643_v59 = vld [vmem:[%s15624_s9 + $0x820] sm:$0xff] }
 0x114   : > { %9067 = vmatpush.bf16.msrb.mxu3 %v14638_v55  ;;  %v14660_v55 = vld [vmem:[%s15624_s9 + $0x8a8] sm:$0xff] }
 0x115   : > { %9029 = vmatpush.bf16.msrb.mxu0 %v14613_v60  ;;  %v8803_v16 = vpop.f32.mrf.mxu2  ;;  %v8779_v19 = vpop.f32.mrf.mxu0  ;;  %v14651_v60 = vld [vmem:[%s15624_s9 + $0x860] sm:$0xff] }
 0x116   : > { %9042 = vmatpush.bf16.msrb.mxu1 %v14621_v61  ;;  %v8804_v17 = vadd.f32 %v8803_v16, %v8791_v11  ;;  %v8816_v18 = vpop.f32.mrf.mxu3  ;;  %v8792_v23 = vpop.f32.mrf.mxu1  ;;  %v14649_v11 = vld [vmem:[%s15624_s9 + $0x850] sm:$0xff]  ;;  %v14648_v16 = vld [vmem:[%s15624_s9 + $0x848] sm:$0xff] }
 0x117   : > { %9055 = vmatpush.bf16.msrb.mxu2 %v14629_v62  ;;  %v14659_v62 = vld [vmem:[%s15624_s9 + $0x8a0] sm:$0xff]  ;;  %v14664_v19 = vld [vmem:[%s15624_s9 + $0x8c8] sm:$0xff] }
 0x118   : > { %9068 = vmatpush.bf16.msrb.mxu3 %v14637_v63  ;;  %v15895_v20 = vadd.f32 %v8816_v18, %v8804_v17  ;;  %v14667_v63 = vld [vmem:[%s15624_s9 + $0x8e0] sm:$0xff]  ;;  %v14656_v18 = vld [vmem:[%s15624_s9 + $0x888] sm:$0xff] }
 0x119   : > { %9030 = vmatpush.bf16.msrb.mxu0 %v14612_v0  ;;  %v271_v17 = vld [vmem:[%s15634_s12 + $0x48] sm:$0xff] }
 0x11a   : > { %9043 = vmatpush.bf16.msrb.mxu1 %v14620_v1  ;;  %v14642_v1 = vld [vmem:[%s15624_s9 + $0x818] sm:$0xff]  ;;  %366 = vst [vmem:[#allocation1 + $0x20] ss:$4 sm:$0xff] %v271_v17  ;;  %v14647_v23 = vld [vmem:[%s15624_s9 + $0x840] sm:$0xff] }
 0x11b   : > { %9056 = vmatpush.bf16.msrb.mxu2 %v14628_v2  ;;  %v14650_v2 = vld [vmem:[%s15624_s9 + $0x858] sm:$0xff] }
 0x11c   : > { %9069 = vmatpush.bf16.msrb.mxu3 %v14636_v3  ;;  %v14658_v3 = vld [vmem:[%s15624_s9 + $0x898] sm:$0xff] }
 0x11d   : > { %9031 = vmatpush.bf16.msrb.mxu0 %v14611_v6  ;;  %v8805_v31 = vpop.f32.mrf.mxu2 }
 0x11e   : > { %9044 = vmatpush.bf16.msrb.mxu1 %v14619_v7  ;;  %v8818_v32 = vpop.f32.mrf.mxu3  ;;  %v370_v31 = vld.sshfl [vmem:[#allocation1 + $0x18] sm:$0xff pattern:$0x73625140] }
 0x11f   : > { %9057 = vmatpush.bf16.msrb.mxu2 %v14627_v9  ;;  %v14694_v32 = vld [vmem:[%s15624_s9 + $0x9b8] sm:$0xff] }
 0x120   : > { %9070 = vmatpush.bf16.msrb.mxu3 %v14635_v10  ;;  %v14641_v10 = vld [vmem:[%s15624_s9 + $0x810] sm:$0xff] }
 0x121   : > { %9032 = vmatpush.bf16.msrb.mxu0 %v14610_v12  ;;  %v371_v17 = vld.sshfl [vmem:[#allocation1 + $0x20] sm:$0xff pattern:$0x73625140] }
 0x122   : > { %9045 = vmatpush.bf16.msrb.mxu1 %v14618_v13  ;;  %v14657_v13 = vld [vmem:[%s15624_s9 + $0x890] sm:$0xff] }
 0x123   : > { %9058 = vmatpush.bf16.msrb.mxu2 %v14626_v14  ;;  %v14665_v14 = vld [vmem:[%s15624_s9 + $0x8d0] sm:$0xff] }
 0x124   : > { %9071 = vmatpush.bf16.msrb.mxu3 %v14634_v15  ;;  %v14640_v15 = vld [vmem:[%s15624_s9 + $0x808] sm:$0xff] }
 0x125   : > { %9033 = vmatpush.bf16.msrb.mxu0 %v14609_v21 }
 0x126   : > { %9046 = vmatpush.bf16.msrb.mxu1 %v14617_v22  ;;  %v14639_v22 = vld [vmem:[%s15624_s9 + $0x800] sm:$0xff] }
 0x127   : > { %9059 = vmatpush.bf16.msrb.mxu2 %v14625_v24  ;;  %v14655_v24 = vld [vmem:[%s15624_s9 + $0x880] sm:$0xff] }
 0x128   : > { %9072 = vmatpush.bf16.msrb.mxu3 %v14633_v25  ;;  %v14663_v25 = vld [vmem:[%s15624_s9 + $0x8c0] sm:$0xff] }
 0x129   : > { %9034 = vmatpush.bf16.msrb.mxu0 %v14608_v26  ;;  %v14678_v26 = vld [vmem:[%s15624_s9 + $0x938] sm:$0xff] }
 0x12a   : > { %9047 = vmatpush.bf16.msrb.mxu1 %v14616_v27  ;;  %v14686_v27 = vld [vmem:[%s15624_s9 + $0x978] sm:$0xff] }
 0x12b   : > { %9060 = vmatpush.bf16.msrb.mxu2 %v14624_v29  ;;  %v369_v29 = vld.sshfl [vmem:[#allocation1 + $0x10] sm:$0xff pattern:$0x73625140] }
 0x12c   : > { %9073 = vmatpush.bf16.msrb.mxu3 %v14632_v30  ;;  %v368_v30 = vld.sshfl [vmem:[#allocation1 + $0x8] sm:$0xff pattern:$0x73625140] }
 0x12d   : > { %9035 = vmatpush.bf16.msrb.mxu0 %v14607_v33  ;;  %v8829_v57 = vpop.f32.mrf.mxu0  ;;  %v14702_v33 = vld [vmem:[%s15624_s9 + $0x9f8] sm:$0xff] }
 0x12e   : > { %9048 = vmatpush.bf16.msrb.mxu1 %v14615_v34  ;;  %v8830_v58 = vadd.f32 %v8829_v57, %v15895_v20  ;;  %v8842_v61 = vpop.f32.mrf.mxu1  ;;  %v636_v34 = vpack.c.bf16 %v367_v28, %v367_v28  ;;  %v14698_v57 = vld [vmem:[%s15624_s9 + $0x9d8] sm:$0xff]  ;;  %v14717_v28 = vld [vmem:[%s15624_s9 + $0xa70] sm:$0xff] }
 0x12f   : > { %9061 = vmatpush.bf16.msrb.mxu2 %v14623_v35  ;;  %v638_v35 = vpack.c.bf16 %v369_v29, %v369_v29  ;;  %v14725_v29 = vld [vmem:[%s15624_s9 + $0xab0] sm:$0xff] }
 0x130   : > { %9074 = vmatpush.bf16.msrb.mxu3 %v14631_v36  ;;  %9036 = vmatmul.bf16.vlgmr.msrb.gmra.mxu0 %v632_v45  ;;  %v8843_v0 = vadd.f32 %v8842_v61, %v8830_v58  ;;  %v637_v36 = vpack.c.bf16 %v368_v30, %v368_v30  ;;  %v14700_v45 = vld [vmem:[%s15624_s9 + $0x9e8] sm:$0xff]  ;;  %v14733_v30 = vld [vmem:[%s15624_s9 + $0xaf0] sm:$0xff] }
 0x131   : > { %9080 = vmatpush.bf16.msra.mxu0 %v14646_v37  ;;  %9049 = vmatmul.bf16.vlgmr.msrb.gmra.mxu1 %v633_v47  ;;  %v639_v37 = vpack.c.bf16 %v370_v31, %v370_v31  ;;  %v14708_v31 = vld [vmem:[%s15624_s9 + $0xa28] sm:$0xff] }
 0x132   : > { %9093 = vmatpush.bf16.msra.mxu1 %v14654_v38  ;;  %9062 = vmatmul.bf16.vlgmr.msrb.gmra.mxu2 %v634_v46  ;;  %v14677_v38 = vld [vmem:[%s15624_s9 + $0x930] sm:$0xff] }
 0x133   : > { %9106 = vmatpush.bf16.msra.mxu2 %v14662_v43  ;;  %9075 = vmatmul.bf16.vlgmr.msrb.gmra.mxu3 %v635_v48  ;;  %v14684_v43 = vld [vmem:[%s15624_s9 + $0x968] sm:$0xff]  ;;  %v14675_v48 = vld [vmem:[%s15624_s9 + $0x920] sm:$0xff] }
 0x134   : > { %9119 = vmatpush.bf16.msra.mxu3 %v14670_v44  ;;  %v14692_v44 = vld [vmem:[%s15624_s9 + $0x9a8] sm:$0xff] }
 0x135   : > { %9081 = vmatpush.bf16.msra.mxu0 %v14645_v49  ;;  %v8855_v5 = vpop.f32.mrf.mxu2  ;;  %v8831_v8 = vpop.f32.mrf.mxu0  ;;  %v14683_v49 = vld [vmem:[%s15624_s9 + $0x960] sm:$0xff] }
 0x136   : > { %9094 = vmatpush.bf16.msra.mxu1 %v14653_v50  ;;  %v8856_v6 = vadd.f32 %v8855_v5, %v8843_v0  ;;  %v8868_v7 = vpop.f32.mrf.mxu3  ;;  %v8844_v12 = vpop.f32.mrf.mxu1  ;;  %v14681_v0 = vld [vmem:[%s15624_s9 + $0x950] sm:$0xff]  ;;  %v14680_v5 = vld [vmem:[%s15624_s9 + $0x948] sm:$0xff] }
 0x137   : > { %9107 = vmatpush.bf16.msra.mxu2 %v14661_v51  ;;  %v14691_v51 = vld [vmem:[%s15624_s9 + $0x9a0] sm:$0xff]  ;;  %v14696_v8 = vld [vmem:[%s15624_s9 + $0x9c8] sm:$0xff] }
 0x138   : > { %9120 = vmatpush.bf16.msra.mxu3 %v14669_v52  ;;  %v15931_v9 = vadd.f32 %v8868_v7, %v8856_v6  ;;  %v14699_v52 = vld [vmem:[%s15624_s9 + $0x9e0] sm:$0xff]  ;;  %v14688_v7 = vld [vmem:[%s15624_s9 + $0x988] sm:$0xff] }
 0x139   : > { %9082 = vmatpush.bf16.msra.mxu0 %v14644_v53  ;;  %v272_v6 = vld [vmem:[%s15634_s12 + $0x50] sm:$0xff] }
 0x13a   : > { %9095 = vmatpush.bf16.msra.mxu1 %v14652_v54  ;;  %v14674_v54 = vld [vmem:[%s15624_s9 + $0x918] sm:$0xff]  ;;  %375 = vst [vmem:[#allocation1] ss:$4 sm:$0xff] %v272_v6  ;;  %v14679_v12 = vld [vmem:[%s15624_s9 + $0x940] sm:$0xff] }
 0x13b   : > { %9108 = vmatpush.bf16.msra.mxu2 %v14660_v55  ;;  %v14682_v55 = vld [vmem:[%s15624_s9 + $0x958] sm:$0xff] }
 0x13c   : > { %9121 = vmatpush.bf16.msra.mxu3 %v14668_v56  ;;  %v14690_v56 = vld [vmem:[%s15624_s9 + $0x998] sm:$0xff] }
 0x13d   : > { %9083 = vmatpush.bf16.msra.mxu0 %v14643_v59  ;;  %v8857_v20 = vpop.f32.mrf.mxu2 }
 0x13e   : > { %9096 = vmatpush.bf16.msra.mxu1 %v14651_v60  ;;  %v8870_v21 = vpop.f32.mrf.mxu3  ;;  %v374_v20 = vld.sshfl [vmem:[#allocation1 + $0x38] sm:$0xff pattern:$0x73625140] }
 0x13f   : > { %9109 = vmatpush.bf16.msra.mxu2 %v14659_v62  ;;  %v14726_v21 = vld [vmem:[%s15624_s9 + $0xab8] sm:$0xff] }
 0x140   : > { %9122 = vmatpush.bf16.msra.mxu3 %v14667_v63  ;;  %v14673_v63 = vld [vmem:[%s15624_s9 + $0x910] sm:$0xff] }
 0x141   : > { %9084 = vmatpush.bf16.msra.mxu0 %v14642_v1  ;;  %v377_v6 = vld.sshfl [vmem:[#allocation1] sm:$0xff pattern:$0x73625140] }
 0x142   : > { %9097 = vmatpush.bf16.msra.mxu1 %v14650_v2  ;;  %v14689_v2 = vld [vmem:[%s15624_s9 + $0x990] sm:$0xff] }
 0x143   : > { %9110 = vmatpush.bf16.msra.mxu2 %v14658_v3  ;;  %v14697_v3 = vld [vmem:[%s15624_s9 + $0x9d0] sm:$0xff] }
 0x144   : > { %9123 = vmatpush.bf16.msra.mxu3 %v14666_v4  ;;  %v14672_v4 = vld [vmem:[%s15624_s9 + $0x908] sm:$0xff] }
 0x145   : > { %9085 = vmatpush.bf16.msra.mxu0 %v14641_v10 }
 0x146   : > { %9098 = vmatpush.bf16.msra.mxu1 %v14649_v11  ;;  %v14671_v11 = vld [vmem:[%s15624_s9 + $0x900] sm:$0xff] }
 0x147   : > { %9111 = vmatpush.bf16.msra.mxu2 %v14657_v13  ;;  %v14687_v13 = vld [vmem:[%s15624_s9 + $0x980] sm:$0xff] }
 0x148   : > { %9124 = vmatpush.bf16.msra.mxu3 %v14665_v14  ;;  %v14695_v14 = vld [vmem:[%s15624_s9 + $0x9c0] sm:$0xff] }
 0x149   : > { %9086 = vmatpush.bf16.msra.mxu0 %v14640_v15  ;;  %v14710_v15 = vld [vmem:[%s15624_s9 + $0xa38] sm:$0xff] }
 0x14a   : > { %9099 = vmatpush.bf16.msra.mxu1 %v14648_v16  ;;  %v14718_v16 = vld [vmem:[%s15624_s9 + $0xa78] sm:$0xff] }
 0x14b   : > { %9112 = vmatpush.bf16.msra.mxu2 %v14656_v18  ;;  %v373_v18 = vld.sshfl [vmem:[#allocation1 + $0x30] sm:$0xff pattern:$0x73625140] }
 0x14c   : > { %9125 = vmatpush.bf16.msra.mxu3 %v14664_v19  ;;  %v372_v19 = vld.sshfl [vmem:[#allocation1 + $0x28] sm:$0xff pattern:$0x73625140] }
 0x14d   : > { %9087 = vmatpush.bf16.msra.mxu0 %v14639_v22  ;;  %v8881_v46 = vpop.f32.mrf.mxu0  ;;  %v14734_v22 = vld [vmem:[%s15624_s9 + $0xaf8] sm:$0xff] }
 0x14e   : > { %9100 = vmatpush.bf16.msra.mxu1 %v14647_v23  ;;  %v8882_v47 = vadd.f32 %v8881_v46, %v15931_v9  ;;  %v8894_v50 = vpop.f32.mrf.mxu1  ;;  %v640_v23 = vpack.c.bf16 %v371_v17, %v371_v17  ;;  %v14730_v46 = vld [vmem:[%s15624_s9 + $0xad8] sm:$0xff]  ;;  %v14749_v17 = vld [vmem:[%s15624_s9 + $0xb70] sm:$0xff] }
 0x14f   : > { %9113 = vmatpush.bf16.msra.mxu2 %v14655_v24  ;;  %v642_v24 = vpack.c.bf16 %v373_v18, %v373_v18  ;;  %v14757_v18 = vld [vmem:[%s15624_s9 + $0xbb0] sm:$0xff] }
 0x150   : > { %9126 = vmatpush.bf16.msra.mxu3 %v14663_v25  ;;  %9088 = vmatmul.bf16.vlgmr.msra.gmra.mxu0 %v636_v34  ;;  %v8895_v53 = vadd.f32 %v8894_v50, %v8882_v47  ;;  %v641_v25 = vpack.c.bf16 %v372_v19, %v372_v19  ;;  %v14732_v34 = vld [vmem:[%s15624_s9 + $0xae8] sm:$0xff]  ;;  %v14765_v19 = vld [vmem:[%s15624_s9 + $0xbf0] sm:$0xff] }
 0x151   : > { %9132 = vmatpush.bf16.msrb.mxu0 %v14678_v26  ;;  %9101 = vmatmul.bf16.vlgmr.msra.gmra.mxu1 %v637_v36  ;;  %v643_v26 = vpack.c.bf16 %v374_v20, %v374_v20  ;;  %v14740_v20 = vld [vmem:[%s15624_s9 + $0xb28] sm:$0xff] }
 0x152   : > { %9145 = vmatpush.bf16.msrb.mxu1 %v14686_v27  ;;  %9114 = vmatmul.bf16.vlgmr.msra.gmra.mxu2 %v638_v35  ;;  %v14709_v27 = vld [vmem:[%s15624_s9 + $0xa30] sm:$0xff] }
 0x153   : > { %9158 = vmatpush.bf16.msrb.mxu2 %v14694_v32  ;;  %9127 = vmatmul.bf16.vlgmr.msra.gmra.mxu3 %v639_v37  ;;  %v14716_v32 = vld [vmem:[%s15624_s9 + $0xa68] sm:$0xff]  ;;  %v14707_v37 = vld [vmem:[%s15624_s9 + $0xa20] sm:$0xff] }
 0x154   : > { %9171 = vmatpush.bf16.msrb.mxu3 %v14702_v33  ;;  %v14724_v33 = vld [vmem:[%s15624_s9 + $0xaa8] sm:$0xff] }
 0x155   : > { %9133 = vmatpush.bf16.msrb.mxu0 %v14677_v38  ;;  %v8907_v58 = vpop.f32.mrf.mxu2  ;;  %v8883_v61 = vpop.f32.mrf.mxu0  ;;  %v14715_v38 = vld [vmem:[%s15624_s9 + $0xa60] sm:$0xff] }
 0x156   : > { %9146 = vmatpush.bf16.msrb.mxu1 %v14685_v39  ;;  %v8908_v59 = vadd.f32 %v8907_v58, %v8895_v53  ;;  %v8920_v60 = vpop.f32.mrf.mxu3  ;;  %v8896_v1 = vpop.f32.mrf.mxu1  ;;  %v14713_v53 = vld [vmem:[%s15624_s9 + $0xa50] sm:$0xff]  ;;  %v14712_v58 = vld [vmem:[%s15624_s9 + $0xa48] sm:$0xff] }
 0x157   : > { %9159 = vmatpush.bf16.msrb.mxu2 %v14693_v40  ;;  %v14723_v40 = vld [vmem:[%s15624_s9 + $0xaa0] sm:$0xff]  ;;  %v14728_v61 = vld [vmem:[%s15624_s9 + $0xac8] sm:$0xff] }
 0x158   : > { %9172 = vmatpush.bf16.msrb.mxu3 %v14701_v41  ;;  %v15967_v62 = vadd.f32 %v8920_v60, %v8908_v59  ;;  %v14731_v41 = vld [vmem:[%s15624_s9 + $0xae0] sm:$0xff]  ;;  %v273_v59 = vld [vmem:[%s15634_s12 + $0x58] sm:$0xff] }
 0x159   : > { %9134 = vmatpush.bf16.msrb.mxu0 %v14676_v42  ;;  %v14720_v60 = vld [vmem:[%s15624_s9 + $0xa88] sm:$0xff]  ;;  %376 = vst [vmem:[#allocation1 + $0x20] ss:$4 sm:$0xff] %v273_v59  ;;  %v14711_v1 = vld [vmem:[%s15624_s9 + $0xa40] sm:$0xff] }
 0x15a   : > { %9147 = vmatpush.bf16.msrb.mxu1 %v14684_v43  ;;  %v14706_v43 = vld [vmem:[%s15624_s9 + $0xa18] sm:$0xff] }
 0x15b   : > { %9160 = vmatpush.bf16.msrb.mxu2 %v14692_v44  ;;  %v14714_v44 = vld [vmem:[%s15624_s9 + $0xa58] sm:$0xff] }
 0x15c   : > { %9173 = vmatpush.bf16.msrb.mxu3 %v14700_v45  ;;  %v14722_v45 = vld [vmem:[%s15624_s9 + $0xa98] sm:$0xff] }
 0x15d   : > { %9135 = vmatpush.bf16.msrb.mxu0 %v14675_v48  ;;  %v8909_v9 = vpop.f32.mrf.mxu2 }
 0x15e   : > { %9148 = vmatpush.bf16.msrb.mxu1 %v14683_v49  ;;  %v8922_v10 = vpop.f32.mrf.mxu3  ;;  %v380_v9 = vld.sshfl [vmem:[#allocation1 + $0x18] sm:$0xff pattern:$0x73625140] }
 0x15f   : > { %9161 = vmatpush.bf16.msrb.mxu2 %v14691_v51  ;;  %v14758_v10 = vld [vmem:[%s15624_s9 + $0xbb8] sm:$0xff] }
 0x160   : > { %9174 = vmatpush.bf16.msrb.mxu3 %v14699_v52  ;;  %v14705_v52 = vld [vmem:[%s15624_s9 + $0xa10] sm:$0xff] }
 0x161   : > { %9136 = vmatpush.bf16.msrb.mxu0 %v14674_v54  ;;  %v381_v59 = vld.sshfl [vmem:[#allocation1 + $0x20] sm:$0xff pattern:$0x73625140] }
 0x162   : > { %9149 = vmatpush.bf16.msrb.mxu1 %v14682_v55  ;;  %v14721_v55 = vld [vmem:[%s15624_s9 + $0xa90] sm:$0xff] }
 0x163   : > { %9162 = vmatpush.bf16.msrb.mxu2 %v14690_v56  ;;  %v14729_v56 = vld [vmem:[%s15624_s9 + $0xad0] sm:$0xff] }
 0x164   : > { %9175 = vmatpush.bf16.msrb.mxu3 %v14698_v57  ;;  %v14704_v57 = vld [vmem:[%s15624_s9 + $0xa08] sm:$0xff] }
 0x165   : > { %9137 = vmatpush.bf16.msrb.mxu0 %v14673_v63 }
 0x166   : > { %9150 = vmatpush.bf16.msrb.mxu1 %v14681_v0  ;;  %v14703_v0 = vld [vmem:[%s15624_s9 + $0xa00] sm:$0xff] }
 0x167   : > { %9163 = vmatpush.bf16.msrb.mxu2 %v14689_v2  ;;  %v14719_v2 = vld [vmem:[%s15624_s9 + $0xa80] sm:$0xff] }
 0x168   : > { %9176 = vmatpush.bf16.msrb.mxu3 %v14697_v3  ;;  %v14727_v3 = vld [vmem:[%s15624_s9 + $0xac0] sm:$0xff] }
 0x169   : > { %9138 = vmatpush.bf16.msrb.mxu0 %v14672_v4  ;;  %v14742_v4 = vld [vmem:[%s15624_s9 + $0xb38] sm:$0xff] }
 0x16a   : > { %9151 = vmatpush.bf16.msrb.mxu1 %v14680_v5  ;;  %v14750_v5 = vld [vmem:[%s15624_s9 + $0xb78] sm:$0xff] }
 0x16b   : > { %9164 = vmatpush.bf16.msrb.mxu2 %v14688_v7  ;;  %v379_v7 = vld.sshfl [vmem:[#allocation1 + $0x10] sm:$0xff pattern:$0x73625140] }
 0x16c   : > { %9177 = vmatpush.bf16.msrb.mxu3 %v14696_v8  ;;  %v378_v8 = vld.sshfl [vmem:[#allocation1 + $0x8] sm:$0xff pattern:$0x73625140] }
 0x16d   : > { %9139 = vmatpush.bf16.msrb.mxu0 %v14671_v11  ;;  %v8933_v35 = vpop.f32.mrf.mxu0  ;;  %v14766_v11 = vld [vmem:[%s15624_s9 + $0xbf8] sm:$0xff] }
 0x16e   : > { %9152 = vmatpush.bf16.msrb.mxu1 %v14679_v12  ;;  %v8934_v36 = vadd.f32 %v8933_v35, %v15967_v62  ;;  %v8946_v39 = vpop.f32.mrf.mxu1  ;;  %v644_v12 = vpack.c.bf16 %v377_v6, %v377_v6  ;;  %v14762_v35 = vld [vmem:[%s15624_s9 + $0xbd8] sm:$0xff]  ;;  %v14781_v6 = vld [vmem:[%s15624_s9 + $0xc70] sm:$0xff] }
 0x16f   : > { %9165 = vmatpush.bf16.msrb.mxu2 %v14687_v13  ;;  %v646_v13 = vpack.c.bf16 %v379_v7, %v379_v7  ;;  %v14789_v7 = vld [vmem:[%s15624_s9 + $0xcb0] sm:$0xff] }
 0x170   : > { %9178 = vmatpush.bf16.msrb.mxu3 %v14695_v14  ;;  %9140 = vmatmul.bf16.vlgmr.msrb.gmra.mxu0 %v640_v23  ;;  %v8947_v42 = vadd.f32 %v8946_v39, %v8934_v36  ;;  %v645_v14 = vpack.c.bf16 %v378_v8, %v378_v8  ;;  %v14764_v23 = vld [vmem:[%s15624_s9 + $0xbe8] sm:$0xff]  ;;  %v14797_v8 = vld [vmem:[%s15624_s9 + $0xcf0] sm:$0xff] }
 0x171   : > { %9184 = vmatpush.bf16.msra.mxu0 %v14710_v15  ;;  %9153 = vmatmul.bf16.vlgmr.msrb.gmra.mxu1 %v641_v25  ;;  %v647_v15 = vpack.c.bf16 %v380_v9, %v380_v9  ;;  %v14772_v9 = vld [vmem:[%s15624_s9 + $0xc28] sm:$0xff] }
 0x172   : > { %9197 = vmatpush.bf16.msra.mxu1 %v14718_v16  ;;  %9166 = vmatmul.bf16.vlgmr.msrb.gmra.mxu2 %v642_v24  ;;  %v14741_v16 = vld [vmem:[%s15624_s9 + $0xb30] sm:$0xff] }
 0x173   : > { %9210 = vmatpush.bf16.msra.mxu2 %v14726_v21  ;;  %9179 = vmatmul.bf16.vlgmr.msrb.gmra.mxu3 %v643_v26  ;;  %v14748_v21 = vld [vmem:[%s15624_s9 + $0xb68] sm:$0xff]  ;;  %v14739_v26 = vld [vmem:[%s15624_s9 + $0xb20] sm:$0xff] }
 0x174   : > { %9223 = vmatpush.bf16.msra.mxu3 %v14734_v22  ;;  %v14756_v22 = vld [vmem:[%s15624_s9 + $0xba8] sm:$0xff] }
 0x175   : > { %9185 = vmatpush.bf16.msra.mxu0 %v14709_v27  ;;  %v8959_v47 = vpop.f32.mrf.mxu2  ;;  %v8935_v50 = vpop.f32.mrf.mxu0  ;;  %v14747_v27 = vld [vmem:[%s15624_s9 + $0xb60] sm:$0xff] }
 0x176   : > { %9198 = vmatpush.bf16.msra.mxu1 %v14717_v28  ;;  %v8960_v48 = vadd.f32 %v8959_v47, %v8947_v42  ;;  %v8972_v49 = vpop.f32.mrf.mxu3  ;;  %v8948_v54 = vpop.f32.mrf.mxu1  ;;  %v14745_v42 = vld [vmem:[%s15624_s9 + $0xb50] sm:$0xff]  ;;  %v14744_v47 = vld [vmem:[%s15624_s9 + $0xb48] sm:$0xff] }
 0x177   : > { %9211 = vmatpush.bf16.msra.mxu2 %v14725_v29  ;;  %v14755_v29 = vld [vmem:[%s15624_s9 + $0xba0] sm:$0xff]  ;;  %v14760_v50 = vld [vmem:[%s15624_s9 + $0xbc8] sm:$0xff] }
 0x178   : > { %9224 = vmatpush.bf16.msra.mxu3 %v14733_v30  ;;  %v16003_v51 = vadd.f32 %v8972_v49, %v8960_v48  ;;  %v14763_v30 = vld [vmem:[%s15624_s9 + $0xbe0] sm:$0xff]  ;;  %v274_v48 = vld [vmem:[%s15634_s12 + $0x60] sm:$0xff]  ;;  %v14752_v49 = vld [vmem:[%s15624_s9 + $0xb88] sm:$0xff] }
 0x179   : > { %9186 = vmatpush.bf16.msra.mxu0 %v14708_v31  ;;  %385 = vst [vmem:[#allocation1] ss:$4 sm:$0xff] %v274_v48  ;;  %v14743_v54 = vld [vmem:[%s15624_s9 + $0xb40] sm:$0xff] }
 0x17a   : > { %9199 = vmatpush.bf16.msra.mxu1 %v14716_v32  ;;  %v14738_v32 = vld [vmem:[%s15624_s9 + $0xb18] sm:$0xff] }
 0x17b   : > { %9212 = vmatpush.bf16.msra.mxu2 %v14724_v33  ;;  %v14746_v33 = vld [vmem:[%s15624_s9 + $0xb58] sm:$0xff] }
 0x17c   : > { %9225 = vmatpush.bf16.msra.mxu3 %v14732_v34  ;;  %v14754_v34 = vld [vmem:[%s15624_s9 + $0xb98] sm:$0xff] }
 0x17d   : > { %9187 = vmatpush.bf16.msra.mxu0 %v14707_v37  ;;  %v8961_v62 = vpop.f32.mrf.mxu2 }
 0x17e   : > { %9200 = vmatpush.bf16.msra.mxu1 %v14715_v38  ;;  %v8974_v63 = vpop.f32.mrf.mxu3  ;;  %v384_v62 = vld.sshfl [vmem:[#allocation1 + $0x38] sm:$0xff pattern:$0x73625140] }
 0x17f   : > { %9213 = vmatpush.bf16.msra.mxu2 %v14723_v40  ;;  %v14790_v63 = vld [vmem:[%s15624_s9 + $0xcb8] sm:$0xff] }
 0x180   : > { %9226 = vmatpush.bf16.msra.mxu3 %v14731_v41  ;;  %v14737_v41 = vld [vmem:[%s15624_s9 + $0xb10] sm:$0xff] }
 0x181   : > { %9188 = vmatpush.bf16.msra.mxu0 %v14706_v43  ;;  %v387_v48 = vld.sshfl [vmem:[#allocation1] sm:$0xff pattern:$0x73625140] }
 0x182   : > { %9201 = vmatpush.bf16.msra.mxu1 %v14714_v44  ;;  %v14753_v44 = vld [vmem:[%s15624_s9 + $0xb90] sm:$0xff] }
 0x183   : > { %9214 = vmatpush.bf16.msra.mxu2 %v14722_v45  ;;  %v14761_v45 = vld [vmem:[%s15624_s9 + $0xbd0] sm:$0xff] }
 0x184   : > { %9227 = vmatpush.bf16.msra.mxu3 %v14730_v46  ;;  %v14736_v46 = vld [vmem:[%s15624_s9 + $0xb08] sm:$0xff] }
 0x185   : > { %9189 = vmatpush.bf16.msra.mxu0 %v14705_v52 }
 0x186   : > { %9202 = vmatpush.bf16.msra.mxu1 %v14713_v53  ;;  %v14735_v53 = vld [vmem:[%s15624_s9 + $0xb00] sm:$0xff] }
 0x187   : > { %9215 = vmatpush.bf16.msra.mxu2 %v14721_v55  ;;  %v14751_v55 = vld [vmem:[%s15624_s9 + $0xb80] sm:$0xff] }
 0x188   : > { %9228 = vmatpush.bf16.msra.mxu3 %v14729_v56  ;;  %v14759_v56 = vld [vmem:[%s15624_s9 + $0xbc0] sm:$0xff] }
 0x189   : > { %9190 = vmatpush.bf16.msra.mxu0 %v14704_v57  ;;  %v14774_v57 = vld [vmem:[%s15624_s9 + $0xc38] sm:$0xff] }
 0x18a   : > { %9203 = vmatpush.bf16.msra.mxu1 %v14712_v58  ;;  %v14782_v58 = vld [vmem:[%s15624_s9 + $0xc78] sm:$0xff] }
 0x18b   : > { %9216 = vmatpush.bf16.msra.mxu2 %v14720_v60  ;;  %v383_v60 = vld.sshfl [vmem:[#allocation1 + $0x30] sm:$0xff pattern:$0x73625140] }
 0x18c   : > { %9229 = vmatpush.bf16.msra.mxu3 %v14728_v61  ;;  %v382_v61 = vld.sshfl [vmem:[#allocation1 + $0x28] sm:$0xff pattern:$0x73625140] }
 0x18d   : > { %9191 = vmatpush.bf16.msra.mxu0 %v14703_v0  ;;  %v8985_v24 = vpop.f32.mrf.mxu0  ;;  %v14798_v0 = vld [vmem:[%s15624_s9 + $0xcf8] sm:$0xff] }
 0x18e   : > { %9204 = vmatpush.bf16.msra.mxu1 %v14711_v1  ;;  %v8986_v25 = vadd.f32 %v8985_v24, %v16003_v51  ;;  %v8998_v28 = vpop.f32.mrf.mxu1  ;;  %v648_v1 = vpack.c.bf16 %v381_v59, %v381_v59  ;;  %v14794_v24 = vld [vmem:[%s15624_s9 + $0xcd8] sm:$0xff]  ;;  %v14813_v59 = vld [vmem:[%s15624_s9 + $0xd70] sm:$0xff] }
 0x18f   : > { %9217 = vmatpush.bf16.msra.mxu2 %v14719_v2  ;;  %v650_v2 = vpack.c.bf16 %v383_v60, %v383_v60  ;;  %v14821_v60 = vld [vmem:[%s15624_s9 + $0xdb0] sm:$0xff] }
 0x190   : > { %9230 = vmatpush.bf16.msra.mxu3 %v14727_v3  ;;  %9192 = vmatmul.bf16.vlgmr.msra.gmra.mxu0 %v644_v12  ;;  %v8999_v31 = vadd.f32 %v8998_v28, %v8986_v25  ;;  %v649_v3 = vpack.c.bf16 %v382_v61, %v382_v61  ;;  %v14796_v12 = vld [vmem:[%s15624_s9 + $0xce8] sm:$0xff]  ;;  %v14829_v61 = vld [vmem:[%s15624_s9 + $0xdf0] sm:$0xff] }
 0x191   : > { %9236 = vmatpush.bf16.msrb.mxu0 %v14742_v4  ;;  %9205 = vmatmul.bf16.vlgmr.msra.gmra.mxu1 %v645_v14  ;;  %v651_v4 = vpack.c.bf16 %v384_v62, %v384_v62  ;;  %v14804_v62 = vld [vmem:[%s15624_s9 + $0xd28] sm:$0xff] }
 0x192   : > { %9249 = vmatpush.bf16.msrb.mxu1 %v14750_v5  ;;  %9218 = vmatmul.bf16.vlgmr.msra.gmra.mxu2 %v646_v13  ;;  %v14773_v5 = vld [vmem:[%s15624_s9 + $0xc30] sm:$0xff] }
 0x193   : > { %9262 = vmatpush.bf16.msrb.mxu2 %v14758_v10  ;;  %9231 = vmatmul.bf16.vlgmr.msra.gmra.mxu3 %v647_v15  ;;  %v14780_v10 = vld [vmem:[%s15624_s9 + $0xc68] sm:$0xff]  ;;  %v14771_v15 = vld [vmem:[%s15624_s9 + $0xc20] sm:$0xff] }
 0x194   : > { %9275 = vmatpush.bf16.msrb.mxu3 %v14766_v11  ;;  %v14788_v11 = vld [vmem:[%s15624_s9 + $0xca8] sm:$0xff] }
 0x195   : > { %9237 = vmatpush.bf16.msrb.mxu0 %v14741_v16  ;;  %v9011_v36 = vpop.f32.mrf.mxu2  ;;  %v8987_v39 = vpop.f32.mrf.mxu0  ;;  %v14779_v16 = vld [vmem:[%s15624_s9 + $0xc60] sm:$0xff] }
 0x196   : > { %9250 = vmatpush.bf16.msrb.mxu1 %v14749_v17  ;;  %v9012_v37 = vadd.f32 %v9011_v36, %v8999_v31  ;;  %v9024_v38 = vpop.f32.mrf.mxu3  ;;  %v9000_v43 = vpop.f32.mrf.mxu1  ;;  %v14777_v31 = vld [vmem:[%s15624_s9 + $0xc50] sm:$0xff]  ;;  %v14776_v36 = vld [vmem:[%s15624_s9 + $0xc48] sm:$0xff] }
 0x197   : > { %9263 = vmatpush.bf16.msrb.mxu2 %v14757_v18  ;;  %v14787_v18 = vld [vmem:[%s15624_s9 + $0xca0] sm:$0xff]  ;;  %v14792_v39 = vld [vmem:[%s15624_s9 + $0xcc8] sm:$0xff] }
 0x198   : > { %9276 = vmatpush.bf16.msrb.mxu3 %v14765_v19  ;;  %v16039_v40 = vadd.f32 %v9024_v38, %v9012_v37  ;;  %v14795_v19 = vld [vmem:[%s15624_s9 + $0xce0] sm:$0xff]  ;;  %v14784_v38 = vld [vmem:[%s15624_s9 + $0xc88] sm:$0xff] }
 0x199   : > { %9238 = vmatpush.bf16.msrb.mxu0 %v14740_v20  ;;  %v275_v37 = vld [vmem:[%s15634_s12 + $0x68] sm:$0xff] }
 0x19a   : > { %9251 = vmatpush.bf16.msrb.mxu1 %v14748_v21  ;;  %v14770_v21 = vld [vmem:[%s15624_s9 + $0xc18] sm:$0xff]  ;;  %386 = vst [vmem:[#allocation1 + $0x20] ss:$4 sm:$0xff] %v275_v37  ;;  %v14775_v43 = vld [vmem:[%s15624_s9 + $0xc40] sm:$0xff] }
 0x19b   : > { %9264 = vmatpush.bf16.msrb.mxu2 %v14756_v22  ;;  %v14778_v22 = vld [vmem:[%s15624_s9 + $0xc58] sm:$0xff] }
 0x19c   : > { %9277 = vmatpush.bf16.msrb.mxu3 %v14764_v23  ;;  %v14786_v23 = vld [vmem:[%s15624_s9 + $0xc98] sm:$0xff] }
 0x19d   : > { %9239 = vmatpush.bf16.msrb.mxu0 %v14739_v26  ;;  %v9013_v51 = vpop.f32.mrf.mxu2 }
 0x19e   : > { %9252 = vmatpush.bf16.msrb.mxu1 %v14747_v27  ;;  %v9026_v52 = vpop.f32.mrf.mxu3  ;;  %v390_v51 = vld.sshfl [vmem:[#allocation1 + $0x18] sm:$0xff pattern:$0x73625140] }
 0x19f   : > { %9265 = vmatpush.bf16.msrb.mxu2 %v14755_v29  ;;  %v14822_v52 = vld [vmem:[%s15624_s9 + $0xdb8] sm:$0xff] }
 0x1a0   : > { %9278 = vmatpush.bf16.msrb.mxu3 %v14763_v30  ;;  %v14769_v30 = vld [vmem:[%s15624_s9 + $0xc10] sm:$0xff] }
 0x1a1   : > { %9240 = vmatpush.bf16.msrb.mxu0 %v14738_v32  ;;  %v391_v37 = vld.sshfl [vmem:[#allocation1 + $0x20] sm:$0xff pattern:$0x73625140] }
 0x1a2   : > { %9253 = vmatpush.bf16.msrb.mxu1 %v14746_v33  ;;  %v14785_v33 = vld [vmem:[%s15624_s9 + $0xc90] sm:$0xff] }
 0x1a3   : > { %9266 = vmatpush.bf16.msrb.mxu2 %v14754_v34  ;;  %v14793_v34 = vld [vmem:[%s15624_s9 + $0xcd0] sm:$0xff] }
 0x1a4   : > { %9279 = vmatpush.bf16.msrb.mxu3 %v14762_v35  ;;  %v14768_v35 = vld [vmem:[%s15624_s9 + $0xc08] sm:$0xff] }
 0x1a5   : > { %9241 = vmatpush.bf16.msrb.mxu0 %v14737_v41 }
 0x1a6   : > { %9254 = vmatpush.bf16.msrb.mxu1 %v14745_v42  ;;  %v14767_v42 = vld [vmem:[%s15624_s9 + $0xc00] sm:$0xff] }
 0x1a7   : > { %9267 = vmatpush.bf16.msrb.mxu2 %v14753_v44  ;;  %v14783_v44 = vld [vmem:[%s15624_s9 + $0xc80] sm:$0xff] }
 0x1a8   : > { %9280 = vmatpush.bf16.msrb.mxu3 %v14761_v45  ;;  %v14791_v45 = vld [vmem:[%s15624_s9 + $0xcc0] sm:$0xff] }
 0x1a9   : > { %9242 = vmatpush.bf16.msrb.mxu0 %v14736_v46  ;;  %v14806_v46 = vld [vmem:[%s15624_s9 + $0xd38] sm:$0xff] }
 0x1aa   : > { %9255 = vmatpush.bf16.msrb.mxu1 %v14744_v47  ;;  %v14814_v47 = vld [vmem:[%s15624_s9 + $0xd78] sm:$0xff] }
 0x1ab   : > { %9268 = vmatpush.bf16.msrb.mxu2 %v14752_v49  ;;  %v389_v49 = vld.sshfl [vmem:[#allocation1 + $0x10] sm:$0xff pattern:$0x73625140] }
 0x1ac   : > { %9281 = vmatpush.bf16.msrb.mxu3 %v14760_v50  ;;  %v388_v50 = vld.sshfl [vmem:[#allocation1 + $0x8] sm:$0xff pattern:$0x73625140] }
 0x1ad   : > { %9243 = vmatpush.bf16.msrb.mxu0 %v14735_v53  ;;  %v9037_v13 = vpop.f32.mrf.mxu0  ;;  %v14830_v53 = vld [vmem:[%s15624_s9 + $0xdf8] sm:$0xff] }
 0x1ae   : > { %9256 = vmatpush.bf16.msrb.mxu1 %v14743_v54  ;;  %v9038_v14 = vadd.f32 %v9037_v13, %v16039_v40  ;;  %v9050_v17 = vpop.f32.mrf.mxu1  ;;  %v652_v54 = vpack.c.bf16 %v387_v48, %v387_v48  ;;  %v14826_v13 = vld [vmem:[%s15624_s9 + $0xdd8] sm:$0xff]  ;;  %v14845_v48 = vld [vmem:[%s15624_s9 + $0xe70] sm:$0xff] }
 0x1af   : > { %9269 = vmatpush.bf16.msrb.mxu2 %v14751_v55  ;;  %v654_v55 = vpack.c.bf16 %v389_v49, %v389_v49  ;;  %v14853_v49 = vld [vmem:[%s15624_s9 + $0xeb0] sm:$0xff] }
 0x1b0   : > { %9282 = vmatpush.bf16.msrb.mxu3 %v14759_v56  ;;  %9244 = vmatmul.bf16.vlgmr.msrb.gmra.mxu0 %v648_v1  ;;  %v9051_v20 = vadd.f32 %v9050_v17, %v9038_v14  ;;  %v653_v56 = vpack.c.bf16 %v388_v50, %v388_v50  ;;  %v14828_v1 = vld [vmem:[%s15624_s9 + $0xde8] sm:$0xff]  ;;  %v14861_v50 = vld [vmem:[%s15624_s9 + $0xef0] sm:$0xff] }
 0x1b1   : > { %9288 = vmatpush.bf16.msra.mxu0 %v14774_v57  ;;  %9257 = vmatmul.bf16.vlgmr.msrb.gmra.mxu1 %v649_v3  ;;  %v655_v57 = vpack.c.bf16 %v390_v51, %v390_v51  ;;  %v14836_v51 = vld [vmem:[%s15624_s9 + $0xe28] sm:$0xff] }
 0x1b2   : > { %9301 = vmatpush.bf16.msra.mxu1 %v14782_v58  ;;  %9270 = vmatmul.bf16.vlgmr.msrb.gmra.mxu2 %v650_v2  ;;  %v14805_v58 = vld [vmem:[%s15624_s9 + $0xd30] sm:$0xff] }
 0x1b3   : > { %9314 = vmatpush.bf16.msra.mxu2 %v14790_v63  ;;  %9283 = vmatmul.bf16.vlgmr.msrb.gmra.mxu3 %v651_v4  ;;  %v14812_v63 = vld [vmem:[%s15624_s9 + $0xd68] sm:$0xff]  ;;  %v14803_v4 = vld [vmem:[%s15624_s9 + $0xd20] sm:$0xff] }
 0x1b4   : > { %9327 = vmatpush.bf16.msra.mxu3 %v14798_v0  ;;  %v14820_v0 = vld [vmem:[%s15624_s9 + $0xda8] sm:$0xff] }
 0x1b5   : > { %9289 = vmatpush.bf16.msra.mxu0 %v14773_v5  ;;  %v9063_v25 = vpop.f32.mrf.mxu2  ;;  %v9039_v28 = vpop.f32.mrf.mxu0  ;;  %v14811_v5 = vld [vmem:[%s15624_s9 + $0xd60] sm:$0xff] }
 0x1b6   : > { %9302 = vmatpush.bf16.msra.mxu1 %v14781_v6  ;;  %v9064_v26 = vadd.f32 %v9063_v25, %v9051_v20  ;;  %v9076_v27 = vpop.f32.mrf.mxu3  ;;  %v9052_v32 = vpop.f32.mrf.mxu1  ;;  %v14809_v20 = vld [vmem:[%s15624_s9 + $0xd50] sm:$0xff]  ;;  %v14808_v25 = vld [vmem:[%s15624_s9 + $0xd48] sm:$0xff] }
 0x1b7   : > { %9315 = vmatpush.bf16.msra.mxu2 %v14789_v7  ;;  %v14819_v7 = vld [vmem:[%s15624_s9 + $0xda0] sm:$0xff]  ;;  %v14824_v28 = vld [vmem:[%s15624_s9 + $0xdc8] sm:$0xff] }
 0x1b8   : > { %9328 = vmatpush.bf16.msra.mxu3 %v14797_v8  ;;  %v16075_v29 = vadd.f32 %v9076_v27, %v9064_v26  ;;  %v14827_v8 = vld [vmem:[%s15624_s9 + $0xde0] sm:$0xff]  ;;  %v14816_v27 = vld [vmem:[%s15624_s9 + $0xd88] sm:$0xff] }
 0x1b9   : > { %9290 = vmatpush.bf16.msra.mxu0 %v14772_v9  ;;  %v276_v26 = vld [vmem:[%s15634_s12 + $0x70] sm:$0xff] }
 0x1ba   : > { %9303 = vmatpush.bf16.msra.mxu1 %v14780_v10  ;;  %v14802_v10 = vld [vmem:[%s15624_s9 + $0xd18] sm:$0xff]  ;;  %395 = vst [vmem:[#allocation1] ss:$4 sm:$0xff] %v276_v26  ;;  %v14807_v32 = vld [vmem:[%s15624_s9 + $0xd40] sm:$0xff] }
 0x1bb   : > { %9316 = vmatpush.bf16.msra.mxu2 %v14788_v11  ;;  %v14810_v11 = vld [vmem:[%s15624_s9 + $0xd58] sm:$0xff] }
 0x1bc   : > { %9329 = vmatpush.bf16.msra.mxu3 %v14796_v12  ;;  %v14818_v12 = vld [vmem:[%s15624_s9 + $0xd98] sm:$0xff] }
 0x1bd   : > { %9291 = vmatpush.bf16.msra.mxu0 %v14771_v15  ;;  %v9065_v40 = vpop.f32.mrf.mxu2 }
 0x1be   : > { %9304 = vmatpush.bf16.msra.mxu1 %v14779_v16  ;;  %v9078_v41 = vpop.f32.mrf.mxu3  ;;  %v394_v40 = vld.sshfl [vmem:[#allocation1 + $0x38] sm:$0xff pattern:$0x73625140] }
 0x1bf   : > { %9317 = vmatpush.bf16.msra.mxu2 %v14787_v18  ;;  %v14854_v41 = vld [vmem:[%s15624_s9 + $0xeb8] sm:$0xff] }
 0x1c0   : > { %9330 = vmatpush.bf16.msra.mxu3 %v14795_v19  ;;  %v14801_v19 = vld [vmem:[%s15624_s9 + $0xd10] sm:$0xff] }
 0x1c1   : > { %9292 = vmatpush.bf16.msra.mxu0 %v14770_v21  ;;  %v397_v26 = vld.sshfl [vmem:[#allocation1] sm:$0xff pattern:$0x73625140] }
 0x1c2   : > { %9305 = vmatpush.bf16.msra.mxu1 %v14778_v22  ;;  %v14817_v22 = vld [vmem:[%s15624_s9 + $0xd90] sm:$0xff] }
 0x1c3   : > { %9318 = vmatpush.bf16.msra.mxu2 %v14786_v23  ;;  %v14825_v23 = vld [vmem:[%s15624_s9 + $0xdd0] sm:$0xff] }
 0x1c4   : > { %9331 = vmatpush.bf16.msra.mxu3 %v14794_v24  ;;  %v14800_v24 = vld [vmem:[%s15624_s9 + $0xd08] sm:$0xff] }
 0x1c5   : > { %9293 = vmatpush.bf16.msra.mxu0 %v14769_v30 }
 0x1c6   : > { %9306 = vmatpush.bf16.msra.mxu1 %v14777_v31  ;;  %v14799_v31 = vld [vmem:[%s15624_s9 + $0xd00] sm:$0xff] }
 0x1c7   : > { %9319 = vmatpush.bf16.msra.mxu2 %v14785_v33  ;;  %v14815_v33 = vld [vmem:[%s15624_s9 + $0xd80] sm:$0xff] }
 0x1c8   : > { %9332 = vmatpush.bf16.msra.mxu3 %v14793_v34  ;;  %v14823_v34 = vld [vmem:[%s15624_s9 + $0xdc0] sm:$0xff] }
 0x1c9   : > { %9294 = vmatpush.bf16.msra.mxu0 %v14768_v35  ;;  %v14838_v35 = vld [vmem:[%s15624_s9 + $0xe38] sm:$0xff] }
 0x1ca   : > { %9307 = vmatpush.bf16.msra.mxu1 %v14776_v36  ;;  %v14846_v36 = vld [vmem:[%s15624_s9 + $0xe78] sm:$0xff] }
 0x1cb   : > { %9320 = vmatpush.bf16.msra.mxu2 %v14784_v38  ;;  %v393_v38 = vld.sshfl [vmem:[#allocation1 + $0x30] sm:$0xff pattern:$0x73625140] }
 0x1cc   : > { %9333 = vmatpush.bf16.msra.mxu3 %v14792_v39  ;;  %v392_v39 = vld.sshfl [vmem:[#allocation1 + $0x28] sm:$0xff pattern:$0x73625140] }
 0x1cd   : > { %9295 = vmatpush.bf16.msra.mxu0 %v14767_v42  ;;  %v9089_v2 = vpop.f32.mrf.mxu0  ;;  %v14862_v42 = vld [vmem:[%s15624_s9 + $0xef8] sm:$0xff] }
 0x1ce   : > { %9308 = vmatpush.bf16.msra.mxu1 %v14775_v43  ;;  %v9090_v3 = vadd.f32 %v9089_v2, %v16075_v29  ;;  %v9102_v6 = vpop.f32.mrf.mxu1  ;;  %v656_v43 = vpack.c.bf16 %v391_v37, %v391_v37  ;;  %v14858_v2 = vld [vmem:[%s15624_s9 + $0xed8] sm:$0xff]  ;;  %v14877_v37 = vld [vmem:[%s15624_s9 + $0xf70] sm:$0xff] }
 0x1cf   : > { %9321 = vmatpush.bf16.msra.mxu2 %v14783_v44  ;;  %v658_v44 = vpack.c.bf16 %v393_v38, %v393_v38  ;;  %v14885_v38 = vld [vmem:[%s15624_s9 + $0xfb0] sm:$0xff] }
 0x1d0   : > { %9334 = vmatpush.bf16.msra.mxu3 %v14791_v45  ;;  %9296 = vmatmul.bf16.vlgmr.msra.gmra.mxu0 %v652_v54  ;;  %v9103_v9 = vadd.f32 %v9102_v6, %v9090_v3  ;;  %v657_v45 = vpack.c.bf16 %v392_v39, %v392_v39  ;;  %v14860_v54 = vld [vmem:[%s15624_s9 + $0xee8] sm:$0xff]  ;;  %v14893_v39 = vld [vmem:[%s15624_s9 + $0xff0] sm:$0xff] }
 0x1d1   : > { %9340 = vmatpush.bf16.msrb.mxu0 %v14806_v46  ;;  %9309 = vmatmul.bf16.vlgmr.msra.gmra.mxu1 %v653_v56  ;;  %v659_v46 = vpack.c.bf16 %v394_v40, %v394_v40  ;;  %v14868_v40 = vld [vmem:[%s15624_s9 + $0xf28] sm:$0xff] }
 0x1d2   : > { %9353 = vmatpush.bf16.msrb.mxu1 %v14814_v47  ;;  %9322 = vmatmul.bf16.vlgmr.msra.gmra.mxu2 %v654_v55  ;;  %v14837_v47 = vld [vmem:[%s15624_s9 + $0xe30] sm:$0xff] }
 0x1d3   : > { %9366 = vmatpush.bf16.msrb.mxu2 %v14822_v52  ;;  %9335 = vmatmul.bf16.vlgmr.msra.gmra.mxu3 %v655_v57  ;;  %v14844_v52 = vld [vmem:[%s15624_s9 + $0xe68] sm:$0xff]  ;;  %v14835_v57 = vld [vmem:[%s15624_s9 + $0xe20] sm:$0xff] }
 0x1d4   : > { %9379 = vmatpush.bf16.msrb.mxu3 %v14830_v53  ;;  %v14852_v53 = vld [vmem:[%s15624_s9 + $0xea8] sm:$0xff] }
 0x1d5   : > { %9341 = vmatpush.bf16.msrb.mxu0 %v14805_v58  ;;  %v9115_v14 = vpop.f32.mrf.mxu2  ;;  %v9091_v17 = vpop.f32.mrf.mxu0  ;;  %v14843_v58 = vld [vmem:[%s15624_s9 + $0xe60] sm:$0xff] }
 0x1d6   : > { %9354 = vmatpush.bf16.msrb.mxu1 %v14813_v59  ;;  %v9116_v15 = vadd.f32 %v9115_v14, %v9103_v9  ;;  %v9128_v16 = vpop.f32.mrf.mxu3  ;;  %v9104_v21 = vpop.f32.mrf.mxu1  ;;  %v14841_v9 = vld [vmem:[%s15624_s9 + $0xe50] sm:$0xff]  ;;  %v14840_v14 = vld [vmem:[%s15624_s9 + $0xe48] sm:$0xff] }
 0x1d7   : > { %9367 = vmatpush.bf16.msrb.mxu2 %v14821_v60  ;;  %v14851_v60 = vld [vmem:[%s15624_s9 + $0xea0] sm:$0xff]  ;;  %v14856_v17 = vld [vmem:[%s15624_s9 + $0xec8] sm:$0xff] }
 0x1d8   : > { %9380 = vmatpush.bf16.msrb.mxu3 %v14829_v61  ;;  %v16111_v18 = vadd.f32 %v9128_v16, %v9116_v15  ;;  %v14859_v61 = vld [vmem:[%s15624_s9 + $0xee0] sm:$0xff]  ;;  %v277_v15 = vld [vmem:[%s15634_s12 + $0x78] sm:$0xff] }
 0x1d9   : > { %9342 = vmatpush.bf16.msrb.mxu0 %v14804_v62  ;;  %v14848_v16 = vld [vmem:[%s15624_s9 + $0xe88] sm:$0xff]  ;;  %396 = vst [vmem:[#allocation1 + $0x20] ss:$4 sm:$0xff] %v277_v15  ;;  %v14839_v21 = vld [vmem:[%s15624_s9 + $0xe40] sm:$0xff] }
 0x1da   : > { %9355 = vmatpush.bf16.msrb.mxu1 %v14812_v63  ;;  %v14834_v63 = vld [vmem:[%s15624_s9 + $0xe18] sm:$0xff] }
 0x1db   : > { %9368 = vmatpush.bf16.msrb.mxu2 %v14820_v0  ;;  %v14842_v0 = vld [vmem:[%s15624_s9 + $0xe58] sm:$0xff] }
 0x1dc   : > { %9381 = vmatpush.bf16.msrb.mxu3 %v14828_v1  ;;  %v14850_v1 = vld [vmem:[%s15624_s9 + $0xe98] sm:$0xff] }
 0x1dd   : > { %9343 = vmatpush.bf16.msrb.mxu0 %v14803_v4  ;;  %v9117_v29 = vpop.f32.mrf.mxu2 }
 0x1de   : > { %9356 = vmatpush.bf16.msrb.mxu1 %v14811_v5  ;;  %v9130_v30 = vpop.f32.mrf.mxu3  ;;  %v400_v29 = vld.sshfl [vmem:[#allocation1 + $0x18] sm:$0xff pattern:$0x73625140] }
 0x1df   : > { %9369 = vmatpush.bf16.msrb.mxu2 %v14819_v7  ;;  %v14886_v30 = vld [vmem:[%s15624_s9 + $0xfb8] sm:$0xff] }
 0x1e0   : > { %9382 = vmatpush.bf16.msrb.mxu3 %v14827_v8  ;;  %v14833_v8 = vld [vmem:[%s15624_s9 + $0xe10] sm:$0xff] }
 0x1e1   : > { %9344 = vmatpush.bf16.msrb.mxu0 %v14802_v10  ;;  %v401_v15 = vld.sshfl [vmem:[#allocation1 + $0x20] sm:$0xff pattern:$0x73625140] }
 0x1e2   : > { %9357 = vmatpush.bf16.msrb.mxu1 %v14810_v11  ;;  %v14849_v11 = vld [vmem:[%s15624_s9 + $0xe90] sm:$0xff] }
 0x1e3   : > { %9370 = vmatpush.bf16.msrb.mxu2 %v14818_v12  ;;  %v14857_v12 = vld [vmem:[%s15624_s9 + $0xed0] sm:$0xff] }
 0x1e4   : > { %9383 = vmatpush.bf16.msrb.mxu3 %v14826_v13  ;;  %v14832_v13 = vld [vmem:[%s15624_s9 + $0xe08] sm:$0xff] }
 0x1e5   : > { %9345 = vmatpush.bf16.msrb.mxu0 %v14801_v19 }
 0x1e6   : > { %9358 = vmatpush.bf16.msrb.mxu1 %v14809_v20  ;;  %v14831_v20 = vld [vmem:[%s15624_s9 + $0xe00] sm:$0xff] }
 0x1e7   : > { %9371 = vmatpush.bf16.msrb.mxu2 %v14817_v22  ;;  %v14847_v22 = vld [vmem:[%s15624_s9 + $0xe80] sm:$0xff] }
 0x1e8   : > { %9384 = vmatpush.bf16.msrb.mxu3 %v14825_v23  ;;  %v14855_v23 = vld [vmem:[%s15624_s9 + $0xec0] sm:$0xff] }
 0x1e9   : > { %9346 = vmatpush.bf16.msrb.mxu0 %v14800_v24  ;;  %v14870_v24 = vld [vmem:[%s15624_s9 + $0xf38] sm:$0xff] }
 0x1ea   : > { %9359 = vmatpush.bf16.msrb.mxu1 %v14808_v25  ;;  %v14878_v25 = vld [vmem:[%s15624_s9 + $0xf78] sm:$0xff] }
 0x1eb   : > { %9372 = vmatpush.bf16.msrb.mxu2 %v14816_v27  ;;  %v399_v27 = vld.sshfl [vmem:[#allocation1 + $0x10] sm:$0xff pattern:$0x73625140] }
 0x1ec   : > { %9385 = vmatpush.bf16.msrb.mxu3 %v14824_v28  ;;  %v398_v28 = vld.sshfl [vmem:[#allocation1 + $0x8] sm:$0xff pattern:$0x73625140] }
 0x1ed   : > { %9347 = vmatpush.bf16.msrb.mxu0 %v14799_v31  ;;  %v9141_v55 = vpop.f32.mrf.mxu0  ;;  %v14894_v31 = vld [vmem:[%s15624_s9 + $0xff8] sm:$0xff] }
 0x1ee   : > { %9360 = vmatpush.bf16.msrb.mxu1 %v14807_v32  ;;  %v9142_v56 = vadd.f32 %v9141_v55, %v16111_v18  ;;  %v9154_v59 = vpop.f32.mrf.mxu1  ;;  %v660_v32 = vpack.c.bf16 %v397_v26, %v397_v26  ;;  %v14890_v55 = vld [vmem:[%s15624_s9 + $0xfd8] sm:$0xff]  ;;  %v14909_v26 = vld [vmem:[%s15624_s9 + $0x1070] sm:$0xff] }
 0x1ef   : > { %9373 = vmatpush.bf16.msrb.mxu2 %v14815_v33  ;;  %v662_v33 = vpack.c.bf16 %v399_v27, %v399_v27  ;;  %v14917_v27 = vld [vmem:[%s15624_s9 + $0x10b0] sm:$0xff] }
 0x1f0   : > { %9386 = vmatpush.bf16.msrb.mxu3 %v14823_v34  ;;  %9348 = vmatmul.bf16.vlgmr.msrb.gmra.mxu0 %v656_v43  ;;  %v9155_v62 = vadd.f32 %v9154_v59, %v9142_v56  ;;  %v661_v34 = vpack.c.bf16 %v398_v28, %v398_v28  ;;  %v14892_v43 = vld [vmem:[%s15624_s9 + $0xfe8] sm:$0xff]  ;;  %v14925_v28 = vld [vmem:[%s15624_s9 + $0x10f0] sm:$0xff] }
 0x1f1   : > { %9392 = vmatpush.bf16.msra.mxu0 %v14838_v35  ;;  %9361 = vmatmul.bf16.vlgmr.msrb.gmra.mxu1 %v657_v45  ;;  %v663_v35 = vpack.c.bf16 %v400_v29, %v400_v29  ;;  %v14900_v29 = vld [vmem:[%s15624_s9 + $0x1028] sm:$0xff] }
 0x1f2   : > { %9405 = vmatpush.bf16.msra.mxu1 %v14846_v36  ;;  %9374 = vmatmul.bf16.vlgmr.msrb.gmra.mxu2 %v658_v44  ;;  %v14869_v36 = vld [vmem:[%s15624_s9 + $0xf30] sm:$0xff] }
 0x1f3   : > { %9418 = vmatpush.bf16.msra.mxu2 %v14854_v41  ;;  %9387 = vmatmul.bf16.vlgmr.msrb.gmra.mxu3 %v659_v46  ;;  %v14876_v41 = vld [vmem:[%s15624_s9 + $0xf68] sm:$0xff]  ;;  %v14867_v46 = vld [vmem:[%s15624_s9 + $0xf20] sm:$0xff] }
 0x1f4   : > { %9431 = vmatpush.bf16.msra.mxu3 %v14862_v42  ;;  %v14884_v42 = vld [vmem:[%s15624_s9 + $0xfa8] sm:$0xff] }
 0x1f5   : > { %9393 = vmatpush.bf16.msra.mxu0 %v14837_v47  ;;  %v9167_v3 = vpop.f32.mrf.mxu2  ;;  %v9143_v6 = vpop.f32.mrf.mxu0  ;;  %v14875_v47 = vld [vmem:[%s15624_s9 + $0xf60] sm:$0xff] }
 0x1f6   : > { %9406 = vmatpush.bf16.msra.mxu1 %v14845_v48  ;;  %v9168_v4 = vadd.f32 %v9167_v3, %v9155_v62  ;;  %v9180_v5 = vpop.f32.mrf.mxu3  ;;  %v9156_v10 = vpop.f32.mrf.mxu1  ;;  %v14873_v62 = vld [vmem:[%s15624_s9 + $0xf50] sm:$0xff]  ;;  %v14872_v3 = vld [vmem:[%s15624_s9 + $0xf48] sm:$0xff] }
 0x1f7   : > { %9419 = vmatpush.bf16.msra.mxu2 %v14853_v49  ;;  %v14883_v49 = vld [vmem:[%s15624_s9 + $0xfa0] sm:$0xff]  ;;  %v14888_v6 = vld [vmem:[%s15624_s9 + $0xfc8] sm:$0xff] }
 0x1f8   : > { %9432 = vmatpush.bf16.msra.mxu3 %v14861_v50  ;;  %v16147_v7 = vadd.f32 %v9180_v5, %v9168_v4  ;;  %v14891_v50 = vld [vmem:[%s15624_s9 + $0xfe0] sm:$0xff]  ;;  %v278_v4 = vld [vmem:[%s15634_s12 + $0x80] sm:$0xff]  ;;  %v14880_v5 = vld [vmem:[%s15624_s9 + $0xf88] sm:$0xff] }
 0x1f9   : > { %9394 = vmatpush.bf16.msra.mxu0 %v14836_v51  ;;  %405 = vst [vmem:[#allocation1] ss:$4 sm:$0xff] %v278_v4  ;;  %v14871_v10 = vld [vmem:[%s15624_s9 + $0xf40] sm:$0xff] }
 0x1fa   : > { %9407 = vmatpush.bf16.msra.mxu1 %v14844_v52  ;;  %v14866_v52 = vld [vmem:[%s15624_s9 + $0xf18] sm:$0xff] }
 0x1fb   : > { %9420 = vmatpush.bf16.msra.mxu2 %v14852_v53  ;;  %v14874_v53 = vld [vmem:[%s15624_s9 + $0xf58] sm:$0xff] }
 0x1fc   : > { %9433 = vmatpush.bf16.msra.mxu3 %v14860_v54  ;;  %v14882_v54 = vld [vmem:[%s15624_s9 + $0xf98] sm:$0xff] }
 0x1fd   : > { %9395 = vmatpush.bf16.msra.mxu0 %v14835_v57  ;;  %v9169_v18 = vpop.f32.mrf.mxu2 }
 0x1fe   : > { %9408 = vmatpush.bf16.msra.mxu1 %v14843_v58  ;;  %v9182_v19 = vpop.f32.mrf.mxu3  ;;  %v404_v18 = vld.sshfl [vmem:[#allocation1 + $0x38] sm:$0xff pattern:$0x73625140] }
 0x1ff   : > { %9421 = vmatpush.bf16.msra.mxu2 %v14851_v60  ;;  %v14918_v19 = vld [vmem:[%s15624_s9 + $0x10b8] sm:$0xff] }
 0x200   : > { %9434 = vmatpush.bf16.msra.mxu3 %v14859_v61  ;;  %v14865_v61 = vld [vmem:[%s15624_s9 + $0xf10] sm:$0xff] }
 0x201   : > { %9396 = vmatpush.bf16.msra.mxu0 %v14834_v63  ;;  %v407_v4 = vld.sshfl [vmem:[#allocation1] sm:$0xff pattern:$0x73625140] }
 0x202   : > { %9409 = vmatpush.bf16.msra.mxu1 %v14842_v0  ;;  %v14881_v0 = vld [vmem:[%s15624_s9 + $0xf90] sm:$0xff] }
 0x203   : > { %9422 = vmatpush.bf16.msra.mxu2 %v14850_v1  ;;  %v14889_v1 = vld [vmem:[%s15624_s9 + $0xfd0] sm:$0xff] }
 0x204   : > { %9435 = vmatpush.bf16.msra.mxu3 %v14858_v2  ;;  %v14864_v2 = vld [vmem:[%s15624_s9 + $0xf08] sm:$0xff] }
 0x205   : > { %9397 = vmatpush.bf16.msra.mxu0 %v14833_v8 }
 0x206   : > { %9410 = vmatpush.bf16.msra.mxu1 %v14841_v9  ;;  %v14863_v9 = vld [vmem:[%s15624_s9 + $0xf00] sm:$0xff] }
 0x207   : > { %9423 = vmatpush.bf16.msra.mxu2 %v14849_v11  ;;  %v14879_v11 = vld [vmem:[%s15624_s9 + $0xf80] sm:$0xff] }
 0x208   : > { %9436 = vmatpush.bf16.msra.mxu3 %v14857_v12  ;;  %v14887_v12 = vld [vmem:[%s15624_s9 + $0xfc0] sm:$0xff] }
 0x209   : > { %9398 = vmatpush.bf16.msra.mxu0 %v14832_v13  ;;  %v14902_v13 = vld [vmem:[%s15624_s9 + $0x1038] sm:$0xff] }
 0x20a   : > { %9411 = vmatpush.bf16.msra.mxu1 %v14840_v14  ;;  %v14910_v14 = vld [vmem:[%s15624_s9 + $0x1078] sm:$0xff] }
 0x20b   : > { %9424 = vmatpush.bf16.msra.mxu2 %v14848_v16  ;;  %v403_v16 = vld.sshfl [vmem:[#allocation1 + $0x30] sm:$0xff pattern:$0x73625140] }
 0x20c   : > { %9437 = vmatpush.bf16.msra.mxu3 %v14856_v17  ;;  %v402_v17 = vld.sshfl [vmem:[#allocation1 + $0x28] sm:$0xff pattern:$0x73625140] }
 0x20d   : > { %9399 = vmatpush.bf16.msra.mxu0 %v14831_v20  ;;  %v9193_v44 = vpop.f32.mrf.mxu0  ;;  %v14926_v20 = vld [vmem:[%s15624_s9 + $0x10f8] sm:$0xff] }
 0x20e   : > { %9412 = vmatpush.bf16.msra.mxu1 %v14839_v21  ;;  %v9194_v45 = vadd.f32 %v9193_v44, %v16147_v7  ;;  %v9206_v48 = vpop.f32.mrf.mxu1  ;;  %v664_v21 = vpack.c.bf16 %v401_v15, %v401_v15  ;;  %v14922_v44 = vld [vmem:[%s15624_s9 + $0x10d8] sm:$0xff]  ;;  %v14941_v15 = vld [vmem:[%s15624_s9 + $0x1170] sm:$0xff] }
 0x20f   : > { %9425 = vmatpush.bf16.msra.mxu2 %v14847_v22  ;;  %v666_v22 = vpack.c.bf16 %v403_v16, %v403_v16  ;;  %v14949_v16 = vld [vmem:[%s15624_s9 + $0x11b0] sm:$0xff] }
 0x210   : > { %9438 = vmatpush.bf16.msra.mxu3 %v14855_v23  ;;  %9400 = vmatmul.bf16.vlgmr.msra.gmra.mxu0 %v660_v32  ;;  %v9207_v51 = vadd.f32 %v9206_v48, %v9194_v45  ;;  %v665_v23 = vpack.c.bf16 %v402_v17, %v402_v17  ;;  %v14924_v32 = vld [vmem:[%s15624_s9 + $0x10e8] sm:$0xff]  ;;  %v14957_v17 = vld [vmem:[%s15624_s9 + $0x11f0] sm:$0xff] }
 0x211   : > { %9444 = vmatpush.bf16.msrb.mxu0 %v14870_v24  ;;  %9413 = vmatmul.bf16.vlgmr.msra.gmra.mxu1 %v661_v34  ;;  %v667_v24 = vpack.c.bf16 %v404_v18, %v404_v18  ;;  %v14932_v18 = vld [vmem:[%s15624_s9 + $0x1128] sm:$0xff] }
 0x212   : > { %9457 = vmatpush.bf16.msrb.mxu1 %v14878_v25  ;;  %9426 = vmatmul.bf16.vlgmr.msra.gmra.mxu2 %v662_v33  ;;  %v14901_v25 = vld [vmem:[%s15624_s9 + $0x1030] sm:$0xff] }
 0x213   : > { %9470 = vmatpush.bf16.msrb.mxu2 %v14886_v30  ;;  %9439 = vmatmul.bf16.vlgmr.msra.gmra.mxu3 %v663_v35  ;;  %v14908_v30 = vld [vmem:[%s15624_s9 + $0x1068] sm:$0xff]  ;;  %v14899_v35 = vld [vmem:[%s15624_s9 + $0x1020] sm:$0xff] }
 0x214   : > { %9483 = vmatpush.bf16.msrb.mxu3 %v14894_v31  ;;  %v14916_v31 = vld [vmem:[%s15624_s9 + $0x10a8] sm:$0xff] }
 0x215   : > { %9445 = vmatpush.bf16.msrb.mxu0 %v14869_v36  ;;  %v9219_v56 = vpop.f32.mrf.mxu2  ;;  %v9195_v59 = vpop.f32.mrf.mxu0  ;;  %v14907_v36 = vld [vmem:[%s15624_s9 + $0x1060] sm:$0xff] }
 0x216   : > { %9458 = vmatpush.bf16.msrb.mxu1 %v14877_v37  ;;  %v9220_v57 = vadd.f32 %v9219_v56, %v9207_v51  ;;  %v9232_v58 = vpop.f32.mrf.mxu3  ;;  %v9208_v63 = vpop.f32.mrf.mxu1  ;;  %v14905_v51 = vld [vmem:[%s15624_s9 + $0x1050] sm:$0xff]  ;;  %v14904_v56 = vld [vmem:[%s15624_s9 + $0x1048] sm:$0xff] }
 0x217   : > { %9471 = vmatpush.bf16.msrb.mxu2 %v14885_v38  ;;  %v14915_v38 = vld [vmem:[%s15624_s9 + $0x10a0] sm:$0xff]  ;;  %v14920_v59 = vld [vmem:[%s15624_s9 + $0x10c8] sm:$0xff] }
 0x218   : > { %9484 = vmatpush.bf16.msrb.mxu3 %v14893_v39  ;;  %v16183_v60 = vadd.f32 %v9232_v58, %v9220_v57  ;;  %v14923_v39 = vld [vmem:[%s15624_s9 + $0x10e0] sm:$0xff]  ;;  %v14912_v58 = vld [vmem:[%s15624_s9 + $0x1088] sm:$0xff] }
 0x219   : > { %9446 = vmatpush.bf16.msrb.mxu0 %v14868_v40  ;;  %v279_v57 = vld [vmem:[%s15634_s12 + $0x88] sm:$0xff] }
 0x21a   : > { %9459 = vmatpush.bf16.msrb.mxu1 %v14876_v41  ;;  %v14898_v41 = vld [vmem:[%s15624_s9 + $0x1018] sm:$0xff]  ;;  %406 = vst [vmem:[#allocation1 + $0x20] ss:$4 sm:$0xff] %v279_v57  ;;  %v14903_v63 = vld [vmem:[%s15624_s9 + $0x1040] sm:$0xff] }
 0x21b   : > { %9472 = vmatpush.bf16.msrb.mxu2 %v14884_v42  ;;  %v14906_v42 = vld [vmem:[%s15624_s9 + $0x1058] sm:$0xff] }
 0x21c   : > { %9485 = vmatpush.bf16.msrb.mxu3 %v14892_v43  ;;  %v14914_v43 = vld [vmem:[%s15624_s9 + $0x1098] sm:$0xff] }
 0x21d   : > { %9447 = vmatpush.bf16.msrb.mxu0 %v14867_v46  ;;  %v9221_v7 = vpop.f32.mrf.mxu2 }
 0x21e   : > { %9460 = vmatpush.bf16.msrb.mxu1 %v14875_v47  ;;  %v9234_v8 = vpop.f32.mrf.mxu3  ;;  %v410_v7 = vld.sshfl [vmem:[#allocation1 + $0x18] sm:$0xff pattern:$0x73625140] }
 0x21f   : > { %9473 = vmatpush.bf16.msrb.mxu2 %v14883_v49  ;;  %v14950_v8 = vld [vmem:[%s15624_s9 + $0x11b8] sm:$0xff] }
 0x220   : > { %9486 = vmatpush.bf16.msrb.mxu3 %v14891_v50  ;;  %v14897_v50 = vld [vmem:[%s15624_s9 + $0x1010] sm:$0xff] }
 0x221   : > { %9448 = vmatpush.bf16.msrb.mxu0 %v14866_v52  ;;  %v411_v57 = vld.sshfl [vmem:[#allocation1 + $0x20] sm:$0xff pattern:$0x73625140] }
 0x222   : > { %9461 = vmatpush.bf16.msrb.mxu1 %v14874_v53  ;;  %v14913_v53 = vld [vmem:[%s15624_s9 + $0x1090] sm:$0xff] }
 0x223   : > { %9474 = vmatpush.bf16.msrb.mxu2 %v14882_v54  ;;  %v14921_v54 = vld [vmem:[%s15624_s9 + $0x10d0] sm:$0xff] }
 0x224   : > { %9487 = vmatpush.bf16.msrb.mxu3 %v14890_v55  ;;  %v14896_v55 = vld [vmem:[%s15624_s9 + $0x1008] sm:$0xff] }
 0x225   : > { %9449 = vmatpush.bf16.msrb.mxu0 %v14865_v61 }
 0x226   : > { %9462 = vmatpush.bf16.msrb.mxu1 %v14873_v62  ;;  %v14895_v62 = vld [vmem:[%s15624_s9 + $0x1000] sm:$0xff] }
 0x227   : > { %9475 = vmatpush.bf16.msrb.mxu2 %v14881_v0  ;;  %v14911_v0 = vld [vmem:[%s15624_s9 + $0x1080] sm:$0xff] }
 0x228   : > { %9488 = vmatpush.bf16.msrb.mxu3 %v14889_v1  ;;  %v14919_v1 = vld [vmem:[%s15624_s9 + $0x10c0] sm:$0xff] }
 0x229   : > { %9450 = vmatpush.bf16.msrb.mxu0 %v14864_v2  ;;  %v14934_v2 = vld [vmem:[%s15624_s9 + $0x1138] sm:$0xff] }
 0x22a   : > { %9463 = vmatpush.bf16.msrb.mxu1 %v14872_v3  ;;  %v14942_v3 = vld [vmem:[%s15624_s9 + $0x1178] sm:$0xff] }
 0x22b   : > { %9476 = vmatpush.bf16.msrb.mxu2 %v14880_v5  ;;  %v409_v5 = vld.sshfl [vmem:[#allocation1 + $0x10] sm:$0xff pattern:$0x73625140] }
 0x22c   : > { %9489 = vmatpush.bf16.msrb.mxu3 %v14888_v6  ;;  %v408_v6 = vld.sshfl [vmem:[#allocation1 + $0x8] sm:$0xff pattern:$0x73625140] }
 0x22d   : > { %9451 = vmatpush.bf16.msrb.mxu0 %v14863_v9  ;;  %v9245_v33 = vpop.f32.mrf.mxu0  ;;  %v14958_v9 = vld [vmem:[%s15624_s9 + $0x11f8] sm:$0xff] }
 0x22e   : > { %9464 = vmatpush.bf16.msrb.mxu1 %v14871_v10  ;;  %v9246_v34 = vadd.f32 %v9245_v33, %v16183_v60  ;;  %v9258_v37 = vpop.f32.mrf.mxu1  ;;  %v668_v10 = vpack.c.bf16 %v407_v4, %v407_v4  ;;  %v14954_v33 = vld [vmem:[%s15624_s9 + $0x11d8] sm:$0xff]  ;;  %v14973_v4 = vld [vmem:[%s15624_s9 + $0x1270] sm:$0xff] }
 0x22f   : > { %9477 = vmatpush.bf16.msrb.mxu2 %v14879_v11  ;;  %v670_v11 = vpack.c.bf16 %v409_v5, %v409_v5  ;;  %v14981_v5 = vld [vmem:[%s15624_s9 + $0x12b0] sm:$0xff] }
 0x230   : > { %9490 = vmatpush.bf16.msrb.mxu3 %v14887_v12  ;;  %9452 = vmatmul.bf16.vlgmr.msrb.gmra.mxu0 %v664_v21  ;;  %v9259_v40 = vadd.f32 %v9258_v37, %v9246_v34  ;;  %v669_v12 = vpack.c.bf16 %v408_v6, %v408_v6  ;;  %v14956_v21 = vld [vmem:[%s15624_s9 + $0x11e8] sm:$0xff]  ;;  %v14989_v6 = vld [vmem:[%s15624_s9 + $0x12f0] sm:$0xff] }
 0x231   : > { %9496 = vmatpush.bf16.msra.mxu0 %v14902_v13  ;;  %9465 = vmatmul.bf16.vlgmr.msrb.gmra.mxu1 %v665_v23  ;;  %v671_v13 = vpack.c.bf16 %v410_v7, %v410_v7  ;;  %v14964_v7 = vld [vmem:[%s15624_s9 + $0x1228] sm:$0xff] }
 0x232   : > { %9509 = vmatpush.bf16.msra.mxu1 %v14910_v14  ;;  %9478 = vmatmul.bf16.vlgmr.msrb.gmra.mxu2 %v666_v22  ;;  %v14933_v14 = vld [vmem:[%s15624_s9 + $0x1130] sm:$0xff] }
 0x233   : > { %9522 = vmatpush.bf16.msra.mxu2 %v14918_v19  ;;  %9491 = vmatmul.bf16.vlgmr.msrb.gmra.mxu3 %v667_v24  ;;  %v14940_v19 = vld [vmem:[%s15624_s9 + $0x1168] sm:$0xff]  ;;  %v14931_v24 = vld [vmem:[%s15624_s9 + $0x1120] sm:$0xff] }
 0x234   : > { %9535 = vmatpush.bf16.msra.mxu3 %v14926_v20  ;;  %v14948_v20 = vld [vmem:[%s15624_s9 + $0x11a8] sm:$0xff] }
 0x235   : > { %9497 = vmatpush.bf16.msra.mxu0 %v14901_v25  ;;  %v9271_v45 = vpop.f32.mrf.mxu2  ;;  %v9247_v48 = vpop.f32.mrf.mxu0  ;;  %v14939_v25 = vld [vmem:[%s15624_s9 + $0x1160] sm:$0xff] }
 0x236   : > { %9510 = vmatpush.bf16.msra.mxu1 %v14909_v26  ;;  %v9272_v46 = vadd.f32 %v9271_v45, %v9259_v40  ;;  %v9284_v47 = vpop.f32.mrf.mxu3  ;;  %v9260_v52 = vpop.f32.mrf.mxu1  ;;  %v14937_v40 = vld [vmem:[%s15624_s9 + $0x1150] sm:$0xff]  ;;  %v14936_v45 = vld [vmem:[%s15624_s9 + $0x1148] sm:$0xff] }
 0x237   : > { %9523 = vmatpush.bf16.msra.mxu2 %v14917_v27  ;;  %v14947_v27 = vld [vmem:[%s15624_s9 + $0x11a0] sm:$0xff]  ;;  %v14952_v48 = vld [vmem:[%s15624_s9 + $0x11c8] sm:$0xff] }
 0x238   : > { %9536 = vmatpush.bf16.msra.mxu3 %v14925_v28  ;;  %v16219_v49 = vadd.f32 %v9284_v47, %v9272_v46  ;;  %v14955_v28 = vld [vmem:[%s15624_s9 + $0x11e0] sm:$0xff]  ;;  %v14944_v47 = vld [vmem:[%s15624_s9 + $0x1188] sm:$0xff] }
 0x239   : > { %9498 = vmatpush.bf16.msra.mxu0 %v14900_v29  ;;  %v280_v46 = vld [vmem:[%s15634_s12 + $0x90] sm:$0xff] }
 0x23a   : > { %9511 = vmatpush.bf16.msra.mxu1 %v14908_v30  ;;  %v14930_v30 = vld [vmem:[%s15624_s9 + $0x1118] sm:$0xff]  ;;  %415 = vst [vmem:[#allocation1] ss:$4 sm:$0xff] %v280_v46  ;;  %v14935_v52 = vld [vmem:[%s15624_s9 + $0x1140] sm:$0xff] }
 0x23b   : > { %9524 = vmatpush.bf16.msra.mxu2 %v14916_v31  ;;  %v14938_v31 = vld [vmem:[%s15624_s9 + $0x1158] sm:$0xff] }
 0x23c   : > { %9537 = vmatpush.bf16.msra.mxu3 %v14924_v32  ;;  %v14946_v32 = vld [vmem:[%s15624_s9 + $0x1198] sm:$0xff] }
 0x23d   : > { %9499 = vmatpush.bf16.msra.mxu0 %v14899_v35  ;;  %v9273_v60 = vpop.f32.mrf.mxu2 }
 0x23e   : > { %9512 = vmatpush.bf16.msra.mxu1 %v14907_v36  ;;  %v9286_v61 = vpop.f32.mrf.mxu3  ;;  %v414_v60 = vld.sshfl [vmem:[#allocation1 + $0x38] sm:$0xff pattern:$0x73625140] }
 0x23f   : > { %9525 = vmatpush.bf16.msra.mxu2 %v14915_v38  ;;  %v14982_v61 = vld [vmem:[%s15624_s9 + $0x12b8] sm:$0xff] }
 0x240   : > { %9538 = vmatpush.bf16.msra.mxu3 %v14923_v39  ;;  %v14929_v39 = vld [vmem:[%s15624_s9 + $0x1110] sm:$0xff] }
 0x241   : > { %9500 = vmatpush.bf16.msra.mxu0 %v14898_v41  ;;  %v417_v46 = vld.sshfl [vmem:[#allocation1] sm:$0xff pattern:$0x73625140] }
 0x242   : > { %9513 = vmatpush.bf16.msra.mxu1 %v14906_v42  ;;  %v14945_v42 = vld [vmem:[%s15624_s9 + $0x1190] sm:$0xff] }
 0x243   : > { %9526 = vmatpush.bf16.msra.mxu2 %v14914_v43  ;;  %v14953_v43 = vld [vmem:[%s15624_s9 + $0x11d0] sm:$0xff] }
 0x244   : > { %9539 = vmatpush.bf16.msra.mxu3 %v14922_v44  ;;  %v14928_v44 = vld [vmem:[%s15624_s9 + $0x1108] sm:$0xff] }
 0x245   : > { %9501 = vmatpush.bf16.msra.mxu0 %v14897_v50 }
 0x246   : > { %9514 = vmatpush.bf16.msra.mxu1 %v14905_v51  ;;  %v14927_v51 = vld [vmem:[%s15624_s9 + $0x1100] sm:$0xff] }
 0x247   : > { %9527 = vmatpush.bf16.msra.mxu2 %v14913_v53  ;;  %v14943_v53 = vld [vmem:[%s15624_s9 + $0x1180] sm:$0xff] }
 0x248   : > { %9540 = vmatpush.bf16.msra.mxu3 %v14921_v54  ;;  %v14951_v54 = vld [vmem:[%s15624_s9 + $0x11c0] sm:$0xff] }
 0x249   : > { %9502 = vmatpush.bf16.msra.mxu0 %v14896_v55  ;;  %v14966_v55 = vld [vmem:[%s15624_s9 + $0x1238] sm:$0xff] }
 0x24a   : > { %9515 = vmatpush.bf16.msra.mxu1 %v14904_v56  ;;  %v14974_v56 = vld [vmem:[%s15624_s9 + $0x1278] sm:$0xff] }
 0x24b   : > { %9528 = vmatpush.bf16.msra.mxu2 %v14912_v58  ;;  %v413_v58 = vld.sshfl [vmem:[#allocation1 + $0x30] sm:$0xff pattern:$0x73625140] }
 0x24c   : > { %9541 = vmatpush.bf16.msra.mxu3 %v14920_v59  ;;  %v412_v59 = vld.sshfl [vmem:[#allocation1 + $0x28] sm:$0xff pattern:$0x73625140] }
 0x24d   : > { %9503 = vmatpush.bf16.msra.mxu0 %v14895_v62  ;;  %v9297_v22 = vpop.f32.mrf.mxu0  ;;  %v14990_v62 = vld [vmem:[%s15624_s9 + $0x12f8] sm:$0xff] }
 0x24e   : > { %9516 = vmatpush.bf16.msra.mxu1 %v14903_v63  ;;  %v9298_v23 = vadd.f32 %v9297_v22, %v16219_v49  ;;  %v9310_v26 = vpop.f32.mrf.mxu1  ;;  %v672_v63 = vpack.c.bf16 %v411_v57, %v411_v57  ;;  %v14986_v22 = vld [vmem:[%s15624_s9 + $0x12d8] sm:$0xff]  ;;  %v15005_v57 = vld [vmem:[%s15624_s9 + $0x1370] sm:$0xff] }
 0x24f   : > { %9529 = vmatpush.bf16.msra.mxu2 %v14911_v0  ;;  %v674_v0 = vpack.c.bf16 %v413_v58, %v413_v58  ;;  %v15013_v58 = vld [vmem:[%s15624_s9 + $0x13b0] sm:$0xff] }
 0x250   : > { %9542 = vmatpush.bf16.msra.mxu3 %v14919_v1  ;;  %9504 = vmatmul.bf16.vlgmr.msra.gmra.mxu0 %v668_v10  ;;  %v9311_v29 = vadd.f32 %v9310_v26, %v9298_v23  ;;  %v673_v1 = vpack.c.bf16 %v412_v59, %v412_v59  ;;  %v14988_v10 = vld [vmem:[%s15624_s9 + $0x12e8] sm:$0xff]  ;;  %v15021_v59 = vld [vmem:[%s15624_s9 + $0x13f0] sm:$0xff] }
 0x251   : > { %9548 = vmatpush.bf16.msrb.mxu0 %v14934_v2  ;;  %9517 = vmatmul.bf16.vlgmr.msra.gmra.mxu1 %v669_v12  ;;  %v675_v2 = vpack.c.bf16 %v414_v60, %v414_v60  ;;  %v14996_v60 = vld [vmem:[%s15624_s9 + $0x1328] sm:$0xff] }
 0x252   : > { %9561 = vmatpush.bf16.msrb.mxu1 %v14942_v3  ;;  %9530 = vmatmul.bf16.vlgmr.msra.gmra.mxu2 %v670_v11  ;;  %v14965_v3 = vld [vmem:[%s15624_s9 + $0x1230] sm:$0xff] }
 0x253   : > { %9574 = vmatpush.bf16.msrb.mxu2 %v14950_v8  ;;  %9543 = vmatmul.bf16.vlgmr.msra.gmra.mxu3 %v671_v13  ;;  %v14972_v8 = vld [vmem:[%s15624_s9 + $0x1268] sm:$0xff]  ;;  %v14963_v13 = vld [vmem:[%s15624_s9 + $0x1220] sm:$0xff] }
 0x254   : > { %9587 = vmatpush.bf16.msrb.mxu3 %v14958_v9  ;;  %v14980_v9 = vld [vmem:[%s15624_s9 + $0x12a8] sm:$0xff] }
 0x255   : > { %9549 = vmatpush.bf16.msrb.mxu0 %v14933_v14  ;;  %v9323_v34 = vpop.f32.mrf.mxu2  ;;  %v9299_v37 = vpop.f32.mrf.mxu0  ;;  %v14971_v14 = vld [vmem:[%s15624_s9 + $0x1260] sm:$0xff] }
 0x256   : > { %9562 = vmatpush.bf16.msrb.mxu1 %v14941_v15  ;;  %v9324_v35 = vadd.f32 %v9323_v34, %v9311_v29  ;;  %v9336_v36 = vpop.f32.mrf.mxu3  ;;  %v9312_v41 = vpop.f32.mrf.mxu1  ;;  %v14969_v29 = vld [vmem:[%s15624_s9 + $0x1250] sm:$0xff]  ;;  %v14968_v34 = vld [vmem:[%s15624_s9 + $0x1248] sm:$0xff] }
 0x257   : > { %9575 = vmatpush.bf16.msrb.mxu2 %v14949_v16  ;;  %v14979_v16 = vld [vmem:[%s15624_s9 + $0x12a0] sm:$0xff]  ;;  %v14984_v37 = vld [vmem:[%s15624_s9 + $0x12c8] sm:$0xff] }
 0x258   : > { %9588 = vmatpush.bf16.msrb.mxu3 %v14957_v17  ;;  %v16255_v38 = vadd.f32 %v9336_v36, %v9324_v35  ;;  %v14987_v17 = vld [vmem:[%s15624_s9 + $0x12e0] sm:$0xff]  ;;  %v281_v35 = vld [vmem:[%s15634_s12 + $0x98] sm:$0xff] }
 0x259   : > { %9550 = vmatpush.bf16.msrb.mxu0 %v14932_v18  ;;  %v14976_v36 = vld [vmem:[%s15624_s9 + $0x1288] sm:$0xff]  ;;  %416 = vst [vmem:[#allocation1 + $0x20] ss:$4 sm:$0xff] %v281_v35  ;;  %v14967_v41 = vld [vmem:[%s15624_s9 + $0x1240] sm:$0xff] }
 0x25a   : > { %9563 = vmatpush.bf16.msrb.mxu1 %v14940_v19  ;;  %v14962_v19 = vld [vmem:[%s15624_s9 + $0x1218] sm:$0xff] }
 0x25b   : > { %9576 = vmatpush.bf16.msrb.mxu2 %v14948_v20  ;;  %v14970_v20 = vld [vmem:[%s15624_s9 + $0x1258] sm:$0xff] }
 0x25c   : > { %9589 = vmatpush.bf16.msrb.mxu3 %v14956_v21  ;;  %v14978_v21 = vld [vmem:[%s15624_s9 + $0x1298] sm:$0xff] }
 0x25d   : > { %9551 = vmatpush.bf16.msrb.mxu0 %v14931_v24  ;;  %v9325_v49 = vpop.f32.mrf.mxu2 }
 0x25e   : > { %9564 = vmatpush.bf16.msrb.mxu1 %v14939_v25  ;;  %v9338_v50 = vpop.f32.mrf.mxu3  ;;  %v420_v49 = vld.sshfl [vmem:[#allocation1 + $0x18] sm:$0xff pattern:$0x73625140] }
 0x25f   : > { %9577 = vmatpush.bf16.msrb.mxu2 %v14947_v27  ;;  %v15014_v50 = vld [vmem:[%s15624_s9 + $0x13b8] sm:$0xff] }
 0x260   : > { %9590 = vmatpush.bf16.msrb.mxu3 %v14955_v28  ;;  %v14961_v28 = vld [vmem:[%s15624_s9 + $0x1210] sm:$0xff] }
 0x261   : > { %9552 = vmatpush.bf16.msrb.mxu0 %v14930_v30  ;;  %v421_v35 = vld.sshfl [vmem:[#allocation1 + $0x20] sm:$0xff pattern:$0x73625140] }
 0x262   : > { %9565 = vmatpush.bf16.msrb.mxu1 %v14938_v31  ;;  %v14977_v31 = vld [vmem:[%s15624_s9 + $0x1290] sm:$0xff] }
 0x263   : > { %9578 = vmatpush.bf16.msrb.mxu2 %v14946_v32  ;;  %v14985_v32 = vld [vmem:[%s15624_s9 + $0x12d0] sm:$0xff] }
 0x264   : > { %9591 = vmatpush.bf16.msrb.mxu3 %v14954_v33  ;;  %v14960_v33 = vld [vmem:[%s15624_s9 + $0x1208] sm:$0xff] }
 0x265   : > { %9553 = vmatpush.bf16.msrb.mxu0 %v14929_v39 }
 0x266   : > { %9566 = vmatpush.bf16.msrb.mxu1 %v14937_v40  ;;  %v14959_v40 = vld [vmem:[%s15624_s9 + $0x1200] sm:$0xff] }
 0x267   : > { %9579 = vmatpush.bf16.msrb.mxu2 %v14945_v42  ;;  %v14975_v42 = vld [vmem:[%s15624_s9 + $0x1280] sm:$0xff] }
 0x268   : > { %9592 = vmatpush.bf16.msrb.mxu3 %v14953_v43  ;;  %v14983_v43 = vld [vmem:[%s15624_s9 + $0x12c0] sm:$0xff] }
 0x269   : > { %9554 = vmatpush.bf16.msrb.mxu0 %v14928_v44  ;;  %v14998_v44 = vld [vmem:[%s15624_s9 + $0x1338] sm:$0xff] }
 0x26a   : > { %9567 = vmatpush.bf16.msrb.mxu1 %v14936_v45  ;;  %v15006_v45 = vld [vmem:[%s15624_s9 + $0x1378] sm:$0xff] }
 0x26b   : > { %9580 = vmatpush.bf16.msrb.mxu2 %v14944_v47  ;;  %v419_v47 = vld.sshfl [vmem:[#allocation1 + $0x10] sm:$0xff pattern:$0x73625140] }
 0x26c   : > { %9593 = vmatpush.bf16.msrb.mxu3 %v14952_v48  ;;  %v418_v48 = vld.sshfl [vmem:[#allocation1 + $0x8] sm:$0xff pattern:$0x73625140] }
 0x26d   : > { %9555 = vmatpush.bf16.msrb.mxu0 %v14927_v51  ;;  %v9349_v11 = vpop.f32.mrf.mxu0  ;;  %v15022_v51 = vld [vmem:[%s15624_s9 + $0x13f8] sm:$0xff] }
 0x26e   : > { %9568 = vmatpush.bf16.msrb.mxu1 %v14935_v52  ;;  %v9350_v12 = vadd.f32 %v9349_v11, %v16255_v38  ;;  %v9362_v15 = vpop.f32.mrf.mxu1  ;;  %v676_v52 = vpack.c.bf16 %v417_v46, %v417_v46  ;;  %v15018_v11 = vld [vmem:[%s15624_s9 + $0x13d8] sm:$0xff]  ;;  %v15037_v46 = vld [vmem:[%s15624_s9 + $0x1470] sm:$0xff] }
 0x26f   : > { %9581 = vmatpush.bf16.msrb.mxu2 %v14943_v53  ;;  %v678_v53 = vpack.c.bf16 %v419_v47, %v419_v47  ;;  %v15045_v47 = vld [vmem:[%s15624_s9 + $0x14b0] sm:$0xff] }
 0x270   : > { %9594 = vmatpush.bf16.msrb.mxu3 %v14951_v54  ;;  %9556 = vmatmul.bf16.vlgmr.msrb.gmra.mxu0 %v672_v63  ;;  %v9363_v18 = vadd.f32 %v9362_v15, %v9350_v12  ;;  %v677_v54 = vpack.c.bf16 %v418_v48, %v418_v48  ;;  %v15020_v63 = vld [vmem:[%s15624_s9 + $0x13e8] sm:$0xff]  ;;  %v15053_v48 = vld [vmem:[%s15624_s9 + $0x14f0] sm:$0xff] }
 0x271   : > { %9600 = vmatpush.bf16.msra.mxu0 %v14966_v55  ;;  %9569 = vmatmul.bf16.vlgmr.msrb.gmra.mxu1 %v673_v1  ;;  %v679_v55 = vpack.c.bf16 %v420_v49, %v420_v49  ;;  %v15028_v49 = vld [vmem:[%s15624_s9 + $0x1428] sm:$0xff] }
 0x272   : > { %9613 = vmatpush.bf16.msra.mxu1 %v14974_v56  ;;  %9582 = vmatmul.bf16.vlgmr.msrb.gmra.mxu2 %v674_v0  ;;  %v14997_v56 = vld [vmem:[%s15624_s9 + $0x1330] sm:$0xff] }
 0x273   : > { %9626 = vmatpush.bf16.msra.mxu2 %v14982_v61  ;;  %9595 = vmatmul.bf16.vlgmr.msrb.gmra.mxu3 %v675_v2  ;;  %v15004_v61 = vld [vmem:[%s15624_s9 + $0x1368] sm:$0xff]  ;;  %v14995_v2 = vld [vmem:[%s15624_s9 + $0x1320] sm:$0xff] }
 0x274   : > { %9639 = vmatpush.bf16.msra.mxu3 %v14990_v62  ;;  %v15012_v62 = vld [vmem:[%s15624_s9 + $0x13a8] sm:$0xff] }
 0x275   : > { %9601 = vmatpush.bf16.msra.mxu0 %v14965_v3  ;;  %v9375_v23 = vpop.f32.mrf.mxu2  ;;  %v9351_v26 = vpop.f32.mrf.mxu0  ;;  %v15003_v3 = vld [vmem:[%s15624_s9 + $0x1360] sm:$0xff] }
 0x276   : > { %9614 = vmatpush.bf16.msra.mxu1 %v14973_v4  ;;  %v9376_v24 = vadd.f32 %v9375_v23, %v9363_v18  ;;  %v9388_v25 = vpop.f32.mrf.mxu3  ;;  %v9364_v30 = vpop.f32.mrf.mxu1  ;;  %v15001_v18 = vld [vmem:[%s15624_s9 + $0x1350] sm:$0xff]  ;;  %v15000_v23 = vld [vmem:[%s15624_s9 + $0x1348] sm:$0xff] }
 0x277   : > { %9627 = vmatpush.bf16.msra.mxu2 %v14981_v5  ;;  %v15011_v5 = vld [vmem:[%s15624_s9 + $0x13a0] sm:$0xff]  ;;  %v15016_v26 = vld [vmem:[%s15624_s9 + $0x13c8] sm:$0xff] }
 0x278   : > { %9640 = vmatpush.bf16.msra.mxu3 %v14989_v6  ;;  %v16291_v27 = vadd.f32 %v9388_v25, %v9376_v24  ;;  %v15019_v6 = vld [vmem:[%s15624_s9 + $0x13e0] sm:$0xff]  ;;  %v282_v24 = vld [vmem:[%s15634_s12 + $0xa0] sm:$0xff]  ;;  %v15008_v25 = vld [vmem:[%s15624_s9 + $0x1388] sm:$0xff] }
 0x279   : > { %9602 = vmatpush.bf16.msra.mxu0 %v14964_v7  ;;  %425 = vst [vmem:[#allocation1] ss:$4 sm:$0xff] %v282_v24  ;;  %v14999_v30 = vld [vmem:[%s15624_s9 + $0x1340] sm:$0xff] }
 0x27a   : > { %9615 = vmatpush.bf16.msra.mxu1 %v14972_v8  ;;  %v14994_v8 = vld [vmem:[%s15624_s9 + $0x1318] sm:$0xff] }
 0x27b   : > { %9628 = vmatpush.bf16.msra.mxu2 %v14980_v9  ;;  %v15002_v9 = vld [vmem:[%s15624_s9 + $0x1358] sm:$0xff] }
 0x27c   : > { %9641 = vmatpush.bf16.msra.mxu3 %v14988_v10  ;;  %v15010_v10 = vld [vmem:[%s15624_s9 + $0x1398] sm:$0xff] }
 0x27d   : > { %9603 = vmatpush.bf16.msra.mxu0 %v14963_v13  ;;  %v9377_v38 = vpop.f32.mrf.mxu2 }
 0x27e   : > { %9616 = vmatpush.bf16.msra.mxu1 %v14971_v14  ;;  %v9390_v39 = vpop.f32.mrf.mxu3  ;;  %v424_v38 = vld.sshfl [vmem:[#allocation1 + $0x38] sm:$0xff pattern:$0x73625140] }
 0x27f   : > { %9629 = vmatpush.bf16.msra.mxu2 %v14979_v16  ;;  %v15046_v39 = vld [vmem:[%s15624_s9 + $0x14b8] sm:$0xff] }
 0x280   : > { %9642 = vmatpush.bf16.msra.mxu3 %v14987_v17  ;;  %v14993_v17 = vld [vmem:[%s15624_s9 + $0x1310] sm:$0xff] }
 0x281   : > { %9604 = vmatpush.bf16.msra.mxu0 %v14962_v19  ;;  %v427_v24 = vld.sshfl [vmem:[#allocation1] sm:$0xff pattern:$0x73625140] }
 0x282   : > { %9617 = vmatpush.bf16.msra.mxu1 %v14970_v20  ;;  %v15009_v20 = vld [vmem:[%s15624_s9 + $0x1390] sm:$0xff] }
 0x283   : > { %9630 = vmatpush.bf16.msra.mxu2 %v14978_v21  ;;  %v15017_v21 = vld [vmem:[%s15624_s9 + $0x13d0] sm:$0xff] }
 0x284   : > { %9643 = vmatpush.bf16.msra.mxu3 %v14986_v22  ;;  %v14992_v22 = vld [vmem:[%s15624_s9 + $0x1308] sm:$0xff] }
 0x285   : > { %9605 = vmatpush.bf16.msra.mxu0 %v14961_v28 }
 0x286   : > { %9618 = vmatpush.bf16.msra.mxu1 %v14969_v29  ;;  %v14991_v29 = vld [vmem:[%s15624_s9 + $0x1300] sm:$0xff] }
 0x287   : > { %9631 = vmatpush.bf16.msra.mxu2 %v14977_v31  ;;  %v15007_v31 = vld [vmem:[%s15624_s9 + $0x1380] sm:$0xff] }
 0x288   : > { %9644 = vmatpush.bf16.msra.mxu3 %v14985_v32  ;;  %v15015_v32 = vld [vmem:[%s15624_s9 + $0x13c0] sm:$0xff] }
 0x289   : > { %9606 = vmatpush.bf16.msra.mxu0 %v14960_v33  ;;  %v15030_v33 = vld [vmem:[%s15624_s9 + $0x1438] sm:$0xff] }
 0x28a   : > { %9619 = vmatpush.bf16.msra.mxu1 %v14968_v34  ;;  %v15038_v34 = vld [vmem:[%s15624_s9 + $0x1478] sm:$0xff] }
 0x28b   : > { %9632 = vmatpush.bf16.msra.mxu2 %v14976_v36  ;;  %v423_v36 = vld.sshfl [vmem:[#allocation1 + $0x30] sm:$0xff pattern:$0x73625140] }
 0x28c   : > { %9645 = vmatpush.bf16.msra.mxu3 %v14984_v37  ;;  %v422_v37 = vld.sshfl [vmem:[#allocation1 + $0x28] sm:$0xff pattern:$0x73625140] }
 0x28d   : > { %9607 = vmatpush.bf16.msra.mxu0 %v14959_v40  ;;  %v9401_v0 = vpop.f32.mrf.mxu0  ;;  %v15054_v40 = vld [vmem:[%s15624_s9 + $0x14f8] sm:$0xff] }
 0x28e   : > { %9620 = vmatpush.bf16.msra.mxu1 %v14967_v41  ;;  %v9402_v1 = vadd.f32 %v9401_v0, %v16291_v27  ;;  %v9414_v4 = vpop.f32.mrf.mxu1  ;;  %v680_v41 = vpack.c.bf16 %v421_v35, %v421_v35  ;;  %v15050_v0 = vld [vmem:[%s15624_s9 + $0x14d8] sm:$0xff]  ;;  %v15069_v35 = vld [vmem:[%s15624_s9 + $0x1570] sm:$0xff] }
 0x28f   : > { %9633 = vmatpush.bf16.msra.mxu2 %v14975_v42  ;;  %v682_v42 = vpack.c.bf16 %v423_v36, %v423_v36  ;;  %v15077_v36 = vld [vmem:[%s15624_s9 + $0x15b0] sm:$0xff] }
 0x290   : > { %9646 = vmatpush.bf16.msra.mxu3 %v14983_v43  ;;  %9608 = vmatmul.bf16.vlgmr.msra.gmra.mxu0 %v676_v52  ;;  %v9415_v7 = vadd.f32 %v9414_v4, %v9402_v1  ;;  %v681_v43 = vpack.c.bf16 %v422_v37, %v422_v37  ;;  %v15052_v52 = vld [vmem:[%s15624_s9 + $0x14e8] sm:$0xff]  ;;  %v15085_v37 = vld [vmem:[%s15624_s9 + $0x15f0] sm:$0xff] }
 0x291   : > { %9652 = vmatpush.bf16.msrb.mxu0 %v14998_v44  ;;  %9621 = vmatmul.bf16.vlgmr.msra.gmra.mxu1 %v677_v54  ;;  %v683_v44 = vpack.c.bf16 %v424_v38, %v424_v38  ;;  %v15060_v38 = vld [vmem:[%s15624_s9 + $0x1528] sm:$0xff] }
 0x292   : > { %9665 = vmatpush.bf16.msrb.mxu1 %v15006_v45  ;;  %9634 = vmatmul.bf16.vlgmr.msra.gmra.mxu2 %v678_v53  ;;  %v15029_v45 = vld [vmem:[%s15624_s9 + $0x1430] sm:$0xff] }
 0x293   : > { %9678 = vmatpush.bf16.msrb.mxu2 %v15014_v50  ;;  %9647 = vmatmul.bf16.vlgmr.msra.gmra.mxu3 %v679_v55  ;;  %v15036_v50 = vld [vmem:[%s15624_s9 + $0x1468] sm:$0xff]  ;;  %v15027_v55 = vld [vmem:[%s15624_s9 + $0x1420] sm:$0xff] }
 0x294   : > { %9691 = vmatpush.bf16.msrb.mxu3 %v15022_v51  ;;  %v15044_v51 = vld [vmem:[%s15624_s9 + $0x14a8] sm:$0xff] }
 0x295   : > { %9653 = vmatpush.bf16.msrb.mxu0 %v14997_v56  ;;  %v9427_v12 = vpop.f32.mrf.mxu2  ;;  %v9403_v15 = vpop.f32.mrf.mxu0  ;;  %v15035_v56 = vld [vmem:[%s15624_s9 + $0x1460] sm:$0xff] }
 0x296   : > { %9666 = vmatpush.bf16.msrb.mxu1 %v15005_v57  ;;  %v9428_v13 = vadd.f32 %v9427_v12, %v9415_v7  ;;  %v9440_v14 = vpop.f32.mrf.mxu3  ;;  %v9416_v19 = vpop.f32.mrf.mxu1  ;;  %v15033_v7 = vld [vmem:[%s15624_s9 + $0x1450] sm:$0xff]  ;;  %v15032_v12 = vld [vmem:[%s15624_s9 + $0x1448] sm:$0xff] }
 0x297   : > { %9679 = vmatpush.bf16.msrb.mxu2 %v15013_v58  ;;  %v15043_v58 = vld [vmem:[%s15624_s9 + $0x14a0] sm:$0xff]  ;;  %v15048_v15 = vld [vmem:[%s15624_s9 + $0x14c8] sm:$0xff] }
 0x298   : > { %9692 = vmatpush.bf16.msrb.mxu3 %v15021_v59  ;;  %v16327_v16 = vadd.f32 %v9440_v14, %v9428_v13  ;;  %v15051_v59 = vld [vmem:[%s15624_s9 + $0x14e0] sm:$0xff]  ;;  %v15040_v14 = vld [vmem:[%s15624_s9 + $0x1488] sm:$0xff] }
 0x299   : > { %9654 = vmatpush.bf16.msrb.mxu0 %v14996_v60  ;;  %v283_v13 = vld [vmem:[%s15634_s12 + $0xa8] sm:$0xff] }
 0x29a   : > { %9667 = vmatpush.bf16.msrb.mxu1 %v15004_v61  ;;  %v15026_v61 = vld [vmem:[%s15624_s9 + $0x1418] sm:$0xff]  ;;  %426 = vst [vmem:[#allocation1 + $0x20] ss:$4 sm:$0xff] %v283_v13  ;;  %v15031_v19 = vld [vmem:[%s15624_s9 + $0x1440] sm:$0xff] }
 0x29b   : > { %9680 = vmatpush.bf16.msrb.mxu2 %v15012_v62  ;;  %v15034_v62 = vld [vmem:[%s15624_s9 + $0x1458] sm:$0xff] }
 0x29c   : > { %9693 = vmatpush.bf16.msrb.mxu3 %v15020_v63  ;;  %v15042_v63 = vld [vmem:[%s15624_s9 + $0x1498] sm:$0xff] }
 0x29d   : > { %9655 = vmatpush.bf16.msrb.mxu0 %v14995_v2  ;;  %v9429_v27 = vpop.f32.mrf.mxu2 }
 0x29e   : > { %9668 = vmatpush.bf16.msrb.mxu1 %v15003_v3  ;;  %v9442_v28 = vpop.f32.mrf.mxu3  ;;  %v430_v27 = vld.sshfl [vmem:[#allocation1 + $0x18] sm:$0xff pattern:$0x73625140] }
 0x29f   : > { %9681 = vmatpush.bf16.msrb.mxu2 %v15011_v5  ;;  %v15078_v28 = vld [vmem:[%s15624_s9 + $0x15b8] sm:$0xff] }
 0x2a0   : > { %9694 = vmatpush.bf16.msrb.mxu3 %v15019_v6  ;;  %v15025_v6 = vld [vmem:[%s15624_s9 + $0x1410] sm:$0xff] }
 0x2a1   : > { %9656 = vmatpush.bf16.msrb.mxu0 %v14994_v8  ;;  %v431_v13 = vld.sshfl [vmem:[#allocation1 + $0x20] sm:$0xff pattern:$0x73625140] }
 0x2a2   : > { %9669 = vmatpush.bf16.msrb.mxu1 %v15002_v9  ;;  %v15041_v9 = vld [vmem:[%s15624_s9 + $0x1490] sm:$0xff] }
 0x2a3   : > { %9682 = vmatpush.bf16.msrb.mxu2 %v15010_v10  ;;  %v15049_v10 = vld [vmem:[%s15624_s9 + $0x14d0] sm:$0xff] }
 0x2a4   : > { %9695 = vmatpush.bf16.msrb.mxu3 %v15018_v11  ;;  %v15024_v11 = vld [vmem:[%s15624_s9 + $0x1408] sm:$0xff] }
 0x2a5   : > { %9657 = vmatpush.bf16.msrb.mxu0 %v14993_v17 }
 0x2a6   : > { %9670 = vmatpush.bf16.msrb.mxu1 %v15001_v18  ;;  %v15023_v18 = vld [vmem:[%s15624_s9 + $0x1400] sm:$0xff] }
 0x2a7   : > { %9683 = vmatpush.bf16.msrb.mxu2 %v15009_v20  ;;  %v15039_v20 = vld [vmem:[%s15624_s9 + $0x1480] sm:$0xff] }
 0x2a8   : > { %9696 = vmatpush.bf16.msrb.mxu3 %v15017_v21  ;;  %v15047_v21 = vld [vmem:[%s15624_s9 + $0x14c0] sm:$0xff] }
 0x2a9   : > { %9658 = vmatpush.bf16.msrb.mxu0 %v14992_v22  ;;  %v15062_v22 = vld [vmem:[%s15624_s9 + $0x1538] sm:$0xff] }
 0x2aa   : > { %9671 = vmatpush.bf16.msrb.mxu1 %v15000_v23  ;;  %v15070_v23 = vld [vmem:[%s15624_s9 + $0x1578] sm:$0xff] }
 0x2ab   : > { %9684 = vmatpush.bf16.msrb.mxu2 %v15008_v25  ;;  %v429_v25 = vld.sshfl [vmem:[#allocation1 + $0x10] sm:$0xff pattern:$0x73625140] }
 0x2ac   : > { %9697 = vmatpush.bf16.msrb.mxu3 %v15016_v26  ;;  %v428_v26 = vld.sshfl [vmem:[#allocation1 + $0x8] sm:$0xff pattern:$0x73625140] }
 0x2ad   : > { %9659 = vmatpush.bf16.msrb.mxu0 %v14991_v29  ;;  %v9453_v53 = vpop.f32.mrf.mxu0  ;;  %v15086_v29 = vld [vmem:[%s15624_s9 + $0x15f8] sm:$0xff] }
 0x2ae   : > { %9672 = vmatpush.bf16.msrb.mxu1 %v14999_v30  ;;  %v9454_v54 = vadd.f32 %v9453_v53, %v16327_v16  ;;  %v9466_v57 = vpop.f32.mrf.mxu1  ;;  %v684_v30 = vpack.c.bf16 %v427_v24, %v427_v24  ;;  %v15082_v53 = vld [vmem:[%s15624_s9 + $0x15d8] sm:$0xff]  ;;  %v15101_v24 = vld [vmem:[%s15624_s9 + $0x1670] sm:$0xff] }
 0x2af   : > { %9685 = vmatpush.bf16.msrb.mxu2 %v15007_v31  ;;  %v686_v31 = vpack.c.bf16 %v429_v25, %v429_v25  ;;  %v15109_v25 = vld [vmem:[%s15624_s9 + $0x16b0] sm:$0xff] }
 0x2b0   : > { %9698 = vmatpush.bf16.msrb.mxu3 %v15015_v32  ;;  %9660 = vmatmul.bf16.vlgmr.msrb.gmra.mxu0 %v680_v41  ;;  %v9467_v60 = vadd.f32 %v9466_v57, %v9454_v54  ;;  %v685_v32 = vpack.c.bf16 %v428_v26, %v428_v26  ;;  %v15084_v41 = vld [vmem:[%s15624_s9 + $0x15e8] sm:$0xff]  ;;  %v15117_v26 = vld [vmem:[%s15624_s9 + $0x16f0] sm:$0xff] }
 0x2b1   : > { %9704 = vmatpush.bf16.msra.mxu0 %v15030_v33  ;;  %9673 = vmatmul.bf16.vlgmr.msrb.gmra.mxu1 %v681_v43  ;;  %v687_v33 = vpack.c.bf16 %v430_v27, %v430_v27  ;;  %v15092_v27 = vld [vmem:[%s15624_s9 + $0x1628] sm:$0xff] }
 0x2b2   : > { %9717 = vmatpush.bf16.msra.mxu1 %v15038_v34  ;;  %9686 = vmatmul.bf16.vlgmr.msrb.gmra.mxu2 %v682_v42  ;;  %v15061_v34 = vld [vmem:[%s15624_s9 + $0x1530] sm:$0xff] }
 0x2b3   : > { %9730 = vmatpush.bf16.msra.mxu2 %v15046_v39  ;;  %9699 = vmatmul.bf16.vlgmr.msrb.gmra.mxu3 %v683_v44  ;;  %v15068_v39 = vld [vmem:[%s15624_s9 + $0x1568] sm:$0xff]  ;;  %v15059_v44 = vld [vmem:[%s15624_s9 + $0x1520] sm:$0xff] }
 0x2b4   : > { %9743 = vmatpush.bf16.msra.mxu3 %v15054_v40  ;;  %v15076_v40 = vld [vmem:[%s15624_s9 + $0x15a8] sm:$0xff] }
 0x2b5   : > { %9705 = vmatpush.bf16.msra.mxu0 %v15029_v45  ;;  %v9479_v1 = vpop.f32.mrf.mxu2  ;;  %v9455_v4 = vpop.f32.mrf.mxu0  ;;  %v15067_v45 = vld [vmem:[%s15624_s9 + $0x1560] sm:$0xff] }
 0x2b6   : > { %9718 = vmatpush.bf16.msra.mxu1 %v15037_v46  ;;  %v9480_v2 = vadd.f32 %v9479_v1, %v9467_v60  ;;  %v9492_v3 = vpop.f32.mrf.mxu3  ;;  %v9468_v8 = vpop.f32.mrf.mxu1  ;;  %v15065_v60 = vld [vmem:[%s15624_s9 + $0x1550] sm:$0xff]  ;;  %v15064_v1 = vld [vmem:[%s15624_s9 + $0x1548] sm:$0xff] }
 0x2b7   : > { %9731 = vmatpush.bf16.msra.mxu2 %v15045_v47  ;;  %v15075_v47 = vld [vmem:[%s15624_s9 + $0x15a0] sm:$0xff]  ;;  %v15080_v4 = vld [vmem:[%s15624_s9 + $0x15c8] sm:$0xff] }
 0x2b8   : > { %9744 = vmatpush.bf16.msra.mxu3 %v15053_v48  ;;  %v16363_v5 = vadd.f32 %v9492_v3, %v9480_v2  ;;  %v15083_v48 = vld [vmem:[%s15624_s9 + $0x15e0] sm:$0xff]  ;;  %v15072_v3 = vld [vmem:[%s15624_s9 + $0x1588] sm:$0xff] }
 0x2b9   : > { %9706 = vmatpush.bf16.msra.mxu0 %v15028_v49  ;;  %v284_v2 = vld [vmem:[%s15634_s12 + $0xb0] sm:$0xff] }
 0x2ba   : > { %9719 = vmatpush.bf16.msra.mxu1 %v15036_v50  ;;  %v15058_v50 = vld [vmem:[%s15624_s9 + $0x1518] sm:$0xff]  ;;  %435 = vst [vmem:[#allocation1] ss:$4 sm:$0xff] %v284_v2  ;;  %v15063_v8 = vld [vmem:[%s15624_s9 + $0x1540] sm:$0xff] }
 0x2bb   : > { %9732 = vmatpush.bf16.msra.mxu2 %v15044_v51  ;;  %v15066_v51 = vld [vmem:[%s15624_s9 + $0x1558] sm:$0xff] }
 0x2bc   : > { %9745 = vmatpush.bf16.msra.mxu3 %v15052_v52  ;;  %v15074_v52 = vld [vmem:[%s15624_s9 + $0x1598] sm:$0xff] }
 0x2bd   : > { %9707 = vmatpush.bf16.msra.mxu0 %v15027_v55  ;;  %v9481_v16 = vpop.f32.mrf.mxu2 }
 0x2be   : > { %9720 = vmatpush.bf16.msra.mxu1 %v15035_v56  ;;  %v9494_v17 = vpop.f32.mrf.mxu3  ;;  %v434_v16 = vld.sshfl [vmem:[#allocation1 + $0x38] sm:$0xff pattern:$0x73625140] }
 0x2bf   : > { %9733 = vmatpush.bf16.msra.mxu2 %v15043_v58  ;;  %v15110_v17 = vld [vmem:[%s15624_s9 + $0x16b8] sm:$0xff] }
 0x2c0   : > { %9746 = vmatpush.bf16.msra.mxu3 %v15051_v59  ;;  %v15057_v59 = vld [vmem:[%s15624_s9 + $0x1510] sm:$0xff] }
 0x2c1   : > { %9708 = vmatpush.bf16.msra.mxu0 %v15026_v61  ;;  %v437_v2 = vld.sshfl [vmem:[#allocation1] sm:$0xff pattern:$0x73625140] }
 0x2c2   : > { %9721 = vmatpush.bf16.msra.mxu1 %v15034_v62  ;;  %v15073_v62 = vld [vmem:[%s15624_s9 + $0x1590] sm:$0xff] }
 0x2c3   : > { %9734 = vmatpush.bf16.msra.mxu2 %v15042_v63  ;;  %v15081_v63 = vld [vmem:[%s15624_s9 + $0x15d0] sm:$0xff] }
 0x2c4   : > { %9747 = vmatpush.bf16.msra.mxu3 %v15050_v0  ;;  %v15056_v0 = vld [vmem:[%s15624_s9 + $0x1508] sm:$0xff] }
 0x2c5   : > { %9709 = vmatpush.bf16.msra.mxu0 %v15025_v6 }
 0x2c6   : > { %9722 = vmatpush.bf16.msra.mxu1 %v15033_v7  ;;  %v15055_v7 = vld [vmem:[%s15624_s9 + $0x1500] sm:$0xff] }
 0x2c7   : > { %9735 = vmatpush.bf16.msra.mxu2 %v15041_v9  ;;  %v15071_v9 = vld [vmem:[%s15624_s9 + $0x1580] sm:$0xff] }
 0x2c8   : > { %9748 = vmatpush.bf16.msra.mxu3 %v15049_v10  ;;  %v15079_v10 = vld [vmem:[%s15624_s9 + $0x15c0] sm:$0xff] }
 0x2c9   : > { %9710 = vmatpush.bf16.msra.mxu0 %v15024_v11  ;;  %v15094_v11 = vld [vmem:[%s15624_s9 + $0x1638] sm:$0xff] }
 0x2ca   : > { %9723 = vmatpush.bf16.msra.mxu1 %v15032_v12  ;;  %v15102_v12 = vld [vmem:[%s15624_s9 + $0x1678] sm:$0xff] }
 0x2cb   : > { %9736 = vmatpush.bf16.msra.mxu2 %v15040_v14  ;;  %v433_v14 = vld.sshfl [vmem:[#allocation1 + $0x30] sm:$0xff pattern:$0x73625140] }
 0x2cc   : > { %9749 = vmatpush.bf16.msra.mxu3 %v15048_v15  ;;  %v432_v15 = vld.sshfl [vmem:[#allocation1 + $0x28] sm:$0xff pattern:$0x73625140] }
 0x2cd   : > { %9711 = vmatpush.bf16.msra.mxu0 %v15023_v18  ;;  %v9505_v42 = vpop.f32.mrf.mxu0  ;;  %v15118_v18 = vld [vmem:[%s15624_s9 + $0x16f8] sm:$0xff] }
 0x2ce   : > { %9724 = vmatpush.bf16.msra.mxu1 %v15031_v19  ;;  %v9506_v43 = vadd.f32 %v9505_v42, %v16363_v5  ;;  %v9518_v46 = vpop.f32.mrf.mxu1  ;;  %v688_v19 = vpack.c.bf16 %v431_v13, %v431_v13  ;;  %v15114_v42 = vld [vmem:[%s15624_s9 + $0x16d8] sm:$0xff]  ;;  %v15133_v13 = vld [vmem:[%s15624_s9 + $0x1770] sm:$0xff] }
 0x2cf   : > { %9737 = vmatpush.bf16.msra.mxu2 %v15039_v20  ;;  %v690_v20 = vpack.c.bf16 %v433_v14, %v433_v14  ;;  %v15141_v14 = vld [vmem:[%s15624_s9 + $0x17b0] sm:$0xff] }
 0x2d0   : > { %9750 = vmatpush.bf16.msra.mxu3 %v15047_v21  ;;  %9712 = vmatmul.bf16.vlgmr.msra.gmra.mxu0 %v684_v30  ;;  %v9519_v49 = vadd.f32 %v9518_v46, %v9506_v43  ;;  %v689_v21 = vpack.c.bf16 %v432_v15, %v432_v15  ;;  %v15116_v30 = vld [vmem:[%s15624_s9 + $0x16e8] sm:$0xff]  ;;  %v15149_v15 = vld [vmem:[%s15624_s9 + $0x17f0] sm:$0xff] }
 0x2d1   : > { %9756 = vmatpush.bf16.msrb.mxu0 %v15062_v22  ;;  %9725 = vmatmul.bf16.vlgmr.msra.gmra.mxu1 %v685_v32  ;;  %v691_v22 = vpack.c.bf16 %v434_v16, %v434_v16  ;;  %v15124_v16 = vld [vmem:[%s15624_s9 + $0x1728] sm:$0xff] }
 0x2d2   : > { %9769 = vmatpush.bf16.msrb.mxu1 %v15070_v23  ;;  %9738 = vmatmul.bf16.vlgmr.msra.gmra.mxu2 %v686_v31  ;;  %v15093_v23 = vld [vmem:[%s15624_s9 + $0x1630] sm:$0xff] }
 0x2d3   : > { %9782 = vmatpush.bf16.msrb.mxu2 %v15078_v28  ;;  %9751 = vmatmul.bf16.vlgmr.msra.gmra.mxu3 %v687_v33  ;;  %v15100_v28 = vld [vmem:[%s15624_s9 + $0x1668] sm:$0xff]  ;;  %v15091_v33 = vld [vmem:[%s15624_s9 + $0x1620] sm:$0xff] }
 0x2d4   : > { %9795 = vmatpush.bf16.msrb.mxu3 %v15086_v29  ;;  %v15108_v29 = vld [vmem:[%s15624_s9 + $0x16a8] sm:$0xff] }
 0x2d5   : > { %9757 = vmatpush.bf16.msrb.mxu0 %v15061_v34  ;;  %v9531_v54 = vpop.f32.mrf.mxu2  ;;  %v9507_v57 = vpop.f32.mrf.mxu0  ;;  %v15099_v34 = vld [vmem:[%s15624_s9 + $0x1660] sm:$0xff] }
 0x2d6   : > { %9770 = vmatpush.bf16.msrb.mxu1 %v15069_v35  ;;  %v9532_v55 = vadd.f32 %v9531_v54, %v9519_v49  ;;  %v9544_v56 = vpop.f32.mrf.mxu3  ;;  %v9520_v61 = vpop.f32.mrf.mxu1  ;;  %v15097_v49 = vld [vmem:[%s15624_s9 + $0x1650] sm:$0xff]  ;;  %v15096_v54 = vld [vmem:[%s15624_s9 + $0x1648] sm:$0xff] }
 0x2d7   : > { %9783 = vmatpush.bf16.msrb.mxu2 %v15077_v36  ;;  %v15107_v36 = vld [vmem:[%s15624_s9 + $0x16a0] sm:$0xff]  ;;  %v15112_v57 = vld [vmem:[%s15624_s9 + $0x16c8] sm:$0xff] }
 0x2d8   : > { %9796 = vmatpush.bf16.msrb.mxu3 %v15085_v37  ;;  %v16399_v58 = vadd.f32 %v9544_v56, %v9532_v55  ;;  %v15115_v37 = vld [vmem:[%s15624_s9 + $0x16e0] sm:$0xff]  ;;  %v285_v55 = vld [vmem:[%s15634_s12 + $0xb8] sm:$0xff] }
 0x2d9   : > { %9758 = vmatpush.bf16.msrb.mxu0 %v15060_v38  ;;  %v15104_v56 = vld [vmem:[%s15624_s9 + $0x1688] sm:$0xff]  ;;  %436 = vst [vmem:[#allocation1 + $0x20] ss:$4 sm:$0xff] %v285_v55  ;;  %v15095_v61 = vld [vmem:[%s15624_s9 + $0x1640] sm:$0xff] }
 0x2da   : > { %9771 = vmatpush.bf16.msrb.mxu1 %v15068_v39  ;;  %v15090_v39 = vld [vmem:[%s15624_s9 + $0x1618] sm:$0xff] }
 0x2db   : > { %9784 = vmatpush.bf16.msrb.mxu2 %v15076_v40  ;;  %v15098_v40 = vld [vmem:[%s15624_s9 + $0x1658] sm:$0xff] }
 0x2dc   : > { %9797 = vmatpush.bf16.msrb.mxu3 %v15084_v41  ;;  %v15106_v41 = vld [vmem:[%s15624_s9 + $0x1698] sm:$0xff] }
 0x2dd   : > { %9759 = vmatpush.bf16.msrb.mxu0 %v15059_v44  ;;  %v9533_v5 = vpop.f32.mrf.mxu2 }
 0x2de   : > { %9772 = vmatpush.bf16.msrb.mxu1 %v15067_v45  ;;  %v9546_v6 = vpop.f32.mrf.mxu3  ;;  %v440_v5 = vld.sshfl [vmem:[#allocation1 + $0x18] sm:$0xff pattern:$0x73625140] }
 0x2df   : > { %9785 = vmatpush.bf16.msrb.mxu2 %v15075_v47  ;;  %v15142_v6 = vld [vmem:[%s15624_s9 + $0x17b8] sm:$0xff] }
 0x2e0   : > { %9798 = vmatpush.bf16.msrb.mxu3 %v15083_v48  ;;  %v15089_v48 = vld [vmem:[%s15624_s9 + $0x1610] sm:$0xff] }
 0x2e1   : > { %9760 = vmatpush.bf16.msrb.mxu0 %v15058_v50  ;;  %v441_v55 = vld.sshfl [vmem:[#allocation1 + $0x20] sm:$0xff pattern:$0x73625140] }
 0x2e2   : > { %9773 = vmatpush.bf16.msrb.mxu1 %v15066_v51  ;;  %v15105_v51 = vld [vmem:[%s15624_s9 + $0x1690] sm:$0xff] }
 0x2e3   : > { %9786 = vmatpush.bf16.msrb.mxu2 %v15074_v52  ;;  %v15113_v52 = vld [vmem:[%s15624_s9 + $0x16d0] sm:$0xff] }
 0x2e4   : > { %9799 = vmatpush.bf16.msrb.mxu3 %v15082_v53  ;;  %v15088_v53 = vld [vmem:[%s15624_s9 + $0x1608] sm:$0xff] }
 0x2e5   : > { %9761 = vmatpush.bf16.msrb.mxu0 %v15057_v59 }
 0x2e6   : > { %9774 = vmatpush.bf16.msrb.mxu1 %v15065_v60  ;;  %v15087_v60 = vld [vmem:[%s15624_s9 + $0x1600] sm:$0xff] }
 0x2e7   : > { %9787 = vmatpush.bf16.msrb.mxu2 %v15073_v62  ;;  %v15103_v62 = vld [vmem:[%s15624_s9 + $0x1680] sm:$0xff] }
 0x2e8   : > { %9800 = vmatpush.bf16.msrb.mxu3 %v15081_v63  ;;  %v15111_v63 = vld [vmem:[%s15624_s9 + $0x16c0] sm:$0xff] }
 0x2e9   : > { %9762 = vmatpush.bf16.msrb.mxu0 %v15056_v0  ;;  %v15126_v0 = vld [vmem:[%s15624_s9 + $0x1738] sm:$0xff] }
 0x2ea   : > { %9775 = vmatpush.bf16.msrb.mxu1 %v15064_v1  ;;  %v15134_v1 = vld [vmem:[%s15624_s9 + $0x1778] sm:$0xff] }
 0x2eb   : > { %9788 = vmatpush.bf16.msrb.mxu2 %v15072_v3  ;;  %v439_v3 = vld.sshfl [vmem:[#allocation1 + $0x10] sm:$0xff pattern:$0x73625140] }
 0x2ec   : > { %9801 = vmatpush.bf16.msrb.mxu3 %v15080_v4  ;;  %v438_v4 = vld.sshfl [vmem:[#allocation1 + $0x8] sm:$0xff pattern:$0x73625140] }
 0x2ed   : > { %9763 = vmatpush.bf16.msrb.mxu0 %v15055_v7  ;;  %v9557_v31 = vpop.f32.mrf.mxu0  ;;  %v15150_v7 = vld [vmem:[%s15624_s9 + $0x17f8] sm:$0xff] }
 0x2ee   : > { %9776 = vmatpush.bf16.msrb.mxu1 %v15063_v8  ;;  %v9558_v32 = vadd.f32 %v9557_v31, %v16399_v58  ;;  %v9570_v35 = vpop.f32.mrf.mxu1  ;;  %v692_v8 = vpack.c.bf16 %v437_v2, %v437_v2  ;;  %v15146_v31 = vld [vmem:[%s15624_s9 + $0x17d8] sm:$0xff]  ;;  %v15165_v2 = vld [vmem:[%s15624_s9 + $0x1870] sm:$0xff] }
 0x2ef   : > { %9789 = vmatpush.bf16.msrb.mxu2 %v15071_v9  ;;  %v694_v9 = vpack.c.bf16 %v439_v3, %v439_v3  ;;  %v15173_v3 = vld [vmem:[%s15624_s9 + $0x18b0] sm:$0xff] }
 0x2f0   : > { %9802 = vmatpush.bf16.msrb.mxu3 %v15079_v10  ;;  %9764 = vmatmul.bf16.vlgmr.msrb.gmra.mxu0 %v688_v19  ;;  %v9571_v38 = vadd.f32 %v9570_v35, %v9558_v32  ;;  %v693_v10 = vpack.c.bf16 %v438_v4, %v438_v4  ;;  %v15148_v19 = vld [vmem:[%s15624_s9 + $0x17e8] sm:$0xff]  ;;  %v15181_v4 = vld [vmem:[%s15624_s9 + $0x18f0] sm:$0xff] }
 0x2f1   : > { %9808 = vmatpush.bf16.msra.mxu0 %v15094_v11  ;;  %9777 = vmatmul.bf16.vlgmr.msrb.gmra.mxu1 %v689_v21  ;;  %v695_v11 = vpack.c.bf16 %v440_v5, %v440_v5  ;;  %v15156_v5 = vld [vmem:[%s15624_s9 + $0x1828] sm:$0xff] }
 0x2f2   : > { %9821 = vmatpush.bf16.msra.mxu1 %v15102_v12  ;;  %9790 = vmatmul.bf16.vlgmr.msrb.gmra.mxu2 %v690_v20  ;;  %v15125_v12 = vld [vmem:[%s15624_s9 + $0x1730] sm:$0xff] }
 0x2f3   : > { %9834 = vmatpush.bf16.msra.mxu2 %v15110_v17  ;;  %9803 = vmatmul.bf16.vlgmr.msrb.gmra.mxu3 %v691_v22  ;;  %v15132_v17 = vld [vmem:[%s15624_s9 + $0x1768] sm:$0xff]  ;;  %v15123_v22 = vld [vmem:[%s15624_s9 + $0x1720] sm:$0xff] }
 0x2f4   : > { %9847 = vmatpush.bf16.msra.mxu3 %v15118_v18  ;;  %v15140_v18 = vld [vmem:[%s15624_s9 + $0x17a8] sm:$0xff] }
 0x2f5   : > { %9809 = vmatpush.bf16.msra.mxu0 %v15093_v23  ;;  %v9583_v43 = vpop.f32.mrf.mxu2  ;;  %v9559_v46 = vpop.f32.mrf.mxu0  ;;  %v15131_v23 = vld [vmem:[%s15624_s9 + $0x1760] sm:$0xff] }
 0x2f6   : > { %9822 = vmatpush.bf16.msra.mxu1 %v15101_v24  ;;  %v9584_v44 = vadd.f32 %v9583_v43, %v9571_v38  ;;  %v9596_v45 = vpop.f32.mrf.mxu3  ;;  %v9572_v50 = vpop.f32.mrf.mxu1  ;;  %v15129_v38 = vld [vmem:[%s15624_s9 + $0x1750] sm:$0xff]  ;;  %v15128_v43 = vld [vmem:[%s15624_s9 + $0x1748] sm:$0xff] }
 0x2f7   : > { %9835 = vmatpush.bf16.msra.mxu2 %v15109_v25  ;;  %v15139_v25 = vld [vmem:[%s15624_s9 + $0x17a0] sm:$0xff]  ;;  %v15144_v46 = vld [vmem:[%s15624_s9 + $0x17c8] sm:$0xff] }
 0x2f8   : > { %9848 = vmatpush.bf16.msra.mxu3 %v15117_v26  ;;  %v16435_v47 = vadd.f32 %v9596_v45, %v9584_v44  ;;  %v15147_v26 = vld [vmem:[%s15624_s9 + $0x17e0] sm:$0xff]  ;;  %v286_v44 = vld [vmem:[%s15634_s12 + $0xc0] sm:$0xff]  ;;  %v15136_v45 = vld [vmem:[%s15624_s9 + $0x1788] sm:$0xff] }
 0x2f9   : > { %9810 = vmatpush.bf16.msra.mxu0 %v15092_v27  ;;  %445 = vst [vmem:[#allocation1] ss:$4 sm:$0xff] %v286_v44  ;;  %v15127_v50 = vld [vmem:[%s15624_s9 + $0x1740] sm:$0xff] }
 0x2fa   : > { %9823 = vmatpush.bf16.msra.mxu1 %v15100_v28  ;;  %v15122_v28 = vld [vmem:[%s15624_s9 + $0x1718] sm:$0xff] }
 0x2fb   : > { %9836 = vmatpush.bf16.msra.mxu2 %v15108_v29  ;;  %v15130_v29 = vld [vmem:[%s15624_s9 + $0x1758] sm:$0xff] }
 0x2fc   : > { %9849 = vmatpush.bf16.msra.mxu3 %v15116_v30  ;;  %v15138_v30 = vld [vmem:[%s15624_s9 + $0x1798] sm:$0xff] }
 0x2fd   : > { %9811 = vmatpush.bf16.msra.mxu0 %v15091_v33  ;;  %v9585_v58 = vpop.f32.mrf.mxu2 }
 0x2fe   : > { %9824 = vmatpush.bf16.msra.mxu1 %v15099_v34  ;;  %v9598_v59 = vpop.f32.mrf.mxu3  ;;  %v444_v58 = vld.sshfl [vmem:[#allocation1 + $0x38] sm:$0xff pattern:$0x73625140] }
 0x2ff   : > { %9837 = vmatpush.bf16.msra.mxu2 %v15107_v36  ;;  %v15174_v59 = vld [vmem:[%s15624_s9 + $0x18b8] sm:$0xff] }
 0x300   : > { %9850 = vmatpush.bf16.msra.mxu3 %v15115_v37  ;;  %v15121_v37 = vld [vmem:[%s15624_s9 + $0x1710] sm:$0xff] }
 0x301   : > { %9812 = vmatpush.bf16.msra.mxu0 %v15090_v39  ;;  %v447_v44 = vld.sshfl [vmem:[#allocation1] sm:$0xff pattern:$0x73625140] }
 0x302   : > { %9825 = vmatpush.bf16.msra.mxu1 %v15098_v40  ;;  %v15137_v40 = vld [vmem:[%s15624_s9 + $0x1790] sm:$0xff] }
 0x303   : > { %9838 = vmatpush.bf16.msra.mxu2 %v15106_v41  ;;  %v15145_v41 = vld [vmem:[%s15624_s9 + $0x17d0] sm:$0xff] }
 0x304   : > { %9851 = vmatpush.bf16.msra.mxu3 %v15114_v42  ;;  %v15120_v42 = vld [vmem:[%s15624_s9 + $0x1708] sm:$0xff] }
 0x305   : > { %9813 = vmatpush.bf16.msra.mxu0 %v15089_v48 }
 0x306   : > { %9826 = vmatpush.bf16.msra.mxu1 %v15097_v49  ;;  %v15119_v49 = vld [vmem:[%s15624_s9 + $0x1700] sm:$0xff] }
 0x307   : > { %9839 = vmatpush.bf16.msra.mxu2 %v15105_v51  ;;  %v15135_v51 = vld [vmem:[%s15624_s9 + $0x1780] sm:$0xff] }
 0x308   : > { %9852 = vmatpush.bf16.msra.mxu3 %v15113_v52  ;;  %v15143_v52 = vld [vmem:[%s15624_s9 + $0x17c0] sm:$0xff] }
 0x309   : > { %9814 = vmatpush.bf16.msra.mxu0 %v15088_v53  ;;  %v15158_v53 = vld [vmem:[%s15624_s9 + $0x1838] sm:$0xff] }
 0x30a   : > { %9827 = vmatpush.bf16.msra.mxu1 %v15096_v54  ;;  %v15166_v54 = vld [vmem:[%s15624_s9 + $0x1878] sm:$0xff] }
 0x30b   : > { %9840 = vmatpush.bf16.msra.mxu2 %v15104_v56  ;;  %v443_v56 = vld.sshfl [vmem:[#allocation1 + $0x30] sm:$0xff pattern:$0x73625140] }
 0x30c   : > { %9853 = vmatpush.bf16.msra.mxu3 %v15112_v57  ;;  %v442_v57 = vld.sshfl [vmem:[#allocation1 + $0x28] sm:$0xff pattern:$0x73625140] }
 0x30d   : > { %9815 = vmatpush.bf16.msra.mxu0 %v15087_v60  ;;  %v9609_v20 = vpop.f32.mrf.mxu0  ;;  %v15182_v60 = vld [vmem:[%s15624_s9 + $0x18f8] sm:$0xff] }
 0x30e   : > { %9828 = vmatpush.bf16.msra.mxu1 %v15095_v61  ;;  %v9610_v21 = vadd.f32 %v9609_v20, %v16435_v47  ;;  %v9622_v24 = vpop.f32.mrf.mxu1  ;;  %v696_v61 = vpack.c.bf16 %v441_v55, %v441_v55  ;;  %v15178_v20 = vld [vmem:[%s15624_s9 + $0x18d8] sm:$0xff]  ;;  %v15197_v55 = vld [vmem:[%s15624_s9 + $0x1970] sm:$0xff] }
 0x30f   : > { %9841 = vmatpush.bf16.msra.mxu2 %v15103_v62  ;;  %v698_v62 = vpack.c.bf16 %v443_v56, %v443_v56  ;;  %v15205_v56 = vld [vmem:[%s15624_s9 + $0x19b0] sm:$0xff] }
 0x310   : > { %9854 = vmatpush.bf16.msra.mxu3 %v15111_v63  ;;  %9816 = vmatmul.bf16.vlgmr.msra.gmra.mxu0 %v692_v8  ;;  %v9623_v27 = vadd.f32 %v9622_v24, %v9610_v21  ;;  %v697_v63 = vpack.c.bf16 %v442_v57, %v442_v57  ;;  %v15180_v8 = vld [vmem:[%s15624_s9 + $0x18e8] sm:$0xff]  ;;  %v15213_v57 = vld [vmem:[%s15624_s9 + $0x19f0] sm:$0xff] }
 0x311   : > { %9860 = vmatpush.bf16.msrb.mxu0 %v15126_v0  ;;  %9829 = vmatmul.bf16.vlgmr.msra.gmra.mxu1 %v693_v10  ;;  %v699_v0 = vpack.c.bf16 %v444_v58, %v444_v58  ;;  %v15188_v58 = vld [vmem:[%s15624_s9 + $0x1928] sm:$0xff] }
 0x312   : > { %9873 = vmatpush.bf16.msrb.mxu1 %v15134_v1  ;;  %9842 = vmatmul.bf16.vlgmr.msra.gmra.mxu2 %v694_v9  ;;  %v15157_v1 = vld [vmem:[%s15624_s9 + $0x1830] sm:$0xff] }
 0x313   : > { %9886 = vmatpush.bf16.msrb.mxu2 %v15142_v6  ;;  %9855 = vmatmul.bf16.vlgmr.msra.gmra.mxu3 %v695_v11  ;;  %v15164_v6 = vld [vmem:[%s15624_s9 + $0x1868] sm:$0xff]  ;;  %v15155_v11 = vld [vmem:[%s15624_s9 + $0x1820] sm:$0xff] }
 0x314   : > { %9899 = vmatpush.bf16.msrb.mxu3 %v15150_v7  ;;  %v15172_v7 = vld [vmem:[%s15624_s9 + $0x18a8] sm:$0xff] }
 0x315   : > { %9861 = vmatpush.bf16.msrb.mxu0 %v15125_v12  ;;  %v9635_v32 = vpop.f32.mrf.mxu2  ;;  %v9611_v35 = vpop.f32.mrf.mxu0  ;;  %v15163_v12 = vld [vmem:[%s15624_s9 + $0x1860] sm:$0xff] }
 0x316   : > { %9874 = vmatpush.bf16.msrb.mxu1 %v15133_v13  ;;  %v9636_v33 = vadd.f32 %v9635_v32, %v9623_v27  ;;  %v9648_v34 = vpop.f32.mrf.mxu3  ;;  %v9624_v39 = vpop.f32.mrf.mxu1  ;;  %v15161_v27 = vld [vmem:[%s15624_s9 + $0x1850] sm:$0xff]  ;;  %v15160_v32 = vld [vmem:[%s15624_s9 + $0x1848] sm:$0xff] }
 0x317   : > { %9887 = vmatpush.bf16.msrb.mxu2 %v15141_v14  ;;  %v15171_v14 = vld [vmem:[%s15624_s9 + $0x18a0] sm:$0xff]  ;;  %v15176_v35 = vld [vmem:[%s15624_s9 + $0x18c8] sm:$0xff] }
 0x318   : > { %9900 = vmatpush.bf16.msrb.mxu3 %v15149_v15  ;;  %v16471_v36 = vadd.f32 %v9648_v34, %v9636_v33  ;;  %v15179_v15 = vld [vmem:[%s15624_s9 + $0x18e0] sm:$0xff]  ;;  %v15168_v34 = vld [vmem:[%s15624_s9 + $0x1888] sm:$0xff] }
 0x319   : > { %9862 = vmatpush.bf16.msrb.mxu0 %v15124_v16  ;;  %v287_v33 = vld [vmem:[%s15634_s12 + $0xc8] sm:$0xff] }
 0x31a   : > { %9875 = vmatpush.bf16.msrb.mxu1 %v15132_v17  ;;  %v15154_v17 = vld [vmem:[%s15624_s9 + $0x1818] sm:$0xff]  ;;  %446 = vst [vmem:[#allocation1 + $0x20] ss:$4 sm:$0xff] %v287_v33  ;;  %v15159_v39 = vld [vmem:[%s15624_s9 + $0x1840] sm:$0xff] }
 0x31b   : > { %9888 = vmatpush.bf16.msrb.mxu2 %v15140_v18  ;;  %v15162_v18 = vld [vmem:[%s15624_s9 + $0x1858] sm:$0xff] }
 0x31c   : > { %9901 = vmatpush.bf16.msrb.mxu3 %v15148_v19  ;;  %v15170_v19 = vld [vmem:[%s15624_s9 + $0x1898] sm:$0xff] }
 0x31d   : > { %9863 = vmatpush.bf16.msrb.mxu0 %v15123_v22  ;;  %v9637_v47 = vpop.f32.mrf.mxu2 }
 0x31e   : > { %9876 = vmatpush.bf16.msrb.mxu1 %v15131_v23  ;;  %v9650_v48 = vpop.f32.mrf.mxu3  ;;  %v450_v47 = vld.sshfl [vmem:[#allocation1 + $0x18] sm:$0xff pattern:$0x73625140] }
 0x31f   : > { %9889 = vmatpush.bf16.msrb.mxu2 %v15139_v25  ;;  %v15206_v48 = vld [vmem:[%s15624_s9 + $0x19b8] sm:$0xff] }
 0x320   : > { %9902 = vmatpush.bf16.msrb.mxu3 %v15147_v26  ;;  %v15153_v26 = vld [vmem:[%s15624_s9 + $0x1810] sm:$0xff] }
 0x321   : > { %9864 = vmatpush.bf16.msrb.mxu0 %v15122_v28  ;;  %v451_v33 = vld.sshfl [vmem:[#allocation1 + $0x20] sm:$0xff pattern:$0x73625140] }
 0x322   : > { %9877 = vmatpush.bf16.msrb.mxu1 %v15130_v29  ;;  %v15169_v29 = vld [vmem:[%s15624_s9 + $0x1890] sm:$0xff] }
 0x323   : > { %9890 = vmatpush.bf16.msrb.mxu2 %v15138_v30  ;;  %v15177_v30 = vld [vmem:[%s15624_s9 + $0x18d0] sm:$0xff] }
 0x324   : > { %9903 = vmatpush.bf16.msrb.mxu3 %v15146_v31  ;;  %v15152_v31 = vld [vmem:[%s15624_s9 + $0x1808] sm:$0xff] }
 0x325   : > { %9865 = vmatpush.bf16.msrb.mxu0 %v15121_v37 }
 0x326   : > { %9878 = vmatpush.bf16.msrb.mxu1 %v15129_v38  ;;  %v15151_v38 = vld [vmem:[%s15624_s9 + $0x1800] sm:$0xff] }
 0x327   : > { %9891 = vmatpush.bf16.msrb.mxu2 %v15137_v40  ;;  %v15167_v40 = vld [vmem:[%s15624_s9 + $0x1880] sm:$0xff] }
 0x328   : > { %9904 = vmatpush.bf16.msrb.mxu3 %v15145_v41  ;;  %v15175_v41 = vld [vmem:[%s15624_s9 + $0x18c0] sm:$0xff] }
 0x329   : > { %9866 = vmatpush.bf16.msrb.mxu0 %v15120_v42  ;;  %v15190_v42 = vld [vmem:[%s15624_s9 + $0x1938] sm:$0xff] }
 0x32a   : > { %9879 = vmatpush.bf16.msrb.mxu1 %v15128_v43  ;;  %v15198_v43 = vld [vmem:[%s15624_s9 + $0x1978] sm:$0xff] }
 0x32b   : > { %9892 = vmatpush.bf16.msrb.mxu2 %v15136_v45  ;;  %v449_v45 = vld.sshfl [vmem:[#allocation1 + $0x10] sm:$0xff pattern:$0x73625140] }
 0x32c   : > { %9905 = vmatpush.bf16.msrb.mxu3 %v15144_v46  ;;  %v448_v46 = vld.sshfl [vmem:[#allocation1 + $0x8] sm:$0xff pattern:$0x73625140] }
 0x32d   : > { %9867 = vmatpush.bf16.msrb.mxu0 %v15119_v49  ;;  %v9661_v9 = vpop.f32.mrf.mxu0  ;;  %v15214_v49 = vld [vmem:[%s15624_s9 + $0x19f8] sm:$0xff] }
 0x32e   : > { %9880 = vmatpush.bf16.msrb.mxu1 %v15127_v50  ;;  %v9662_v10 = vadd.f32 %v9661_v9, %v16471_v36  ;;  %v9674_v13 = vpop.f32.mrf.mxu1  ;;  %v700_v50 = vpack.c.bf16 %v447_v44, %v447_v44  ;;  %v15210_v9 = vld [vmem:[%s15624_s9 + $0x19d8] sm:$0xff]  ;;  %v15229_v44 = vld [vmem:[%s15624_s9 + $0x1a70] sm:$0xff] }
 0x32f   : > { %9893 = vmatpush.bf16.msrb.mxu2 %v15135_v51  ;;  %v702_v51 = vpack.c.bf16 %v449_v45, %v449_v45  ;;  %v15237_v45 = vld [vmem:[%s15624_s9 + $0x1ab0] sm:$0xff] }
 0x330   : > { %9906 = vmatpush.bf16.msrb.mxu3 %v15143_v52  ;;  %9868 = vmatmul.bf16.vlgmr.msrb.gmra.mxu0 %v696_v61  ;;  %v9675_v16 = vadd.f32 %v9674_v13, %v9662_v10  ;;  %v701_v52 = vpack.c.bf16 %v448_v46, %v448_v46  ;;  %v15212_v61 = vld [vmem:[%s15624_s9 + $0x19e8] sm:$0xff]  ;;  %v15245_v46 = vld [vmem:[%s15624_s9 + $0x1af0] sm:$0xff] }
 0x331   : > { %9912 = vmatpush.bf16.msra.mxu0 %v15158_v53  ;;  %9881 = vmatmul.bf16.vlgmr.msrb.gmra.mxu1 %v697_v63  ;;  %v703_v53 = vpack.c.bf16 %v450_v47, %v450_v47  ;;  %v15220_v47 = vld [vmem:[%s15624_s9 + $0x1a28] sm:$0xff] }
 0x332   : > { %9925 = vmatpush.bf16.msra.mxu1 %v15166_v54  ;;  %9894 = vmatmul.bf16.vlgmr.msrb.gmra.mxu2 %v698_v62  ;;  %v15189_v54 = vld [vmem:[%s15624_s9 + $0x1930] sm:$0xff] }
 0x333   : > { %9938 = vmatpush.bf16.msra.mxu2 %v15174_v59  ;;  %9907 = vmatmul.bf16.vlgmr.msrb.gmra.mxu3 %v699_v0  ;;  %v15196_v59 = vld [vmem:[%s15624_s9 + $0x1968] sm:$0xff]  ;;  %v15187_v0 = vld [vmem:[%s15624_s9 + $0x1920] sm:$0xff] }
 0x334   : > { %9951 = vmatpush.bf16.msra.mxu3 %v15182_v60  ;;  %v15204_v60 = vld [vmem:[%s15624_s9 + $0x19a8] sm:$0xff] }
 0x335   : > { %9913 = vmatpush.bf16.msra.mxu0 %v15157_v1  ;;  %v9687_v21 = vpop.f32.mrf.mxu2  ;;  %v9663_v24 = vpop.f32.mrf.mxu0  ;;  %v15195_v1 = vld [vmem:[%s15624_s9 + $0x1960] sm:$0xff] }
 0x336   : > { %9926 = vmatpush.bf16.msra.mxu1 %v15165_v2  ;;  %v9688_v22 = vadd.f32 %v9687_v21, %v9675_v16  ;;  %v9700_v23 = vpop.f32.mrf.mxu3  ;;  %v9676_v28 = vpop.f32.mrf.mxu1  ;;  %v15193_v16 = vld [vmem:[%s15624_s9 + $0x1950] sm:$0xff]  ;;  %v15192_v21 = vld [vmem:[%s15624_s9 + $0x1948] sm:$0xff] }
 0x337   : > { %9939 = vmatpush.bf16.msra.mxu2 %v15173_v3  ;;  %v15203_v3 = vld [vmem:[%s15624_s9 + $0x19a0] sm:$0xff]  ;;  %v15208_v24 = vld [vmem:[%s15624_s9 + $0x19c8] sm:$0xff] }
 0x338   : > { %9952 = vmatpush.bf16.msra.mxu3 %v15181_v4  ;;  %v16507_v25 = vadd.f32 %v9700_v23, %v9688_v22  ;;  %v15211_v4 = vld [vmem:[%s15624_s9 + $0x19e0] sm:$0xff]  ;;  %v15200_v23 = vld [vmem:[%s15624_s9 + $0x1988] sm:$0xff] }
 0x339   : > { %9914 = vmatpush.bf16.msra.mxu0 %v15156_v5  ;;  %v288_v22 = vld [vmem:[%s15634_s12 + $0xd0] sm:$0xff] }
 0x33a   : > { %9927 = vmatpush.bf16.msra.mxu1 %v15164_v6  ;;  %v15186_v6 = vld [vmem:[%s15624_s9 + $0x1918] sm:$0xff]  ;;  %455 = vst [vmem:[#allocation1] ss:$4 sm:$0xff] %v288_v22  ;;  %v15191_v28 = vld [vmem:[%s15624_s9 + $0x1940] sm:$0xff] }
 0x33b   : > { %9940 = vmatpush.bf16.msra.mxu2 %v15172_v7  ;;  %v15194_v7 = vld [vmem:[%s15624_s9 + $0x1958] sm:$0xff] }
 0x33c   : > { %9953 = vmatpush.bf16.msra.mxu3 %v15180_v8  ;;  %v15202_v8 = vld [vmem:[%s15624_s9 + $0x1998] sm:$0xff] }
 0x33d   : > { %9915 = vmatpush.bf16.msra.mxu0 %v15155_v11  ;;  %v9689_v36 = vpop.f32.mrf.mxu2 }
 0x33e   : > { %9928 = vmatpush.bf16.msra.mxu1 %v15163_v12  ;;  %v9702_v37 = vpop.f32.mrf.mxu3  ;;  %v454_v36 = vld.sshfl [vmem:[#allocation1 + $0x38] sm:$0xff pattern:$0x73625140] }
 0x33f   : > { %9941 = vmatpush.bf16.msra.mxu2 %v15171_v14  ;;  %v15238_v37 = vld [vmem:[%s15624_s9 + $0x1ab8] sm:$0xff] }
 0x340   : > { %9954 = vmatpush.bf16.msra.mxu3 %v15179_v15  ;;  %v15185_v15 = vld [vmem:[%s15624_s9 + $0x1910] sm:$0xff] }
 0x341   : > { %9916 = vmatpush.bf16.msra.mxu0 %v15154_v17  ;;  %v457_v22 = vld.sshfl [vmem:[#allocation1] sm:$0xff pattern:$0x73625140] }
 0x342   : > { %9929 = vmatpush.bf16.msra.mxu1 %v15162_v18  ;;  %v15201_v18 = vld [vmem:[%s15624_s9 + $0x1990] sm:$0xff] }
 0x343   : > { %9942 = vmatpush.bf16.msra.mxu2 %v15170_v19  ;;  %v15209_v19 = vld [vmem:[%s15624_s9 + $0x19d0] sm:$0xff] }
 0x344   : > { %9955 = vmatpush.bf16.msra.mxu3 %v15178_v20  ;;  %v15184_v20 = vld [vmem:[%s15624_s9 + $0x1908] sm:$0xff] }
 0x345   : > { %9917 = vmatpush.bf16.msra.mxu0 %v15153_v26 }
 0x346   : > { %9930 = vmatpush.bf16.msra.mxu1 %v15161_v27  ;;  %v15183_v27 = vld [vmem:[%s15624_s9 + $0x1900] sm:$0xff] }
 0x347   : > { %9943 = vmatpush.bf16.msra.mxu2 %v15169_v29  ;;  %v15199_v29 = vld [vmem:[%s15624_s9 + $0x1980] sm:$0xff] }
 0x348   : > { %9956 = vmatpush.bf16.msra.mxu3 %v15177_v30  ;;  %v15207_v30 = vld [vmem:[%s15624_s9 + $0x19c0] sm:$0xff] }
 0x349   : > { %9918 = vmatpush.bf16.msra.mxu0 %v15152_v31  ;;  %v15222_v31 = vld [vmem:[%s15624_s9 + $0x1a38] sm:$0xff] }
 0x34a   : > { %9931 = vmatpush.bf16.msra.mxu1 %v15160_v32  ;;  %v15230_v32 = vld [vmem:[%s15624_s9 + $0x1a78] sm:$0xff] }
 0x34b   : > { %9944 = vmatpush.bf16.msra.mxu2 %v15168_v34  ;;  %v453_v34 = vld.sshfl [vmem:[#allocation1 + $0x30] sm:$0xff pattern:$0x73625140] }
 0x34c   : > { %9957 = vmatpush.bf16.msra.mxu3 %v15176_v35  ;;  %v452_v35 = vld.sshfl [vmem:[#allocation1 + $0x28] sm:$0xff pattern:$0x73625140] }
 0x34d   : > { %9919 = vmatpush.bf16.msra.mxu0 %v15151_v38  ;;  %v9713_v62 = vpop.f32.mrf.mxu0  ;;  %v15246_v38 = vld [vmem:[%s15624_s9 + $0x1af8] sm:$0xff] }
 0x34e   : > { %9932 = vmatpush.bf16.msra.mxu1 %v15159_v39  ;;  %v9714_v63 = vadd.f32 %v9713_v62, %v16507_v25  ;;  %v9726_v2 = vpop.f32.mrf.mxu1  ;;  %v704_v39 = vpack.c.bf16 %v451_v33, %v451_v33  ;;  %v15242_v62 = vld [vmem:[%s15624_s9 + $0x1ad8] sm:$0xff]  ;;  %v15261_v33 = vld [vmem:[%s15624_s9 + $0x1b70] sm:$0xff] }
 0x34f   : > { %9945 = vmatpush.bf16.msra.mxu2 %v15167_v40  ;;  %v706_v40 = vpack.c.bf16 %v453_v34, %v453_v34  ;;  %v15269_v34 = vld [vmem:[%s15624_s9 + $0x1bb0] sm:$0xff] }
 0x350   : > { %9958 = vmatpush.bf16.msra.mxu3 %v15175_v41  ;;  %9920 = vmatmul.bf16.vlgmr.msra.gmra.mxu0 %v700_v50  ;;  %v9727_v5 = vadd.f32 %v9726_v2, %v9714_v63  ;;  %v705_v41 = vpack.c.bf16 %v452_v35, %v452_v35  ;;  %v15244_v50 = vld [vmem:[%s15624_s9 + $0x1ae8] sm:$0xff]  ;;  %v15277_v35 = vld [vmem:[%s15624_s9 + $0x1bf0] sm:$0xff] }
 0x351   : > { %9964 = vmatpush.bf16.msrb.mxu0 %v15190_v42  ;;  %9933 = vmatmul.bf16.vlgmr.msra.gmra.mxu1 %v701_v52  ;;  %v707_v42 = vpack.c.bf16 %v454_v36, %v454_v36  ;;  %v15252_v36 = vld [vmem:[%s15624_s9 + $0x1b28] sm:$0xff] }
 0x352   : > { %9977 = vmatpush.bf16.msrb.mxu1 %v15198_v43  ;;  %9946 = vmatmul.bf16.vlgmr.msra.gmra.mxu2 %v702_v51  ;;  %v15221_v43 = vld [vmem:[%s15624_s9 + $0x1a30] sm:$0xff] }
 0x353   : > { %9990 = vmatpush.bf16.msrb.mxu2 %v15206_v48  ;;  %9959 = vmatmul.bf16.vlgmr.msra.gmra.mxu3 %v703_v53  ;;  %v15228_v48 = vld [vmem:[%s15624_s9 + $0x1a68] sm:$0xff]  ;;  %v15219_v53 = vld [vmem:[%s15624_s9 + $0x1a20] sm:$0xff] }
 0x354   : > { %10003 = vmatpush.bf16.msrb.mxu3 %v15214_v49  ;;  %v15236_v49 = vld [vmem:[%s15624_s9 + $0x1aa8] sm:$0xff] }
 0x355   : > { %9965 = vmatpush.bf16.msrb.mxu0 %v15189_v54  ;;  %v9739_v10 = vpop.f32.mrf.mxu2  ;;  %v9715_v13 = vpop.f32.mrf.mxu0  ;;  %v15227_v54 = vld [vmem:[%s15624_s9 + $0x1a60] sm:$0xff] }
 0x356   : > { %9978 = vmatpush.bf16.msrb.mxu1 %v15197_v55  ;;  %v9740_v11 = vadd.f32 %v9739_v10, %v9727_v5  ;;  %v9752_v12 = vpop.f32.mrf.mxu3  ;;  %v9728_v17 = vpop.f32.mrf.mxu1  ;;  %v15225_v5 = vld [vmem:[%s15624_s9 + $0x1a50] sm:$0xff]  ;;  %v15224_v10 = vld [vmem:[%s15624_s9 + $0x1a48] sm:$0xff] }
 0x357   : > { %9991 = vmatpush.bf16.msrb.mxu2 %v15205_v56  ;;  %v15235_v56 = vld [vmem:[%s15624_s9 + $0x1aa0] sm:$0xff]  ;;  %v15240_v13 = vld [vmem:[%s15624_s9 + $0x1ac8] sm:$0xff] }
 0x358   : > { %10004 = vmatpush.bf16.msrb.mxu3 %v15213_v57  ;;  %v16543_v14 = vadd.f32 %v9752_v12, %v9740_v11  ;;  %v15243_v57 = vld [vmem:[%s15624_s9 + $0x1ae0] sm:$0xff]  ;;  %v289_v11 = vld [vmem:[%s15634_s12 + $0xd8] sm:$0xff] }
 0x359   : > { %9966 = vmatpush.bf16.msrb.mxu0 %v15188_v58  ;;  %v15232_v12 = vld [vmem:[%s15624_s9 + $0x1a88] sm:$0xff]  ;;  %456 = vst [vmem:[#allocation1 + $0x20] ss:$4 sm:$0xff] %v289_v11  ;;  %v15223_v17 = vld [vmem:[%s15624_s9 + $0x1a40] sm:$0xff] }
 0x35a   : > { %9979 = vmatpush.bf16.msrb.mxu1 %v15196_v59  ;;  %v15218_v59 = vld [vmem:[%s15624_s9 + $0x1a18] sm:$0xff] }
 0x35b   : > { %9992 = vmatpush.bf16.msrb.mxu2 %v15204_v60  ;;  %v15226_v60 = vld [vmem:[%s15624_s9 + $0x1a58] sm:$0xff] }
 0x35c   : > { %10005 = vmatpush.bf16.msrb.mxu3 %v15212_v61  ;;  %v15234_v61 = vld [vmem:[%s15624_s9 + $0x1a98] sm:$0xff] }
 0x35d   : > { %9967 = vmatpush.bf16.msrb.mxu0 %v15187_v0  ;;  %v9741_v25 = vpop.f32.mrf.mxu2 }
 0x35e   : > { %9980 = vmatpush.bf16.msrb.mxu1 %v15195_v1  ;;  %v9754_v26 = vpop.f32.mrf.mxu3  ;;  %v460_v25 = vld.sshfl [vmem:[#allocation1 + $0x18] sm:$0xff pattern:$0x73625140] }
 0x35f   : > { %9993 = vmatpush.bf16.msrb.mxu2 %v15203_v3  ;;  %v15270_v26 = vld [vmem:[%s15624_s9 + $0x1bb8] sm:$0xff] }
 0x360   : > { %10006 = vmatpush.bf16.msrb.mxu3 %v15211_v4  ;;  %v15217_v4 = vld [vmem:[%s15624_s9 + $0x1a10] sm:$0xff] }
 0x361   : > { %9968 = vmatpush.bf16.msrb.mxu0 %v15186_v6  ;;  %v461_v11 = vld.sshfl [vmem:[#allocation1 + $0x20] sm:$0xff pattern:$0x73625140] }
 0x362   : > { %9981 = vmatpush.bf16.msrb.mxu1 %v15194_v7  ;;  %v15233_v7 = vld [vmem:[%s15624_s9 + $0x1a90] sm:$0xff] }
 0x363   : > { %9994 = vmatpush.bf16.msrb.mxu2 %v15202_v8  ;;  %v15241_v8 = vld [vmem:[%s15624_s9 + $0x1ad0] sm:$0xff] }
 0x364   : > { %10007 = vmatpush.bf16.msrb.mxu3 %v15210_v9  ;;  %v15216_v9 = vld [vmem:[%s15624_s9 + $0x1a08] sm:$0xff] }
 0x365   : > { %9969 = vmatpush.bf16.msrb.mxu0 %v15185_v15 }
 0x366   : > { %9982 = vmatpush.bf16.msrb.mxu1 %v15193_v16  ;;  %v15215_v16 = vld [vmem:[%s15624_s9 + $0x1a00] sm:$0xff] }
 0x367   : > { %9995 = vmatpush.bf16.msrb.mxu2 %v15201_v18  ;;  %v15231_v18 = vld [vmem:[%s15624_s9 + $0x1a80] sm:$0xff] }
 0x368   : > { %10008 = vmatpush.bf16.msrb.mxu3 %v15209_v19  ;;  %v15239_v19 = vld [vmem:[%s15624_s9 + $0x1ac0] sm:$0xff] }
 0x369   : > { %9970 = vmatpush.bf16.msrb.mxu0 %v15184_v20  ;;  %v15254_v20 = vld [vmem:[%s15624_s9 + $0x1b38] sm:$0xff] }
 0x36a   : > { %9983 = vmatpush.bf16.msrb.mxu1 %v15192_v21  ;;  %v15262_v21 = vld [vmem:[%s15624_s9 + $0x1b78] sm:$0xff] }
 0x36b   : > { %9996 = vmatpush.bf16.msrb.mxu2 %v15200_v23  ;;  %v459_v23 = vld.sshfl [vmem:[#allocation1 + $0x10] sm:$0xff pattern:$0x73625140] }
 0x36c   : > { %10009 = vmatpush.bf16.msrb.mxu3 %v15208_v24  ;;  %v458_v24 = vld.sshfl [vmem:[#allocation1 + $0x8] sm:$0xff pattern:$0x73625140] }
 0x36d   : > { %9971 = vmatpush.bf16.msrb.mxu0 %v15183_v27  ;;  %v9765_v51 = vpop.f32.mrf.mxu0  ;;  %v15278_v27 = vld [vmem:[%s15624_s9 + $0x1bf8] sm:$0xff] }
 0x36e   : > { %9984 = vmatpush.bf16.msrb.mxu1 %v15191_v28  ;;  %v9766_v52 = vadd.f32 %v9765_v51, %v16543_v14  ;;  %v9778_v55 = vpop.f32.mrf.mxu1  ;;  %v708_v28 = vpack.c.bf16 %v457_v22, %v457_v22  ;;  %v15274_v51 = vld [vmem:[%s15624_s9 + $0x1bd8] sm:$0xff]  ;;  %v15293_v22 = vld [vmem:[%s15624_s9 + $0x1c70] sm:$0xff] }
 0x36f   : > { %9997 = vmatpush.bf16.msrb.mxu2 %v15199_v29  ;;  %v710_v29 = vpack.c.bf16 %v459_v23, %v459_v23  ;;  %v15301_v23 = vld [vmem:[%s15624_s9 + $0x1cb0] sm:$0xff] }
 0x370   : > { %10010 = vmatpush.bf16.msrb.mxu3 %v15207_v30  ;;  %9972 = vmatmul.bf16.vlgmr.msrb.gmra.mxu0 %v704_v39  ;;  %v9779_v58 = vadd.f32 %v9778_v55, %v9766_v52  ;;  %v709_v30 = vpack.c.bf16 %v458_v24, %v458_v24  ;;  %v15276_v39 = vld [vmem:[%s15624_s9 + $0x1be8] sm:$0xff]  ;;  %v15309_v24 = vld [vmem:[%s15624_s9 + $0x1cf0] sm:$0xff] }
 0x371   : > { %10016 = vmatpush.bf16.msra.mxu0 %v15222_v31  ;;  %9985 = vmatmul.bf16.vlgmr.msrb.gmra.mxu1 %v705_v41  ;;  %v711_v31 = vpack.c.bf16 %v460_v25, %v460_v25  ;;  %v15284_v25 = vld [vmem:[%s15624_s9 + $0x1c28] sm:$0xff] }
 0x372   : > { %10029 = vmatpush.bf16.msra.mxu1 %v15230_v32  ;;  %9998 = vmatmul.bf16.vlgmr.msrb.gmra.mxu2 %v706_v40  ;;  %v15253_v32 = vld [vmem:[%s15624_s9 + $0x1b30] sm:$0xff] }
 0x373   : > { %10042 = vmatpush.bf16.msra.mxu2 %v15238_v37  ;;  %10011 = vmatmul.bf16.vlgmr.msrb.gmra.mxu3 %v707_v42  ;;  %v15260_v37 = vld [vmem:[%s15624_s9 + $0x1b68] sm:$0xff]  ;;  %v15251_v42 = vld [vmem:[%s15624_s9 + $0x1b20] sm:$0xff] }
 0x374   : > { %10055 = vmatpush.bf16.msra.mxu3 %v15246_v38  ;;  %v15268_v38 = vld [vmem:[%s15624_s9 + $0x1ba8] sm:$0xff] }
 0x375   : > { %10017 = vmatpush.bf16.msra.mxu0 %v15221_v43  ;;  %v9791_v63 = vpop.f32.mrf.mxu2  ;;  %v9767_v2 = vpop.f32.mrf.mxu0  ;;  %v15259_v43 = vld [vmem:[%s15624_s9 + $0x1b60] sm:$0xff] }
 0x376   : > { %10030 = vmatpush.bf16.msra.mxu1 %v15229_v44  ;;  %v9792_v0 = vadd.f32 %v9791_v63, %v9779_v58  ;;  %v9804_v1 = vpop.f32.mrf.mxu3  ;;  %v9780_v6 = vpop.f32.mrf.mxu1  ;;  %v15257_v58 = vld [vmem:[%s15624_s9 + $0x1b50] sm:$0xff]  ;;  %v15256_v63 = vld [vmem:[%s15624_s9 + $0x1b48] sm:$0xff] }
 0x377   : > { %10043 = vmatpush.bf16.msra.mxu2 %v15237_v45  ;;  %v15267_v45 = vld [vmem:[%s15624_s9 + $0x1ba0] sm:$0xff]  ;;  %v15272_v2 = vld [vmem:[%s15624_s9 + $0x1bc8] sm:$0xff] }
 0x378   : > { %10056 = vmatpush.bf16.msra.mxu3 %v15245_v46  ;;  %v16579_v3 = vadd.f32 %v9804_v1, %v9792_v0  ;;  %v15275_v46 = vld [vmem:[%s15624_s9 + $0x1be0] sm:$0xff]  ;;  %v290_v0 = vld [vmem:[%s15634_s12 + $0xe0] sm:$0xff]  ;;  %v15264_v1 = vld [vmem:[%s15624_s9 + $0x1b88] sm:$0xff] }
 0x379   : > { %10018 = vmatpush.bf16.msra.mxu0 %v15220_v47  ;;  %465 = vst [vmem:[#allocation1] ss:$4 sm:$0xff] %v290_v0  ;;  %v15255_v6 = vld [vmem:[%s15624_s9 + $0x1b40] sm:$0xff] }
 0x37a   : > { %10031 = vmatpush.bf16.msra.mxu1 %v15228_v48  ;;  %v15250_v48 = vld [vmem:[%s15624_s9 + $0x1b18] sm:$0xff] }
 0x37b   : > { %10044 = vmatpush.bf16.msra.mxu2 %v15236_v49  ;;  %v15258_v49 = vld [vmem:[%s15624_s9 + $0x1b58] sm:$0xff] }
 0x37c   : > { %10057 = vmatpush.bf16.msra.mxu3 %v15244_v50  ;;  %v15266_v50 = vld [vmem:[%s15624_s9 + $0x1b98] sm:$0xff] }
 0x37d   : > { %10019 = vmatpush.bf16.msra.mxu0 %v15219_v53  ;;  %v9793_v14 = vpop.f32.mrf.mxu2 }
 0x37e   : > { %10032 = vmatpush.bf16.msra.mxu1 %v15227_v54  ;;  %v9806_v15 = vpop.f32.mrf.mxu3  ;;  %v464_v14 = vld.sshfl [vmem:[#allocation1 + $0x38] sm:$0xff pattern:$0x73625140] }
 0x37f   : > { %10045 = vmatpush.bf16.msra.mxu2 %v15235_v56  ;;  %v15302_v15 = vld [vmem:[%s15624_s9 + $0x1cb8] sm:$0xff] }
 0x380   : > { %10058 = vmatpush.bf16.msra.mxu3 %v15243_v57  ;;  %v15249_v57 = vld [vmem:[%s15624_s9 + $0x1b10] sm:$0xff] }
 0x381   : > { %10020 = vmatpush.bf16.msra.mxu0 %v15218_v59  ;;  %v467_v0 = vld.sshfl [vmem:[#allocation1] sm:$0xff pattern:$0x73625140] }
 0x382   : > { %10033 = vmatpush.bf16.msra.mxu1 %v15226_v60  ;;  %v15265_v60 = vld [vmem:[%s15624_s9 + $0x1b90] sm:$0xff] }
 0x383   : > { %10046 = vmatpush.bf16.msra.mxu2 %v15234_v61  ;;  %v15273_v61 = vld [vmem:[%s15624_s9 + $0x1bd0] sm:$0xff] }
 0x384   : > { %10059 = vmatpush.bf16.msra.mxu3 %v15242_v62  ;;  %v15248_v62 = vld [vmem:[%s15624_s9 + $0x1b08] sm:$0xff] }
 0x385   : > { %10021 = vmatpush.bf16.msra.mxu0 %v15217_v4 }
 0x386   : > { %10034 = vmatpush.bf16.msra.mxu1 %v15225_v5  ;;  %v15247_v5 = vld [vmem:[%s15624_s9 + $0x1b00] sm:$0xff] }
 0x387   : > { %10047 = vmatpush.bf16.msra.mxu2 %v15233_v7  ;;  %v15263_v7 = vld [vmem:[%s15624_s9 + $0x1b80] sm:$0xff] }
 0x388   : > { %10060 = vmatpush.bf16.msra.mxu3 %v15241_v8  ;;  %v15271_v8 = vld [vmem:[%s15624_s9 + $0x1bc0] sm:$0xff] }
 0x389   : > { %10022 = vmatpush.bf16.msra.mxu0 %v15216_v9  ;;  %v15286_v9 = vld [vmem:[%s15624_s9 + $0x1c38] sm:$0xff] }
 0x38a   : > { %10035 = vmatpush.bf16.msra.mxu1 %v15224_v10  ;;  %v15294_v10 = vld [vmem:[%s15624_s9 + $0x1c78] sm:$0xff] }
 0x38b   : > { %10048 = vmatpush.bf16.msra.mxu2 %v15232_v12  ;;  %v463_v12 = vld.sshfl [vmem:[#allocation1 + $0x30] sm:$0xff pattern:$0x73625140] }
 0x38c   : > { %10061 = vmatpush.bf16.msra.mxu3 %v15240_v13  ;;  %v462_v13 = vld.sshfl [vmem:[#allocation1 + $0x28] sm:$0xff pattern:$0x73625140] }
 0x38d   : > { %10023 = vmatpush.bf16.msra.mxu0 %v15215_v16  ;;  %v9817_v40 = vpop.f32.mrf.mxu0  ;;  %v15310_v16 = vld [vmem:[%s15624_s9 + $0x1cf8] sm:$0xff] }
 0x38e   : > { %10036 = vmatpush.bf16.msra.mxu1 %v15223_v17  ;;  %v9818_v41 = vadd.f32 %v9817_v40, %v16579_v3  ;;  %v9830_v44 = vpop.f32.mrf.mxu1  ;;  %v712_v17 = vpack.c.bf16 %v461_v11, %v461_v11  ;;  %v15306_v40 = vld [vmem:[%s15624_s9 + $0x1cd8] sm:$0xff]  ;;  %v15325_v11 = vld [vmem:[%s15624_s9 + $0x1d70] sm:$0xff] }
 0x38f   : > { %10049 = vmatpush.bf16.msra.mxu2 %v15231_v18  ;;  %v714_v18 = vpack.c.bf16 %v463_v12, %v463_v12  ;;  %v15333_v12 = vld [vmem:[%s15624_s9 + $0x1db0] sm:$0xff] }
 0x390   : > { %10062 = vmatpush.bf16.msra.mxu3 %v15239_v19  ;;  %10024 = vmatmul.bf16.vlgmr.msra.gmra.mxu0 %v708_v28  ;;  %v9831_v47 = vadd.f32 %v9830_v44, %v9818_v41  ;;  %v713_v19 = vpack.c.bf16 %v462_v13, %v462_v13  ;;  %v15308_v28 = vld [vmem:[%s15624_s9 + $0x1ce8] sm:$0xff]  ;;  %v15341_v13 = vld [vmem:[%s15624_s9 + $0x1df0] sm:$0xff] }
 0x391   : > { %10068 = vmatpush.bf16.msrb.mxu0 %v15254_v20  ;;  %10037 = vmatmul.bf16.vlgmr.msra.gmra.mxu1 %v709_v30  ;;  %v715_v20 = vpack.c.bf16 %v464_v14, %v464_v14  ;;  %v15316_v14 = vld [vmem:[%s15624_s9 + $0x1d28] sm:$0xff] }
 0x392   : > { %10081 = vmatpush.bf16.msrb.mxu1 %v15262_v21  ;;  %10050 = vmatmul.bf16.vlgmr.msra.gmra.mxu2 %v710_v29  ;;  %v15285_v21 = vld [vmem:[%s15624_s9 + $0x1c30] sm:$0xff] }
 0x393   : > { %10094 = vmatpush.bf16.msrb.mxu2 %v15270_v26  ;;  %10063 = vmatmul.bf16.vlgmr.msra.gmra.mxu3 %v711_v31  ;;  %v15292_v26 = vld [vmem:[%s15624_s9 + $0x1c68] sm:$0xff]  ;;  %v15283_v31 = vld [vmem:[%s15624_s9 + $0x1c20] sm:$0xff] }
 0x394   : > { %10107 = vmatpush.bf16.msrb.mxu3 %v15278_v27  ;;  %v15300_v27 = vld [vmem:[%s15624_s9 + $0x1ca8] sm:$0xff] }
 0x395   : > { %10069 = vmatpush.bf16.msrb.mxu0 %v15253_v32  ;;  %v9843_v52 = vpop.f32.mrf.mxu2  ;;  %v9819_v55 = vpop.f32.mrf.mxu0  ;;  %v15291_v32 = vld [vmem:[%s15624_s9 + $0x1c60] sm:$0xff] }
 0x396   : > { %10082 = vmatpush.bf16.msrb.mxu1 %v15261_v33  ;;  %v9844_v53 = vadd.f32 %v9843_v52, %v9831_v47  ;;  %v9856_v54 = vpop.f32.mrf.mxu3  ;;  %v9832_v59 = vpop.f32.mrf.mxu1  ;;  %v15289_v47 = vld [vmem:[%s15624_s9 + $0x1c50] sm:$0xff]  ;;  %v15288_v52 = vld [vmem:[%s15624_s9 + $0x1c48] sm:$0xff] }
 0x397   : > { %10095 = vmatpush.bf16.msrb.mxu2 %v15269_v34  ;;  %v15299_v34 = vld [vmem:[%s15624_s9 + $0x1ca0] sm:$0xff]  ;;  %v15304_v55 = vld [vmem:[%s15624_s9 + $0x1cc8] sm:$0xff] }
 0x398   : > { %10108 = vmatpush.bf16.msrb.mxu3 %v15277_v35  ;;  %v16615_v56 = vadd.f32 %v9856_v54, %v9844_v53  ;;  %v15307_v35 = vld [vmem:[%s15624_s9 + $0x1ce0] sm:$0xff]  ;;  %v15296_v54 = vld [vmem:[%s15624_s9 + $0x1c88] sm:$0xff] }
 0x399   : > { %10070 = vmatpush.bf16.msrb.mxu0 %v15252_v36  ;;  %v291_v53 = vld [vmem:[%s15634_s12 + $0xe8] sm:$0xff] }
 0x39a   : > { %10083 = vmatpush.bf16.msrb.mxu1 %v15260_v37  ;;  %v15282_v37 = vld [vmem:[%s15624_s9 + $0x1c18] sm:$0xff]  ;;  %466 = vst [vmem:[#allocation1 + $0x20] ss:$4 sm:$0xff] %v291_v53  ;;  %v15287_v59 = vld [vmem:[%s15624_s9 + $0x1c40] sm:$0xff] }
 0x39b   : > { %10096 = vmatpush.bf16.msrb.mxu2 %v15268_v38  ;;  %v15290_v38 = vld [vmem:[%s15624_s9 + $0x1c58] sm:$0xff] }
 0x39c   : > { %10109 = vmatpush.bf16.msrb.mxu3 %v15276_v39  ;;  %v15298_v39 = vld [vmem:[%s15624_s9 + $0x1c98] sm:$0xff] }
 0x39d   : > { %10071 = vmatpush.bf16.msrb.mxu0 %v15251_v42  ;;  %v9845_v3 = vpop.f32.mrf.mxu2 }
 0x39e   : > { %10084 = vmatpush.bf16.msrb.mxu1 %v15259_v43  ;;  %v9858_v4 = vpop.f32.mrf.mxu3  ;;  %v470_v3 = vld.sshfl [vmem:[#allocation1 + $0x18] sm:$0xff pattern:$0x73625140] }
 0x39f   : > { %10097 = vmatpush.bf16.msrb.mxu2 %v15267_v45  ;;  %v15334_v4 = vld [vmem:[%s15624_s9 + $0x1db8] sm:$0xff] }
 0x3a0   : > { %10110 = vmatpush.bf16.msrb.mxu3 %v15275_v46  ;;  %v15281_v46 = vld [vmem:[%s15624_s9 + $0x1c10] sm:$0xff] }
 0x3a1   : > { %10072 = vmatpush.bf16.msrb.mxu0 %v15250_v48  ;;  %v471_v53 = vld.sshfl [vmem:[#allocation1 + $0x20] sm:$0xff pattern:$0x73625140] }
 0x3a2   : > { %10085 = vmatpush.bf16.msrb.mxu1 %v15258_v49  ;;  %v15297_v49 = vld [vmem:[%s15624_s9 + $0x1c90] sm:$0xff] }
 0x3a3   : > { %10098 = vmatpush.bf16.msrb.mxu2 %v15266_v50  ;;  %v15305_v50 = vld [vmem:[%s15624_s9 + $0x1cd0] sm:$0xff] }
 0x3a4   : > { %10111 = vmatpush.bf16.msrb.mxu3 %v15274_v51  ;;  %v15280_v51 = vld [vmem:[%s15624_s9 + $0x1c08] sm:$0xff] }
 0x3a5   : > { %10073 = vmatpush.bf16.msrb.mxu0 %v15249_v57 }
 0x3a6   : > { %10086 = vmatpush.bf16.msrb.mxu1 %v15257_v58  ;;  %v15279_v58 = vld [vmem:[%s15624_s9 + $0x1c00] sm:$0xff] }
 0x3a7   : > { %10099 = vmatpush.bf16.msrb.mxu2 %v15265_v60  ;;  %v15295_v60 = vld [vmem:[%s15624_s9 + $0x1c80] sm:$0xff] }
 0x3a8   : > { %10112 = vmatpush.bf16.msrb.mxu3 %v15273_v61  ;;  %v15303_v61 = vld [vmem:[%s15624_s9 + $0x1cc0] sm:$0xff] }
 0x3a9   : > { %10074 = vmatpush.bf16.msrb.mxu0 %v15248_v62  ;;  %v15318_v62 = vld [vmem:[%s15624_s9 + $0x1d38] sm:$0xff] }
 0x3aa   : > { %10087 = vmatpush.bf16.msrb.mxu1 %v15256_v63  ;;  %v15326_v63 = vld [vmem:[%s15624_s9 + $0x1d78] sm:$0xff] }
 0x3ab   : > { %10100 = vmatpush.bf16.msrb.mxu2 %v15264_v1  ;;  %v469_v1 = vld.sshfl [vmem:[#allocation1 + $0x10] sm:$0xff pattern:$0x73625140] }
 0x3ac   : > { %10113 = vmatpush.bf16.msrb.mxu3 %v15272_v2  ;;  %v468_v2 = vld.sshfl [vmem:[#allocation1 + $0x8] sm:$0xff pattern:$0x73625140] }
 0x3ad   : > { %10075 = vmatpush.bf16.msrb.mxu0 %v15247_v5  ;;  %v9869_v29 = vpop.f32.mrf.mxu0  ;;  %v15342_v5 = vld [vmem:[%s15624_s9 + $0x1df8] sm:$0xff] }
 0x3ae   : > { %10088 = vmatpush.bf16.msrb.mxu1 %v15255_v6  ;;  %v9870_v30 = vadd.f32 %v9869_v29, %v16615_v56  ;;  %v9882_v33 = vpop.f32.mrf.mxu1  ;;  %v716_v6 = vpack.c.bf16 %v467_v0, %v467_v0  ;;  %v15338_v29 = vld [vmem:[%s15624_s9 + $0x1dd8] sm:$0xff]  ;;  %v15357_v0 = vld [vmem:[%s15624_s9 + $0x1e70] sm:$0xff] }
 0x3af   : > { %10101 = vmatpush.bf16.msrb.mxu2 %v15263_v7  ;;  %v718_v7 = vpack.c.bf16 %v469_v1, %v469_v1  ;;  %v15365_v1 = vld [vmem:[%s15624_s9 + $0x1eb0] sm:$0xff] }
 0x3b0   : > { %10114 = vmatpush.bf16.msrb.mxu3 %v15271_v8  ;;  %10076 = vmatmul.bf16.vlgmr.msrb.gmra.mxu0 %v712_v17  ;;  %v9883_v36 = vadd.f32 %v9882_v33, %v9870_v30  ;;  %v717_v8 = vpack.c.bf16 %v468_v2, %v468_v2  ;;  %v15340_v17 = vld [vmem:[%s15624_s9 + $0x1de8] sm:$0xff]  ;;  %v15373_v2 = vld [vmem:[%s15624_s9 + $0x1ef0] sm:$0xff] }
 0x3b1   : > { %10120 = vmatpush.bf16.msra.mxu0 %v15286_v9  ;;  %10089 = vmatmul.bf16.vlgmr.msrb.gmra.mxu1 %v713_v19  ;;  %v719_v9 = vpack.c.bf16 %v470_v3, %v470_v3  ;;  %v15348_v3 = vld [vmem:[%s15624_s9 + $0x1e28] sm:$0xff] }
 0x3b2   : > { %10133 = vmatpush.bf16.msra.mxu1 %v15294_v10  ;;  %10102 = vmatmul.bf16.vlgmr.msrb.gmra.mxu2 %v714_v18  ;;  %v15317_v10 = vld [vmem:[%s15624_s9 + $0x1d30] sm:$0xff] }
 0x3b3   : > { %10146 = vmatpush.bf16.msra.mxu2 %v15302_v15  ;;  %10115 = vmatmul.bf16.vlgmr.msrb.gmra.mxu3 %v715_v20  ;;  %v15324_v15 = vld [vmem:[%s15624_s9 + $0x1d68] sm:$0xff]  ;;  %v15315_v20 = vld [vmem:[%s15624_s9 + $0x1d20] sm:$0xff] }
 0x3b4   : > { %10159 = vmatpush.bf16.msra.mxu3 %v15310_v16  ;;  %v15332_v16 = vld [vmem:[%s15624_s9 + $0x1da8] sm:$0xff] }
 0x3b5   : > { %10121 = vmatpush.bf16.msra.mxu0 %v15285_v21  ;;  %v9895_v41 = vpop.f32.mrf.mxu2  ;;  %v9871_v44 = vpop.f32.mrf.mxu0  ;;  %v15323_v21 = vld [vmem:[%s15624_s9 + $0x1d60] sm:$0xff] }
 0x3b6   : > { %10134 = vmatpush.bf16.msra.mxu1 %v15293_v22  ;;  %v9896_v42 = vadd.f32 %v9895_v41, %v9883_v36  ;;  %v9908_v43 = vpop.f32.mrf.mxu3  ;;  %v9884_v48 = vpop.f32.mrf.mxu1  ;;  %v15321_v36 = vld [vmem:[%s15624_s9 + $0x1d50] sm:$0xff]  ;;  %v15312_v41 = vld [vmem:[%s15624_s9 + $0x1d08] sm:$0xff] }
 0x3b7   : > { %10147 = vmatpush.bf16.msra.mxu2 %v15301_v23  ;;  %v15331_v23 = vld [vmem:[%s15624_s9 + $0x1da0] sm:$0xff]  ;;  %v15336_v44 = vld [vmem:[%s15624_s9 + $0x1dc8] sm:$0xff] }
 0x3b8   : > { %10160 = vmatpush.bf16.msra.mxu3 %v15309_v24  ;;  %v16651_v45 = vadd.f32 %v9908_v43, %v9896_v42  ;;  %v15339_v24 = vld [vmem:[%s15624_s9 + $0x1de0] sm:$0xff]  ;;  %v15320_v42 = vld [vmem:[%s15624_s9 + $0x1d48] sm:$0xff] }
 0x3b9   : > { %10122 = vmatpush.bf16.msra.mxu0 %v15284_v25  ;;  %v15328_v43 = vld [vmem:[%s15624_s9 + $0x1d88] sm:$0xff]  ;;  %v15319_v48 = vld [vmem:[%s15624_s9 + $0x1d40] sm:$0xff] }
 0x3ba   : > { %10135 = vmatpush.bf16.msra.mxu1 %v15292_v26  ;;  %v15314_v26 = vld [vmem:[%s15624_s9 + $0x1d18] sm:$0xff] }
 0x3bb   : > { %10148 = vmatpush.bf16.msra.mxu2 %v15300_v27  ;;  %v15322_v27 = vld [vmem:[%s15624_s9 + $0x1d58] sm:$0xff] }
 0x3bc   : > { %10161 = vmatpush.bf16.msra.mxu3 %v15308_v28  ;;  %v15330_v28 = vld [vmem:[%s15624_s9 + $0x1d98] sm:$0xff] }
 0x3bd   : > { %10123 = vmatpush.bf16.msra.mxu0 %v15283_v31  ;;  %v9897_v56 = vpop.f32.mrf.mxu2 }
 0x3be   : > { %10136 = vmatpush.bf16.msra.mxu1 %v15291_v32  ;;  %v9910_v57 = vpop.f32.mrf.mxu3  ;;  %v474_v56 = vld.sshfl [vmem:[#allocation1 + $0x38] sm:$0xff pattern:$0x73625140] }
 0x3bf   : > { %10149 = vmatpush.bf16.msra.mxu2 %v15299_v34  ;;  %v15366_v57 = vld [vmem:[%s15624_s9 + $0x1eb8] sm:$0xff] }
 0x3c0   : > { %10162 = vmatpush.bf16.msra.mxu3 %v15307_v35  ;;  %v15313_v35 = vld [vmem:[%s15624_s9 + $0x1d10] sm:$0xff] }
 0x3c1   : > { %10124 = vmatpush.bf16.msra.mxu0 %v15282_v37 }
 0x3c2   : > { %10137 = vmatpush.bf16.msra.mxu1 %v15290_v38  ;;  %v15329_v38 = vld [vmem:[%s15624_s9 + $0x1d90] sm:$0xff] }
 0x3c3   : > { %10150 = vmatpush.bf16.msra.mxu2 %v15298_v39  ;;  %v15337_v39 = vld [vmem:[%s15624_s9 + $0x1dd0] sm:$0xff] }
 0x3c4   : > { %10163 = vmatpush.bf16.msra.mxu3 %v15306_v40  ;;  %v292_v40 = vld [vmem:[%s15634_s12 + $0xf0] sm:$0xff] }
 0x3c5   : > { %10125 = vmatpush.bf16.msra.mxu0 %v15281_v46  ;;  %475 = vst [vmem:[#allocation1] ss:$4 sm:$0xff] %v292_v40 }
 0x3c6   : > { %10138 = vmatpush.bf16.msra.mxu1 %v15289_v47  ;;  %v15311_v47 = vld [vmem:[%s15624_s9 + $0x1d00] sm:$0xff] }
 0x3c7   : > { %10151 = vmatpush.bf16.msra.mxu2 %v15297_v49  ;;  %v15327_v49 = vld [vmem:[%s15624_s9 + $0x1d80] sm:$0xff] }
 0x3c8   : > { %10164 = vmatpush.bf16.msra.mxu3 %v15305_v50  ;;  %v15335_v50 = vld [vmem:[%s15624_s9 + $0x1dc0] sm:$0xff] }
 0x3c9   : > { %10126 = vmatpush.bf16.msra.mxu0 %v15280_v51  ;;  %v15350_v51 = vld [vmem:[%s15624_s9 + $0x1e38] sm:$0xff] }
 0x3ca   : > { %10139 = vmatpush.bf16.msra.mxu1 %v15288_v52  ;;  %v15358_v52 = vld [vmem:[%s15624_s9 + $0x1e78] sm:$0xff] }
 0x3cb   : > { %10152 = vmatpush.bf16.msra.mxu2 %v15296_v54  ;;  %v473_v54 = vld.sshfl [vmem:[#allocation1 + $0x30] sm:$0xff pattern:$0x73625140] }
 0x3cc   : > { %10165 = vmatpush.bf16.msra.mxu3 %v15304_v55  ;;  %v472_v55 = vld.sshfl [vmem:[#allocation1 + $0x28] sm:$0xff pattern:$0x73625140] }
 0x3cd   : > { %10127 = vmatpush.bf16.msra.mxu0 %v15279_v58  ;;  %v9921_v18 = vpop.f32.mrf.mxu0  ;;  %v15374_v58 = vld [vmem:[%s15624_s9 + $0x1ef8] sm:$0xff] }
 0x3ce   : > { %10140 = vmatpush.bf16.msra.mxu1 %v15287_v59  ;;  %v9922_v19 = vadd.f32 %v9921_v18, %v16651_v45  ;;  %v9934_v22 = vpop.f32.mrf.mxu1  ;;  %v720_v59 = vpack.c.bf16 %v471_v53, %v471_v53  ;;  %v15370_v18 = vld [vmem:[%s15624_s9 + $0x1ed8] sm:$0xff] }
 0x3cf   : > { %10153 = vmatpush.bf16.msra.mxu2 %v15295_v60  ;;  %v722_v60 = vpack.c.bf16 %v473_v54, %v473_v54  ;;  %v477_v40 = vld.sshfl [vmem:[#allocation1 + $0x8] sm:$0xff pattern:$0x73625140] }
 0x3d0   : > { %10166 = vmatpush.bf16.msra.mxu3 %v15303_v61  ;;  %10128 = vmatmul.bf16.vlgmr.msra.gmra.mxu0 %v716_v6  ;;  %v9935_v25 = vadd.f32 %v9934_v22, %v9922_v19  ;;  %v721_v61 = vpack.c.bf16 %v472_v55, %v472_v55  ;;  %v15372_v6 = vld [vmem:[%s15624_s9 + $0x1ee8] sm:$0xff] }
 0x3d1   : > { %10172 = vmatpush.bf16.msrb.mxu0 %v15318_v62  ;;  %10141 = vmatmul.bf16.vlgmr.msra.gmra.mxu1 %v717_v8  ;;  %v723_v62 = vpack.c.bf16 %v474_v56, %v474_v56 }
 0x3d2   : > { %10185 = vmatpush.bf16.msrb.mxu1 %v15326_v63  ;;  %10154 = vmatmul.bf16.vlgmr.msra.gmra.mxu2 %v718_v7  ;;  %v15349_v63 = vld [vmem:[%s15624_s9 + $0x1e30] sm:$0xff] }
 0x3d3   : > { %10198 = vmatpush.bf16.msrb.mxu2 %v15334_v4  ;;  %10167 = vmatmul.bf16.vlgmr.msra.gmra.mxu3 %v719_v9  ;;  %v15356_v4 = vld [vmem:[%s15624_s9 + $0x1e68] sm:$0xff]  ;;  %v15347_v9 = vld [vmem:[%s15624_s9 + $0x1e20] sm:$0xff] }
 0x3d4   : > { %10211 = vmatpush.bf16.msrb.mxu3 %v15342_v5  ;;  %v15364_v5 = vld [vmem:[%s15624_s9 + $0x1ea8] sm:$0xff] }
 0x3d5   : > { %10173 = vmatpush.bf16.msrb.mxu0 %v15317_v10  ;;  %v9947_v30 = vpop.f32.mrf.mxu2  ;;  %v9923_v33 = vpop.f32.mrf.mxu0  ;;  %v15355_v10 = vld [vmem:[%s15624_s9 + $0x1e60] sm:$0xff] }
 0x3d6   : > { %10186 = vmatpush.bf16.msrb.mxu1 %v15325_v11  ;;  %v9948_v31 = vadd.f32 %v9947_v30, %v9935_v25  ;;  %v9960_v32 = vpop.f32.mrf.mxu3  ;;  %v9936_v37 = vpop.f32.mrf.mxu1  ;;  %v15353_v25 = vld [vmem:[%s15624_s9 + $0x1e50] sm:$0xff]  ;;  %v15352_v30 = vld [vmem:[%s15624_s9 + $0x1e48] sm:$0xff] }
 0x3d7   : > { %10199 = vmatpush.bf16.msrb.mxu2 %v15333_v12  ;;  %v15363_v12 = vld [vmem:[%s15624_s9 + $0x1ea0] sm:$0xff] }
 0x3d8   : > { %10212 = vmatpush.bf16.msrb.mxu3 %v15341_v13  ;;  %v16687_v34 = vadd.f32 %v9960_v32, %v9948_v31  ;;  %v15371_v13 = vld [vmem:[%s15624_s9 + $0x1ee0] sm:$0xff]  ;;  %v15360_v31 = vld [vmem:[%s15624_s9 + $0x1e88] sm:$0xff] }
 0x3d9   : > { %10174 = vmatpush.bf16.msrb.mxu0 %v15316_v14  ;;  %v15368_v32 = vld [vmem:[%s15624_s9 + $0x1ec8] sm:$0xff]  ;;  %v15359_v37 = vld [vmem:[%s15624_s9 + $0x1e80] sm:$0xff] }
 0x3da   : > { %10187 = vmatpush.bf16.msrb.mxu1 %v15324_v15  ;;  %v15346_v15 = vld [vmem:[%s15624_s9 + $0x1e18] sm:$0xff] }
 0x3db   : > { %10200 = vmatpush.bf16.msrb.mxu2 %v15332_v16  ;;  %v15354_v16 = vld [vmem:[%s15624_s9 + $0x1e58] sm:$0xff] }
 0x3dc   : > { %10213 = vmatpush.bf16.msrb.mxu3 %v15340_v17  ;;  %v15362_v17 = vld [vmem:[%s15624_s9 + $0x1e98] sm:$0xff] }
 0x3dd   : > { %10175 = vmatpush.bf16.msrb.mxu0 %v15315_v20  ;;  %v9949_v45 = vpop.f32.mrf.mxu2 }
 0x3de   : > { %10188 = vmatpush.bf16.msrb.mxu1 %v15323_v21  ;;  %v9962_v46 = vpop.f32.mrf.mxu3 }
 0x3df   : > { %10201 = vmatpush.bf16.msrb.mxu2 %v15331_v23 }
 0x3e0   : > { %10214 = vmatpush.bf16.msrb.mxu3 %v15339_v24  ;;  %v15345_v24 = vld [vmem:[%s15624_s9 + $0x1e10] sm:$0xff] }
 0x3e1   : > { %10176 = vmatpush.bf16.msrb.mxu0 %v15314_v26 }
 0x3e2   : > { %10189 = vmatpush.bf16.msrb.mxu1 %v15322_v27  ;;  %v15361_v27 = vld [vmem:[%s15624_s9 + $0x1e90] sm:$0xff] }
 0x3e3   : > { %10202 = vmatpush.bf16.msrb.mxu2 %v15330_v28  ;;  %v15369_v28 = vld [vmem:[%s15624_s9 + $0x1ed0] sm:$0xff] }
 0x3e4   : > { %10215 = vmatpush.bf16.msrb.mxu3 %v15338_v29  ;;  %v15344_v29 = vld [vmem:[%s15624_s9 + $0x1e08] sm:$0xff] }
 0x3e5   : > { %10177 = vmatpush.bf16.msrb.mxu0 %v15313_v35 }
 0x3e6   : > { %10190 = vmatpush.bf16.msrb.mxu1 %v15321_v36  ;;  %v15351_v36 = vld [vmem:[%s15624_s9 + $0x1e40] sm:$0xff] }
 0x3e7   : > { %10203 = vmatpush.bf16.msrb.mxu2 %v15329_v38  ;;  %v15367_v38 = vld [vmem:[%s15624_s9 + $0x1ec0] sm:$0xff] }
 0x3e8   : > { %10216 = vmatpush.bf16.msrb.mxu3 %v15337_v39  ;;  %v476_v39 = vld.sshfl [vmem:[#allocation1] sm:$0xff pattern:$0x73625140] }
 0x3e9   : > { %10178 = vmatpush.bf16.msrb.mxu0 %v15312_v41  ;;  %v478_v41 = vld.sshfl [vmem:[#allocation1 + $0x10] sm:$0xff pattern:$0x73625140] }
 0x3ea   : > { %10191 = vmatpush.bf16.msrb.mxu1 %v15320_v42  ;;  %v479_v42 = vld.sshfl [vmem:[#allocation1 + $0x18] sm:$0xff pattern:$0x73625140]  ;;  %v726_v45 = vpack.c.bf16 %v478_v41, %v478_v41 }
 0x3eb   : > { %10204 = vmatpush.bf16.msrb.mxu2 %v15328_v43  ;;  %v724_v43 = vpack.c.bf16 %v476_v39, %v476_v39  ;;  %v727_v46 = vpack.c.bf16 %v479_v42, %v479_v42 }
 0x3ec   : > { %10217 = vmatpush.bf16.msrb.mxu3 %v15336_v44  ;;  %v725_v44 = vpack.c.bf16 %v477_v40, %v477_v40  ;;  %v261_v40 = vld [vmem:[#allocation2] sm:$0x3] }
 0x3ed   : > { %10179 = vmatpush.bf16.msrb.mxu0 %v15311_v47  ;;  %v9973_v7 = vpop.f32.mrf.mxu0 }
 0x3ee   : > { %10192 = vmatpush.bf16.msrb.mxu1 %v15319_v48  ;;  %v9974_v8 = vadd.f32 %v9973_v7, %v16687_v34  ;;  %v9986_v11 = vpop.f32.mrf.mxu1  ;;  %v15343_v34 = vld [vmem:[%s15624_s9 + $0x1e00] sm:$0xff] }
 0x3ef   : > { %10205 = vmatpush.bf16.msrb.mxu2 %v15327_v49 }
 0x3f0   : > { %10218 = vmatpush.bf16.msrb.mxu3 %v15335_v50  ;;  %10180 = vmatmul.bf16.vlgmr.msrb.gmra.mxu0 %v720_v59  ;;  %v9987_v14 = vadd.f32 %v9986_v11, %v9974_v8 }
 0x3f1   : > { %10224 = vmatpush.bf16.msra.mxu0 %v15350_v51  ;;  %10193 = vmatmul.bf16.vlgmr.msrb.gmra.mxu1 %v721_v61 }
 0x3f2   : > { %10237 = vmatpush.bf16.msra.mxu1 %v15358_v52  ;;  %10206 = vmatmul.bf16.vlgmr.msrb.gmra.mxu2 %v722_v60 }
 0x3f3   : > { %10250 = vmatpush.bf16.msra.mxu2 %v15366_v57  ;;  %10219 = vmatmul.bf16.vlgmr.msrb.gmra.mxu3 %v723_v62 }
 0x3f4   : > { %10263 = vmatpush.bf16.msra.mxu3 %v15374_v58 }
 0x3f5   : > { %10225 = vmatpush.bf16.msra.mxu0 %v15349_v63  ;;  %v9999_v19 = vpop.f32.mrf.mxu2  ;;  %v9975_v22 = vpop.f32.mrf.mxu0 }
 0x3f6   : > { %10238 = vmatpush.bf16.msra.mxu1 %v15357_v0  ;;  %v10000_v20 = vadd.f32 %v9999_v19, %v9987_v14  ;;  %v10012_v21 = vpop.f32.mrf.mxu3  ;;  %v9988_v26 = vpop.f32.mrf.mxu1 }
 0x3f7   : > { %10251 = vmatpush.bf16.msra.mxu2 %v15365_v1 }
 0x3f8   : > { %10264 = vmatpush.bf16.msra.mxu3 %v15373_v2  ;;  %v10013_v23 = vadd.f32 %v10012_v21, %v10000_v20 }
 0x3f9   : > { %10226 = vmatpush.bf16.msra.mxu0 %v15348_v3 }
 0x3fa   : > { %10239 = vmatpush.bf16.msra.mxu1 %v15356_v4 }
 0x3fb   : > { %10252 = vmatpush.bf16.msra.mxu2 %v15364_v5 }
 0x3fc   : > { %10265 = vmatpush.bf16.msra.mxu3 %v15372_v6 }
 0x3fd   : > { %10227 = vmatpush.bf16.msra.mxu0 %v15347_v9  ;;  %v10001_v33 = vpop.f32.mrf.mxu2 }
 0x3fe   : > { %10240 = vmatpush.bf16.msra.mxu1 %v15355_v10  ;;  %v10014_v35 = vpop.f32.mrf.mxu3 }
 0x3ff   : > { %10253 = vmatpush.bf16.msra.mxu2 %v15363_v12 }
 0x400   : > { %10266 = vmatpush.bf16.msra.mxu3 %v15371_v13 }
 0x401   : > { %10228 = vmatpush.bf16.msra.mxu0 %v15346_v15 }
 0x402   : > { %10241 = vmatpush.bf16.msra.mxu1 %v15354_v16 }
 0x403   : > { %10254 = vmatpush.bf16.msra.mxu2 %v15362_v17 }
 0x404   : > { %10267 = vmatpush.bf16.msra.mxu3 %v15370_v18 }
 0x405   : > { %10229 = vmatpush.bf16.msra.mxu0 %v15345_v24 }
 0x406   : > { %10242 = vmatpush.bf16.msra.mxu1 %v15353_v25 }
 0x407   : > { %10255 = vmatpush.bf16.msra.mxu2 %v15361_v27 }
 0x408   : > { %10268 = vmatpush.bf16.msra.mxu3 %v15369_v28 }
 0x409   : > { %10230 = vmatpush.bf16.msra.mxu0 %v15344_v29 }
 0x40a   : > { %10243 = vmatpush.bf16.msra.mxu1 %v15352_v30 }
 0x40b   : > { %10256 = vmatpush.bf16.msra.mxu2 %v15360_v31 }
 0x40c   : > { %10269 = vmatpush.bf16.msra.mxu3 %v15368_v32 }
 0x40d   : > { %10231 = vmatpush.bf16.msra.mxu0 %v15343_v34  ;;  %v10025_v47 = vpop.f32.mrf.mxu0 }
 0x40e   : > { %10244 = vmatpush.bf16.msra.mxu1 %v15351_v36  ;;  %v10026_v48 = vadd.f32 %v10025_v47, %v10013_v23  ;;  %v10038_v49 = vpop.f32.mrf.mxu1 }
 0x40f   : > { %10257 = vmatpush.bf16.msra.mxu2 %v15359_v37 }
 0x410   : > { %10270 = vmatpush.bf16.msra.mxu3 %v15367_v38  ;;  %10232 = vmatmul.bf16.vlgmr.msra.gmra.mxu0 %v724_v43  ;;  %v10039_v50 = vadd.f32 %v10038_v49, %v10026_v48 }
 0x411   : > { %10245 = vmatmul.bf16.vlgmr.msra.gmra.mxu1 %v725_v44 }
 0x412   : > { %10258 = vmatmul.bf16.vlgmr.msra.gmra.mxu2 %v726_v45 }
 0x413   : > { %10271 = vmatmul.bf16.vlgmr.msra.gmra.mxu3 %v727_v46 }
 0x415   : > { %v10051_v51 = vpop.f32.mrf.mxu2  ;;  %v10027_v54 = vpop.f32.mrf.mxu0 }
 0x416   : > { %v10052_v52 = vadd.f32 %v10051_v51, %v10039_v50  ;;  %v10064_v53 = vpop.f32.mrf.mxu3  ;;  %v10040_v56 = vpop.f32.mrf.mxu1 }
 0x418   : > { %v10065_v55 = vadd.f32 %v10064_v53, %v10052_v52 }
 0x41d   : > { %v10053_v57 = vpop.f32.mrf.mxu2 }
 0x41e   : > { %v10066_v58 = vpop.f32.mrf.mxu3 }
 0x42d   : > { %v10077_v59 = vpop.f32.mrf.mxu0 }
 0x42e   : > { %v10078_v60 = vadd.f32 %v10077_v59, %v10065_v55  ;;  %v10090_v61 = vpop.f32.mrf.mxu1 }
 0x430   : > { %v10091_v62 = vadd.f32 %v10090_v61, %v10078_v60 }
 0x435   : > { %v10103_v63 = vpop.f32.mrf.mxu2  ;;  %v10079_v2 = vpop.f32.mrf.mxu0 }
 0x436   : > { %v10104_v0 = vadd.f32 %v10103_v63, %v10091_v62  ;;  %v10116_v1 = vpop.f32.mrf.mxu3  ;;  %v10092_v4 = vpop.f32.mrf.mxu1 }
 0x438   : > { %v10117_v3 = vadd.f32 %v10116_v1, %v10104_v0 }
 0x43d   : > { %v10105_v5 = vpop.f32.mrf.mxu2 }
 0x43e   : > { %v10118_v6 = vpop.f32.mrf.mxu3 }
 0x44d   : > { %v10129_v7 = vpop.f32.mrf.mxu0 }
 0x44e   : > { %v10142_v8 = vpop.f32.mrf.mxu1  ;;  %v10130_v18 = vadd.f32 %v10129_v7, %v10117_v3 }
 0x450   : > { %v10143_v22 = vadd.f32 %v10142_v8, %v10130_v18 }
 0x455   : > { %v10155_v9 = vpop.f32.mrf.mxu2  ;;  %v10131_v11 = vpop.f32.mrf.mxu0 }
 0x456   : > { %v10168_v10 = vpop.f32.mrf.mxu3  ;;  %v10144_v12 = vpop.f32.mrf.mxu1  ;;  %v10156_v23 = vadd.f32 %v10155_v9, %v10143_v22 }
 0x458   : > { %v10169_v26 = vadd.f32 %v10168_v10, %v10156_v23 }
 0x45d   : > { %v10157_v13 = vpop.f32.mrf.mxu2 }
 0x45e   : > { %v10170_v14 = vpop.f32.mrf.mxu3 }
 0x46d   : > { %v10181_v15 = vpop.f32.mrf.mxu0 }
 0x46e   : > { %v10194_v16 = vpop.f32.mrf.mxu1  ;;  %v10182_v27 = vadd.f32 %v10181_v15, %v10169_v26 }
 0x470   : > { %v10195_v28 = vadd.f32 %v10194_v16, %v10182_v27 }
 0x475   : > { %v10207_v17 = vpop.f32.mrf.mxu2  ;;  %v10183_v20 = vpop.f32.mrf.mxu0 }
 0x476   : > { %v10220_v19 = vpop.f32.mrf.mxu3  ;;  %v10196_v21 = vpop.f32.mrf.mxu1  ;;  %v10208_v29 = vadd.f32 %v10207_v17, %v10195_v28 }
 0x478   : > { %v10221_v30 = vadd.f32 %v10220_v19, %v10208_v29 }
 0x47d   : > { %v10209_v24 = vpop.f32.mrf.mxu2 }
 0x47e   : > { %v10222_v25 = vpop.f32.mrf.mxu3 }
 0x48d   : > { %v10233_v31 = vpop.f32.mrf.mxu0 }
 0x48e   : > { %v10246_v32 = vpop.f32.mrf.mxu1  ;;  %v10234_v33 = vadd.f32 %v10233_v31, %v10221_v30 }
 0x490   : > { %v10247_v34 = vadd.f32 %v10246_v32, %v10234_v33 }
 0x495   : > { %v10259_v35 = vpop.f32.mrf.mxu2  ;;  %v10235_v38 = vpop.f32.mrf.mxu0 }
 0x496   : > { %v10272_v36 = vpop.f32.mrf.mxu3  ;;  %v10260_v37 = vadd.f32 %v10259_v35, %v10247_v34  ;;  %v10248_v39 = vpop.f32.mrf.mxu1 }
 0x498   : > { %v10273_v41 = vadd.f32 %v10272_v36, %v10260_v37 }
 0x49a   : > { %v10276_v42 = vadd.f32 %v10273_v41, %v261_v40  ;;  %10281 = sbr.rel (%p14377_p7) target bundleno = 1344 (0x540), region = 52 }
 0x49c   : > { %10277 = vst [vmem:[#allocation2] sm:$0x3] %v10276_v42 }
 0x49d   : > { %v10261_v43 = vpop.f32.mrf.mxu2 }
 0x49e   : > { %v10274_v44 = vpop.f32.mrf.mxu3 }
 0x49f   : > { %v10304_v45 = vld [vmem:[%s16810_s3 + $0x78] sm:$0xff]  ;;  %v10303_v46 = vld [vmem:[%s16810_s3 + $0x70] sm:$0xff]  ;;  %v10302_v47 = vld [vmem:[%s16810_s3 + $0x68] sm:$0xff]  ;;  %vm10329_vm0 = vcmask 33792  }
 0x4a0   : > { %10309 = vmatpush.msra.mxu0 %v10304_v45  ;;  %v10301_v48 = vld [vmem:[%s16810_s3 + $0x60] sm:$0xff]  ;;  %v10300_v49 = vld [vmem:[%s16810_s3 + $0x58] sm:$0xff]  ;;  %v10299_v50 = vld [vmem:[%s16810_s3 + $0x50] sm:$0xff] }
 0x4a1   : > { %v10298_v51 = vld [vmem:[%s16810_s3 + $0x48] sm:$0xff]  ;;  %v10297_v52 = vld [vmem:[%s16810_s3 + $0x40] sm:$0xff]  ;;  %v10296_v53 = vld [vmem:[%s16810_s3 + $0x38] sm:$0xff] }
 0x4a2   : > { %10310 = vmatpush.msra.mxu0 %v10303_v46  ;;  %v10295_v54 = vld [vmem:[%s16810_s3 + $0x30] sm:$0xff]  ;;  %v10294_v55 = vld [vmem:[%s16810_s3 + $0x28] sm:$0xff]  ;;  %v10293_v56 = vld [vmem:[%s16810_s3 + $0x20] sm:$0xff] }
 0x4a3   : > { %v15426_v57 = vld [vmem:[%s16809_s2] ss:$0 sm:$0xff]  ;;  %v10282_v58 = vld [vmem:[#allocation2] sm:$0x3]  ;;  %v10292_v59 = vld [vmem:[%s16810_s3 + $0x18] sm:$0xff] }
 0x4a4   : > { %10311 = vmatpush.msra.mxu0 %v10302_v47  ;;  %v10291_v60 = vld [vmem:[%s16810_s3 + $0x10] sm:$0xff]  ;;  %v10287_v61 = vadd.f32 %v15426_v57, %v10282_v58  ;;  %v10290_v62 = vld [vmem:[%s16810_s3 + $0x8] sm:$0xff]  ;;  %v10289_v63 = vld [vmem:[%s16810_s3] sm:$0xff] }
 0x4a5   : > { %v15427_v1 = vld [vmem:[%s16811_s4] ss:$0 sm:$0xff] }
 0x4a6   : > { %10312 = vmatpush.msra.mxu0 %v10301_v48  ;;  %v10288_v0 = vmax.f32 %v10287_v61, 0.0 }
 0x4a8   : > { %10313 = vmatpush.msra.mxu0 %v10300_v49 }
 0x4aa   : > { %10314 = vmatpush.msra.mxu0 %v10299_v50 }
 0x4ac   : > { %10315 = vmatpush.msra.mxu0 %v10298_v51 }
 0x4ae   : > { %10316 = vmatpush.msra.mxu0 %v10297_v52 }
 0x4b0   : > { %10317 = vmatpush.msra.mxu0 %v10296_v53 }
 0x4b2   : > { %10318 = vmatpush.msra.mxu0 %v10295_v54 }
 0x4b4   : > { %10319 = vmatpush.msra.mxu0 %v10294_v55 }
 0x4b6   : > { %10320 = vmatpush.msra.mxu0 %v10293_v56 }
 0x4b8   : > { %10321 = vmatpush.msra.mxu0 %v10292_v59 }
 0x4ba   : > { %10322 = vmatpush.msra.mxu0 %v10291_v60 }
 0x4bc   : > { %10323 = vmatpush.msra.mxu0 %v10290_v62 }
 0x4be   : > { %10324 = vmatpush.msra.mxu0 %v10289_v63 }
 0x4bf   : > { %10325 = vmatmul.f32.vlgmr.msra.gmra.mxu0 %v10288_v0 }
 0x53c   : > { %v10326_v2 = vpop.f32.mrf.mxu0 }
 0x53d   : > { %v10327_v3 = vadd.f32 %v15427_v1, %v10326_v2 }
 0x53f   : > { %10330 = vst.msk [vmem:[#allocation6] sm:$0x3] %vm10329_vm0, %v10327_v3 }
 0x540 PF: > { %p15388_p9 = scmp.eq.s32.totalorder %s15579_s22, 7  ;;  %s15529_s6 = smov [#allocation6]  }
 0x541   : > { %s10337_s21 = sshll.u32 %s15529_s6, 4  ;;  %s10339_s27 = sshll.u32 %s16812_s5, 4  ;;  %s10338_s21 = int_to_ptr.vmem [resolvable:$true] %s10337_s21  ;;  %s10340_s27 = int_to_ptr.hbm [resolvable:$true] %s10339_s27 }
 0x542   : > { %15380 = dma.vmem_to_hbm [thread:$0]  (%p15388_p9), %s10338_s21, 32, %s10340_s27, [#allocation5]  }
 0x543   : > { %15507 = dma.done.wait (%p15388_p9), [#allocation5], 32  }
 0x544   : > { %15509 = vsyncadd (%p15388_p9), [#allocation5], 4294967264 }
 0x545 PF: > { %p16_p10 = scmp.ge.s32.totalorder %s15582_s23, 10   ;;  %s16815_s18 = smov %s15516_s19 }
 0x546   : > { %s16816_s19 = smov %s15520_s20  ;;  %s16817_s20 = smov %s15592_s26 }
 0x547   : > { %s16818_s21 = smov %s15582_s23  ;;  %18 = sbr.rel (!%p16_p10) target bundleno = 4 (0x4), region = 89 }
 0x54c   :  { %10353 = vsyncpa [#allocation4], 1 }
 0x54d   :  { %10355 = vsyncpa [#allocation4 + $0x1], 1 }
 0x54e   :  { %10356 = vsyncpa [#allocation5], 1 }
 0x54f   :  { %10358 = vsyncpa [#allocation5 + $0x1], 1 }

</bundles_post_ra>
